<compile_context>
chip_gen: v7x
topology: tpu7x:2x2x1
jax: 0.10.0
libtpu: 0.0.40
codegen_flags: <defaults>
</compile_context>

<pallas_src>
import functools
import numpy as np
import jax
import jax.numpy as jnp
from jax.experimental import pallas as pl
from jax.experimental.pallas import tpu as pltpu


# ----------------------------- configuration ------------------------------
CFG = dict(
    image_size=16,
    num_classes=10,
    channels=3,
    dim=32,
    dim_stem=32,
    heads=(2, 4),
    dim_head=16,
    depth=(4, 2),          # stage0 covers all 4 block kinds, stage1 window+grid
    window_size=2,
)

_PAR = pltpu.CompilerParams(dimension_semantics=("parallel",))
_EPS = 1e-5


def _row_block(m):
    """Split rows into two aligned blocks (2-TC parallelism) when possible."""
    if m >= 16 and m % 16 == 0:
        return m // 2
    return m


# ------------------------------ Pallas kernels -----------------------------

def _gelu(x):
    # TODO(synk): PyTorch nn.GELU default is exact erf-GELU; tanh approx used here.
    c = 0.7978845608028654  # sqrt(2/pi)
    return 0.5 * x * (1.0 + jnp.tanh(c * (x + 0.044715 * x * x * x)))


def _layer_norm(x, g, b, eps):
    mu = jnp.mean(x, axis=-1, keepdims=True)
    var = jnp.mean((x - mu) ** 2, axis=-1, keepdims=True)
    return (x - mu) * jax.lax.rsqrt(var + eps) * g + b


def _linear_kernel(x_ref, w_ref, b_ref, o_ref):
    acc = jnp.dot(x_ref[...].astype(jnp.float32), w_ref[...].astype(jnp.float32),
                  preferred_element_type=jnp.float32) + b_ref[...]
    o_ref[...] = acc.astype(o_ref.dtype)


def _ff_kernel(x_ref, g_ref, be_ref, w1_ref, b1_ref, w2_ref, b2_ref, o_ref, *, eps):
    # fused PreNormResidual(FeedForward): LN -> Linear -> GELU -> Linear -> +x
    x = x_ref[...].astype(jnp.float32)
    xn = _layer_norm(x, g_ref[...], be_ref[...], eps)
    h = _gelu(jnp.dot(xn, w1_ref[...], preferred_element_type=jnp.float32) + b1_ref[...])
    y = x + jnp.dot(h, w2_ref[...], preferred_element_type=jnp.float32) + b2_ref[...]
    o_ref[...] = y.astype(o_ref.dtype)


def _block_kernel(x_ref, g1_ref, b1_ref, qkvw_ref, outw_ref, outb_ref, *rest,
                  heads, dim_head, scale, has_bias, has_ff, eps):
    # Fused transformer block:
    #   y = x + OutProj(Attn(LN1(x)))            (PreNormResidual attention)
    #   if has_ff: y = y + FF(LN2(y))            (PreNormResidual feed-forward)
    # All intermediates (qkv, per-head q/k/v, attention probs, head outputs)
    # stay in VMEM / vregs -- no HBM round trips.
    rest = list(rest)
    bias_ref = rest.pop(0) if has_bias else None
    if has_ff:
        g2_ref, b2_ref, w1_ref, bf1_ref, w2_ref, bf2_ref = rest[:6]
        rest = rest[6:]
    (o_ref,) = rest

    blk, n, d = x_ref.shape
    inner = heads * dim_head

    x3 = x_ref[...].astype(jnp.float32)
    x2 = x3.reshape(blk * n, d)                                   # per-token rows

    xn = _layer_norm(x2, g1_ref[...], b1_ref[...], eps)
    qkv = jnp.dot(xn, qkvw_ref[...].astype(jnp.float32),
                  preferred_element_type=jnp.float32)             # (blk*n, 3*inner)

    outw = outw_ref[...].astype(jnp.float32)
    y = x2 + outb_ref[...]                                        # residual + out bias

    for h in range(heads):
        q = qkv[:, h * dim_head:(h + 1) * dim_head].reshape(blk, n, dim_head) * scale
        k = qkv[:, inner + h * dim_head: inner + (h + 1) * dim_head].reshape(blk, n, dim_head)
        v = qkv[:, 2 * inner + h * dim_head: 2 * inner + (h + 1) * dim_head].reshape(blk, n, dim_head)
        s = jnp.einsum('bqd,bkd->bqk', q, k, preferred_element_type=jnp.float32)
        if has_bias:
            s = s + bias_ref[h].astype(jnp.float32)               # (n, n) broadcast over blk
        m = jnp.max(s, axis=-1, keepdims=True)
        p = jnp.exp(s - m)
        p = p * pl.reciprocal(jnp.sum(p, axis=-1, keepdims=True), approx=True)
        oh = jnp.einsum('bqk,bkd->bqd', p, v, preferred_element_type=jnp.float32)
        # per-head slice of the output projection (avoids an in-kernel lane concat)
        y = y + jnp.dot(oh.reshape(blk * n, dim_head),
                        outw[h * dim_head:(h + 1) * dim_head, :],
                        preferred_element_type=jnp.float32)

    if has_ff:
        yn = _layer_norm(y, g2_ref[...], b2_ref[...], eps)
        hmid = _gelu(jnp.dot(yn, w1_ref[...], preferred_element_type=jnp.float32) + bf1_ref[...])
        y = y + jnp.dot(hmid, w2_ref[...], preferred_element_type=jnp.float32) + bf2_ref[...]

    o_ref[...] = y.reshape(blk, n, d).astype(o_ref.dtype)


def _gate_head_kernel(x_ref, g_ref, be_ref, cw_ref, cb_ref, hw_ref, hb_ref, o_ref, *, eps):
    # Fused tail: LayerNorm -> grouped full-window conv -> flatten -> head Linear.
    # conv weights are stored (K, P, C): cw[k, p, c] == W_pt[c*K+k, 0, p//ws, p%ws]
    # head weights are stored (K, C, ncls): hw[k, c, :] == W_head[c*K+k, :]
    x = x_ref[...].astype(jnp.float32)                            # (b, P, C)
    xn = _layer_norm(x, g_ref[...], be_ref[...], eps)
    logits = hb_ref[...].astype(jnp.float32)                      # (1, ncls)
    K = cw_ref.shape[0]
    for k_i in range(K):
        wk = cw_ref[k_i].astype(jnp.float32)                      # (P, C)
        gk = jnp.sum(xn * wk[None, :, :], axis=1)                 # (b, C)
        gk = gk + cb_ref[k_i:k_i + 1, :].astype(jnp.float32)      # (b, C) + (1, C)
        logits = logits + jnp.dot(gk, hw_ref[k_i].astype(jnp.float32),
                                  preferred_element_type=jnp.float32)
    o_ref[...] = logits.astype(o_ref.dtype)


# ------------------------------ kernel wrappers -----------------------------

def pallas_linear(x, w, b):
    m, k = x.shape
    n = w.shape[1]
    bm = _row_block(m)
    grid = (pl.cdiv(m, bm),)
    return pl.pallas_call(
        _linear_kernel,
        out_shape=jax.ShapeDtypeStruct((m, n), x.dtype),
        grid_spec=pltpu.PrefetchScalarGridSpec(
            num_scalar_prefetch=0, grid=grid,
            in_specs=[pl.BlockSpec((bm, k), lambda i: (i, 0)),
                      pl.BlockSpec((k, n), lambda i: (0, 0)),
                      pl.BlockSpec((1, n), lambda i: (0, 0))],
            out_specs=pl.BlockSpec((bm, n), lambda i: (i, 0))),
        compiler_params=_PAR,
    )(x, w, b.reshape(1, n))


def pallas_feed_forward(x2, p):
    m, d = x2.shape
    hid = p["w1"].shape[1]
    bm = _row_block(m)
    grid = (pl.cdiv(m, bm),)
    return pl.pallas_call(
        functools.partial(_ff_kernel, eps=_EPS),
        out_shape=jax.ShapeDtypeStruct((m, d), x2.dtype),
        grid_spec=pltpu.PrefetchScalarGridSpec(
            num_scalar_prefetch=0, grid=grid,
            in_specs=[pl.BlockSpec((bm, d), lambda i: (i, 0)),
                      pl.BlockSpec((1, d), lambda i: (0, 0)),
                      pl.BlockSpec((1, d), lambda i: (0, 0)),
                      pl.BlockSpec((d, hid), lambda i: (0, 0)),
                      pl.BlockSpec((1, hid), lambda i: (0, 0)),
                      pl.BlockSpec((hid, d), lambda i: (0, 0)),
                      pl.BlockSpec((1, d), lambda i: (0, 0))],
            out_specs=pl.BlockSpec((bm, d), lambda i: (i, 0))),
        compiler_params=_PAR,
    )(x2, p["ln_g"].reshape(1, d), p["ln_b"].reshape(1, d),
      p["w1"], p["b1"].reshape(1, hid), p["w2"], p["b2"].reshape(1, d))


def pallas_attention_block(x, ap, ffp, *, heads, dim_head, bias):
    """Fused PreNormResidual(Attention) [+ PreNormResidual(FeedForward)] per window."""
    bw, n, d = x.shape
    inner = heads * dim_head
    scale = dim_head ** -0.5
    has_bias = bias is not None
    has_ff = ffp is not None
    block_b = bw // 2 if (bw % 2 == 0 and bw >= 2) else bw       # grid >=2 for 2-TC chips
    grid = (pl.cdiv(bw, block_b),)

    args = [x, ap["ln_g"].reshape(1, d), ap["ln_b"].reshape(1, d),
            ap["qkv_w"], ap["out_w"], ap["out_b"].reshape(1, d)]
    in_specs = [pl.BlockSpec((block_b, n, d), lambda i: (i, 0, 0)),
                pl.BlockSpec((1, d), lambda i: (0, 0)),
                pl.BlockSpec((1, d), lambda i: (0, 0)),
                pl.BlockSpec((d, 3 * inner), lambda i: (0, 0)),
                pl.BlockSpec((inner, d), lambda i: (0, 0)),
                pl.BlockSpec((1, d), lambda i: (0, 0))]
    if has_bias:
        args.append(bias)
        in_specs.append(pl.BlockSpec((heads, n, n), lambda i: (0, 0, 0)))  # resident
    if has_ff:
        hid = ffp["w1"].shape[1]
        args += [ffp["ln_g"].reshape(1, d), ffp["ln_b"].reshape(1, d),
                 ffp["w1"], ffp["b1"].reshape(1, hid),
                 ffp["w2"], ffp["b2"].reshape(1, d)]
        in_specs += [pl.BlockSpec((1, d), lambda i: (0, 0)),
                     pl.BlockSpec((1, d), lambda i: (0, 0)),
                     pl.BlockSpec((d, hid), lambda i: (0, 0)),
                     pl.BlockSpec((1, hid), lambda i: (0, 0)),
                     pl.BlockSpec((hid, d), lambda i: (0, 0)),
                     pl.BlockSpec((1, d), lambda i: (0, 0))]

    kern = functools.partial(_block_kernel, heads=heads, dim_head=dim_head,
                             scale=scale, has_bias=has_bias, has_ff=has_ff, eps=_EPS)
    return pl.pallas_call(
        kern,
        out_shape=jax.ShapeDtypeStruct((bw, n, d), x.dtype),
        grid_spec=pltpu.PrefetchScalarGridSpec(
            num_scalar_prefetch=0, grid=grid,
            in_specs=in_specs,
            out_specs=pl.BlockSpec((block_b, n, d), lambda i: (i, 0, 0))),
        compiler_params=_PAR,
    )(*args)


def pallas_gate_head(x, g, h):
    b, s, d = x.shape
    ncls = h["w"].shape[-1]
    return pl.pallas_call(
        functools.partial(_gate_head_kernel, eps=_EPS),
        out_shape=jax.ShapeDtypeStruct((b, ncls), x.dtype),
        grid_spec=pltpu.PrefetchScalarGridSpec(
            num_scalar_prefetch=0, grid=(1,),
            in_specs=[pl.BlockSpec((b, s, d), lambda i: (0, 0, 0)),
                      pl.BlockSpec((1, d), lambda i: (0, 0)),
                      pl.BlockSpec((1, d), lambda i: (0, 0)),
                      pl.BlockSpec(g["conv_w"].shape, lambda i: (0, 0, 0)),
                      pl.BlockSpec(g["conv_b"].shape, lambda i: (0, 0)),
                      pl.BlockSpec(h["w"].shape, lambda i: (0, 0, 0)),
                      pl.BlockSpec((1, ncls), lambda i: (0, 0))],
            out_specs=pl.BlockSpec((b, ncls), lambda i: (0, 0))),
        compiler_params=_PAR,
    )(x, g["ln_g"].reshape(1, d), g["ln_b"].reshape(1, d),
      g["conv_w"], g["conv_b"], h["w"], h["b"].reshape(1, ncls))


# ------------------------- einops rearranges (jnp) --------------------------
# Pure layout plumbing (no compute); kept out of kernels.

def _win_in(x, ws, wr):        # 'b (x w1 y w2) d -> (b x y) (w1 w2) d'
    b, _, d = x.shape
    x = x.reshape(b, wr, ws, wr, ws, d).transpose(0, 1, 3, 2, 4, 5)
    return x.reshape(b * wr * wr, ws * ws, d)

def _win_out(x, ws, wr, b):    # '(b x y) (w1 w2) d -> b (x w1 y w2) d'
    d = x.shape[-1]
    x = x.reshape(b, wr, wr, ws, ws, d).transpose(0, 1, 3, 2, 4, 5)
    return x.reshape(b, (wr * ws) ** 2, d)

def _grid_in(x, ws, wr):       # 'b (w1 x w2 y) d -> (b x y) (w1 w2) d'
    b, _, d = x.shape
    x = x.reshape(b, ws, wr, ws, wr, d).transpose(0, 2, 4, 1, 3, 5)
    return x.reshape(b * wr * wr, ws * ws, d)

def _grid_out(x, ws, wr, b):   # '(b x y) (w1 w2) d -> b (w1 x w2 y) d'
    d = x.shape[-1]
    x = x.reshape(b, wr, wr, ws, ws, d).transpose(0, 3, 1, 4, 2, 5)
    return x.reshape(b, (wr * ws) ** 2, d)

def _win_ch_in(x, ws, wr):     # 'b (x w1 y w2) d -> (b x y) d (w1 w2)'
    b, _, d = x.shape
    x = x.reshape(b, wr, ws, wr, ws, d).transpose(0, 1, 3, 5, 2, 4)
    return x.reshape(b * wr * wr, d, ws * ws)

def _win_ch_out(x, ws, wr, b): # '(b x y) d (w1 w2) -> b d (x w1 y w2)'
    d = x.shape[1]
    x = x.reshape(b, wr, wr, d, ws, ws).transpose(0, 3, 1, 4, 2, 5)
    return x.reshape(b, d, (wr * ws) ** 2)

def _grid_ch_in(x, ws, wr):    # 'b (w1 x w2 y) d -> (b x y) d (w1 w2)'
    b, _, d = x.shape
    x = x.reshape(b, ws, wr, ws, wr, d).transpose(0, 2, 4, 5, 1, 3)
    return x.reshape(b * wr * wr, d, ws * ws)

def _grid_ch_out(x, ws, wr, b):  # '(b x y) d (w1 w2) -> b d (w1 x w2 y)'
    d = x.shape[1]
    x = x.reshape(b, wr, wr, d, ws, ws).transpose(0, 3, 4, 1, 5, 2)
    return x.reshape(b, d, (wr * ws) ** 2)

def _merge_first(x, h):        # 'b d (h p1) (w p2) -> b (h w) (p1 p2 d)'
    b, d = x.shape[0], x.shape[1]
    x = x.reshape(b, d, h, 2, h, 2).transpose(0, 2, 4, 3, 5, 1)
    return x.reshape(b, h * h, 4 * d)

def _merge_later(x, h):        # 'b (h p1 w p2) d -> b (h w) (p1 p2 d)'
    b, _, d = x.shape
    x = x.reshape(b, h, 2, h, 2, d).transpose(0, 1, 3, 2, 4, 5)
    return x.reshape(b, h * h, 4 * d)


# ------------------------------- model blocks -------------------------------

def _attention_block(x, p, *, kind, ws, wr, heads, dim_head):
    b = x.shape[0]
    channel = kind in ("wchannel", "gchannel")
    if kind == "window":
        xr = _win_in(x, ws, wr)
    elif kind == "grid":
        xr = _grid_in(x, ws, wr)
    elif kind == "wchannel":
        xr = _win_ch_in(x, ws, wr)
    else:
        xr = _grid_ch_in(x, ws, wr)

    bias = None
    if not channel:
        # reference: dots*scale + bias*scale -> pre-scale the (H, N, N) bias once.
        scale = dim_head ** -0.5
        table = p["attn"]["rel_bias"]                      # ((2ws-1)^2, H)
        idx = p["attn"]["rel_idx"]                         # (ws^2, ws^2)
        bias = jnp.take(table, idx.reshape(-1), axis=0).reshape(ws * ws, ws * ws, heads)
        bias = bias.transpose(2, 0, 1) * scale             # (H, N, N)

    if not channel:
        # The FF in these blocks is per-token over d, so it commutes with the
        # token-permuting 'expose' rearrange -> fuse it into the same kernel.
        y = pallas_attention_block(xr, p["attn"], p["ff"], heads=heads,
                                   dim_head=dim_head, bias=bias)
        return _win_out(y, ws, wr, b) if kind == "window" else _grid_out(y, ws, wr, b)

    # channel blocks: FF mixes tokens across windows, so it runs after 'expose'.
    y = pallas_attention_block(xr, p["attn"], None, heads=heads,
                               dim_head=dim_head, bias=None)
    ye = _win_ch_out(y, ws, wr, b) if kind == "wchannel" else _grid_ch_out(y, ws, wr, b)
    bb, dd, ss = ye.shape
    ym = pallas_feed_forward(ye.reshape(bb * dd, ss), p["ff"]).reshape(bb, dd, ss)
    return ym.transpose(0, 2, 1)                           # recover: b d s -> b s d


def _stem(x, p):
    b, c, hh, ww = x.shape
    h, w = hh // 2, ww // 2
    # 'b d (h p1) (w p2) -> b (p1 p2 d) h w'
    xr = x.reshape(b, c, h, 2, w, 2).transpose(0, 3, 5, 1, 2, 4).reshape(b, 4 * c, h, w)
    cin = 4 * c
    # 3x3 conv, padding=1 via im2col (layout plumbing) + Pallas matmul
    xp = jnp.pad(xr, ((0, 0), (0, 0), (1, 1), (1, 1)))
    cols = jnp.stack([xp[:, :, kh:kh + h, kw:kw + w]
                      for kh in range(3) for kw in range(3)], axis=2)   # (b,cin,9,h,w)
    cols = cols.transpose(0, 3, 4, 1, 2).reshape(b * h * w, cin * 9)
    kpad = p["w"].shape[0]                                  # weight rows padded to 128
    if kpad > cin * 9:
        cols = jnp.pad(cols, ((0, 0), (0, kpad - cin * 9)))
    y = pallas_linear(cols, p["w"], p["b"])
    dim_stem = p["w"].shape[1]
    return y.reshape(b, h, w, dim_stem).transpose(0, 3, 1, 2)


def selfvit_forward(params, x, cfg):
    ws = cfg["window_size"]
    heads = cfg["heads"]
    dim_head = cfg["dim_head"]
    depth = cfg["depth"]
    num_stages = len(depth)
    size = [cfg["image_size"] // 2 ** (i + 2) for i in range(num_stages)]
    kinds = ("window", "grid", "wchannel", "gchannel")

    x = _stem(x, params["stem"])                                      # (b, dim_stem, 2*s0, 2*s0)
    for i in range(num_stages):
        st = params["stages"][i]
        xm = _merge_first(x, size[0]) if i == 0 else _merge_later(x, size[i])
        b, s, k = xm.shape
        x = pallas_linear(xm.reshape(b * s, k), st["down_w"], st["down_b"]).reshape(b, s, -1)
        wr = size[i] // ws
        for j in range(depth[i]):
            x = _attention_block(x, st["blocks"][j], kind=kinds[j % 4],
                                 ws=ws, wr=wr, heads=heads[i], dim_head=dim_head)

    # fused tail: LayerNorm + grouped full-window conv + head
    return pallas_gate_head(x, params["gate"], params["head"])


# -------------------------------- parameters --------------------------------

def _rel_pos_indices(ws):
    pos = np.arange(ws)
    gi, gj = np.meshgrid(pos, pos, indexing="ij")
    grid = np.stack([gi, gj], axis=0).reshape(2, -1).T
    rel = grid[:, None, :] - grid[None, :, :] + (ws - 1)
    return (rel[..., 0] * (2 * ws - 1) + rel[..., 1]).astype(np.int32)


def init_params(key, cfg):
    channels, dim, dim_stem = cfg["channels"], cfg["dim"], cfg["dim_stem"]
    ws, heads, dim_head = cfg["window_size"], cfg["heads"], cfg["dim_head"]
    depth, num_classes = cfg["depth"], cfg["num_classes"]
    num_stages = len(depth)
    dims = [2 ** i * dim for i in range(num_stages)]
    size = [cfg["image_size"] // 2 ** (i + 2) for i in range(num_stages)]

    keys = iter(jax.random.split(key, 1024))
    nrm = lambda shape, scale=0.02: scale * jax.random.normal(next(keys), shape, jnp.float32)
    zeros = lambda shape: jnp.zeros(shape, jnp.float32)
    ones = lambda shape: jnp.ones(shape, jnp.float32)
    rel_idx = jnp.asarray(_rel_pos_indices(ws))

    def attn_params(input_dim, n_heads, with_bias):
        inner = n_heads * dim_head
        p = dict(ln_g=ones((input_dim,)), ln_b=zeros((input_dim,)),
                 qkv_w=nrm((input_dim, inner * 3)),
                 out_w=nrm((inner, input_dim)), out_b=zeros((input_dim,)))
        if with_bias:
            p["rel_bias"] = nrm(((2 * ws - 1) ** 2, n_heads))
            p["rel_idx"] = rel_idx
        return p

    def ff_params(d):
        hid = int(d * 4)
        return dict(ln_g=ones((d,)), ln_b=zeros((d,)),
                    w1=nrm((d, hid)), b1=zeros((hid,)),
                    w2=nrm((hid, d)), b2=zeros((d,)))

    # stem conv weight as im2col matrix, K padded to a multiple of 128 (zero rows).
    kdim = channels * 4 * 9
    kpad = ((kdim + 127) // 128) * 128
    stem_w = jnp.pad(nrm((kdim, dim_stem)), ((0, kpad - kdim), (0, 0)))
    stem = dict(w=stem_w, b=zeros((dim_stem,)))

    stages = []
    for i in range(num_stages):
        in_dim = dim_stem * 4 if i == 0 else dims[i - 1] * 4
        st = dict(down_w=nrm((in_dim, dims[i])), down_b=zeros((dims[i],)), blocks=[])
        wr = size[i] // ws
        for j in range(depth[i]):
            kind = ("window", "grid", "wchannel", "gchannel")[j % 4]
            channel = kind in ("wchannel", "gchannel")
            a_dim = dims[i] if not channel else ws * ws
            ffdim = dims[i] if not channel else ws * ws * wr * wr
            st["blocks"].append(dict(attn=attn_params(a_dim, heads[i], not channel),
                                     ff=ff_params(ffdim)))
        stages.append(st)

    # gate grouped conv stored as (K=4, P=ws*ws, C); bias as (K, C).
    # (Equivalent to PyTorch Conv2d(C, 4C, ws, groups=C): conv_w[k,p,c] = W[c*4+k,0,p//ws,p%ws])
    gate = dict(ln_g=ones((dims[-1],)), ln_b=zeros((dims[-1],)),
                conv_w=nrm((4, ws * ws, dims[-1])), conv_b=zeros((4, dims[-1])))
    # head weight stored as (K=4, C, num_classes): hw[k,c,:] = W_head[c*4+k,:]
    head = dict(w=nrm((4, dims[-1], num_classes)), b=zeros((num_classes,)))
    return dict(stem=stem, stages=stages, gate=gate, head=head)


# ----------------------------------- main ------------------------------------

if __name__ == "__main__":
    key = jax.random.PRNGKey(0)
    kp, kx = jax.random.split(key)
    params = init_params(kp, CFG)
    x = jax.random.normal(kx, (2, CFG["channels"], CFG["image_size"], CFG["image_size"]),
                          dtype=jnp.float32)

    fwd = jax.jit(functools.partial(selfvit_forward, cfg=CFG))
    logits = fwd(params, x)
    logits = jax.block_until_ready(logits)

    assert logits.shape == (2, CFG["num_classes"]), logits.shape
    assert bool(jnp.all(jnp.isfinite(logits)))
    print("KERNEL_OK")
</pallas_src>

<mosaic_0001>
module attributes {stable_mosaic.version = 11 : i64} {
  func.func @_linear_kernel(%arg0: i32, %arg1: memref<64x128xf32, #tpu.memory_space<vmem>>, %arg2: memref<128x32xf32, #tpu.memory_space<vmem>>, %arg3: memref<1x32xf32, #tpu.memory_space<vmem>>, %arg4: memref<64x32xf32, #tpu.memory_space<vmem>>) attributes {dimension_semantics = [#tpu.dimension_semantics<parallel>], iteration_bounds = array<i64: 2>, scalar_prefetch = 0 : i64, scratch_operands = 0 : i64, tpu.core_type = #tpu.core_type<tc>, window_params = [{transform_indices = @transform_0, window_bounds = array<i64: 64, 128>}, {pipeline_mode = #tpu.pipeline_mode<synchronous>, transform_indices = @transform_1, window_bounds = array<i64: 128, 32>}, {pipeline_mode = #tpu.pipeline_mode<synchronous>, transform_indices = @transform_2, window_bounds = array<i64: 1, 32>}, {transform_indices = @transform_3, window_bounds = array<i64: 64, 32>}]} {
    %c0 = arith.constant 0 : index
    %c0_0 = arith.constant 0 : index
    %0 = vector.load %arg1[%c0, %c0_0] : memref<64x128xf32, #tpu.memory_space<vmem>>, vector<64x128xf32>
    %c0_1 = arith.constant 0 : index
    %c0_2 = arith.constant 0 : index
    %1 = vector.load %arg2[%c0_1, %c0_2] : memref<128x32xf32, #tpu.memory_space<vmem>>, vector<128x32xf32>
    %cst = arith.constant dense<0.000000e+00> : vector<64x32xf32>
    %2 = tpu.matmul %0, %1, %cst {dimension_numbers = #tpu.dot_dimension_numbers<[1], [0], [0], [1], [0, 0, 1, 1], [], []>} : vector<64x128xf32>, vector<128x32xf32>, vector<64x32xf32> -> vector<64x32xf32>
    %c0_3 = arith.constant 0 : index
    %c0_4 = arith.constant 0 : index
    %3 = vector.load %arg3[%c0_3, %c0_4] : memref<1x32xf32, #tpu.memory_space<vmem>>, vector<1x32xf32>
    %4 = vector.broadcast %3 : vector<1x32xf32> to vector<64x32xf32>
    %5 = arith.addf %2, %4 : vector<64x32xf32>
    %c0_5 = arith.constant 0 : index
    %c0_6 = arith.constant 0 : index
    %6 = vector.load %arg4[%c0_5, %c0_6] : memref<64x32xf32, #tpu.memory_space<vmem>>, vector<64x32xf32>
    tpu.vector_store %arg4[%c0_5, %c0_6], %5 {strides = array<i32>} : memref<64x32xf32, #tpu.memory_space<vmem>>, vector<64x32xf32>,
    return
  }
  func.func @transform_0(%arg0: i32) -> (i32, i32) {
    %c0_i32 = arith.constant 0 : i32
    %c0_i32_0 = arith.constant 0 : i32
    return %arg0, %c0_i32 : i32, i32
  }
  func.func @transform_1(%arg0: i32) -> (i32, i32) {
    %c0_i32 = arith.constant 0 : i32
    %c0_i32_0 = arith.constant 0 : i32
    %c0_i32_1 = arith.constant 0 : i32
    return %c0_i32, %c0_i32_0 : i32, i32
  }
  func.func @transform_2(%arg0: i32) -> (i32, i32) {
    %c0_i32 = arith.constant 0 : i32
    %c0_i32_0 = arith.constant 0 : i32
    %c0_i32_1 = arith.constant 0 : i32
    return %c0_i32, %c0_i32_0 : i32, i32
  }
  func.func @transform_3(%arg0: i32) -> (i32, i32) {
    %c0_i32 = arith.constant 0 : i32
    %c0_i32_0 = arith.constant 0 : i32
    return %arg0, %c0_i32 : i32, i32
  }
}

module attributes {stable_mosaic.version = 11 : i64} {
  func.func @_linear_kernel(%arg0: i32, %arg1: memref<16x128xf32, #tpu.memory_space<vmem>>, %arg2: memref<128x32xf32, #tpu.memory_space<vmem>>, %arg3: memref<1x32xf32, #tpu.memory_space<vmem>>, %arg4: memref<16x32xf32, #tpu.memory_space<vmem>>) attributes {dimension_semantics = [#tpu.dimension_semantics<parallel>], iteration_bounds = array<i64: 2>, scalar_prefetch = 0 : i64, scratch_operands = 0 : i64, tpu.core_type = #tpu.core_type<tc>, window_params = [{transform_indices = @transform_0, window_bounds = array<i64: 16, 128>}, {pipeline_mode = #tpu.pipeline_mode<synchronous>, transform_indices = @transform_1, window_bounds = array<i64: 128, 32>}, {pipeline_mode = #tpu.pipeline_mode<synchronous>, transform_indices = @transform_2, window_bounds = array<i64: 1, 32>}, {transform_indices = @transform_3, window_bounds = array<i64: 16, 32>}]} {
    %c0 = arith.constant 0 : index
    %c0_0 = arith.constant 0 : index
    %0 = vector.load %arg1[%c0, %c0_0] : memref<16x128xf32, #tpu.memory_space<vmem>>, vector<16x128xf32>
    %c0_1 = arith.constant 0 : index
    %c0_2 = arith.constant 0 : index
    %1 = vector.load %arg2[%c0_1, %c0_2] : memref<128x32xf32, #tpu.memory_space<vmem>>, vector<128x32xf32>
    %cst = arith.constant dense<0.000000e+00> : vector<16x32xf32>
    %2 = tpu.matmul %0, %1, %cst {dimension_numbers = #tpu.dot_dimension_numbers<[1], [0], [0], [1], [0, 0, 1, 1], [], []>} : vector<16x128xf32>, vector<128x32xf32>, vector<16x32xf32> -> vector<16x32xf32>
    %c0_3 = arith.constant 0 : index
    %c0_4 = arith.constant 0 : index
    %3 = vector.load %arg3[%c0_3, %c0_4] : memref<1x32xf32, #tpu.memory_space<vmem>>, vector<1x32xf32>
    %4 = vector.broadcast %3 : vector<1x32xf32> to vector<16x32xf32>
    %5 = arith.addf %2, %4 : vector<16x32xf32>
    %c0_5 = arith.constant 0 : index
    %c0_6 = arith.constant 0 : index
    %6 = vector.load %arg4[%c0_5, %c0_6] : memref<16x32xf32, #tpu.memory_space<vmem>>, vector<16x32xf32>
    tpu.vector_store %arg4[%c0_5, %c0_6], %5 {strides = array<i32>} : memref<16x32xf32, #tpu.memory_space<vmem>>, vector<16x32xf32>,
    return
  }
  func.func @transform_0(%arg0: i32) -> (i32, i32) {
    %c0_i32 = arith.constant 0 : i32
    %c0_i32_0 = arith.constant 0 : i32
    return %arg0, %c0_i32 : i32, i32
  }
  func.func @transform_1(%arg0: i32) -> (i32, i32) {
    %c0_i32 = arith.constant 0 : i32
    %c0_i32_0 = arith.constant 0 : i32
    %c0_i32_1 = arith.constant 0 : i32
    return %c0_i32, %c0_i32_0 : i32, i32
  }
  func.func @transform_2(%arg0: i32) -> (i32, i32) {
    %c0_i32 = arith.constant 0 : i32
    %c0_i32_0 = arith.constant 0 : i32
    %c0_i32_1 = arith.constant 0 : i32
    return %c0_i32, %c0_i32_0 : i32, i32
  }
  func.func @transform_3(%arg0: i32) -> (i32, i32) {
    %c0_i32 = arith.constant 0 : i32
    %c0_i32_0 = arith.constant 0 : i32
    return %arg0, %c0_i32 : i32, i32
  }
}

module attributes {stable_mosaic.version = 11 : i64} {
  func.func @_block_kernel(%arg0: i32, %arg1: memref<4x4x32xf32, #tpu.memory_space<vmem>>, %arg2: memref<1x32xf32, #tpu.memory_space<vmem>>, %arg3: memref<1x32xf32, #tpu.memory_space<vmem>>, %arg4: memref<32x96xf32, #tpu.memory_space<vmem>>, %arg5: memref<32x32xf32, #tpu.memory_space<vmem>>, %arg6: memref<1x32xf32, #tpu.memory_space<vmem>>, %arg7: memref<2x4x4xf32, #tpu.memory_space<vmem>>, %arg8: memref<1x32xf32, #tpu.memory_space<vmem>>, %arg9: memref<1x32xf32, #tpu.memory_space<vmem>>, %arg10: memref<32x128xf32, #tpu.memory_space<vmem>>, %arg11: memref<1x128xf32, #tpu.memory_space<vmem>>, %arg12: memref<128x32xf32, #tpu.memory_space<vmem>>, %arg13: memref<1x32xf32, #tpu.memory_space<vmem>>, %arg14: memref<4x4x32xf32, #tpu.memory_space<vmem>>) attributes {dimension_semantics = [#tpu.dimension_semantics<parallel>], iteration_bounds = array<i64: 2>, scalar_prefetch = 0 : i64, scratch_operands = 0 : i64, tpu.core_type = #tpu.core_type<tc>, window_params = [{transform_indices = @transform_0, window_bounds = array<i64: 4, 4, 32>}, {pipeline_mode = #tpu.pipeline_mode<synchronous>, transform_indices = @transform_1, window_bounds = array<i64: 1, 32>}, {pipeline_mode = #tpu.pipeline_mode<synchronous>, transform_indices = @transform_2, window_bounds = array<i64: 1, 32>}, {pipeline_mode = #tpu.pipeline_mode<synchronous>, transform_indices = @transform_3, window_bounds = array<i64: 32, 96>}, {pipeline_mode = #tpu.pipeline_mode<synchronous>, transform_indices = @transform_4, window_bounds = array<i64: 32, 32>}, {pipeline_mode = #tpu.pipeline_mode<synchronous>, transform_indices = @transform_5, window_bounds = array<i64: 1, 32>}, {pipeline_mode = #tpu.pipeline_mode<synchronous>, transform_indices = @transform_6, window_bounds = array<i64: 2, 4, 4>}, {pipeline_mode = #tpu.pipeline_mode<synchronous>, transform_indices = @transform_7, window_bounds = array<i64: 1, 32>}, {pipeline_mode = #tpu.pipeline_mode<synchronous>, transform_indices = @transform_8, window_bounds = array<i64: 1, 32>}, {pipeline_mode = #tpu.pipeline_mode<synchronous>, transform_indices = @transform_9, window_bounds = array<i64: 32, 128>}, {pipeline_mode = #tpu.pipeline_mode<synchronous>, transform_indices = @transform_10, window_bounds = array<i64: 1, 128>}, {pipeline_mode = #tpu.pipeline_mode<synchronous>, transform_indices = @transform_11, window_bounds = array<i64: 128, 32>}, {pipeline_mode = #tpu.pipeline_mode<synchronous>, transform_indices = @transform_12, window_bounds = array<i64: 1, 32>}, {transform_indices = @transform_13, window_bounds = array<i64: 4, 4, 32>}]} {
    %c0 = arith.constant 0 : index
    %c0_0 = arith.constant 0 : index
    %c0_1 = arith.constant 0 : index
    %0 = vector.load %arg1[%c0, %c0_0, %c0_1] : memref<4x4x32xf32, #tpu.memory_space<vmem>>, vector<4x4x32xf32>
    %1 = vector.shape_cast %0 : vector<4x4x32xf32> to vector<16x32xf32>
    %c0_2 = arith.constant 0 : index
    %c0_3 = arith.constant 0 : index
    %2 = vector.load %arg2[%c0_2, %c0_3] : memref<1x32xf32, #tpu.memory_space<vmem>>, vector<1x32xf32>
    %c0_4 = arith.constant 0 : index
    %c0_5 = arith.constant 0 : index
    %3 = vector.load %arg3[%c0_4, %c0_5] : memref<1x32xf32, #tpu.memory_space<vmem>>, vector<1x32xf32>
    %cst = arith.constant dense<0.000000e+00> : vector<16xf32>
    %4 = vector.multi_reduction <add>, %1, %cst [1] : vector<16x32xf32> to vector<16xf32>
    %5 = vector.shape_cast %4 : vector<16xf32> to vector<16x1xf32>
    %cst_6 = arith.constant 3.200000e+01 : f32
    %6 = vector.broadcast %cst_6 : f32 to vector<16x1xf32>
    %7 = arith.divf %5, %6 : vector<16x1xf32>
    %8 = vector.broadcast %7 : vector<16x1xf32> to vector<16x32xf32>
    %9 = arith.subf %1, %8 : vector<16x32xf32>
    %10 = arith.mulf %9, %9 : vector<16x32xf32>
    %cst_7 = arith.constant dense<0.000000e+00> : vector<16xf32>
    %11 = vector.multi_reduction <add>, %10, %cst_7 [1] : vector<16x32xf32> to vector<16xf32>
    %12 = vector.shape_cast %11 : vector<16xf32> to vector<16x1xf32>
    %cst_8 = arith.constant 3.200000e+01 : f32
    %13 = vector.broadcast %cst_8 : f32 to vector<16x1xf32>
    %14 = arith.divf %12, %13 : vector<16x1xf32>
    %15 = vector.broadcast %7 : vector<16x1xf32> to vector<16x32xf32>
    %16 = arith.subf %1, %15 : vector<16x32xf32>
    %cst_9 = arith.constant 9.99999974E-6 : f32
    %17 = vector.broadcast %cst_9 : f32 to vector<16x1xf32>
    %18 = arith.addf %14, %17 : vector<16x1xf32>
    %19 = math.rsqrt %18 : vector<16x1xf32>
    %20 = vector.broadcast %19 : vector<16x1xf32> to vector<16x32xf32>
    %21 = arith.mulf %16, %20 : vector<16x32xf32>
    %22 = vector.broadcast %2 : vector<1x32xf32> to vector<16x32xf32>
    %23 = arith.mulf %21, %22 : vector<16x32xf32>
    %24 = vector.broadcast %3 : vector<1x32xf32> to vector<16x32xf32>
    %25 = arith.addf %23, %24 : vector<16x32xf32>
    %c0_10 = arith.constant 0 : index
    %c0_11 = arith.constant 0 : index
    %26 = vector.load %arg4[%c0_10, %c0_11] : memref<32x96xf32, #tpu.memory_space<vmem>>, vector<32x96xf32>
    %cst_12 = arith.constant dense<0.000000e+00> : vector<16x96xf32>
    %27 = tpu.matmul %25, %26, %cst_12 {dimension_numbers = #tpu.dot_dimension_numbers<[1], [0], [0], [1], [0, 0, 1, 1], [], []>} : vector<16x32xf32>, vector<32x96xf32>, vector<16x96xf32> -> vector<16x96xf32>
    %c0_13 = arith.constant 0 : index
    %c0_14 = arith.constant 0 : index
    %28 = vector.load %arg5[%c0_13, %c0_14] : memref<32x32xf32, #tpu.memory_space<vmem>>, vector<32x32xf32>
    %c0_15 = arith.constant 0 : index
    %c0_16 = arith.constant 0 : index
    %29 = vector.load %arg6[%c0_15, %c0_16] : memref<1x32xf32, #tpu.memory_space<vmem>>, vector<1x32xf32>
    %30 = vector.broadcast %29 : vector<1x32xf32> to vector<16x32xf32>
    %31 = arith.addf %1, %30 : vector<16x32xf32>
    %32 = vector.extract_strided_slice %27 {offsets = [0, 0], sizes = [16, 16], strides = [1, 1]} : vector<16x96xf32> to vector<16x16xf32>
    %33 = vector.shape_cast %32 : vector<16x16xf32> to vector<4x4x16xf32>
    %cst_17 = arith.constant 2.500000e-01 : f32
    %34 = vector.broadcast %cst_17 : f32 to vector<4x4x16xf32>
    %35 = arith.mulf %33, %34 : vector<4x4x16xf32>
    %36 = vector.extract_strided_slice %27 {offsets = [0, 32], sizes = [16, 16], strides = [1, 1]} : vector<16x96xf32> to vector<16x16xf32>
    %37 = vector.shape_cast %36 : vector<16x16xf32> to vector<4x4x16xf32>
    %38 = vector.extract_strided_slice %27 {offsets = [0, 64], sizes = [16, 16], strides = [1, 1]} : vector<16x96xf32> to vector<16x16xf32>
    %39 = vector.shape_cast %38 : vector<16x16xf32> to vector<4x4x16xf32>
    "tpu.trace_start"() <{level = 10 : i32, message = "bqd,bkd->bqk"}> : () -> ()
    %cst_18 = arith.constant dense<0.000000e+00> : vector<4x4x4xf32>
    %40 = tpu.matmul %35, %37, %cst_18 {dimension_numbers = #tpu.dot_dimension_numbers<[2], [2], [1], [1], [0, 0, 0, 1, 1, 1], [0], [0]>} : vector<4x4x16xf32>, vector<4x4x16xf32>, vector<4x4x4xf32> -> vector<4x4x4xf32>
    "tpu.trace_stop"() : () -> ()
    %c0_19 = arith.constant 0 : index
    %c0_20 = arith.constant 0 : index
    %c0_21 = arith.constant 0 : index
    %41 = vector.load %arg7[%c0_19, %c0_20, %c0_21] : memref<2x4x4xf32, #tpu.memory_space<vmem>>, vector<1x4x4xf32>
    %42 = vector.shape_cast %41 : vector<1x4x4xf32> to vector<4x4xf32>
    %43 = vector.shape_cast %42 : vector<4x4xf32> to vector<1x4x4xf32>
    %44 = vector.broadcast %43 : vector<1x4x4xf32> to vector<4x4x4xf32>
    %45 = arith.addf %40, %44 : vector<4x4x4xf32>
    %cst_22 = arith.constant dense<0xFF800000> : vector<4x4xf32>
    %46 = vector.multi_reduction <maximumf>, %45, %cst_22 [2] : vector<4x4x4xf32> to vector<4x4xf32>
    %47 = vector.shape_cast %46 : vector<4x4xf32> to vector<4x4x1xf32>
    %48 = vector.broadcast %47 : vector<4x4x1xf32> to vector<4x4x4xf32>
    %49 = arith.subf %45, %48 : vector<4x4x4xf32>
    %50 = math.exp %49 : vector<4x4x4xf32>
    %cst_23 = arith.constant dense<0.000000e+00> : vector<4x4xf32>
    %51 = vector.multi_reduction <add>, %50, %cst_23 [2] : vector<4x4x4xf32> to vector<4x4xf32>
    %52 = vector.shape_cast %51 : vector<4x4xf32> to vector<4x4x1xf32>
    %53 = tpu.reciprocal %52 {approx = true} : vector<4x4x1xf32> -> vector<4x4x1xf32>
    %54 = vector.broadcast %53 : vector<4x4x1xf32> to vector<4x4x4xf32>
    %55 = arith.mulf %50, %54 : vector<4x4x4xf32>
    "tpu.trace_start"() <{level = 10 : i32, message = "bqk,bkd->bqd"}> : () -> ()
    %cst_24 = arith.constant dense<0.000000e+00> : vector<4x4x16xf32>
    %56 = tpu.matmul %55, %39, %cst_24 {dimension_numbers = #tpu.dot_dimension_numbers<[2], [1], [1], [2], [0, 0, 0, 1, 1, 2], [0], [0]>} : vector<4x4x4xf32>, vector<4x4x16xf32>, vector<4x4x16xf32> -> vector<4x4x16xf32>
    "tpu.trace_stop"() : () -> ()
    %57 = vector.shape_cast %56 : vector<4x4x16xf32> to vector<16x16xf32>
    %58 = vector.extract_strided_slice %28 {offsets = [0, 0], sizes = [16, 32], strides = [1, 1]} : vector<32x32xf32> to vector<16x32xf32>
    %cst_25 = arith.constant dense<0.000000e+00> : vector<16x32xf32>
    %59 = tpu.matmul %57, %58, %cst_25 {dimension_numbers = #tpu.dot_dimension_numbers<[1], [0], [0], [1], [0, 0, 1, 1], [], []>} : vector<16x16xf32>, vector<16x32xf32>, vector<16x32xf32> -> vector<16x32xf32>
    %60 = arith.addf %31, %59 : vector<16x32xf32>
    %61 = vector.extract_strided_slice %27 {offsets = [0, 16], sizes = [16, 16], strides = [1, 1]} : vector<16x96xf32> to vector<16x16xf32>
    %62 = vector.shape_cast %61 : vector<16x16xf32> to vector<4x4x16xf32>
    %cst_26 = arith.constant 2.500000e-01 : f32
    %63 = vector.broadcast %cst_26 : f32 to vector<4x4x16xf32>
    %64 = arith.mulf %62, %63 : vector<4x4x16xf32>
    %65 = vector.extract_strided_slice %27 {offsets = [0, 48], sizes = [16, 16], strides = [1, 1]} : vector<16x96xf32> to vector<16x16xf32>
    %66 = vector.shape_cast %65 : vector<16x16xf32> to vector<4x4x16xf32>
    %67 = vector.extract_strided_slice %27 {offsets = [0, 80], sizes = [16, 16], strides = [1, 1]} : vector<16x96xf32> to vector<16x16xf32>
    %68 = vector.shape_cast %67 : vector<16x16xf32> to vector<4x4x16xf32>
    "tpu.trace_start"() <{level = 10 : i32, message = "bqd,bkd->bqk"}> : () -> ()
    %cst_27 = arith.constant dense<0.000000e+00> : vector<4x4x4xf32>
    %69 = tpu.matmul %64, %66, %cst_27 {dimension_numbers = #tpu.dot_dimension_numbers<[2], [2], [1], [1], [0, 0, 0, 1, 1, 1], [0], [0]>} : vector<4x4x16xf32>, vector<4x4x16xf32>, vector<4x4x4xf32> -> vector<4x4x4xf32>
    "tpu.trace_stop"() : () -> ()
    %c1 = arith.constant 1 : index
    %c0_28 = arith.constant 0 : index
    %c0_29 = arith.constant 0 : index
    %70 = vector.load %arg7[%c1, %c0_28, %c0_29] : memref<2x4x4xf32, #tpu.memory_space<vmem>>, vector<1x4x4xf32>
    %71 = vector.shape_cast %70 : vector<1x4x4xf32> to vector<4x4xf32>
    %72 = vector.shape_cast %71 : vector<4x4xf32> to vector<1x4x4xf32>
    %73 = vector.broadcast %72 : vector<1x4x4xf32> to vector<4x4x4xf32>
    %74 = arith.addf %69, %73 : vector<4x4x4xf32>
    %cst_30 = arith.constant dense<0xFF800000> : vector<4x4xf32>
    %75 = vector.multi_reduction <maximumf>, %74, %cst_30 [2] : vector<4x4x4xf32> to vector<4x4xf32>
    %76 = vector.shape_cast %75 : vector<4x4xf32> to vector<4x4x1xf32>
    %77 = vector.broadcast %76 : vector<4x4x1xf32> to vector<4x4x4xf32>
    %78 = arith.subf %74, %77 : vector<4x4x4xf32>
    %79 = math.exp %78 : vector<4x4x4xf32>
    %cst_31 = arith.constant dense<0.000000e+00> : vector<4x4xf32>
    %80 = vector.multi_reduction <add>, %79, %cst_31 [2] : vector<4x4x4xf32> to vector<4x4xf32>
    %81 = vector.shape_cast %80 : vector<4x4xf32> to vector<4x4x1xf32>
    %82 = tpu.reciprocal %81 {approx = true} : vector<4x4x1xf32> -> vector<4x4x1xf32>
    %83 = vector.broadcast %82 : vector<4x4x1xf32> to vector<4x4x4xf32>
    %84 = arith.mulf %79, %83 : vector<4x4x4xf32>
    "tpu.trace_start"() <{level = 10 : i32, message = "bqk,bkd->bqd"}> : () -> ()
    %cst_32 = arith.constant dense<0.000000e+00> : vector<4x4x16xf32>
    %85 = tpu.matmul %84, %68, %cst_32 {dimension_numbers = #tpu.dot_dimension_numbers<[2], [1], [1], [2], [0, 0, 0, 1, 1, 2], [0], [0]>} : vector<4x4x4xf32>, vector<4x4x16xf32>, vector<4x4x16xf32> -> vector<4x4x16xf32>
    "tpu.trace_stop"() : () -> ()
    %86 = vector.shape_cast %85 : vector<4x4x16xf32> to vector<16x16xf32>
    %87 = vector.extract_strided_slice %28 {offsets = [16, 0], sizes = [16, 32], strides = [1, 1]} : vector<32x32xf32> to vector<16x32xf32>
    %cst_33 = arith.constant dense<0.000000e+00> : vector<16x32xf32>
    %88 = tpu.matmul %86, %87, %cst_33 {dimension_numbers = #tpu.dot_dimension_numbers<[1], [0], [0], [1], [0, 0, 1, 1], [], []>} : vector<16x16xf32>, vector<16x32xf32>, vector<16x32xf32> -> vector<16x32xf32>
    %89 = arith.addf %60, %88 : vector<16x32xf32>
    %c0_34 = arith.constant 0 : index
    %c0_35 = arith.constant 0 : index
    %90 = vector.load %arg8[%c0_34, %c0_35] : memref<1x32xf32, #tpu.memory_space<vmem>>, vector<1x32xf32>
    %c0_36 = arith.constant 0 : index
    %c0_37 = arith.constant 0 : index
    %91 = vector.load %arg9[%c0_36, %c0_37] : memref<1x32xf32, #tpu.memory_space<vmem>>, vector<1x32xf32>
    %cst_38 = arith.constant dense<0.000000e+00> : vector<16xf32>
    %92 = vector.multi_reduction <add>, %89, %cst_38 [1] : vector<16x32xf32> to vector<16xf32>
    %93 = vector.shape_cast %92 : vector<16xf32> to vector<16x1xf32>
    %cst_39 = arith.constant 3.200000e+01 : f32
    %94 = vector.broadcast %cst_39 : f32 to vector<16x1xf32>
    %95 = arith.divf %93, %94 : vector<16x1xf32>
    %96 = vector.broadcast %95 : vector<16x1xf32> to vector<16x32xf32>
    %97 = arith.subf %89, %96 : vector<16x32xf32>
    %98 = arith.mulf %97, %97 : vector<16x32xf32>
    %cst_40 = arith.constant dense<0.000000e+00> : vector<16xf32>
    %99 = vector.multi_reduction <add>, %98, %cst_40 [1] : vector<16x32xf32> to vector<16xf32>
    %100 = vector.shape_cast %99 : vector<16xf32> to vector<16x1xf32>
    %cst_41 = arith.constant 3.200000e+01 : f32
    %101 = vector.broadcast %cst_41 : f32 to vector<16x1xf32>
    %102 = arith.divf %100, %101 : vector<16x1xf32>
    %103 = vector.broadcast %95 : vector<16x1xf32> to vector<16x32xf32>
    %104 = arith.subf %89, %103 : vector<16x32xf32>
    %cst_42 = arith.constant 9.99999974E-6 : f32
    %105 = vector.broadcast %cst_42 : f32 to vector<16x1xf32>
    %106 = arith.addf %102, %105 : vector<16x1xf32>
    %107 = math.rsqrt %106 : vector<16x1xf32>
    %108 = vector.broadcast %107 : vector<16x1xf32> to vector<16x32xf32>
    %109 = arith.mulf %104, %108 : vector<16x32xf32>
    %110 = vector.broadcast %90 : vector<1x32xf32> to vector<16x32xf32>
    %111 = arith.mulf %109, %110 : vector<16x32xf32>
    %112 = vector.broadcast %91 : vector<1x32xf32> to vector<16x32xf32>
    %113 = arith.addf %111, %112 : vector<16x32xf32>
    %c0_43 = arith.constant 0 : index
    %c0_44 = arith.constant 0 : index
    %114 = vector.load %arg10[%c0_43, %c0_44] : memref<32x128xf32, #tpu.memory_space<vmem>>, vector<32x128xf32>
    %cst_45 = arith.constant dense<0.000000e+00> : vector<16x128xf32>
    %115 = tpu.matmul %113, %114, %cst_45 {dimension_numbers = #tpu.dot_dimension_numbers<[1], [0], [0], [1], [0, 0, 1, 1], [], []>} : vector<16x32xf32>, vector<32x128xf32>, vector<16x128xf32> -> vector<16x128xf32>
    %c0_46 = arith.constant 0 : index
    %c0_47 = arith.constant 0 : index
    %116 = vector.load %arg11[%c0_46, %c0_47] : memref<1x128xf32, #tpu.memory_space<vmem>>, vector<1x128xf32>
    %117 = vector.broadcast %116 : vector<1x128xf32> to vector<16x128xf32>
    %118 = arith.addf %115, %117 : vector<16x128xf32>
    %cst_48 = arith.constant 5.000000e-01 : f32
    %119 = vector.broadcast %cst_48 : f32 to vector<16x128xf32>
    %120 = arith.mulf %119, %118 : vector<16x128xf32>
    %cst_49 = arith.constant 4.471500e-02 : f32
    %121 = vector.broadcast %cst_49 : f32 to vector<16x128xf32>
    %122 = arith.mulf %121, %118 : vector<16x128xf32>
    %123 = arith.mulf %122, %118 : vector<16x128xf32>
    %124 = arith.mulf %123, %118 : vector<16x128xf32>
    %125 = arith.addf %118, %124 : vector<16x128xf32>
    %cst_50 = arith.constant 0.797884583 : f32
    %126 = vector.broadcast %cst_50 : f32 to vector<16x128xf32>
    %127 = arith.mulf %126, %125 : vector<16x128xf32>
    %128 = math.tanh %127 : vector<16x128xf32>
    %cst_51 = arith.constant 1.000000e+00 : f32
    %129 = vector.broadcast %cst_51 : f32 to vector<16x128xf32>
    %130 = arith.addf %129, %128 : vector<16x128xf32>
    %131 = arith.mulf %120, %130 : vector<16x128xf32>
    %c0_52 = arith.constant 0 : index
    %c0_53 = arith.constant 0 : index
    %132 = vector.load %arg12[%c0_52, %c0_53] : memref<128x32xf32, #tpu.memory_space<vmem>>, vector<128x32xf32>
    %cst_54 = arith.constant dense<0.000000e+00> : vector<16x32xf32>
    %133 = tpu.matmul %131, %132, %cst_54 {dimension_numbers = #tpu.dot_dimension_numbers<[1], [0], [0], [1], [0, 0, 1, 1], [], []>} : vector<16x128xf32>, vector<128x32xf32>, vector<16x32xf32> -> vector<16x32xf32>
    %134 = arith.addf %89, %133 : vector<16x32xf32>
    %c0_55 = arith.constant 0 : index
    %c0_56 = arith.constant 0 : index
    %135 = vector.load %arg13[%c0_55, %c0_56] : memref<1x32xf32, #tpu.memory_space<vmem>>, vector<1x32xf32>
    %136 = vector.broadcast %135 : vector<1x32xf32> to vector<16x32xf32>
    %137 = arith.addf %134, %136 : vector<16x32xf32>
    %138 = vector.shape_cast %137 : vector<16x32xf32> to vector<4x4x32xf32>
    %c0_57 = arith.constant 0 : index
    %c0_58 = arith.constant 0 : index
    %c0_59 = arith.constant 0 : index
    %139 = vector.load %arg14[%c0_57, %c0_58, %c0_59] : memref<4x4x32xf32, #tpu.memory_space<vmem>>, vector<4x4x32xf32>
    tpu.vector_store %arg14[%c0_57, %c0_58, %c0_59], %138 {strides = array<i32>} : memref<4x4x32xf32, #tpu.memory_space<vmem>>, vector<4x4x32xf32>,
    return
  }
  func.func @transform_0(%arg0: i32) -> (i32, i32, i32) {
    %c0_i32 = arith.constant 0 : i32
    %c0_i32_0 = arith.constant 0 : i32
    %c0_i32_1 = arith.constant 0 : i32
    return %arg0, %c0_i32, %c0_i32_0 : i32, i32, i32
  }
  func.func @transform_1(%arg0: i32) -> (i32, i32) {
    %c0_i32 = arith.constant 0 : i32
    %c0_i32_0 = arith.constant 0 : i32
    %c0_i32_1 = arith.constant 0 : i32
    return %c0_i32, %c0_i32_0 : i32, i32
  }
  func.func @transform_2(%arg0: i32) -> (i32, i32) {
    %c0_i32 = arith.constant 0 : i32
    %c0_i32_0 = arith.constant 0 : i32
    %c0_i32_1 = arith.constant 0 : i32
    return %c0_i32, %c0_i32_0 : i32, i32
  }
  func.func @transform_3(%arg0: i32) -> (i32, i32) {
    %c0_i32 = arith.constant 0 : i32
    %c0_i32_0 = arith.constant 0 : i32
    %c0_i32_1 = arith.constant 0 : i32
    return %c0_i32, %c0_i32_0 : i32, i32
  }
  func.func @transform_4(%arg0: i32) -> (i32, i32) {
    %c0_i32 = arith.constant 0 : i32
    %c0_i32_0 = arith.constant 0 : i32
    %c0_i32_1 = arith.constant 0 : i32
    return %c0_i32, %c0_i32_0 : i32, i32
  }
  func.func @transform_5(%arg0: i32) -> (i32, i32) {
    %c0_i32 = arith.constant 0 : i32
    %c0_i32_0 = arith.constant 0 : i32
    %c0_i32_1 = arith.constant 0 : i32
    return %c0_i32, %c0_i32_0 : i32, i32
  }
  func.func @transform_6(%arg0: i32) -> (i32, i32, i32) {
    %c0_i32 = arith.constant 0 : i32
    %c0_i32_0 = arith.constant 0 : i32
    %c0_i32_1 = arith.constant 0 : i32
    %c0_i32_2 = arith.constant 0 : i32
    return %c0_i32, %c0_i32_0, %c0_i32_1 : i32, i32, i32
  }
  func.func @transform_7(%arg0: i32) -> (i32, i32) {
    %c0_i32 = arith.constant 0 : i32
    %c0_i32_0 = arith.constant 0 : i32
    %c0_i32_1 = arith.constant 0 : i32
    return %c0_i32, %c0_i32_0 : i32, i32
  }
  func.func @transform_8(%arg0: i32) -> (i32, i32) {
    %c0_i32 = arith.constant 0 : i32
    %c0_i32_0 = arith.constant 0 : i32
    %c0_i32_1 = arith.constant 0 : i32
    return %c0_i32, %c0_i32_0 : i32, i32
  }
  func.func @transform_9(%arg0: i32) -> (i32, i32) {
    %c0_i32 = arith.constant 0 : i32
    %c0_i32_0 = arith.constant 0 : i32
    %c0_i32_1 = arith.constant 0 : i32
    return %c0_i32, %c0_i32_0 : i32, i32
  }
  func.func @transform_10(%arg0: i32) -> (i32, i32) {
    %c0_i32 = arith.constant 0 : i32
    %c0_i32_0 = arith.constant 0 : i32
    %c0_i32_1 = arith.constant 0 : i32
    return %c0_i32, %c0_i32_0 : i32, i32
  }
  func.func @transform_11(%arg0: i32) -> (i32, i32) {
    %c0_i32 = arith.constant 0 : i32
    %c0_i32_0 = arith.constant 0 : i32
    %c0_i32_1 = arith.constant 0 : i32
    return %c0_i32, %c0_i32_0 : i32, i32
  }
  func.func @transform_12(%arg0: i32) -> (i32, i32) {
    %c0_i32 = arith.constant 0 : i32
    %c0_i32_0 = arith.constant 0 : i32
    %c0_i32_1 = arith.constant 0 : i32
    return %c0_i32, %c0_i32_0 : i32, i32
  }
  func.func @transform_13(%arg0: i32) -> (i32, i32, i32) {
    %c0_i32 = arith.constant 0 : i32
    %c0_i32_0 = arith.constant 0 : i32
    %c0_i32_1 = arith.constant 0 : i32
    return %arg0, %c0_i32, %c0_i32_0 : i32, i32, i32
  }
}

module attributes {stable_mosaic.version = 11 : i64} {
  func.func @_block_kernel(%arg0: i32, %arg1: memref<4x32x4xf32, #tpu.memory_space<vmem>>, %arg2: memref<1x4xf32, #tpu.memory_space<vmem>>, %arg3: memref<1x4xf32, #tpu.memory_space<vmem>>, %arg4: memref<4x96xf32, #tpu.memory_space<vmem>>, %arg5: memref<32x4xf32, #tpu.memory_space<vmem>>, %arg6: memref<1x4xf32, #tpu.memory_space<vmem>>, %arg7: memref<4x32x4xf32, #tpu.memory_space<vmem>>) attributes {dimension_semantics = [#tpu.dimension_semantics<parallel>], iteration_bounds = array<i64: 2>, scalar_prefetch = 0 : i64, scratch_operands = 0 : i64, tpu.core_type = #tpu.core_type<tc>, window_params = [{transform_indices = @transform_0, window_bounds = array<i64: 4, 32, 4>}, {pipeline_mode = #tpu.pipeline_mode<synchronous>, transform_indices = @transform_1, window_bounds = array<i64: 1, 4>}, {pipeline_mode = #tpu.pipeline_mode<synchronous>, transform_indices = @transform_2, window_bounds = array<i64: 1, 4>}, {pipeline_mode = #tpu.pipeline_mode<synchronous>, transform_indices = @transform_3, window_bounds = array<i64: 4, 96>}, {pipeline_mode = #tpu.pipeline_mode<synchronous>, transform_indices = @transform_4, window_bounds = array<i64: 32, 4>}, {pipeline_mode = #tpu.pipeline_mode<synchronous>, transform_indices = @transform_5, window_bounds = array<i64: 1, 4>}, {transform_indices = @transform_6, window_bounds = array<i64: 4, 32, 4>}]} {
    %c0 = arith.constant 0 : index
    %c0_0 = arith.constant 0 : index
    %c0_1 = arith.constant 0 : index
    %0 = vector.load %arg1[%c0, %c0_0, %c0_1] : memref<4x32x4xf32, #tpu.memory_space<vmem>>, vector<4x32x4xf32>
    %1 = vector.shape_cast %0 : vector<4x32x4xf32> to vector<128x4xf32>
    %c0_2 = arith.constant 0 : index
    %c0_3 = arith.constant 0 : index
    %2 = vector.load %arg2[%c0_2, %c0_3] : memref<1x4xf32, #tpu.memory_space<vmem>>, vector<1x4xf32>
    %c0_4 = arith.constant 0 : index
    %c0_5 = arith.constant 0 : index
    %3 = vector.load %arg3[%c0_4, %c0_5] : memref<1x4xf32, #tpu.memory_space<vmem>>, vector<1x4xf32>
    %cst = arith.constant dense<0.000000e+00> : vector<128xf32>
    %4 = vector.multi_reduction <add>, %1, %cst [1] : vector<128x4xf32> to vector<128xf32>
    %5 = vector.shape_cast %4 : vector<128xf32> to vector<128x1xf32>
    %cst_6 = arith.constant 4.000000e+00 : f32
    %6 = vector.broadcast %cst_6 : f32 to vector<128x1xf32>
    %7 = arith.divf %5, %6 : vector<128x1xf32>
    %8 = vector.broadcast %7 : vector<128x1xf32> to vector<128x4xf32>
    %9 = arith.subf %1, %8 : vector<128x4xf32>
    %10 = arith.mulf %9, %9 : vector<128x4xf32>
    %cst_7 = arith.constant dense<0.000000e+00> : vector<128xf32>
    %11 = vector.multi_reduction <add>, %10, %cst_7 [1] : vector<128x4xf32> to vector<128xf32>
    %12 = vector.shape_cast %11 : vector<128xf32> to vector<128x1xf32>
    %cst_8 = arith.constant 4.000000e+00 : f32
    %13 = vector.broadcast %cst_8 : f32 to vector<128x1xf32>
    %14 = arith.divf %12, %13 : vector<128x1xf32>
    %15 = vector.broadcast %7 : vector<128x1xf32> to vector<128x4xf32>
    %16 = arith.subf %1, %15 : vector<128x4xf32>
    %cst_9 = arith.constant 9.99999974E-6 : f32
    %17 = vector.broadcast %cst_9 : f32 to vector<128x1xf32>
    %18 = arith.addf %14, %17 : vector<128x1xf32>
    %19 = math.rsqrt %18 : vector<128x1xf32>
    %20 = vector.broadcast %19 : vector<128x1xf32> to vector<128x4xf32>
    %21 = arith.mulf %16, %20 : vector<128x4xf32>
    %22 = vector.broadcast %2 : vector<1x4xf32> to vector<128x4xf32>
    %23 = arith.mulf %21, %22 : vector<128x4xf32>
    %24 = vector.broadcast %3 : vector<1x4xf32> to vector<128x4xf32>
    %25 = arith.addf %23, %24 : vector<128x4xf32>
    %c0_10 = arith.constant 0 : index
    %c0_11 = arith.constant 0 : index
    %26 = vector.load %arg4[%c0_10, %c0_11] : memref<4x96xf32, #tpu.memory_space<vmem>>, vector<4x96xf32>
    %cst_12 = arith.constant dense<0.000000e+00> : vector<128x96xf32>
    %27 = tpu.matmul %25, %26, %cst_12 {dimension_numbers = #tpu.dot_dimension_numbers<[1], [0], [0], [1], [0, 0, 1, 1], [], []>} : vector<128x4xf32>, vector<4x96xf32>, vector<128x96xf32> -> vector<128x96xf32>
    %c0_13 = arith.constant 0 : index
    %c0_14 = arith.constant 0 : index
    %28 = vector.load %arg5[%c0_13, %c0_14] : memref<32x4xf32, #tpu.memory_space<vmem>>, vector<32x4xf32>
    %c0_15 = arith.constant 0 : index
    %c0_16 = arith.constant 0 : index
    %29 = vector.load %arg6[%c0_15, %c0_16] : memref<1x4xf32, #tpu.memory_space<vmem>>, vector<1x4xf32>
    %30 = vector.broadcast %29 : vector<1x4xf32> to vector<128x4xf32>
    %31 = arith.addf %1, %30 : vector<128x4xf32>
    %32 = vector.extract_strided_slice %27 {offsets = [0, 0], sizes = [128, 16], strides = [1, 1]} : vector<128x96xf32> to vector<128x16xf32>
    %33 = vector.shape_cast %32 : vector<128x16xf32> to vector<4x32x16xf32>
    %cst_17 = arith.constant 2.500000e-01 : f32
    %34 = vector.broadcast %cst_17 : f32 to vector<4x32x16xf32>
    %35 = arith.mulf %33, %34 : vector<4x32x16xf32>
    %36 = vector.extract_strided_slice %27 {offsets = [0, 32], sizes = [128, 16], strides = [1, 1]} : vector<128x96xf32> to vector<128x16xf32>
    %37 = vector.shape_cast %36 : vector<128x16xf32> to vector<4x32x16xf32>
    %38 = vector.extract_strided_slice %27 {offsets = [0, 64], sizes = [128, 16], strides = [1, 1]} : vector<128x96xf32> to vector<128x16xf32>
    %39 = vector.shape_cast %38 : vector<128x16xf32> to vector<4x32x16xf32>
    "tpu.trace_start"() <{level = 10 : i32, message = "bqd,bkd->bqk"}> : () -> ()
    %cst_18 = arith.constant dense<0.000000e+00> : vector<4x32x32xf32>
    %40 = tpu.matmul %35, %37, %cst_18 {dimension_numbers = #tpu.dot_dimension_numbers<[2], [2], [1], [1], [0, 0, 0, 1, 1, 1], [0], [0]>} : vector<4x32x16xf32>, vector<4x32x16xf32>, vector<4x32x32xf32> -> vector<4x32x32xf32>
    "tpu.trace_stop"() : () -> ()
    %cst_19 = arith.constant dense<0xFF800000> : vector<4x32xf32>
    %41 = vector.multi_reduction <maximumf>, %40, %cst_19 [2] : vector<4x32x32xf32> to vector<4x32xf32>
    %42 = vector.shape_cast %41 : vector<4x32xf32> to vector<4x32x1xf32>
    %43 = vector.broadcast %42 : vector<4x32x1xf32> to vector<4x32x32xf32>
    %44 = arith.subf %40, %43 : vector<4x32x32xf32>
    %45 = math.exp %44 : vector<4x32x32xf32>
    %cst_20 = arith.constant dense<0.000000e+00> : vector<4x32xf32>
    %46 = vector.multi_reduction <add>, %45, %cst_20 [2] : vector<4x32x32xf32> to vector<4x32xf32>
    %47 = vector.shape_cast %46 : vector<4x32xf32> to vector<4x32x1xf32>
    %48 = tpu.reciprocal %47 {approx = true} : vector<4x32x1xf32> -> vector<4x32x1xf32>
    %49 = vector.broadcast %48 : vector<4x32x1xf32> to vector<4x32x32xf32>
    %50 = arith.mulf %45, %49 : vector<4x32x32xf32>
    "tpu.trace_start"() <{level = 10 : i32, message = "bqk,bkd->bqd"}> : () -> ()
    %cst_21 = arith.constant dense<0.000000e+00> : vector<4x32x16xf32>
    %51 = tpu.matmul %50, %39, %cst_21 {dimension_numbers = #tpu.dot_dimension_numbers<[2], [1], [1], [2], [0, 0, 0, 1, 1, 2], [0], [0]>} : vector<4x32x32xf32>, vector<4x32x16xf32>, vector<4x32x16xf32> -> vector<4x32x16xf32>
    "tpu.trace_stop"() : () -> ()
    %52 = vector.shape_cast %51 : vector<4x32x16xf32> to vector<128x16xf32>
    %53 = vector.extract_strided_slice %28 {offsets = [0, 0], sizes = [16, 4], strides = [1, 1]} : vector<32x4xf32> to vector<16x4xf32>
    %cst_22 = arith.constant dense<0.000000e+00> : vector<128x4xf32>
    %54 = tpu.matmul %52, %53, %cst_22 {dimension_numbers = #tpu.dot_dimension_numbers<[1], [0], [0], [1], [0, 0, 1, 1], [], []>} : vector<128x16xf32>, vector<16x4xf32>, vector<128x4xf32> -> vector<128x4xf32>
    %55 = arith.addf %31, %54 : vector<128x4xf32>
    %56 = vector.extract_strided_slice %27 {offsets = [0, 16], sizes = [128, 16], strides = [1, 1]} : vector<128x96xf32> to vector<128x16xf32>
    %57 = vector.shape_cast %56 : vector<128x16xf32> to vector<4x32x16xf32>
    %cst_23 = arith.constant 2.500000e-01 : f32
    %58 = vector.broadcast %cst_23 : f32 to vector<4x32x16xf32>
    %59 = arith.mulf %57, %58 : vector<4x32x16xf32>
    %60 = vector.extract_strided_slice %27 {offsets = [0, 48], sizes = [128, 16], strides = [1, 1]} : vector<128x96xf32> to vector<128x16xf32>
    %61 = vector.shape_cast %60 : vector<128x16xf32> to vector<4x32x16xf32>
    %62 = vector.extract_strided_slice %27 {offsets = [0, 80], sizes = [128, 16], strides = [1, 1]} : vector<128x96xf32> to vector<128x16xf32>
    %63 = vector.shape_cast %62 : vector<128x16xf32> to vector<4x32x16xf32>
    "tpu.trace_start"() <{level = 10 : i32, message = "bqd,bkd->bqk"}> : () -> ()
    %cst_24 = arith.constant dense<0.000000e+00> : vector<4x32x32xf32>
    %64 = tpu.matmul %59, %61, %cst_24 {dimension_numbers = #tpu.dot_dimension_numbers<[2], [2], [1], [1], [0, 0, 0, 1, 1, 1], [0], [0]>} : vector<4x32x16xf32>, vector<4x32x16xf32>, vector<4x32x32xf32> -> vector<4x32x32xf32>
    "tpu.trace_stop"() : () -> ()
    %cst_25 = arith.constant dense<0xFF800000> : vector<4x32xf32>
    %65 = vector.multi_reduction <maximumf>, %64, %cst_25 [2] : vector<4x32x32xf32> to vector<4x32xf32>
    %66 = vector.shape_cast %65 : vector<4x32xf32> to vector<4x32x1xf32>
    %67 = vector.broadcast %66 : vector<4x32x1xf32> to vector<4x32x32xf32>
    %68 = arith.subf %64, %67 : vector<4x32x32xf32>
    %69 = math.exp %68 : vector<4x32x32xf32>
    %cst_26 = arith.constant dense<0.000000e+00> : vector<4x32xf32>
    %70 = vector.multi_reduction <add>, %69, %cst_26 [2] : vector<4x32x32xf32> to vector<4x32xf32>
    %71 = vector.shape_cast %70 : vector<4x32xf32> to vector<4x32x1xf32>
    %72 = tpu.reciprocal %71 {approx = true} : vector<4x32x1xf32> -> vector<4x32x1xf32>
    %73 = vector.broadcast %72 : vector<4x32x1xf32> to vector<4x32x32xf32>
    %74 = arith.mulf %69, %73 : vector<4x32x32xf32>
    "tpu.trace_start"() <{level = 10 : i32, message = "bqk,bkd->bqd"}> : () -> ()
    %cst_27 = arith.constant dense<0.000000e+00> : vector<4x32x16xf32>
    %75 = tpu.matmul %74, %63, %cst_27 {dimension_numbers = #tpu.dot_dimension_numbers<[2], [1], [1], [2], [0, 0, 0, 1, 1, 2], [0], [0]>} : vector<4x32x32xf32>, vector<4x32x16xf32>, vector<4x32x16xf32> -> vector<4x32x16xf32>
    "tpu.trace_stop"() : () -> ()
    %76 = vector.shape_cast %75 : vector<4x32x16xf32> to vector<128x16xf32>
    %77 = vector.extract_strided_slice %28 {offsets = [16, 0], sizes = [16, 4], strides = [1, 1]} : vector<32x4xf32> to vector<16x4xf32>
    %cst_28 = arith.constant dense<0.000000e+00> : vector<128x4xf32>
    %78 = tpu.matmul %76, %77, %cst_28 {dimension_numbers = #tpu.dot_dimension_numbers<[1], [0], [0], [1], [0, 0, 1, 1], [], []>} : vector<128x16xf32>, vector<16x4xf32>, vector<128x4xf32> -> vector<128x4xf32>
    %79 = arith.addf %55, %78 : vector<128x4xf32>
    %80 = vector.shape_cast %79 : vector<128x4xf32> to vector<4x32x4xf32>
    %c0_29 = arith.constant 0 : index
    %c0_30 = arith.constant 0 : index
    %c0_31 = arith.constant 0 : index
    %81 = vector.load %arg7[%c0_29, %c0_30, %c0_31] : memref<4x32x4xf32, #tpu.memory_space<vmem>>, vector<4x32x4xf32>
    tpu.vector_store %arg7[%c0_29, %c0_30, %c0_31], %80 {strides = array<i32>} : memref<4x32x4xf32, #tpu.memory_space<vmem>>, vector<4x32x4xf32>,
    return
  }
  func.func @transform_0(%arg0: i32) -> (i32, i32, i32) {
    %c0_i32 = arith.constant 0 : i32
    %c0_i32_0 = arith.constant 0 : i32
    %c0_i32_1 = arith.constant 0 : i32
    return %arg0, %c0_i32, %c0_i32_0 : i32, i32, i32
  }
  func.func @transform_1(%arg0: i32) -> (i32, i32) {
    %c0_i32 = arith.constant 0 : i32
    %c0_i32_0 = arith.constant 0 : i32
    %c0_i32_1 = arith.constant 0 : i32
    return %c0_i32, %c0_i32_0 : i32, i32
  }
  func.func @transform_2(%arg0: i32) -> (i32, i32) {
    %c0_i32 = arith.constant 0 : i32
    %c0_i32_0 = arith.constant 0 : i32
    %c0_i32_1 = arith.constant 0 : i32
    return %c0_i32, %c0_i32_0 : i32, i32
  }
  func.func @transform_3(%arg0: i32) -> (i32, i32) {
    %c0_i32 = arith.constant 0 : i32
    %c0_i32_0 = arith.constant 0 : i32
    %c0_i32_1 = arith.constant 0 : i32
    return %c0_i32, %c0_i32_0 : i32, i32
  }
  func.func @transform_4(%arg0: i32) -> (i32, i32) {
    %c0_i32 = arith.constant 0 : i32
    %c0_i32_0 = arith.constant 0 : i32
    %c0_i32_1 = arith.constant 0 : i32
    return %c0_i32, %c0_i32_0 : i32, i32
  }
  func.func @transform_5(%arg0: i32) -> (i32, i32) {
    %c0_i32 = arith.constant 0 : i32
    %c0_i32_0 = arith.constant 0 : i32
    %c0_i32_1 = arith.constant 0 : i32
    return %c0_i32, %c0_i32_0 : i32, i32
  }
  func.func @transform_6(%arg0: i32) -> (i32, i32, i32) {
    %c0_i32 = arith.constant 0 : i32
    %c0_i32_0 = arith.constant 0 : i32
    %c0_i32_1 = arith.constant 0 : i32
    return %arg0, %c0_i32, %c0_i32_0 : i32, i32, i32
  }
}

module attributes {stable_mosaic.version = 11 : i64} {
  func.func @_ff_kernel(%arg0: i32, %arg1: memref<32x16xf32, #tpu.memory_space<vmem>>, %arg2: memref<1x16xf32, #tpu.memory_space<vmem>>, %arg3: memref<1x16xf32, #tpu.memory_space<vmem>>, %arg4: memref<16x64xf32, #tpu.memory_space<vmem>>, %arg5: memref<1x64xf32, #tpu.memory_space<vmem>>, %arg6: memref<64x16xf32, #tpu.memory_space<vmem>>, %arg7: memref<1x16xf32, #tpu.memory_space<vmem>>, %arg8: memref<32x16xf32, #tpu.memory_space<vmem>>) attributes {dimension_semantics = [#tpu.dimension_semantics<parallel>], iteration_bounds = array<i64: 2>, scalar_prefetch = 0 : i64, scratch_operands = 0 : i64, tpu.core_type = #tpu.core_type<tc>, window_params = [{transform_indices = @transform_0, window_bounds = array<i64: 32, 16>}, {pipeline_mode = #tpu.pipeline_mode<synchronous>, transform_indices = @transform_1, window_bounds = array<i64: 1, 16>}, {pipeline_mode = #tpu.pipeline_mode<synchronous>, transform_indices = @transform_2, window_bounds = array<i64: 1, 16>}, {pipeline_mode = #tpu.pipeline_mode<synchronous>, transform_indices = @transform_3, window_bounds = array<i64: 16, 64>}, {pipeline_mode = #tpu.pipeline_mode<synchronous>, transform_indices = @transform_4, window_bounds = array<i64: 1, 64>}, {pipeline_mode = #tpu.pipeline_mode<synchronous>, transform_indices = @transform_5, window_bounds = array<i64: 64, 16>}, {pipeline_mode = #tpu.pipeline_mode<synchronous>, transform_indices = @transform_6, window_bounds = array<i64: 1, 16>}, {transform_indices = @transform_7, window_bounds = array<i64: 32, 16>}]} {
    %c0 = arith.constant 0 : index
    %c0_0 = arith.constant 0 : index
    %0 = vector.load %arg1[%c0, %c0_0] : memref<32x16xf32, #tpu.memory_space<vmem>>, vector<32x16xf32>
    %c0_1 = arith.constant 0 : index
    %c0_2 = arith.constant 0 : index
    %1 = vector.load %arg2[%c0_1, %c0_2] : memref<1x16xf32, #tpu.memory_space<vmem>>, vector<1x16xf32>
    %c0_3 = arith.constant 0 : index
    %c0_4 = arith.constant 0 : index
    %2 = vector.load %arg3[%c0_3, %c0_4] : memref<1x16xf32, #tpu.memory_space<vmem>>, vector<1x16xf32>
    %cst = arith.constant dense<0.000000e+00> : vector<32xf32>
    %3 = vector.multi_reduction <add>, %0, %cst [1] : vector<32x16xf32> to vector<32xf32>
    %4 = vector.shape_cast %3 : vector<32xf32> to vector<32x1xf32>
    %cst_5 = arith.constant 1.600000e+01 : f32
    %5 = vector.broadcast %cst_5 : f32 to vector<32x1xf32>
    %6 = arith.divf %4, %5 : vector<32x1xf32>
    %7 = vector.broadcast %6 : vector<32x1xf32> to vector<32x16xf32>
    %8 = arith.subf %0, %7 : vector<32x16xf32>
    %9 = arith.mulf %8, %8 : vector<32x16xf32>
    %cst_6 = arith.constant dense<0.000000e+00> : vector<32xf32>
    %10 = vector.multi_reduction <add>, %9, %cst_6 [1] : vector<32x16xf32> to vector<32xf32>
    %11 = vector.shape_cast %10 : vector<32xf32> to vector<32x1xf32>
    %cst_7 = arith.constant 1.600000e+01 : f32
    %12 = vector.broadcast %cst_7 : f32 to vector<32x1xf32>
    %13 = arith.divf %11, %12 : vector<32x1xf32>
    %14 = vector.broadcast %6 : vector<32x1xf32> to vector<32x16xf32>
    %15 = arith.subf %0, %14 : vector<32x16xf32>
    %cst_8 = arith.constant 9.99999974E-6 : f32
    %16 = vector.broadcast %cst_8 : f32 to vector<32x1xf32>
    %17 = arith.addf %13, %16 : vector<32x1xf32>
    %18 = math.rsqrt %17 : vector<32x1xf32>
    %19 = vector.broadcast %18 : vector<32x1xf32> to vector<32x16xf32>
    %20 = arith.mulf %15, %19 : vector<32x16xf32>
    %21 = vector.broadcast %1 : vector<1x16xf32> to vector<32x16xf32>
    %22 = arith.mulf %20, %21 : vector<32x16xf32>
    %23 = vector.broadcast %2 : vector<1x16xf32> to vector<32x16xf32>
    %24 = arith.addf %22, %23 : vector<32x16xf32>
    %c0_9 = arith.constant 0 : index
    %c0_10 = arith.constant 0 : index
    %25 = vector.load %arg4[%c0_9, %c0_10] : memref<16x64xf32, #tpu.memory_space<vmem>>, vector<16x64xf32>
    %cst_11 = arith.constant dense<0.000000e+00> : vector<32x64xf32>
    %26 = tpu.matmul %24, %25, %cst_11 {dimension_numbers = #tpu.dot_dimension_numbers<[1], [0], [0], [1], [0, 0, 1, 1], [], []>} : vector<32x16xf32>, vector<16x64xf32>, vector<32x64xf32> -> vector<32x64xf32>
    %c0_12 = arith.constant 0 : index
    %c0_13 = arith.constant 0 : index
    %27 = vector.load %arg5[%c0_12, %c0_13] : memref<1x64xf32, #tpu.memory_space<vmem>>, vector<1x64xf32>
    %28 = vector.broadcast %27 : vector<1x64xf32> to vector<32x64xf32>
    %29 = arith.addf %26, %28 : vector<32x64xf32>
    %cst_14 = arith.constant 5.000000e-01 : f32
    %30 = vector.broadcast %cst_14 : f32 to vector<32x64xf32>
    %31 = arith.mulf %30, %29 : vector<32x64xf32>
    %cst_15 = arith.constant 4.471500e-02 : f32
    %32 = vector.broadcast %cst_15 : f32 to vector<32x64xf32>
    %33 = arith.mulf %32, %29 : vector<32x64xf32>
    %34 = arith.mulf %33, %29 : vector<32x64xf32>
    %35 = arith.mulf %34, %29 : vector<32x64xf32>
    %36 = arith.addf %29, %35 : vector<32x64xf32>
    %cst_16 = arith.constant 0.797884583 : f32
    %37 = vector.broadcast %cst_16 : f32 to vector<32x64xf32>
    %38 = arith.mulf %37, %36 : vector<32x64xf32>
    %39 = math.tanh %38 : vector<32x64xf32>
    %cst_17 = arith.constant 1.000000e+00 : f32
    %40 = vector.broadcast %cst_17 : f32 to vector<32x64xf32>
    %41 = arith.addf %40, %39 : vector<32x64xf32>
    %42 = arith.mulf %31, %41 : vector<32x64xf32>
    %c0_18 = arith.constant 0 : index
    %c0_19 = arith.constant 0 : index
    %43 = vector.load %arg6[%c0_18, %c0_19] : memref<64x16xf32, #tpu.memory_space<vmem>>, vector<64x16xf32>
    %cst_20 = arith.constant dense<0.000000e+00> : vector<32x16xf32>
    %44 = tpu.matmul %42, %43, %cst_20 {dimension_numbers = #tpu.dot_dimension_numbers<[1], [0], [0], [1], [0, 0, 1, 1], [], []>} : vector<32x64xf32>, vector<64x16xf32>, vector<32x16xf32> -> vector<32x16xf32>
    %45 = arith.addf %0, %44 : vector<32x16xf32>
    %c0_21 = arith.constant 0 : index
    %c0_22 = arith.constant 0 : index
    %46 = vector.load %arg7[%c0_21, %c0_22] : memref<1x16xf32, #tpu.memory_space<vmem>>, vector<1x16xf32>
    %47 = vector.broadcast %46 : vector<1x16xf32> to vector<32x16xf32>
    %48 = arith.addf %45, %47 : vector<32x16xf32>
    %c0_23 = arith.constant 0 : index
    %c0_24 = arith.constant 0 : index
    %49 = vector.load %arg8[%c0_23, %c0_24] : memref<32x16xf32, #tpu.memory_space<vmem>>, vector<32x16xf32>
    tpu.vector_store %arg8[%c0_23, %c0_24], %48 {strides = array<i32>} : memref<32x16xf32, #tpu.memory_space<vmem>>, vector<32x16xf32>,
    return
  }
  func.func @transform_0(%arg0: i32) -> (i32, i32) {
    %c0_i32 = arith.constant 0 : i32
    %c0_i32_0 = arith.constant 0 : i32
    return %arg0, %c0_i32 : i32, i32
  }
  func.func @transform_1(%arg0: i32) -> (i32, i32) {
    %c0_i32 = arith.constant 0 : i32
    %c0_i32_0 = arith.constant 0 : i32
    %c0_i32_1 = arith.constant 0 : i32
    return %c0_i32, %c0_i32_0 : i32, i32
  }
  func.func @transform_2(%arg0: i32) -> (i32, i32) {
    %c0_i32 = arith.constant 0 : i32
    %c0_i32_0 = arith.constant 0 : i32
    %c0_i32_1 = arith.constant 0 : i32
    return %c0_i32, %c0_i32_0 : i32, i32
  }
  func.func @transform_3(%arg0: i32) -> (i32, i32) {
    %c0_i32 = arith.constant 0 : i32
    %c0_i32_0 = arith.constant 0 : i32
    %c0_i32_1 = arith.constant 0 : i32
    return %c0_i32, %c0_i32_0 : i32, i32
  }
  func.func @transform_4(%arg0: i32) -> (i32, i32) {
    %c0_i32 = arith.constant 0 : i32
    %c0_i32_0 = arith.constant 0 : i32
    %c0_i32_1 = arith.constant 0 : i32
    return %c0_i32, %c0_i32_0 : i32, i32
  }
  func.func @transform_5(%arg0: i32) -> (i32, i32) {
    %c0_i32 = arith.constant 0 : i32
    %c0_i32_0 = arith.constant 0 : i32
    %c0_i32_1 = arith.constant 0 : i32
    return %c0_i32, %c0_i32_0 : i32, i32
  }
  func.func @transform_6(%arg0: i32) -> (i32, i32) {
    %c0_i32 = arith.constant 0 : i32
    %c0_i32_0 = arith.constant 0 : i32
    %c0_i32_1 = arith.constant 0 : i32
    return %c0_i32, %c0_i32_0 : i32, i32
  }
  func.func @transform_7(%arg0: i32) -> (i32, i32) {
    %c0_i32 = arith.constant 0 : i32
    %c0_i32_0 = arith.constant 0 : i32
    return %arg0, %c0_i32 : i32, i32
  }
}

module attributes {stable_mosaic.version = 11 : i64} {
  func.func @_linear_kernel(%arg0: i32, %arg1: memref<8x128xf32, #tpu.memory_space<vmem>>, %arg2: memref<128x64xf32, #tpu.memory_space<vmem>>, %arg3: memref<1x64xf32, #tpu.memory_space<vmem>>, %arg4: memref<8x64xf32, #tpu.memory_space<vmem>>) attributes {dimension_semantics = [#tpu.dimension_semantics<parallel>], iteration_bounds = array<i64: 1>, scalar_prefetch = 0 : i64, scratch_operands = 0 : i64, tpu.core_type = #tpu.core_type<tc>, window_params = [{transform_indices = @transform_0, window_bounds = array<i64: 8, 128>}, {pipeline_mode = #tpu.pipeline_mode<synchronous>, transform_indices = @transform_1, window_bounds = array<i64: 128, 64>}, {pipeline_mode = #tpu.pipeline_mode<synchronous>, transform_indices = @transform_2, window_bounds = array<i64: 1, 64>}, {transform_indices = @transform_3, window_bounds = array<i64: 8, 64>}]} {
    %c0 = arith.constant 0 : index
    %c0_0 = arith.constant 0 : index
    %0 = vector.load %arg1[%c0, %c0_0] : memref<8x128xf32, #tpu.memory_space<vmem>>, vector<8x128xf32>
    %c0_1 = arith.constant 0 : index
    %c0_2 = arith.constant 0 : index
    %1 = vector.load %arg2[%c0_1, %c0_2] : memref<128x64xf32, #tpu.memory_space<vmem>>, vector<128x64xf32>
    %cst = arith.constant dense<0.000000e+00> : vector<8x64xf32>
    %2 = tpu.matmul %0, %1, %cst {dimension_numbers = #tpu.dot_dimension_numbers<[1], [0], [0], [1], [0, 0, 1, 1], [], []>} : vector<8x128xf32>, vector<128x64xf32>, vector<8x64xf32> -> vector<8x64xf32>
    %c0_3 = arith.constant 0 : index
    %c0_4 = arith.constant 0 : index
    %3 = vector.load %arg3[%c0_3, %c0_4] : memref<1x64xf32, #tpu.memory_space<vmem>>, vector<1x64xf32>
    %4 = vector.broadcast %3 : vector<1x64xf32> to vector<8x64xf32>
    %5 = arith.addf %2, %4 : vector<8x64xf32>
    %c0_5 = arith.constant 0 : index
    %c0_6 = arith.constant 0 : index
    %6 = vector.load %arg4[%c0_5, %c0_6] : memref<8x64xf32, #tpu.memory_space<vmem>>, vector<8x64xf32>
    tpu.vector_store %arg4[%c0_5, %c0_6], %5 {strides = array<i32>} : memref<8x64xf32, #tpu.memory_space<vmem>>, vector<8x64xf32>,
    return
  }
  func.func @transform_0(%arg0: i32) -> (i32, i32) {
    %c0_i32 = arith.constant 0 : i32
    %c0_i32_0 = arith.constant 0 : i32
    return %arg0, %c0_i32 : i32, i32
  }
  func.func @transform_1(%arg0: i32) -> (i32, i32) {
    %c0_i32 = arith.constant 0 : i32
    %c0_i32_0 = arith.constant 0 : i32
    %c0_i32_1 = arith.constant 0 : i32
    return %c0_i32, %c0_i32_0 : i32, i32
  }
  func.func @transform_2(%arg0: i32) -> (i32, i32) {
    %c0_i32 = arith.constant 0 : i32
    %c0_i32_0 = arith.constant 0 : i32
    %c0_i32_1 = arith.constant 0 : i32
    return %c0_i32, %c0_i32_0 : i32, i32
  }
  func.func @transform_3(%arg0: i32) -> (i32, i32) {
    %c0_i32 = arith.constant 0 : i32
    %c0_i32_0 = arith.constant 0 : i32
    return %arg0, %c0_i32 : i32, i32
  }
}

module attributes {stable_mosaic.version = 11 : i64} {
  func.func @_block_kernel(%arg0: i32, %arg1: memref<1x4x64xf32, #tpu.memory_space<vmem>>, %arg2: memref<1x64xf32, #tpu.memory_space<vmem>>, %arg3: memref<1x64xf32, #tpu.memory_space<vmem>>, %arg4: memref<64x192xf32, #tpu.memory_space<vmem>>, %arg5: memref<64x64xf32, #tpu.memory_space<vmem>>, %arg6: memref<1x64xf32, #tpu.memory_space<vmem>>, %arg7: memref<4x4x4xf32, #tpu.memory_space<vmem>>, %arg8: memref<1x64xf32, #tpu.memory_space<vmem>>, %arg9: memref<1x64xf32, #tpu.memory_space<vmem>>, %arg10: memref<64x256xf32, #tpu.memory_space<vmem>>, %arg11: memref<1x256xf32, #tpu.memory_space<vmem>>, %arg12: memref<256x64xf32, #tpu.memory_space<vmem>>, %arg13: memref<1x64xf32, #tpu.memory_space<vmem>>, %arg14: memref<1x4x64xf32, #tpu.memory_space<vmem>>) attributes {dimension_semantics = [#tpu.dimension_semantics<parallel>], iteration_bounds = array<i64: 2>, scalar_prefetch = 0 : i64, scratch_operands = 0 : i64, tpu.core_type = #tpu.core_type<tc>, window_params = [{transform_indices = @transform_0, window_bounds = array<i64: 1, 4, 64>}, {pipeline_mode = #tpu.pipeline_mode<synchronous>, transform_indices = @transform_1, window_bounds = array<i64: 1, 64>}, {pipeline_mode = #tpu.pipeline_mode<synchronous>, transform_indices = @transform_2, window_bounds = array<i64: 1, 64>}, {pipeline_mode = #tpu.pipeline_mode<synchronous>, transform_indices = @transform_3, window_bounds = array<i64: 64, 192>}, {pipeline_mode = #tpu.pipeline_mode<synchronous>, transform_indices = @transform_4, window_bounds = array<i64: 64, 64>}, {pipeline_mode = #tpu.pipeline_mode<synchronous>, transform_indices = @transform_5, window_bounds = array<i64: 1, 64>}, {pipeline_mode = #tpu.pipeline_mode<synchronous>, transform_indices = @transform_6, window_bounds = array<i64: 4, 4, 4>}, {pipeline_mode = #tpu.pipeline_mode<synchronous>, transform_indices = @transform_7, window_bounds = array<i64: 1, 64>}, {pipeline_mode = #tpu.pipeline_mode<synchronous>, transform_indices = @transform_8, window_bounds = array<i64: 1, 64>}, {pipeline_mode = #tpu.pipeline_mode<synchronous>, transform_indices = @transform_9, window_bounds = array<i64: 64, 256>}, {pipeline_mode = #tpu.pipeline_mode<synchronous>, transform_indices = @transform_10, window_bounds = array<i64: 1, 256>}, {pipeline_mode = #tpu.pipeline_mode<synchronous>, transform_indices = @transform_11, window_bounds = array<i64: 256, 64>}, {pipeline_mode = #tpu.pipeline_mode<synchronous>, transform_indices = @transform_12, window_bounds = array<i64: 1, 64>}, {transform_indices = @transform_13, window_bounds = array<i64: 1, 4, 64>}]} {
    %c0 = arith.constant 0 : index
    %c0_0 = arith.constant 0 : index
    %c0_1 = arith.constant 0 : index
    %0 = vector.load %arg1[%c0, %c0_0, %c0_1] : memref<1x4x64xf32, #tpu.memory_space<vmem>>, vector<1x4x64xf32>
    %1 = vector.shape_cast %0 : vector<1x4x64xf32> to vector<4x64xf32>
    %c0_2 = arith.constant 0 : index
    %c0_3 = arith.constant 0 : index
    %2 = vector.load %arg2[%c0_2, %c0_3] : memref<1x64xf32, #tpu.memory_space<vmem>>, vector<1x64xf32>
    %c0_4 = arith.constant 0 : index
    %c0_5 = arith.constant 0 : index
    %3 = vector.load %arg3[%c0_4, %c0_5] : memref<1x64xf32, #tpu.memory_space<vmem>>, vector<1x64xf32>
    %cst = arith.constant dense<0.000000e+00> : vector<4xf32>
    %4 = vector.multi_reduction <add>, %1, %cst [1] : vector<4x64xf32> to vector<4xf32>
    %5 = vector.shape_cast %4 : vector<4xf32> to vector<4x1xf32>
    %cst_6 = arith.constant 6.400000e+01 : f32
    %6 = vector.broadcast %cst_6 : f32 to vector<4x1xf32>
    %7 = arith.divf %5, %6 : vector<4x1xf32>
    %8 = vector.broadcast %7 : vector<4x1xf32> to vector<4x64xf32>
    %9 = arith.subf %1, %8 : vector<4x64xf32>
    %10 = arith.mulf %9, %9 : vector<4x64xf32>
    %cst_7 = arith.constant dense<0.000000e+00> : vector<4xf32>
    %11 = vector.multi_reduction <add>, %10, %cst_7 [1] : vector<4x64xf32> to vector<4xf32>
    %12 = vector.shape_cast %11 : vector<4xf32> to vector<4x1xf32>
    %cst_8 = arith.constant 6.400000e+01 : f32
    %13 = vector.broadcast %cst_8 : f32 to vector<4x1xf32>
    %14 = arith.divf %12, %13 : vector<4x1xf32>
    %15 = vector.broadcast %7 : vector<4x1xf32> to vector<4x64xf32>
    %16 = arith.subf %1, %15 : vector<4x64xf32>
    %cst_9 = arith.constant 9.99999974E-6 : f32
    %17 = vector.broadcast %cst_9 : f32 to vector<4x1xf32>
    %18 = arith.addf %14, %17 : vector<4x1xf32>
    %19 = math.rsqrt %18 : vector<4x1xf32>
    %20 = vector.broadcast %19 : vector<4x1xf32> to vector<4x64xf32>
    %21 = arith.mulf %16, %20 : vector<4x64xf32>
    %22 = vector.broadcast %2 : vector<1x64xf32> to vector<4x64xf32>
    %23 = arith.mulf %21, %22 : vector<4x64xf32>
    %24 = vector.broadcast %3 : vector<1x64xf32> to vector<4x64xf32>
    %25 = arith.addf %23, %24 : vector<4x64xf32>
    %c0_10 = arith.constant 0 : index
    %c0_11 = arith.constant 0 : index
    %26 = vector.load %arg4[%c0_10, %c0_11] : memref<64x192xf32, #tpu.memory_space<vmem>>, vector<64x192xf32>
    %cst_12 = arith.constant dense<0.000000e+00> : vector<4x192xf32>
    %27 = tpu.matmul %25, %26, %cst_12 {dimension_numbers = #tpu.dot_dimension_numbers<[1], [0], [0], [1], [0, 0, 1, 1], [], []>} : vector<4x64xf32>, vector<64x192xf32>, vector<4x192xf32> -> vector<4x192xf32>
    %c0_13 = arith.constant 0 : index
    %c0_14 = arith.constant 0 : index
    %28 = vector.load %arg5[%c0_13, %c0_14] : memref<64x64xf32, #tpu.memory_space<vmem>>, vector<64x64xf32>
    %c0_15 = arith.constant 0 : index
    %c0_16 = arith.constant 0 : index
    %29 = vector.load %arg6[%c0_15, %c0_16] : memref<1x64xf32, #tpu.memory_space<vmem>>, vector<1x64xf32>
    %30 = vector.broadcast %29 : vector<1x64xf32> to vector<4x64xf32>
    %31 = arith.addf %1, %30 : vector<4x64xf32>
    %32 = vector.extract_strided_slice %27 {offsets = [0, 0], sizes = [4, 16], strides = [1, 1]} : vector<4x192xf32> to vector<4x16xf32>
    %33 = vector.shape_cast %32 : vector<4x16xf32> to vector<1x4x16xf32>
    %cst_17 = arith.constant 2.500000e-01 : f32
    %34 = vector.broadcast %cst_17 : f32 to vector<1x4x16xf32>
    %35 = arith.mulf %33, %34 : vector<1x4x16xf32>
    %36 = vector.extract_strided_slice %27 {offsets = [0, 64], sizes = [4, 16], strides = [1, 1]} : vector<4x192xf32> to vector<4x16xf32>
    %37 = vector.shape_cast %36 : vector<4x16xf32> to vector<1x4x16xf32>
    %38 = vector.extract_strided_slice %27 {offsets = [0, 128], sizes = [4, 16], strides = [1, 1]} : vector<4x192xf32> to vector<4x16xf32>
    %39 = vector.shape_cast %38 : vector<4x16xf32> to vector<1x4x16xf32>
    "tpu.trace_start"() <{level = 10 : i32, message = "bqd,bkd->bqk"}> : () -> ()
    %cst_18 = arith.constant dense<0.000000e+00> : vector<1x4x4xf32>
    %40 = tpu.matmul %35, %37, %cst_18 {dimension_numbers = #tpu.dot_dimension_numbers<[2], [2], [1], [1], [0, 0, 0, 1, 1, 1], [0], [0]>} : vector<1x4x16xf32>, vector<1x4x16xf32>, vector<1x4x4xf32> -> vector<1x4x4xf32>
    "tpu.trace_stop"() : () -> ()
    %c0_19 = arith.constant 0 : index
    %c0_20 = arith.constant 0 : index
    %c0_21 = arith.constant 0 : index
    %41 = vector.load %arg7[%c0_19, %c0_20, %c0_21] : memref<4x4x4xf32, #tpu.memory_space<vmem>>, vector<1x4x4xf32>
    %42 = vector.shape_cast %41 : vector<1x4x4xf32> to vector<4x4xf32>
    %43 = vector.shape_cast %42 : vector<4x4xf32> to vector<1x4x4xf32>
    %44 = arith.addf %40, %43 : vector<1x4x4xf32>
    %cst_22 = arith.constant dense<0xFF800000> : vector<1x4xf32>
    %45 = vector.multi_reduction <maximumf>, %44, %cst_22 [2] : vector<1x4x4xf32> to vector<1x4xf32>
    %46 = vector.shape_cast %45 : vector<1x4xf32> to vector<1x4x1xf32>
    %47 = vector.broadcast %46 : vector<1x4x1xf32> to vector<1x4x4xf32>
    %48 = arith.subf %44, %47 : vector<1x4x4xf32>
    %49 = math.exp %48 : vector<1x4x4xf32>
    %cst_23 = arith.constant dense<0.000000e+00> : vector<1x4xf32>
    %50 = vector.multi_reduction <add>, %49, %cst_23 [2] : vector<1x4x4xf32> to vector<1x4xf32>
    %51 = vector.shape_cast %50 : vector<1x4xf32> to vector<1x4x1xf32>
    %52 = tpu.reciprocal %51 {approx = true} : vector<1x4x1xf32> -> vector<1x4x1xf32>
    %53 = vector.broadcast %52 : vector<1x4x1xf32> to vector<1x4x4xf32>
    %54 = arith.mulf %49, %53 : vector<1x4x4xf32>
    "tpu.trace_start"() <{level = 10 : i32, message = "bqk,bkd->bqd"}> : () -> ()
    %cst_24 = arith.constant dense<0.000000e+00> : vector<1x4x16xf32>
    %55 = tpu.matmul %54, %39, %cst_24 {dimension_numbers = #tpu.dot_dimension_numbers<[2], [1], [1], [2], [0, 0, 0, 1, 1, 2], [0], [0]>} : vector<1x4x4xf32>, vector<1x4x16xf32>, vector<1x4x16xf32> -> vector<1x4x16xf32>
    "tpu.trace_stop"() : () -> ()
    %56 = vector.shape_cast %55 : vector<1x4x16xf32> to vector<4x16xf32>
    %57 = vector.extract_strided_slice %28 {offsets = [0, 0], sizes = [16, 64], strides = [1, 1]} : vector<64x64xf32> to vector<16x64xf32>
    %cst_25 = arith.constant dense<0.000000e+00> : vector<4x64xf32>
    %58 = tpu.matmul %56, %57, %cst_25 {dimension_numbers = #tpu.dot_dimension_numbers<[1], [0], [0], [1], [0, 0, 1, 1], [], []>} : vector<4x16xf32>, vector<16x64xf32>, vector<4x64xf32> -> vector<4x64xf32>
    %59 = arith.addf %31, %58 : vector<4x64xf32>
    %60 = vector.extract_strided_slice %27 {offsets = [0, 16], sizes = [4, 16], strides = [1, 1]} : vector<4x192xf32> to vector<4x16xf32>
    %61 = vector.shape_cast %60 : vector<4x16xf32> to vector<1x4x16xf32>
    %cst_26 = arith.constant 2.500000e-01 : f32
    %62 = vector.broadcast %cst_26 : f32 to vector<1x4x16xf32>
    %63 = arith.mulf %61, %62 : vector<1x4x16xf32>
    %64 = vector.extract_strided_slice %27 {offsets = [0, 80], sizes = [4, 16], strides = [1, 1]} : vector<4x192xf32> to vector<4x16xf32>
    %65 = vector.shape_cast %64 : vector<4x16xf32> to vector<1x4x16xf32>
    %66 = vector.extract_strided_slice %27 {offsets = [0, 144], sizes = [4, 16], strides = [1, 1]} : vector<4x192xf32> to vector<4x16xf32>
    %67 = vector.shape_cast %66 : vector<4x16xf32> to vector<1x4x16xf32>
    "tpu.trace_start"() <{level = 10 : i32, message = "bqd,bkd->bqk"}> : () -> ()
    %cst_27 = arith.constant dense<0.000000e+00> : vector<1x4x4xf32>
    %68 = tpu.matmul %63, %65, %cst_27 {dimension_numbers = #tpu.dot_dimension_numbers<[2], [2], [1], [1], [0, 0, 0, 1, 1, 1], [0], [0]>} : vector<1x4x16xf32>, vector<1x4x16xf32>, vector<1x4x4xf32> -> vector<1x4x4xf32>
    "tpu.trace_stop"() : () -> ()
    %c1 = arith.constant 1 : index
    %c0_28 = arith.constant 0 : index
    %c0_29 = arith.constant 0 : index
    %69 = vector.load %arg7[%c1, %c0_28, %c0_29] : memref<4x4x4xf32, #tpu.memory_space<vmem>>, vector<1x4x4xf32>
    %70 = vector.shape_cast %69 : vector<1x4x4xf32> to vector<4x4xf32>
    %71 = vector.shape_cast %70 : vector<4x4xf32> to vector<1x4x4xf32>
    %72 = arith.addf %68, %71 : vector<1x4x4xf32>
    %cst_30 = arith.constant dense<0xFF800000> : vector<1x4xf32>
    %73 = vector.multi_reduction <maximumf>, %72, %cst_30 [2] : vector<1x4x4xf32> to vector<1x4xf32>
    %74 = vector.shape_cast %73 : vector<1x4xf32> to vector<1x4x1xf32>
    %75 = vector.broadcast %74 : vector<1x4x1xf32> to vector<1x4x4xf32>
    %76 = arith.subf %72, %75 : vector<1x4x4xf32>
    %77 = math.exp %76 : vector<1x4x4xf32>
    %cst_31 = arith.constant dense<0.000000e+00> : vector<1x4xf32>
    %78 = vector.multi_reduction <add>, %77, %cst_31 [2] : vector<1x4x4xf32> to vector<1x4xf32>
    %79 = vector.shape_cast %78 : vector<1x4xf32> to vector<1x4x1xf32>
    %80 = tpu.reciprocal %79 {approx = true} : vector<1x4x1xf32> -> vector<1x4x1xf32>
    %81 = vector.broadcast %80 : vector<1x4x1xf32> to vector<1x4x4xf32>
    %82 = arith.mulf %77, %81 : vector<1x4x4xf32>
    "tpu.trace_start"() <{level = 10 : i32, message = "bqk,bkd->bqd"}> : () -> ()
    %cst_32 = arith.constant dense<0.000000e+00> : vector<1x4x16xf32>
    %83 = tpu.matmul %82, %67, %cst_32 {dimension_numbers = #tpu.dot_dimension_numbers<[2], [1], [1], [2], [0, 0, 0, 1, 1, 2], [0], [0]>} : vector<1x4x4xf32>, vector<1x4x16xf32>, vector<1x4x16xf32> -> vector<1x4x16xf32>
    "tpu.trace_stop"() : () -> ()
    %84 = vector.shape_cast %83 : vector<1x4x16xf32> to vector<4x16xf32>
    %85 = vector.extract_strided_slice %28 {offsets = [16, 0], sizes = [16, 64], strides = [1, 1]} : vector<64x64xf32> to vector<16x64xf32>
    %cst_33 = arith.constant dense<0.000000e+00> : vector<4x64xf32>
    %86 = tpu.matmul %84, %85, %cst_33 {dimension_numbers = #tpu.dot_dimension_numbers<[1], [0], [0], [1], [0, 0, 1, 1], [], []>} : vector<4x16xf32>, vector<16x64xf32>, vector<4x64xf32> -> vector<4x64xf32>
    %87 = arith.addf %59, %86 : vector<4x64xf32>
    %88 = vector.extract_strided_slice %27 {offsets = [0, 32], sizes = [4, 16], strides = [1, 1]} : vector<4x192xf32> to vector<4x16xf32>
    %89 = vector.shape_cast %88 : vector<4x16xf32> to vector<1x4x16xf32>
    %cst_34 = arith.constant 2.500000e-01 : f32
    %90 = vector.broadcast %cst_34 : f32 to vector<1x4x16xf32>
    %91 = arith.mulf %89, %90 : vector<1x4x16xf32>
    %92 = vector.extract_strided_slice %27 {offsets = [0, 96], sizes = [4, 16], strides = [1, 1]} : vector<4x192xf32> to vector<4x16xf32>
    %93 = vector.shape_cast %92 : vector<4x16xf32> to vector<1x4x16xf32>
    %94 = vector.extract_strided_slice %27 {offsets = [0, 160], sizes = [4, 16], strides = [1, 1]} : vector<4x192xf32> to vector<4x16xf32>
    %95 = vector.shape_cast %94 : vector<4x16xf32> to vector<1x4x16xf32>
    "tpu.trace_start"() <{level = 10 : i32, message = "bqd,bkd->bqk"}> : () -> ()
    %cst_35 = arith.constant dense<0.000000e+00> : vector<1x4x4xf32>
    %96 = tpu.matmul %91, %93, %cst_35 {dimension_numbers = #tpu.dot_dimension_numbers<[2], [2], [1], [1], [0, 0, 0, 1, 1, 1], [0], [0]>} : vector<1x4x16xf32>, vector<1x4x16xf32>, vector<1x4x4xf32> -> vector<1x4x4xf32>
    "tpu.trace_stop"() : () -> ()
    %c2 = arith.constant 2 : index
    %c0_36 = arith.constant 0 : index
    %c0_37 = arith.constant 0 : index
    %97 = vector.load %arg7[%c2, %c0_36, %c0_37] : memref<4x4x4xf32, #tpu.memory_space<vmem>>, vector<1x4x4xf32>
    %98 = vector.shape_cast %97 : vector<1x4x4xf32> to vector<4x4xf32>
    %99 = vector.shape_cast %98 : vector<4x4xf32> to vector<1x4x4xf32>
    %100 = arith.addf %96, %99 : vector<1x4x4xf32>
    %cst_38 = arith.constant dense<0xFF800000> : vector<1x4xf32>
    %101 = vector.multi_reduction <maximumf>, %100, %cst_38 [2] : vector<1x4x4xf32> to vector<1x4xf32>
    %102 = vector.shape_cast %101 : vector<1x4xf32> to vector<1x4x1xf32>
    %103 = vector.broadcast %102 : vector<1x4x1xf32> to vector<1x4x4xf32>
    %104 = arith.subf %100, %103 : vector<1x4x4xf32>
    %105 = math.exp %104 : vector<1x4x4xf32>
    %cst_39 = arith.constant dense<0.000000e+00> : vector<1x4xf32>
    %106 = vector.multi_reduction <add>, %105, %cst_39 [2] : vector<1x4x4xf32> to vector<1x4xf32>
    %107 = vector.shape_cast %106 : vector<1x4xf32> to vector<1x4x1xf32>
    %108 = tpu.reciprocal %107 {approx = true} : vector<1x4x1xf32> -> vector<1x4x1xf32>
    %109 = vector.broadcast %108 : vector<1x4x1xf32> to vector<1x4x4xf32>
    %110 = arith.mulf %105, %109 : vector<1x4x4xf32>
    "tpu.trace_start"() <{level = 10 : i32, message = "bqk,bkd->bqd"}> : () -> ()
    %cst_40 = arith.constant dense<0.000000e+00> : vector<1x4x16xf32>
    %111 = tpu.matmul %110, %95, %cst_40 {dimension_numbers = #tpu.dot_dimension_numbers<[2], [1], [1], [2], [0, 0, 0, 1, 1, 2], [0], [0]>} : vector<1x4x4xf32>, vector<1x4x16xf32>, vector<1x4x16xf32> -> vector<1x4x16xf32>
    "tpu.trace_stop"() : () -> ()
    %112 = vector.shape_cast %111 : vector<1x4x16xf32> to vector<4x16xf32>
    %113 = vector.extract_strided_slice %28 {offsets = [32, 0], sizes = [16, 64], strides = [1, 1]} : vector<64x64xf32> to vector<16x64xf32>
    %cst_41 = arith.constant dense<0.000000e+00> : vector<4x64xf32>
    %114 = tpu.matmul %112, %113, %cst_41 {dimension_numbers = #tpu.dot_dimension_numbers<[1], [0], [0], [1], [0, 0, 1, 1], [], []>} : vector<4x16xf32>, vector<16x64xf32>, vector<4x64xf32> -> vector<4x64xf32>
    %115 = arith.addf %87, %114 : vector<4x64xf32>
    %116 = vector.extract_strided_slice %27 {offsets = [0, 48], sizes = [4, 16], strides = [1, 1]} : vector<4x192xf32> to vector<4x16xf32>
    %117 = vector.shape_cast %116 : vector<4x16xf32> to vector<1x4x16xf32>
    %cst_42 = arith.constant 2.500000e-01 : f32
    %118 = vector.broadcast %cst_42 : f32 to vector<1x4x16xf32>
    %119 = arith.mulf %117, %118 : vector<1x4x16xf32>
    %120 = vector.extract_strided_slice %27 {offsets = [0, 112], sizes = [4, 16], strides = [1, 1]} : vector<4x192xf32> to vector<4x16xf32>
    %121 = vector.shape_cast %120 : vector<4x16xf32> to vector<1x4x16xf32>
    %122 = vector.extract_strided_slice %27 {offsets = [0, 176], sizes = [4, 16], strides = [1, 1]} : vector<4x192xf32> to vector<4x16xf32>
    %123 = vector.shape_cast %122 : vector<4x16xf32> to vector<1x4x16xf32>
    "tpu.trace_start"() <{level = 10 : i32, message = "bqd,bkd->bqk"}> : () -> ()
    %cst_43 = arith.constant dense<0.000000e+00> : vector<1x4x4xf32>
    %124 = tpu.matmul %119, %121, %cst_43 {dimension_numbers = #tpu.dot_dimension_numbers<[2], [2], [1], [1], [0, 0, 0, 1, 1, 1], [0], [0]>} : vector<1x4x16xf32>, vector<1x4x16xf32>, vector<1x4x4xf32> -> vector<1x4x4xf32>
    "tpu.trace_stop"() : () -> ()
    %c3 = arith.constant 3 : index
    %c0_44 = arith.constant 0 : index
    %c0_45 = arith.constant 0 : index
    %125 = vector.load %arg7[%c3, %c0_44, %c0_45] : memref<4x4x4xf32, #tpu.memory_space<vmem>>, vector<1x4x4xf32>
    %126 = vector.shape_cast %125 : vector<1x4x4xf32> to vector<4x4xf32>
    %127 = vector.shape_cast %126 : vector<4x4xf32> to vector<1x4x4xf32>
    %128 = arith.addf %124, %127 : vector<1x4x4xf32>
    %cst_46 = arith.constant dense<0xFF800000> : vector<1x4xf32>
    %129 = vector.multi_reduction <maximumf>, %128, %cst_46 [2] : vector<1x4x4xf32> to vector<1x4xf32>
    %130 = vector.shape_cast %129 : vector<1x4xf32> to vector<1x4x1xf32>
    %131 = vector.broadcast %130 : vector<1x4x1xf32> to vector<1x4x4xf32>
    %132 = arith.subf %128, %131 : vector<1x4x4xf32>
    %133 = math.exp %132 : vector<1x4x4xf32>
    %cst_47 = arith.constant dense<0.000000e+00> : vector<1x4xf32>
    %134 = vector.multi_reduction <add>, %133, %cst_47 [2] : vector<1x4x4xf32> to vector<1x4xf32>
    %135 = vector.shape_cast %134 : vector<1x4xf32> to vector<1x4x1xf32>
    %136 = tpu.reciprocal %135 {approx = true} : vector<1x4x1xf32> -> vector<1x4x1xf32>
    %137 = vector.broadcast %136 : vector<1x4x1xf32> to vector<1x4x4xf32>
    %138 = arith.mulf %133, %137 : vector<1x4x4xf32>
    "tpu.trace_start"() <{level = 10 : i32, message = "bqk,bkd->bqd"}> : () -> ()
    %cst_48 = arith.constant dense<0.000000e+00> : vector<1x4x16xf32>
    %139 = tpu.matmul %138, %123, %cst_48 {dimension_numbers = #tpu.dot_dimension_numbers<[2], [1], [1], [2], [0, 0, 0, 1, 1, 2], [0], [0]>} : vector<1x4x4xf32>, vector<1x4x16xf32>, vector<1x4x16xf32> -> vector<1x4x16xf32>
    "tpu.trace_stop"() : () -> ()
    %140 = vector.shape_cast %139 : vector<1x4x16xf32> to vector<4x16xf32>
    %141 = vector.extract_strided_slice %28 {offsets = [48, 0], sizes = [16, 64], strides = [1, 1]} : vector<64x64xf32> to vector<16x64xf32>
    %cst_49 = arith.constant dense<0.000000e+00> : vector<4x64xf32>
    %142 = tpu.matmul %140, %141, %cst_49 {dimension_numbers = #tpu.dot_dimension_numbers<[1], [0], [0], [1], [0, 0, 1, 1], [], []>} : vector<4x16xf32>, vector<16x64xf32>, vector<4x64xf32> -> vector<4x64xf32>
    %143 = arith.addf %115, %142 : vector<4x64xf32>
    %c0_50 = arith.constant 0 : index
    %c0_51 = arith.constant 0 : index
    %144 = vector.load %arg8[%c0_50, %c0_51] : memref<1x64xf32, #tpu.memory_space<vmem>>, vector<1x64xf32>
    %c0_52 = arith.constant 0 : index
    %c0_53 = arith.constant 0 : index
    %145 = vector.load %arg9[%c0_52, %c0_53] : memref<1x64xf32, #tpu.memory_space<vmem>>, vector<1x64xf32>
    %cst_54 = arith.constant dense<0.000000e+00> : vector<4xf32>
    %146 = vector.multi_reduction <add>, %143, %cst_54 [1] : vector<4x64xf32> to vector<4xf32>
    %147 = vector.shape_cast %146 : vector<4xf32> to vector<4x1xf32>
    %cst_55 = arith.constant 6.400000e+01 : f32
    %148 = vector.broadcast %cst_55 : f32 to vector<4x1xf32>
    %149 = arith.divf %147, %148 : vector<4x1xf32>
    %150 = vector.broadcast %149 : vector<4x1xf32> to vector<4x64xf32>
    %151 = arith.subf %143, %150 : vector<4x64xf32>
    %152 = arith.mulf %151, %151 : vector<4x64xf32>
    %cst_56 = arith.constant dense<0.000000e+00> : vector<4xf32>
    %153 = vector.multi_reduction <add>, %152, %cst_56 [1] : vector<4x64xf32> to vector<4xf32>
    %154 = vector.shape_cast %153 : vector<4xf32> to vector<4x1xf32>
    %cst_57 = arith.constant 6.400000e+01 : f32
    %155 = vector.broadcast %cst_57 : f32 to vector<4x1xf32>
    %156 = arith.divf %154, %155 : vector<4x1xf32>
    %157 = vector.broadcast %149 : vector<4x1xf32> to vector<4x64xf32>
    %158 = arith.subf %143, %157 : vector<4x64xf32>
    %cst_58 = arith.constant 9.99999974E-6 : f32
    %159 = vector.broadcast %cst_58 : f32 to vector<4x1xf32>
    %160 = arith.addf %156, %159 : vector<4x1xf32>
    %161 = math.rsqrt %160 : vector<4x1xf32>
    %162 = vector.broadcast %161 : vector<4x1xf32> to vector<4x64xf32>
    %163 = arith.mulf %158, %162 : vector<4x64xf32>
    %164 = vector.broadcast %144 : vector<1x64xf32> to vector<4x64xf32>
    %165 = arith.mulf %163, %164 : vector<4x64xf32>
    %166 = vector.broadcast %145 : vector<1x64xf32> to vector<4x64xf32>
    %167 = arith.addf %165, %166 : vector<4x64xf32>
    %c0_59 = arith.constant 0 : index
    %c0_60 = arith.constant 0 : index
    %168 = vector.load %arg10[%c0_59, %c0_60] : memref<64x256xf32, #tpu.memory_space<vmem>>, vector<64x256xf32>
    %cst_61 = arith.constant dense<0.000000e+00> : vector<4x256xf32>
    %169 = tpu.matmul %167, %168, %cst_61 {dimension_numbers = #tpu.dot_dimension_numbers<[1], [0], [0], [1], [0, 0, 1, 1], [], []>} : vector<4x64xf32>, vector<64x256xf32>, vector<4x256xf32> -> vector<4x256xf32>
    %c0_62 = arith.constant 0 : index
    %c0_63 = arith.constant 0 : index
    %170 = vector.load %arg11[%c0_62, %c0_63] : memref<1x256xf32, #tpu.memory_space<vmem>>, vector<1x256xf32>
    %171 = vector.broadcast %170 : vector<1x256xf32> to vector<4x256xf32>
    %172 = arith.addf %169, %171 : vector<4x256xf32>
    %cst_64 = arith.constant 5.000000e-01 : f32
    %173 = vector.broadcast %cst_64 : f32 to vector<4x256xf32>
    %174 = arith.mulf %173, %172 : vector<4x256xf32>
    %cst_65 = arith.constant 4.471500e-02 : f32
    %175 = vector.broadcast %cst_65 : f32 to vector<4x256xf32>
    %176 = arith.mulf %175, %172 : vector<4x256xf32>
    %177 = arith.mulf %176, %172 : vector<4x256xf32>
    %178 = arith.mulf %177, %172 : vector<4x256xf32>
    %179 = arith.addf %172, %178 : vector<4x256xf32>
    %cst_66 = arith.constant 0.797884583 : f32
    %180 = vector.broadcast %cst_66 : f32 to vector<4x256xf32>
    %181 = arith.mulf %180, %179 : vector<4x256xf32>
    %182 = math.tanh %181 : vector<4x256xf32>
    %cst_67 = arith.constant 1.000000e+00 : f32
    %183 = vector.broadcast %cst_67 : f32 to vector<4x256xf32>
    %184 = arith.addf %183, %182 : vector<4x256xf32>
    %185 = arith.mulf %174, %184 : vector<4x256xf32>
    %c0_68 = arith.constant 0 : index
    %c0_69 = arith.constant 0 : index
    %186 = vector.load %arg12[%c0_68, %c0_69] : memref<256x64xf32, #tpu.memory_space<vmem>>, vector<256x64xf32>
    %cst_70 = arith.constant dense<0.000000e+00> : vector<4x64xf32>
    %187 = tpu.matmul %185, %186, %cst_70 {dimension_numbers = #tpu.dot_dimension_numbers<[1], [0], [0], [1], [0, 0, 1, 1], [], []>} : vector<4x256xf32>, vector<256x64xf32>, vector<4x64xf32> -> vector<4x64xf32>
    %188 = arith.addf %143, %187 : vector<4x64xf32>
    %c0_71 = arith.constant 0 : index
    %c0_72 = arith.constant 0 : index
    %189 = vector.load %arg13[%c0_71, %c0_72] : memref<1x64xf32, #tpu.memory_space<vmem>>, vector<1x64xf32>
    %190 = vector.broadcast %189 : vector<1x64xf32> to vector<4x64xf32>
    %191 = arith.addf %188, %190 : vector<4x64xf32>
    %192 = vector.shape_cast %191 : vector<4x64xf32> to vector<1x4x64xf32>
    %c0_73 = arith.constant 0 : index
    %c0_74 = arith.constant 0 : index
    %c0_75 = arith.constant 0 : index
    %193 = vector.load %arg14[%c0_73, %c0_74, %c0_75] : memref<1x4x64xf32, #tpu.memory_space<vmem>>, vector<1x4x64xf32>
    tpu.vector_store %arg14[%c0_73, %c0_74, %c0_75], %192 {strides = array<i32>} : memref<1x4x64xf32, #tpu.memory_space<vmem>>, vector<1x4x64xf32>,
    return
  }
  func.func @transform_0(%arg0: i32) -> (i32, i32, i32) {
    %c0_i32 = arith.constant 0 : i32
    %c0_i32_0 = arith.constant 0 : i32
    %c0_i32_1 = arith.constant 0 : i32
    return %arg0, %c0_i32, %c0_i32_0 : i32, i32, i32
  }
  func.func @transform_1(%arg0: i32) -> (i32, i32) {
    %c0_i32 = arith.constant 0 : i32
    %c0_i32_0 = arith.constant 0 : i32
    %c0_i32_1 = arith.constant 0 : i32
    return %c0_i32, %c0_i32_0 : i32, i32
  }
  func.func @transform_2(%arg0: i32) -> (i32, i32) {
    %c0_i32 = arith.constant 0 : i32
    %c0_i32_0 = arith.constant 0 : i32
    %c0_i32_1 = arith.constant 0 : i32
    return %c0_i32, %c0_i32_0 : i32, i32
  }
  func.func @transform_3(%arg0: i32) -> (i32, i32) {
    %c0_i32 = arith.constant 0 : i32
    %c0_i32_0 = arith.constant 0 : i32
    %c0_i32_1 = arith.constant 0 : i32
    return %c0_i32, %c0_i32_0 : i32, i32
  }
  func.func @transform_4(%arg0: i32) -> (i32, i32) {
    %c0_i32 = arith.constant 0 : i32
    %c0_i32_0 = arith.constant 0 : i32
    %c0_i32_1 = arith.constant 0 : i32
    return %c0_i32, %c0_i32_0 : i32, i32
  }
  func.func @transform_5(%arg0: i32) -> (i32, i32) {
    %c0_i32 = arith.constant 0 : i32
    %c0_i32_0 = arith.constant 0 : i32
    %c0_i32_1 = arith.constant 0 : i32
    return %c0_i32, %c0_i32_0 : i32, i32
  }
  func.func @transform_6(%arg0: i32) -> (i32, i32, i32) {
    %c0_i32 = arith.constant 0 : i32
    %c0_i32_0 = arith.constant 0 : i32
    %c0_i32_1 = arith.constant 0 : i32
    %c0_i32_2 = arith.constant 0 : i32
    return %c0_i32, %c0_i32_0, %c0_i32_1 : i32, i32, i32
  }
  func.func @transform_7(%arg0: i32) -> (i32, i32) {
    %c0_i32 = arith.constant 0 : i32
    %c0_i32_0 = arith.constant 0 : i32
    %c0_i32_1 = arith.constant 0 : i32
    return %c0_i32, %c0_i32_0 : i32, i32
  }
  func.func @transform_8(%arg0: i32) -> (i32, i32) {
    %c0_i32 = arith.constant 0 : i32
    %c0_i32_0 = arith.constant 0 : i32
    %c0_i32_1 = arith.constant 0 : i32
    return %c0_i32, %c0_i32_0 : i32, i32
  }
  func.func @transform_9(%arg0: i32) -> (i32, i32) {
    %c0_i32 = arith.constant 0 : i32
    %c0_i32_0 = arith.constant 0 : i32
    %c0_i32_1 = arith.constant 0 : i32
    return %c0_i32, %c0_i32_0 : i32, i32
  }
  func.func @transform_10(%arg0: i32) -> (i32, i32) {
    %c0_i32 = arith.constant 0 : i32
    %c0_i32_0 = arith.constant 0 : i32
    %c0_i32_1 = arith.constant 0 : i32
    return %c0_i32, %c0_i32_0 : i32, i32
  }
  func.func @transform_11(%arg0: i32) -> (i32, i32) {
    %c0_i32 = arith.constant 0 : i32
    %c0_i32_0 = arith.constant 0 : i32
    %c0_i32_1 = arith.constant 0 : i32
    return %c0_i32, %c0_i32_0 : i32, i32
  }
  func.func @transform_12(%arg0: i32) -> (i32, i32) {
    %c0_i32 = arith.constant 0 : i32
    %c0_i32_0 = arith.constant 0 : i32
    %c0_i32_1 = arith.constant 0 : i32
    return %c0_i32, %c0_i32_0 : i32, i32
  }
  func.func @transform_13(%arg0: i32) -> (i32, i32, i32) {
    %c0_i32 = arith.constant 0 : i32
    %c0_i32_0 = arith.constant 0 : i32
    %c0_i32_1 = arith.constant 0 : i32
    return %arg0, %c0_i32, %c0_i32_0 : i32, i32, i32
  }
}

module attributes {stable_mosaic.version = 11 : i64} {
  func.func @_gate_head_kernel(%arg0: i32, %arg1: memref<2x4x64xf32, #tpu.memory_space<vmem>>, %arg2: memref<1x64xf32, #tpu.memory_space<vmem>>, %arg3: memref<1x64xf32, #tpu.memory_space<vmem>>, %arg4: memref<4x4x64xf32, #tpu.memory_space<vmem>>, %arg5: memref<4x64xf32, #tpu.memory_space<vmem>>, %arg6: memref<4x64x10xf32, #tpu.memory_space<vmem>>, %arg7: memref<1x10xf32, #tpu.memory_space<vmem>>, %arg8: memref<2x10xf32, #tpu.memory_space<vmem>>) attributes {dimension_semantics = [#tpu.dimension_semantics<parallel>], iteration_bounds = array<i64: 1>, scalar_prefetch = 0 : i64, scratch_operands = 0 : i64, tpu.core_type = #tpu.core_type<tc>, window_params = [{pipeline_mode = #tpu.pipeline_mode<synchronous>, transform_indices = @transform_0, window_bounds = array<i64: 2, 4, 64>}, {pipeline_mode = #tpu.pipeline_mode<synchronous>, transform_indices = @transform_1, window_bounds = array<i64: 1, 64>}, {pipeline_mode = #tpu.pipeline_mode<synchronous>, transform_indices = @transform_2, window_bounds = array<i64: 1, 64>}, {pipeline_mode = #tpu.pipeline_mode<synchronous>, transform_indices = @transform_3, window_bounds = array<i64: 4, 4, 64>}, {pipeline_mode = #tpu.pipeline_mode<synchronous>, transform_indices = @transform_4, window_bounds = array<i64: 4, 64>}, {pipeline_mode = #tpu.pipeline_mode<synchronous>, transform_indices = @transform_5, window_bounds = array<i64: 4, 64, 10>}, {pipeline_mode = #tpu.pipeline_mode<synchronous>, transform_indices = @transform_6, window_bounds = array<i64: 1, 10>}, {pipeline_mode = #tpu.pipeline_mode<synchronous>, transform_indices = @transform_7, window_bounds = array<i64: 2, 10>}]} {
    %c0 = arith.constant 0 : index
    %c0_0 = arith.constant 0 : index
    %c0_1 = arith.constant 0 : index
    %0 = vector.load %arg1[%c0, %c0_0, %c0_1] : memref<2x4x64xf32, #tpu.memory_space<vmem>>, vector<2x4x64xf32>
    %c0_2 = arith.constant 0 : index
    %c0_3 = arith.constant 0 : index
    %1 = vector.load %arg2[%c0_2, %c0_3] : memref<1x64xf32, #tpu.memory_space<vmem>>, vector<1x64xf32>
    %c0_4 = arith.constant 0 : index
    %c0_5 = arith.constant 0 : index
    %2 = vector.load %arg3[%c0_4, %c0_5] : memref<1x64xf32, #tpu.memory_space<vmem>>, vector<1x64xf32>
    %cst = arith.constant dense<0.000000e+00> : vector<2x4xf32>
    %3 = vector.multi_reduction <add>, %0, %cst [2] : vector<2x4x64xf32> to vector<2x4xf32>
    %4 = vector.shape_cast %3 : vector<2x4xf32> to vector<2x4x1xf32>
    %cst_6 = arith.constant 6.400000e+01 : f32
    %5 = vector.broadcast %cst_6 : f32 to vector<2x4x1xf32>
    %6 = arith.divf %4, %5 : vector<2x4x1xf32>
    %7 = vector.broadcast %6 : vector<2x4x1xf32> to vector<2x4x64xf32>
    %8 = arith.subf %0, %7 : vector<2x4x64xf32>
    %9 = arith.mulf %8, %8 : vector<2x4x64xf32>
    %cst_7 = arith.constant dense<0.000000e+00> : vector<2x4xf32>
    %10 = vector.multi_reduction <add>, %9, %cst_7 [2] : vector<2x4x64xf32> to vector<2x4xf32>
    %11 = vector.shape_cast %10 : vector<2x4xf32> to vector<2x4x1xf32>
    %cst_8 = arith.constant 6.400000e+01 : f32
    %12 = vector.broadcast %cst_8 : f32 to vector<2x4x1xf32>
    %13 = arith.divf %11, %12 : vector<2x4x1xf32>
    %14 = vector.broadcast %6 : vector<2x4x1xf32> to vector<2x4x64xf32>
    %15 = arith.subf %0, %14 : vector<2x4x64xf32>
    %cst_9 = arith.constant 9.99999974E-6 : f32
    %16 = vector.broadcast %cst_9 : f32 to vector<2x4x1xf32>
    %17 = arith.addf %13, %16 : vector<2x4x1xf32>
    %18 = math.rsqrt %17 : vector<2x4x1xf32>
    %19 = vector.broadcast %18 : vector<2x4x1xf32> to vector<2x4x64xf32>
    %20 = arith.mulf %15, %19 : vector<2x4x64xf32>
    %21 = vector.shape_cast %1 : vector<1x64xf32> to vector<1x1x64xf32>
    %22 = vector.broadcast %21 : vector<1x1x64xf32> to vector<2x4x64xf32>
    %23 = arith.mulf %20, %22 : vector<2x4x64xf32>
    %24 = vector.shape_cast %2 : vector<1x64xf32> to vector<1x1x64xf32>
    %25 = vector.broadcast %24 : vector<1x1x64xf32> to vector<2x4x64xf32>
    %26 = arith.addf %23, %25 : vector<2x4x64xf32>
    %c0_10 = arith.constant 0 : index
    %c0_11 = arith.constant 0 : index
    %27 = vector.load %arg7[%c0_10, %c0_11] : memref<1x10xf32, #tpu.memory_space<vmem>>, vector<1x10xf32>
    %c0_12 = arith.constant 0 : index
    %c0_13 = arith.constant 0 : index
    %c0_14 = arith.constant 0 : index
    %28 = vector.load %arg4[%c0_12, %c0_13, %c0_14] : memref<4x4x64xf32, #tpu.memory_space<vmem>>, vector<1x4x64xf32>
    %29 = vector.shape_cast %28 : vector<1x4x64xf32> to vector<4x64xf32>
    %30 = vector.shape_cast %29 : vector<4x64xf32> to vector<1x4x64xf32>
    %31 = vector.broadcast %30 : vector<1x4x64xf32> to vector<2x4x64xf32>
    %32 = arith.mulf %26, %31 : vector<2x4x64xf32>
    %cst_15 = arith.constant dense<0.000000e+00> : vector<2x64xf32>
    %33 = vector.multi_reduction <add>, %32, %cst_15 [1] : vector<2x4x64xf32> to vector<2x64xf32>
    %c0_16 = arith.constant 0 : index
    %c0_17 = arith.constant 0 : index
    %34 = vector.load %arg5[%c0_16, %c0_17] : memref<4x64xf32, #tpu.memory_space<vmem>>, vector<1x64xf32>
    %35 = vector.broadcast %34 : vector<1x64xf32> to vector<2x64xf32>
    %36 = arith.addf %33, %35 : vector<2x64xf32>
    %c0_18 = arith.constant 0 : index
    %c0_19 = arith.constant 0 : index
    %c0_20 = arith.constant 0 : index
    %37 = vector.load %arg6[%c0_18, %c0_19, %c0_20] : memref<4x64x10xf32, #tpu.memory_space<vmem>>, vector<1x64x10xf32>
    %38 = vector.shape_cast %37 : vector<1x64x10xf32> to vector<64x10xf32>
    %cst_21 = arith.constant dense<0.000000e+00> : vector<2x10xf32>
    %39 = tpu.matmul %36, %38, %cst_21 {dimension_numbers = #tpu.dot_dimension_numbers<[1], [0], [0], [1], [0, 0, 1, 1], [], []>} : vector<2x64xf32>, vector<64x10xf32>, vector<2x10xf32> -> vector<2x10xf32>
    %40 = vector.broadcast %27 : vector<1x10xf32> to vector<2x10xf32>
    %41 = arith.addf %40, %39 : vector<2x10xf32>
    %c1 = arith.constant 1 : index
    %c0_22 = arith.constant 0 : index
    %c0_23 = arith.constant 0 : index
    %42 = vector.load %arg4[%c1, %c0_22, %c0_23] : memref<4x4x64xf32, #tpu.memory_space<vmem>>, vector<1x4x64xf32>
    %43 = vector.shape_cast %42 : vector<1x4x64xf32> to vector<4x64xf32>
    %44 = vector.shape_cast %43 : vector<4x64xf32> to vector<1x4x64xf32>
    %45 = vector.broadcast %44 : vector<1x4x64xf32> to vector<2x4x64xf32>
    %46 = arith.mulf %26, %45 : vector<2x4x64xf32>
    %cst_24 = arith.constant dense<0.000000e+00> : vector<2x64xf32>
    %47 = vector.multi_reduction <add>, %46, %cst_24 [1] : vector<2x4x64xf32> to vector<2x64xf32>
    %c1_25 = arith.constant 1 : index
    %c0_26 = arith.constant 0 : index
    %48 = vector.load %arg5[%c1_25, %c0_26] : memref<4x64xf32, #tpu.memory_space<vmem>>, vector<1x64xf32>
    %49 = vector.broadcast %48 : vector<1x64xf32> to vector<2x64xf32>
    %50 = arith.addf %47, %49 : vector<2x64xf32>
    %c1_27 = arith.constant 1 : index
    %c0_28 = arith.constant 0 : index
    %c0_29 = arith.constant 0 : index
    %51 = vector.load %arg6[%c1_27, %c0_28, %c0_29] : memref<4x64x10xf32, #tpu.memory_space<vmem>>, vector<1x64x10xf32>
    %52 = vector.shape_cast %51 : vector<1x64x10xf32> to vector<64x10xf32>
    %cst_30 = arith.constant dense<0.000000e+00> : vector<2x10xf32>
    %53 = tpu.matmul %50, %52, %cst_30 {dimension_numbers = #tpu.dot_dimension_numbers<[1], [0], [0], [1], [0, 0, 1, 1], [], []>} : vector<2x64xf32>, vector<64x10xf32>, vector<2x10xf32> -> vector<2x10xf32>
    %54 = arith.addf %41, %53 : vector<2x10xf32>
    %c2 = arith.constant 2 : index
    %c0_31 = arith.constant 0 : index
    %c0_32 = arith.constant 0 : index
    %55 = vector.load %arg4[%c2, %c0_31, %c0_32] : memref<4x4x64xf32, #tpu.memory_space<vmem>>, vector<1x4x64xf32>
    %56 = vector.shape_cast %55 : vector<1x4x64xf32> to vector<4x64xf32>
    %57 = vector.shape_cast %56 : vector<4x64xf32> to vector<1x4x64xf32>
    %58 = vector.broadcast %57 : vector<1x4x64xf32> to vector<2x4x64xf32>
    %59 = arith.mulf %26, %58 : vector<2x4x64xf32>
    %cst_33 = arith.constant dense<0.000000e+00> : vector<2x64xf32>
    %60 = vector.multi_reduction <add>, %59, %cst_33 [1] : vector<2x4x64xf32> to vector<2x64xf32>
    %c2_34 = arith.constant 2 : index
    %c0_35 = arith.constant 0 : index
    %61 = vector.load %arg5[%c2_34, %c0_35] : memref<4x64xf32, #tpu.memory_space<vmem>>, vector<1x64xf32>
    %62 = vector.broadcast %61 : vector<1x64xf32> to vector<2x64xf32>
    %63 = arith.addf %60, %62 : vector<2x64xf32>
    %c2_36 = arith.constant 2 : index
    %c0_37 = arith.constant 0 : index
    %c0_38 = arith.constant 0 : index
    %64 = vector.load %arg6[%c2_36, %c0_37, %c0_38] : memref<4x64x10xf32, #tpu.memory_space<vmem>>, vector<1x64x10xf32>
    %65 = vector.shape_cast %64 : vector<1x64x10xf32> to vector<64x10xf32>
    %cst_39 = arith.constant dense<0.000000e+00> : vector<2x10xf32>
    %66 = tpu.matmul %63, %65, %cst_39 {dimension_numbers = #tpu.dot_dimension_numbers<[1], [0], [0], [1], [0, 0, 1, 1], [], []>} : vector<2x64xf32>, vector<64x10xf32>, vector<2x10xf32> -> vector<2x10xf32>
    %67 = arith.addf %54, %66 : vector<2x10xf32>
    %c3 = arith.constant 3 : index
    %c0_40 = arith.constant 0 : index
    %c0_41 = arith.constant 0 : index
    %68 = vector.load %arg4[%c3, %c0_40, %c0_41] : memref<4x4x64xf32, #tpu.memory_space<vmem>>, vector<1x4x64xf32>
    %69 = vector.shape_cast %68 : vector<1x4x64xf32> to vector<4x64xf32>
    %70 = vector.shape_cast %69 : vector<4x64xf32> to vector<1x4x64xf32>
    %71 = vector.broadcast %70 : vector<1x4x64xf32> to vector<2x4x64xf32>
    %72 = arith.mulf %26, %71 : vector<2x4x64xf32>
    %cst_42 = arith.constant dense<0.000000e+00> : vector<2x64xf32>
    %73 = vector.multi_reduction <add>, %72, %cst_42 [1] : vector<2x4x64xf32> to vector<2x64xf32>
    %c3_43 = arith.constant 3 : index
    %c0_44 = arith.constant 0 : index
    %74 = vector.load %arg5[%c3_43, %c0_44] : memref<4x64xf32, #tpu.memory_space<vmem>>, vector<1x64xf32>
    %75 = vector.broadcast %74 : vector<1x64xf32> to vector<2x64xf32>
    %76 = arith.addf %73, %75 : vector<2x64xf32>
    %c3_45 = arith.constant 3 : index
    %c0_46 = arith.constant 0 : index
    %c0_47 = arith.constant 0 : index
    %77 = vector.load %arg6[%c3_45, %c0_46, %c0_47] : memref<4x64x10xf32, #tpu.memory_space<vmem>>, vector<1x64x10xf32>
    %78 = vector.shape_cast %77 : vector<1x64x10xf32> to vector<64x10xf32>
    %cst_48 = arith.constant dense<0.000000e+00> : vector<2x10xf32>
    %79 = tpu.matmul %76, %78, %cst_48 {dimension_numbers = #tpu.dot_dimension_numbers<[1], [0], [0], [1], [0, 0, 1, 1], [], []>} : vector<2x64xf32>, vector<64x10xf32>, vector<2x10xf32> -> vector<2x10xf32>
    %80 = arith.addf %67, %79 : vector<2x10xf32>
    %c0_49 = arith.constant 0 : index
    %c0_50 = arith.constant 0 : index
    %81 = vector.load %arg8[%c0_49, %c0_50] : memref<2x10xf32, #tpu.memory_space<vmem>>, vector<2x10xf32>
    tpu.vector_store %arg8[%c0_49, %c0_50], %80 {strides = array<i32>} : memref<2x10xf32, #tpu.memory_space<vmem>>, vector<2x10xf32>,
    return
  }
  func.func @transform_0(%arg0: i32) -> (i32, i32, i32) {
    %c0_i32 = arith.constant 0 : i32
    %c0_i32_0 = arith.constant 0 : i32
    %c0_i32_1 = arith.constant 0 : i32
    %c0_i32_2 = arith.constant 0 : i32
    return %c0_i32, %c0_i32_0, %c0_i32_1 : i32, i32, i32
  }
  func.func @transform_1(%arg0: i32) -> (i32, i32) {
    %c0_i32 = arith.constant 0 : i32
    %c0_i32_0 = arith.constant 0 : i32
    %c0_i32_1 = arith.constant 0 : i32
    return %c0_i32, %c0_i32_0 : i32, i32
  }
  func.func @transform_2(%arg0: i32) -> (i32, i32) {
    %c0_i32 = arith.constant 0 : i32
    %c0_i32_0 = arith.constant 0 : i32
    %c0_i32_1 = arith.constant 0 : i32
    return %c0_i32, %c0_i32_0 : i32, i32
  }
  func.func @transform_3(%arg0: i32) -> (i32, i32, i32) {
    %c0_i32 = arith.constant 0 : i32
    %c0_i32_0 = arith.constant 0 : i32
    %c0_i32_1 = arith.constant 0 : i32
    %c0_i32_2 = arith.constant 0 : i32
    return %c0_i32, %c0_i32_0, %c0_i32_1 : i32, i32, i32
  }
  func.func @transform_4(%arg0: i32) -> (i32, i32) {
    %c0_i32 = arith.constant 0 : i32
    %c0_i32_0 = arith.constant 0 : i32
    %c0_i32_1 = arith.constant 0 : i32
    return %c0_i32, %c0_i32_0 : i32, i32
  }
  func.func @transform_5(%arg0: i32) -> (i32, i32, i32) {
    %c0_i32 = arith.constant 0 : i32
    %c0_i32_0 = arith.constant 0 : i32
    %c0_i32_1 = arith.constant 0 : i32
    %c0_i32_2 = arith.constant 0 : i32
    return %c0_i32, %c0_i32_0, %c0_i32_1 : i32, i32, i32
  }
  func.func @transform_6(%arg0: i32) -> (i32, i32) {
    %c0_i32 = arith.constant 0 : i32
    %c0_i32_0 = arith.constant 0 : i32
    %c0_i32_1 = arith.constant 0 : i32
    return %c0_i32, %c0_i32_0 : i32, i32
  }
  func.func @transform_7(%arg0: i32) -> (i32, i32) {
    %c0_i32 = arith.constant 0 : i32
    %c0_i32_0 = arith.constant 0 : i32
    %c0_i32_1 = arith.constant 0 : i32
    return %c0_i32, %c0_i32_0 : i32, i32
  }
}

</mosaic_0001>

<bundles_post_ra>
// kernel: selfvit_forward.12
= control target key start
LH: loop header
LB: loop body
LE: loop exit
PB: predicated region body
PF: predicated region fallthrough
CT: control target
= control target key end

     0   :  { %s539_s12 = smov 0   ;;  %s632_s0 = inlined_call_operand.vmem [shape: f32[128,128], index: 0, kind: input, shape index: {}]   ;;  %s633_s1 = inlined_call_operand.vmem [shape: f32[128,32], index: 1, kind: input, shape index: {}]   ;;  %s634_s2 = inlined_call_operand.vmem [shape: f32[1,32], index: 2, kind: input, shape index: {}]   ;;  %s635_s3 = inlined_call_operand.vmem [shape: f32[128,32], index: 3, kind: output, shape index: {}]  }
   0x1 LB: > { %s375_s13 = sadd.s32 4294967295, %s517_s12   ;;  %p379_p0 = scmp.ge.s32.totalorder %s517_s12, 1  ;;  %s517_s12 = sphi %s539_s12, %s13_s12  }
   0x2   : > { %p138_p1 = scmp.lt.s32.totalorder %s517_s12, 3 }
   0x4   : > { %p139_p2 = pnand %p379_p0, %p138_p1 }
   0x5   : > { %v182_v0 = vld [vmem:[%s633_s1] sm:$0xff] (!%p139_p2)  ;;  %v183_v1 = vld [vmem:[%s633_s1 + $0x8] sm:$0xff] (!%p139_p2)  ;;  %v184_v2 = vld [vmem:[%s633_s1 + $0x10] sm:$0xff] (!%p139_p2)  ;;  %s380_s20 = sshll.u32 (!%p139_p2), %s375_s13, 3  ;;  %vm310_vm0 = vcmask (!%p139_p2), 261120  }
   0x6   : > { %142 = sbr.rel (%p139_p2) target bundleno = 261 (0x105), region = 32  ;;  %v455_v3 = vpack.c.bf16 (!%p139_p2), %v183_v1, %v182_v0  ;;  %v185_v4 = vld [vmem:[%s633_s1 + $0x18] sm:$0xff] (!%p139_p2)  ;;  %p163_p3 = scmp.lt.s32.totalorder (!%p139_p2), %s380_s20, 15  ;;  %v186_v6 = vld [vmem:[%s633_s1 + $0x20] sm:$0xff] (!%p139_p2)  ;;  %v187_v7 = vld [vmem:[%s633_s1 + $0x28] sm:$0xff] (!%p139_p2) }
   0x7   : > { %v459_v5 = vpack.c.bf16 (!%p139_p2), %v185_v4, %v184_v2  ;;  %v463_v8 = vpack.c.bf16 (!%p139_p2), %v187_v7, %v186_v6  ;;  %v188_v9 = vld [vmem:[%s633_s1 + $0x30] sm:$0xff] (!%p139_p2)  ;;  %v189_v10 = vld [vmem:[%s633_s1 + $0x38] sm:$0xff] (!%p139_p2)  ;;  %v190_v14 = vld [vmem:[%s633_s1 + $0x40] sm:$0xff] (!%p139_p2) }
   0x8   : > { %456 = vmatprep.subr.bf16.mxu0 (!%p139_p2), %v455_v3  ;;  %487 = vmatprep.subr.bf16.mxu1 (!%p139_p2), %v455_v3  ;;  %v467_v13 = vpack.c.bf16 (!%p139_p2), %v189_v10, %v188_v9  ;;  %v191_v15 = vld [vmem:[%s633_s1 + $0x48] sm:$0xff] (!%p139_p2)  ;;  %v192_v17 = vld [vmem:[%s633_s1 + $0x50] sm:$0xff] (!%p139_p2)  ;;  %v193_v18 = vld [vmem:[%s633_s1 + $0x58] sm:$0xff] (!%p139_p2) }
   0x9   : > { %458 = vmatpush3.bf16.msra.mxu0 (!%p139_p2), %v455_v3  ;;  %495 = vmatpush3.bf16.msra.mxu1 (!%p139_p2), %v455_v3  ;;  %v471_v16 = vpack.c.bf16 (!%p139_p2), %v191_v15, %v190_v14  ;;  %v475_v19 = vpack.c.bf16 (!%p139_p2), %v193_v18, %v192_v17  ;;  %v194_v20 = vld [vmem:[%s633_s1 + $0x60] sm:$0xff] (!%p139_p2)  ;;  %v195_v21 = vld [vmem:[%s633_s1 + $0x68] sm:$0xff] (!%p139_p2)  ;;  %v196_v23 = vld [vmem:[%s633_s1 + $0x70] sm:$0xff] (!%p139_p2) }
   0xa   : > { %460 = vmatprep.subr.bf16.mxu0 (!%p139_p2), %v459_v5  ;;  %488 = vmatprep.subr.bf16.mxu1 (!%p139_p2), %v459_v5  ;;  %v479_v22 = vpack.c.bf16 (!%p139_p2), %v195_v21, %v194_v20  ;;  %v197_v24 = vld [vmem:[%s633_s1 + $0x78] sm:$0xff] (!%p139_p2)  ;;  %v384_v32 = vld [vmem:[%s634_s2] ss:$0 sm:$0xff] (!%p139_p2) }
   0xb   : > { %v483_v25 = vpack.c.bf16 (!%p139_p2), %v197_v24, %v196_v23 }
   0xd   : > { %s637_s20 = smov (!%p163_p3, %s380_s20), 15  ;;  %462 = vmatpush3.bf16.msra.mxu0 %v459_v5  ;;  %496 = vmatpush3.bf16.msra.mxu1 %v459_v5 }
   0xe   : > { %s381_s27 = sshll.u32 %s637_s20, 3  ;;  %464 = vmatprep.subr.bf16.mxu0 %v463_v8  ;;  %489 = vmatprep.subr.bf16.mxu1 %v463_v8 }
   0xf   : > { %s579_s7 = scalar_lea.vmem %s632_s0, %s381_s27  ;;  %s172_s4 = scalar_lea.vmem %s635_s3, %s381_s27 }
  0x10   : > { %v174_v11 = vld [vmem:[%s579_s7] sm:$0xff]  ;;  %v175_v26 = vld [vmem:[%s579_s7 + $0x8] sm:$0xff]  ;;  %v176_v28 = vld [vmem:[%s579_s7 + $0x10] sm:$0xff] }
  0x11   : > { %v178_v12 = vld [vmem:[%s579_s7 + $0x20] sm:$0xff]  ;;  %443 = vmatprep.mubr.f32.mxu0 %v174_v11  ;;  %466 = vmatpush3.bf16.msra.mxu0 %v463_v8  ;;  %v179_v27 = vld [vmem:[%s579_s7 + $0x28] sm:$0xff]  ;;  %v180_v29 = vld [vmem:[%s579_s7 + $0x30] sm:$0xff] }
  0x12   : > { %449 = vmatprep.mubr.f32.mxu1 %v178_v12  ;;  %497 = vmatpush3.bf16.msra.mxu1 %v463_v8  ;;  %v177_v30 = vld [vmem:[%s579_s7 + $0x18] sm:$0xff] }
  0x13   : > { %468 = vmatprep.subr.bf16.mxu0 %v467_v13  ;;  %490 = vmatprep.subr.bf16.mxu1 %v467_v13  ;;  %v181_v31 = vld [vmem:[%s579_s7 + $0x38] sm:$0xff] }
  0x15   : > { %470 = vmatpush3.bf16.msra.mxu0 %v467_v13 }
  0x16   : > { %498 = vmatpush3.bf16.msra.mxu1 %v467_v13  ;;  %472 = vmatprep.subr.bf16.mxu0 %v471_v16 }
  0x17   : > { %491 = vmatprep.subr.bf16.mxu1 %v471_v16 }
  0x19   : > { %474 = vmatpush3.bf16.msra.mxu0 %v471_v16 }
  0x1a   : > { %499 = vmatpush3.bf16.msra.mxu1 %v471_v16  ;;  %476 = vmatprep.subr.bf16.mxu0 %v475_v19 }
  0x1b   : > { %492 = vmatprep.subr.bf16.mxu1 %v475_v19 }
  0x1d   : > { %478 = vmatpush3.bf16.msra.mxu0 %v475_v19 }
  0x1e   : > { %500 = vmatpush3.bf16.msra.mxu1 %v475_v19  ;;  %480 = vmatprep.subr.bf16.mxu0 %v479_v22 }
  0x1f   : > { %493 = vmatprep.subr.bf16.mxu1 %v479_v22 }
  0x21   : > { %482 = vmatpush3.bf16.msra.mxu0 %v479_v22 }
  0x22   : > { %501 = vmatpush3.bf16.msra.mxu1 %v479_v22  ;;  %484 = vmatprep.subr.bf16.mxu0 %v483_v25 }
  0x23   : > { %494 = vmatprep.subr.bf16.mxu1 %v483_v25 }
  0x25   : > { %486 = vmatpush3.bf16.msra.mxu0 %v483_v25 }
  0x26   : > { %502 = vmatpush3.bf16.msra.mxu1 %v483_v25 }
  0x28   : > { %444 = vmatmul.mubr.f32.vlgmr.msra.gmra.mrb[0].mxu0 %v175_v26 }
  0x29   : > { %450 = vmatmul.mubr.f32.vlgmr.msra.gmra.mrb[0].mxu1 %v179_v27  ;;  %446 = vmatprep.mubr.f32.mxu0 %v176_v28 }
  0x2a   : > { %452 = vmatprep.mubr.f32.mxu1 %v180_v29 }
  0x2c   : > { %447 = vmatmul.mubr.f32.gmra.mrb[2].mxu0 %v177_v30 }
  0x2d   : > { %453 = vmatmul.mubr.f32.gmra.mrb[2].mxu1 %v181_v31 }
  0xfb   : > { %v445_v33 = vpop.f32.mrb[0].mxu0 }
  0xfc   : > { %v451_v34 = vpop.f32.mrb[0].mxu1  ;;  %v277_v35 = vadd.f32 %v445_v33, %v384_v32  ;;  %v271_v37 = vpop.f32.mrb[1].mxu0 }
  0xfd   : > { %v297_v36 = vadd.f32 %v451_v34, %v384_v32  ;;  %v291_v38 = vpop.f32.mrb[1].mxu1  ;;  %v272_v39 = vadd.f32 %v384_v32, %v271_v37 }
  0xfe   : > { %v292_v40 = vadd.f32 %v384_v32, %v291_v38  ;;  %312 = vst.msk [vmem:[%s172_s4 + $0x8] sm:$0xff] %vm310_vm0, %v277_v35 }
  0xff   : > { %316 = vst.msk [vmem:[%s172_s4 + $0x28] sm:$0xff] %vm310_vm0, %v297_v36  ;;  %311 = vst.msk [vmem:[%s172_s4] sm:$0xff] %vm310_vm0, %v272_v39  ;;  %v448_v41 = vpop.f32.mrb[2].mxu0 }
 0x100   : > { %315 = vst.msk [vmem:[%s172_s4 + $0x20] sm:$0xff] %vm310_vm0, %v292_v40  ;;  %v454_v42 = vpop.f32.mrb[2].mxu1  ;;  %v287_v43 = vadd.f32 %v448_v41, %v384_v32  ;;  %v281_v45 = vpop.f32.mrb[3].mxu0 }
 0x101   : > { %v307_v44 = vadd.f32 %v454_v42, %v384_v32  ;;  %v301_v46 = vpop.f32.mrb[3].mxu1  ;;  %v282_v47 = vadd.f32 %v384_v32, %v281_v45 }
 0x102   : > { %v302_v48 = vadd.f32 %v384_v32, %v301_v46  ;;  %314 = vst.msk [vmem:[%s172_s4 + $0x18] sm:$0xff] %vm310_vm0, %v287_v43 }
 0x103   : > { %318 = vst.msk [vmem:[%s172_s4 + $0x38] sm:$0xff] %vm310_vm0, %v307_v44  ;;  %313 = vst.msk [vmem:[%s172_s4 + $0x10] sm:$0xff] %vm310_vm0, %v282_v47 }
 0x104   : > { %317 = vst.msk [vmem:[%s172_s4 + $0x30] sm:$0xff] %vm310_vm0, %v302_v48 }
 0x105 PF: > { %s13_s12 = sadd.s32 1, %s517_s12  }
 0x106   : > { %p10_p4 = scmp.ge.s32.totalorder %s13_s12, 4  }
 0x108   :  { %12 = sbr.rel (!%p10_p4) target bundleno = 1 (0x1), region = 62 }

// kernel: selfvit_forward.13
= control target key start
LH: loop header
LB: loop body
LE: loop exit
PB: predicated region body
PF: predicated region fallthrough
CT: control target
= control target key end

     0   :  { %s466_s12 = smov 0   ;;  %s541_s0 = inlined_call_operand.vmem [shape: f32[32,128], index: 0, kind: input, shape index: {}]   ;;  %s542_s1 = inlined_call_operand.vmem [shape: f32[128,32], index: 1, kind: input, shape index: {}]   ;;  %s543_s2 = inlined_call_operand.vmem [shape: f32[1,32], index: 2, kind: input, shape index: {}]   ;;  %s544_s3 = inlined_call_operand.vmem [shape: f32[32,32], index: 3, kind: output, shape index: {}]  }
   0x1 LB: > { %s333_s13 = sadd.s32 4294967295, %s444_s12   ;;  %p337_p0 = scmp.ge.s32.totalorder %s444_s12, 1  ;;  %s444_s12 = sphi %s466_s12, %s13_s12  }
   0x2   : > { %p138_p1 = scmp.lt.s32.totalorder %s444_s12, 3 }
   0x4   : > { %p139_p2 = pnand %p337_p0, %p138_p1 }
   0x5   : > { %v176_v0 = vld [vmem:[%s542_s1] sm:$0xff] (!%p139_p2)  ;;  %v177_v1 = vld [vmem:[%s542_s1 + $0x8] sm:$0xff] (!%p139_p2)  ;;  %v178_v2 = vld [vmem:[%s542_s1 + $0x10] sm:$0xff] (!%p139_p2)  ;;  %s338_s20 = sshll.u32 (!%p139_p2), %s333_s13, 1  ;;  %vm274_vm0 = vcmask (!%p139_p2), 261120  }
   0x6   : > { %142 = sbr.rel (%p139_p2) target bundleno = 256 (0x100), region = 32  ;;  %v398_v3 = vpack.c.bf16 (!%p139_p2), %v177_v1, %v176_v0  ;;  %v179_v4 = vld [vmem:[%s542_s1 + $0x18] sm:$0xff] (!%p139_p2)  ;;  %p163_p3 = scmp.lt.s32.totalorder (!%p139_p2), %s338_s20, 3  ;;  %v180_v6 = vld [vmem:[%s542_s1 + $0x20] sm:$0xff] (!%p139_p2)  ;;  %v181_v7 = vld [vmem:[%s542_s1 + $0x28] sm:$0xff] (!%p139_p2) }
   0x7   : > { %v402_v5 = vpack.c.bf16 (!%p139_p2), %v179_v4, %v178_v2  ;;  %v406_v8 = vpack.c.bf16 (!%p139_p2), %v181_v7, %v180_v6  ;;  %v182_v9 = vld [vmem:[%s542_s1 + $0x30] sm:$0xff] (!%p139_p2)  ;;  %v183_v10 = vld [vmem:[%s542_s1 + $0x38] sm:$0xff] (!%p139_p2)  ;;  %v184_v13 = vld [vmem:[%s542_s1 + $0x40] sm:$0xff] (!%p139_p2) }
   0x8   : > { %399 = vmatprep.subr.bf16.mxu0 (!%p139_p2), %v398_v3  ;;  %v410_v12 = vpack.c.bf16 (!%p139_p2), %v183_v10, %v182_v9  ;;  %v185_v14 = vld [vmem:[%s542_s1 + $0x48] sm:$0xff] (!%p139_p2)  ;;  %v186_v16 = vld [vmem:[%s542_s1 + $0x50] sm:$0xff] (!%p139_p2)  ;;  %v187_v17 = vld [vmem:[%s542_s1 + $0x58] sm:$0xff] (!%p139_p2) }
   0x9   : > { %401 = vmatpush3.bf16.msra.mxu0 (!%p139_p2), %v398_v3  ;;  %v414_v15 = vpack.c.bf16 (!%p139_p2), %v185_v14, %v184_v13  ;;  %v418_v18 = vpack.c.bf16 (!%p139_p2), %v187_v17, %v186_v16  ;;  %v188_v19 = vld [vmem:[%s542_s1 + $0x60] sm:$0xff] (!%p139_p2)  ;;  %v189_v20 = vld [vmem:[%s542_s1 + $0x68] sm:$0xff] (!%p139_p2)  ;;  %v190_v22 = vld [vmem:[%s542_s1 + $0x70] sm:$0xff] (!%p139_p2) }
   0xa   : > { %403 = vmatprep.subr.bf16.mxu0 (!%p139_p2), %v402_v5  ;;  %v422_v21 = vpack.c.bf16 (!%p139_p2), %v189_v20, %v188_v19  ;;  %v191_v23 = vld [vmem:[%s542_s1 + $0x78] sm:$0xff] (!%p139_p2)  ;;  %v342_v26 = vld [vmem:[%s543_s2] ss:$0 sm:$0xff] (!%p139_p2) }
   0xb   : > { %v426_v24 = vpack.c.bf16 (!%p139_p2), %v191_v23, %v190_v22 }
   0xd   : > { %s546_s20 = smov (!%p163_p3, %s338_s20), 3  ;;  %405 = vmatpush3.bf16.msra.mxu0 %v402_v5 }
   0xe   : > { %s339_s27 = sshll.u32 %s546_s20, 3  ;;  %407 = vmatprep.subr.bf16.mxu0 %v406_v8 }
   0xf   : > { %s166_s7 = scalar_lea.vmem %s541_s0, %s339_s27  ;;  %s172_s4 = scalar_lea.vmem %s544_s3, %s339_s27 }
  0x10   : > { %v174_v11 = vld [vmem:[%s166_s7] sm:$0xff]  ;;  %v175_v25 = vld [vmem:[%s166_s7 + $0x8] sm:$0xff] }
  0x11   : > { %395 = vmatprep.mubr.f32.mxu0 %v174_v11  ;;  %409 = vmatpush3.bf16.msra.mxu0 %v406_v8 }
  0x12   : > { %411 = vmatprep.subr.bf16.mxu0 %v410_v12 }
  0x15   : > { %413 = vmatpush3.bf16.msra.mxu0 %v410_v12 }
  0x16   : > { %415 = vmatprep.subr.bf16.mxu0 %v414_v15 }
  0x19   : > { %417 = vmatpush3.bf16.msra.mxu0 %v414_v15 }
  0x1a   : > { %419 = vmatprep.subr.bf16.mxu0 %v418_v18 }
  0x1d   : > { %421 = vmatpush3.bf16.msra.mxu0 %v418_v18 }
  0x1e   : > { %423 = vmatprep.subr.bf16.mxu0 %v422_v21 }
  0x21   : > { %425 = vmatpush3.bf16.msra.mxu0 %v422_v21 }
  0x22   : > { %427 = vmatprep.subr.bf16.mxu0 %v426_v24 }
  0x25   : > { %429 = vmatpush3.bf16.msra.mxu0 %v426_v24 }
  0x28   : > { %396 = vmatmul.mubr.f32.vlgmr.msra.gmra.mrb[0].mxu0 %v175_v25 }
  0xfb   : > { %v397_v27 = vpop.f32.mrb[0].mxu0 }
  0xfc   : > { %v265_v28 = vpop.f32.mrb[1].mxu0  ;;  %v271_v30 = vadd.f32 %v397_v27, %v342_v26 }
  0xfd   : > { %v266_v29 = vadd.f32 %v342_v26, %v265_v28 }
  0xfe   : > { %276 = vst.msk [vmem:[%s172_s4 + $0x8] sm:$0xff] %vm274_vm0, %v271_v30 }
  0xff   : > { %275 = vst.msk [vmem:[%s172_s4] sm:$0xff] %vm274_vm0, %v266_v29 }
 0x100 PF: > { %s13_s12 = sadd.s32 1, %s444_s12  }
 0x101   : > { %p10_p4 = scmp.ge.s32.totalorder %s13_s12, 4  }
 0x103   :  { %12 = sbr.rel (!%p10_p4) target bundleno = 1 (0x1), region = 62 }

// kernel: selfvit_forward.14
= control target key start
LH: loop header
LB: loop body
LE: loop exit
PB: predicated region body
PF: predicated region fallthrough
CT: control target
= control target key end

     0   :  { %s3146_s25 = smov 0   ;;  %s3515_s0 = inlined_call_operand.vmem [shape: f32[8,4,32], index: 0, kind: input, shape index: {}]   ;;  %s3516_s1 = inlined_call_operand.vmem [shape: f32[1,32], index: 1, kind: input, shape index: {}]   ;;  %s3517_s2 = inlined_call_operand.vmem [shape: f32[1,32], index: 2, kind: input, shape index: {}]   ;;  %s3518_s3 = inlined_call_operand.vmem [shape: f32[32,96], index: 3, kind: input, shape index: {}]   ;;  %s3519_s4 = inlined_call_operand.vmem [shape: f32[32,32], index: 4, kind: input, shape index: {}]   ;;  %s3520_s5 = inlined_call_operand.vmem [shape: f32[1,32], index: 5, kind: input, shape index: {}]   ;;  %s3521_s6 = inlined_call_operand.vmem [shape: f32[2,4,4], index: 6, kind: input, shape index: {}]   ;;  %s3522_s7 = inlined_call_operand.vmem [shape: f32[1,32], index: 7, kind: input, shape index: {}]   ;;  %s3523_s8 = inlined_call_operand.vmem [shape: f32[1,32], index: 8, kind: input, shape index: {}]   ;;  %s3524_s9 = inlined_call_operand.vmem [shape: f32[32,128], index: 9, kind: input, shape index: {}]   ;;  %s3525_s10 = inlined_call_operand.vmem [shape: f32[1,128], index: 10, kind: input, shape index: {}]   ;;  %s3526_s11 = inlined_call_operand.vmem [shape: f32[128,32], index: 11, kind: input, shape index: {}]   ;;  %s3527_s12 = inlined_call_operand.vmem [shape: f32[1,32], index: 12, kind: input, shape index: {}]   ;;  %s3528_s13 = inlined_call_operand.vmem [shape: f32[8,4,32], index: 13, kind: output, shape index: {}]  }
   0x1 LB: > { %s2660_s26 = sadd.s32 4294967295, %s3065_s25   ;;  %p2664_p0 = scmp.ge.s32.totalorder %s3065_s25, 1  ;;  %s3065_s25 = sphi %s3146_s25, %s23_s25  }
   0x2   : > { %p388_p1 = scmp.lt.s32.totalorder %s3065_s25, 3 }
   0x4   : > { %p389_p2 = pnand %p2664_p0, %p388_p1 }
   0x5   : > { %s2665_s27 = sshll.u32 (!%p389_p2), %s2660_s26, 2  ;;  %vm458_vm0 = vcmask (!%p389_p2), 261120   ;;  %v3067_v8 = vmov (!%p389_p2), 839922192   ;;  %v473_v10 = vlaneseq (!%p389_p2)  ;;  %v3068_v11 = vmov (!%p389_p2), 1985246804  }
   0x6   : > { %392 = sbr.rel (%p389_p2) target bundleno = 3233 (0xca1), region = 72  ;;  %p433_p3 = scmp.lt.s32.totalorder (!%p389_p2), %s2665_s27, 7  ;;  %v471_v9 = vunpack.c.l.s4 (!%p389_p2), %v3067_v8  ;;  %v478_v12 = vunpack.c.l.s4 (!%p389_p2), %v3068_v11  ;;  %v592_v38 = vld [vmem:[%s3518_s3] sm:$0xff] (!%p389_p2)  ;;  %v593_v39 = vld [vmem:[%s3518_s3 + $0x8] sm:$0xff] (!%p389_p2)  ;;  %v594_v41 = vld [vmem:[%s3518_s3 + $0x10] sm:$0xff] (!%p389_p2)  ;;  %vm3070_vm1 = vmmov (!%p389_p2), 0  }
   0x7   : > { %v474_v14 = vshrl.u32 (!%p389_p2), %v473_v10, 7  ;;  %v2940_v40 = vpack.c.bf16 (!%p389_p2), %v593_v39, %v592_v38  ;;  %v595_v42 = vld [vmem:[%s3518_s3 + $0x18] sm:$0xff] (!%p389_p2)  ;;  %v2669_v50 = vld [vmem:[%s3516_s1] ss:$0 sm:$0xff] (!%p389_p2)  ;;  %s3071_s30 = smov (!%p389_p2), 96   ;;  %vm711_vm2 = vcmask (!%p389_p2), 130048  }
   0x8   : > { %v472_v13 = vunpack.c.0.s8 (!%p389_p2), %v471_v9  ;;  %v479_v15 = vunpack.c.0.s8 (!%p389_p2), %v478_v12  ;;  %v2944_v43 = vpack.c.bf16 (!%p389_p2), %v595_v42, %v594_v41  ;;  %v2670_v52 = vld [vmem:[%s3517_s2] ss:$0 sm:$0xff] (!%p389_p2)  ;;  %v574_v55 = vcombine.high (!%p389_p2), %v2669_v50, %v2669_v50  ;;  %s3072_s16 = smov (!%p389_p2), 64   ;;  %s3073_s17 = smov (!%p389_p2), 80  }
   0x9   : > { %2941 = vmatprep.subr.bf16.mxu0 (!%p389_p2), %v2940_v40  ;;  %v586_v58 = vcombine.high (!%p389_p2), %v2670_v52, %v2670_v52  ;;  %vm1018_vm3 = vcmask (!%p389_p2), 27648   ;;  %s3074_s18 = smov (!%p389_p2), 112   ;;  %vm1069_vm4 = vcmask (!%p389_p2), 1043456   ;;  %vm1065_vm5 = vcmask (!%p389_p2), 31744   ;;  %s3075_s26 = smov (!%p389_p2), 48  }
   0xa   : > { %v3176_v16 = vsub.s32 (!%p389_p2), %v472_v13, %v474_v14  ;;  %v3178_v17 = vsub.s32 (!%p389_p2), %v479_v15, %v474_v14  ;;  %2943 = vmatpush3.bf16.msra.mxu0 (!%p389_p2), %v2940_v40  ;;  %v3069_v14 = vmov (!%p389_p2), 0.0   ;;  %vm2599_vm6 = vcmask (!%p389_p2), 257024  }
   0xb   : > { %2945 = vmatprep.subr.bf16.mxu0 (!%p389_p2), %v2944_v43  ;;  %2825 = vmatprep.subr.mxu1 (!%p389_p2), %v3069_v14 }
   0xc   : > { %2827 = vmatprep.mubr.msk.f32.mxu1 (!%p389_p2), %vm3070_vm1, %v3069_v14 }
   0xd   : > { %s3530_s27 = smov (!%p433_p3, %s2665_s27), 7 }
   0xe   : > { %s2666_s28 = sshll.u32 %s3530_s27, 2  ;;  %2947 = vmatpush3.bf16.msra.mxu0 %v2944_v43 }
   0xf   : > { %s436_s14 = scalar_lea.vmem %s3515_s0, %s2666_s28  ;;  %2800 = vmatprep.subr.mxu0 %v3069_v14  ;;  %s442_s29 = scalar_lea.vmem %s3528_s13, %s2666_s28 }
  0x10   : > { %v3162_v0 = vld [vmem:[%s436_s14] sm:$0xf]  ;;  %v3164_v1 = vld [vmem:[%s436_s14 + $0x4] sm:$0xf]  ;;  %v3166_v2 = vld [vmem:[%s436_s14 + $0x8] sm:$0xf] }
  0x11   : > { %v454_v3 = vcombine.low %v3162_v0, %v3164_v1  ;;  %v3170_v4 = vld [vmem:[%s436_s14 + $0xc] sm:$0xf] }
  0x12   : > { %v455_v5 = vcombine.low %v3166_v2, %v3170_v4 }
  0x13   : > { %v459_v6 = vsel %vm458_vm0, %v454_v3, 0.0 }
  0x14   : > { %460 = vadd.xlane.f32.xlu0 %v459_v6  ;;  %v462_v7 = vsel %vm458_vm0, %v455_v5, 0.0 }
  0x18   : > { %463 = vadd.xlane.f32.xlu0 %v462_v7 }
  0xa1   : > { %v461_v18 = vpop.xlane.xlu0 %460 }
  0xa2   : > { %v466_v19 = vmul.f32 0.03125, %v461_v18 }
  0xa4   : > { %v476_v20 = vrot.slane %v466_v19, %v3176_v16  ;;  %v483_v21 = vrot.slane %v466_v19, %v3178_v17 }
  0xa5   : > { %v464_v22 = vpop.xlane.xlu0 %463 }
  0xa6   : > { %v502_v23 = vsub.f32 %v3162_v0, %v476_v20  ;;  %v503_v24 = vsub.f32 %v3164_v1, %v483_v21  ;;  %v467_v25 = vmul.f32 0.03125, %v464_v22 }
  0xa8   : > { %v490_v26 = vrot.slane %v467_v25, %v3176_v16  ;;  %v497_v27 = vrot.slane %v467_v25, %v3178_v17  ;;  %v506_v28 = vmul.f32 %v502_v23, %v502_v23  ;;  %v507_v29 = vmul.f32 %v503_v24, %v503_v24 }
  0xaa   : > { %v504_v30 = vsub.f32 %v3166_v2, %v490_v26  ;;  %v505_v31 = vsub.f32 %v3170_v4, %v497_v27  ;;  %v514_v32 = vcombine.low %v506_v28, %v507_v29  ;;  %v708_v29 = vld [vmem:[%s3521_s6] sm:$0xf] }
  0xac   : > { %v518_v33 = vsel %vm458_vm0, %v514_v32, 0.0  ;;  %v508_v34 = vmul.f32 %v504_v30, %v504_v30  ;;  %v509_v35 = vmul.f32 %v505_v31, %v505_v31 }
  0xad   : > { %519 = vadd.xlane.f32.xlu1 %v518_v33 }
  0xae   : > { %v515_v36 = vcombine.low %v508_v34, %v509_v35 }
  0xb0   : > { %v521_v37 = vsel %vm458_vm0, %v515_v36, 0.0 }
  0xb1   : > { %522 = vadd.xlane.f32.xlu1 %v521_v37 }
 0x13a   : > { %v520_v44 = vpop.xlane.xlu1 %519 }
 0x13b   : > { %v524_v45 = vmul.f32 0.03125, %v520_v44 }
 0x13d   : > { %v526_v46 = vadd.f32 1e-05, %v524_v45 }
 0x13e   : > { %v523_v47 = vpop.xlane.xlu1 %522 }
 0x13f   : > { %3015 = vrsqrt.f32 %v526_v46  ;;  %v525_v48 = vmul.f32 0.03125, %v523_v47 }
 0x141   : > { %v527_v49 = vadd.f32 1e-05, %v525_v48 }
 0x143   : > { %3017 = vrsqrt.f32 %v527_v49 }
 0x149   : > { %v3016_v51 = vpop.eup %3015 }
 0x14a   : > { %v538_v53 = vrot.slane %v3016_v51, %v3176_v16  ;;  %v545_v54 = vrot.slane %v3016_v51, %v3178_v17 }
 0x14c   : > { %v564_v56 = vmul.f32 %v538_v53, %v502_v23  ;;  %v565_v57 = vmul.f32 %v545_v54, %v503_v24 }
 0x14d   : > { %v3018_v59 = vpop.eup %3017 }
 0x14e   : > { %v552_v60 = vrot.slane %v3018_v59, %v3176_v16  ;;  %v559_v61 = vrot.slane %v3018_v59, %v3178_v17  ;;  %v576_v62 = vmul.f32 %v2669_v50, %v564_v56  ;;  %v577_v63 = vmul.f32 %v574_v55, %v565_v57 }
 0x150   : > { %v566_v3 = vmul.f32 %v552_v60, %v504_v30  ;;  %v567_v5 = vmul.f32 %v559_v61, %v505_v31  ;;  %v588_v6 = vadd.f32 %v2670_v52, %v576_v62  ;;  %v589_v7 = vadd.f32 %v586_v58, %v577_v63 }
 0x152   : > { %v578_v8 = vmul.f32 %v2669_v50, %v566_v3  ;;  %v579_v9 = vmul.f32 %v574_v55, %v567_v5  ;;  %v600_v10 = vcombine.low %v588_v6, %v589_v7 }
 0x154   : > { %v590_v11 = vadd.f32 %v2670_v52, %v578_v8  ;;  %v591_v12 = vadd.f32 %v586_v58, %v579_v9  ;;  %2797 = vmatprep.mubr.msk.f32.mxu0 %vm458_vm0, %v600_v10 }
 0x156   : > { %v601_v13 = vcombine.low %v590_v11, %v591_v12 }
 0x158   : > { %2798 = vmatmul.mubr.msk.f32.vlgmr.msra.gmra.mrb[0].mxu0 %vm458_vm0, %v601_v13 }
 0x159   : > { %2802 = vmatprep.mubr.msk.f32.mxu0 %vm3070_vm1, %v3069_v14 }
 0x22b   : > { %v3220_v15 = vpop.f32.mrb[0].mxu0 }
 0x22c   : > { %v3222_v18 = vpop.f32.mrb[1].mxu0  ;;  %v3233_v20 = vcombine.high %v3220_v15, %v3220_v15  ;;  %v3256_v26 = vmul.f32 0.25, %v3220_v15 }
 0x22d   : > { %v3226_v19 = vcombine.high %v3222_v18, %v3222_v18  ;;  %709 = vrot.lane.b32.xlu0 %v3222_v18, %s3071_s30  ;;  %v3238_v22 = vmul.f32 0.25, %v3222_v18 }
 0x22e   : > { %v3265_v28 = vmul.f32 0.25, %v3233_v20 }
 0x22f   : > { %787 = vrot.lane.b32.xlu1 %v3226_v19, %s3071_s30  ;;  %v3247_v25 = vmul.f32 0.25, %v3226_v19 }
 0x233   : > { %864 = vrot.lane.b32.xlu1 %v3220_v15, %s3071_s30 }
 0x237   : > { %941 = vrot.lane.b32.xlu1 %v3233_v20, %s3071_s30 }
 0x29f   : > { %v710_v21 = vpop.permute.xlu0 %709 }
 0x2a0   : > { %2801 = vmatpush3.xpose.msk.msra.mxu0 %vm711_vm2, %v710_v21 }
 0x2a1   : > { %v788_v23 = vpop.permute.xlu1 %787  ;;  %2805 = vmatprep.subr.mxu0 %v3069_v14 }
 0x2a3   : > { %2803 = vmatmul.mubr.msk.f32.vlgmr.msra.gmra.mrb[2].mxu0 %vm711_vm2, %v3238_v22 }
 0x2a4   : > { %2806 = vmatpush3.xpose.msk.msra.mxu0 %vm711_vm2, %v788_v23  ;;  %2807 = vmatprep.mubr.msk.f32.mxu0 %vm3070_vm1, %v3069_v14 }
 0x2a5   : > { %v865_v24 = vpop.permute.xlu1 %864  ;;  %2810 = vmatprep.subr.mxu0 %v3069_v14 }
 0x2a7   : > { %2808 = vmatmul.mubr.msk.f32.vlgmr.msra.gmra.mrb[4].mxu0 %vm711_vm2, %v3247_v25 }
 0x2a8   : > { %2811 = vmatpush3.xpose.msk.msra.mxu0 %vm711_vm2, %v865_v24  ;;  %2812 = vmatprep.mubr.msk.f32.mxu0 %vm3070_vm1, %v3069_v14 }
 0x2a9   : > { %2815 = vmatprep.subr.mxu0 %v3069_v14  ;;  %v942_v27 = vpop.permute.xlu1 %941 }
 0x2ab   : > { %2813 = vmatmul.mubr.msk.f32.vlgmr.msra.gmra.mrb[6].mxu0 %vm711_vm2, %v3256_v26 }
 0x2ac   : > { %2816 = vmatpush3.xpose.msk.msra.mxu0 %vm711_vm2, %v942_v27  ;;  %2817 = vmatprep.mubr.msk.f32.mxu0 %vm3070_vm1, %v3069_v14 }
 0x2ad   : > { %2820 = vmatprep.subr.mxu0 %v3069_v14 }
 0x2af   : > { %2818 = vmatmul.mubr.msk.f32.vlgmr.msra.gmra.mrb[8].mxu0 %vm711_vm2, %v3265_v28 }
 0x2b0   : > { %2822 = vmatprep.mubr.msk.f32.mxu0 %vm3070_vm1, %v3069_v14 }
 0x376   : > { %v783_v30 = vpop.f32.mrb[2].mxu0 }
 0x377   : > { %v784_v31 = vadd.f32 %v783_v30, %v708_v29  ;;  %v2804_v32 = vpop.f32.mrb[3].mxu0 }
 0x379   : > { %v1019_v33 = vsel %vm1018_vm3, %v784_v31, -inf }
 0x37a   : > { %1020 = vmax.xlane.f32.xlu0 %v1019_v33  ;;  %v860_v34 = vpop.f32.mrb[4].mxu0  ;;  %v681_v33 = vld [vmem:[%s3519_s4] sm:$0xff] }
 0x37b   : > { %v861_v35 = vadd.f32 %v860_v34, %v708_v29  ;;  %v2809_v36 = vpop.f32.mrb[5].mxu0  ;;  %v682_v34 = vld [vmem:[%s3519_s4 + $0x8] sm:$0xff] }
 0x37d   : > { %v1022_v37 = vsel %vm1018_vm3, %v861_v35, -inf }
 0x37e   : > { %1023 = vmax.xlane.f32.xlu1 %v1022_v37  ;;  %v937_v38 = vpop.f32.mrb[6].mxu0 }
 0x37f   : > { %v938_v39 = vadd.f32 %v937_v38, %v708_v29  ;;  %v2814_v40 = vpop.f32.mrb[7].mxu0 }
 0x381   : > { %v1025_v41 = vsel %vm1018_vm3, %v938_v39, -inf }
 0x382   : > { %1026 = vmax.xlane.f32.xlu0 %v1025_v41  ;;  %v1014_v42 = vpop.f32.mrb[8].mxu0 }
 0x383   : > { %v1015_v43 = vadd.f32 %v1014_v42, %v708_v29  ;;  %v2819_v44 = vpop.f32.mrb[9].mxu0 }
 0x385   : > { %v1028_v45 = vsel %vm1018_vm3, %v1015_v43, -inf }
 0x386   : > { %1029 = vmax.xlane.f32.xlu0 %v1028_v45 }
 0x407   : > { %v1021_v46 = vpop.xlane.xlu0 %1020 }
 0x408   : > { %v1031_v47 = vsub.f32 %v784_v31, %v1021_v46 }
 0x40a   : > { %v1035_v48 = vmul.f32 1.442695, %v1031_v47 }
 0x40b   : > { %v1024_v49 = vpop.xlane.xlu1 %1023 }
 0x40c   : > { %3019 = vpow2.f32 %v1035_v48  ;;  %v1032_v50 = vsub.f32 %v861_v35, %v1024_v49  ;;  %v2948_v35 = vpack.c.bf16 %v682_v34, %v681_v33  ;;  %v2692_v48 = vld [vmem:[%s3521_s6 + $0x4] sm:$0xf] }
 0x40e   : > { %v1037_v51 = vmul.f32 1.442695, %v1032_v50 }
 0x40f   : > { %v1027_v52 = vpop.xlane.xlu0 %1026 }
 0x410   : > { %3021 = vpow2.f32 %v1037_v51  ;;  %v1033_v53 = vsub.f32 %v938_v39, %v1027_v52 }
 0x412   : > { %v1039_v54 = vmul.f32 1.442695, %v1033_v53 }
 0x413   : > { %v1030_v61 = vpop.xlane.xlu0 %1029 }
 0x414   : > { %3023 = vpow2.f32 %v1039_v54  ;;  %v1034_v62 = vsub.f32 %v1015_v43, %v1030_v61 }
 0x416   : > { %v3020_v55 = vpop.eup %3019  ;;  %v1041_v63 = vmul.f32 1.442695, %v1034_v62 }
 0x417   : > { %v1043_v56 = vsel %vm1018_vm3, %v3020_v55, 0.0 }
 0x418   : > { %1044 = vadd.xlane.f32.xlu0 %v1043_v56  ;;  %3025 = vpow2.f32 %v1041_v63 }
 0x41a   : > { %v3022_v57 = vpop.eup %3021 }
 0x41b   : > { %v1046_v58 = vsel %vm1018_vm3, %v3022_v57, 0.0 }
 0x41c   : > { %1047 = vadd.xlane.f32.xlu1 %v1046_v58 }
 0x41e   : > { %v3024_v59 = vpop.eup %3023 }
 0x41f   : > { %v1049_v60 = vsel %vm1018_vm3, %v3024_v59, 0.0 }
 0x420   : > { %1050 = vadd.xlane.f32.xlu0 %v1049_v60 }
 0x422   : > { %v3026_v3 = vpop.eup %3025 }
 0x423   : > { %v1052_v5 = vsel %vm1018_vm3, %v3026_v3, 0.0 }
 0x42d   : > { %1142 = vrot.lane.b32.xlu1 %v3226_v19, %s3072_s16 }
 0x431   : > { %1219 = vrot.lane.b32.xlu1 %v3220_v15, %s3072_s16 }
 0x436   : > { %1063 = vrot.lane.b32.xlu0 %v3222_v18, %s3072_s16 }
 0x43a   : > { %1472 = vrot.lane.b32.xlu0 %v3222_v18, %s3073_s17 }
 0x43e   : > { %1470 = vrot.lane.b32.xlu0 %v3238_v22, %s3074_s18 }
 0x442   : > { %1628 = vrot.lane.b32.xlu0 %v3220_v15, %s3073_s17 }
 0x446   : > { %1626 = vrot.lane.b32.xlu0 %v3256_v26, %s3074_s18 }
 0x455   : > { %1053 = vadd.xlane.f32.xlu1 %v1052_v5 }
 0x466   : > { %1296 = vrot.lane.b32.xlu1 %v3233_v20, %s3072_s16 }
 0x46a   : > { %1550 = vrot.lane.b32.xlu1 %v3226_v19, %s3073_s17 }
 0x46e   : > { %1548 = vrot.lane.b32.xlu1 %v3247_v25, %s3074_s18 }
 0x472   : > { %1706 = vrot.lane.b32.xlu1 %v3233_v20, %s3073_s17 }
 0x476   : > { %1704 = vrot.lane.b32.xlu1 %v3265_v28, %s3074_s18 }
 0x4a5   : > { %v1045_v6 = vpop.xlane.xlu0 %1044 }
 0x4a6   : > { %3027 = vrcp.f32 %v1045_v6 }
 0x4a9   : > { %v1048_v7 = vpop.xlane.xlu1 %1047 }
 0x4aa   : > { %3029 = vrcp.f32 %v1048_v7 }
 0x4ad   : > { %v1143_v8 = vpop.permute.xlu1 %1142  ;;  %v1051_v9 = vpop.xlane.xlu0 %1050 }
 0x4ae   : > { %3031 = vrcp.f32 %v1051_v9  ;;  %2826 = vmatpush3.msk.msra.mxu1 %vm1069_vm4, %v1143_v8 }
 0x4af   : > { %2835 = vmatprep.subr.mxu1 %v3069_v14 }
 0x4b0   : > { %v3028_v10 = vpop.eup %3027 }
 0x4b1   : > { %v1059_v11 = vmul.f32 %v3028_v10, %v3020_v55  ;;  %v1064_v12 = vpop.permute.xlu0 %1063  ;;  %v1220_v13 = vpop.permute.xlu1 %1219 }
 0x4b2   : > { %2821 = vmatpush3.msk.msra.mxu0 %vm1069_vm4, %v1064_v12 }
 0x4b3   : > { %2823 = vmatmul.mubr.msk.f32.vlgmr.msra.gmra.mrb[10].mxu0 %vm1065_vm5, %v1059_v11  ;;  %2830 = vmatprep.subr.mxu0 %v3069_v14 }
 0x4b4   : > { %v3030_v21 = vpop.eup %3029  ;;  %2831 = vmatpush3.msk.msra.mxu0 %vm1069_vm4, %v1220_v13  ;;  %2832 = vmatprep.mubr.msk.f32.mxu0 %vm3070_vm1, %v3069_v14 }
 0x4b5   : > { %v1060_v22 = vmul.f32 %v3030_v21, %v3022_v57  ;;  %v1473_v26 = vpop.permute.xlu0 %1472  ;;  %2949 = vmatprep.subr.bf16.mxu0 %v2948_v35 }
 0x4b7   : > { %2828 = vmatmul.mubr.msk.f32.vlgmr.msra.gmra.mrb[0].mxu1 %vm1065_vm5, %v1060_v22 }
 0x4b8   : > { %v3032_v23 = vpop.eup %3031  ;;  %2837 = vmatprep.mubr.msk.f32.mxu1 %vm3070_vm1, %v3069_v14 }
 0x4b9   : > { %v1061_v24 = vmul.f32 %v3032_v23, %v3024_v59  ;;  %v1471_v28 = vpop.permute.xlu0 %1470 }
 0x4bb   : > { %2833 = vmatmul.mubr.msk.f32.vlgmr.msra.gmra.mrb[12].mxu0 %vm1065_vm5, %v1061_v24 }
 0x4bc   : > { %2951 = vmatpush3.bf16.msra.mxu0 %v2948_v35 }
 0x4bd   : > { %v1629_v31 = vpop.permute.xlu0 %1628  ;;  %2852 = vmatprep.subr.mxu0 %v3069_v14 }
 0x4c1   : > { %v1627_v32 = vpop.permute.xlu0 %1626 }
 0x4e2   : > { %v1054_v25 = vpop.xlane.xlu1 %1053 }
 0x4e3   : > { %3033 = vrcp.f32 %v1054_v25 }
 0x4e6   : > { %v1297_v27 = vpop.permute.xlu1 %1296 }
 0x4e7   : > { %2836 = vmatpush3.msk.msra.mxu1 %vm1069_vm4, %v1297_v27 }
 0x4e8   : > { %2847 = vmatprep.subr.mxu1 %v3069_v14 }
 0x4ea   : > { %v1551_v43 = vpop.permute.xlu1 %1550 }
 0x4ed   : > { %v3034_v29 = vpop.eup %3033 }
 0x4ee   : > { %v1062_v30 = vmul.f32 %v3034_v29, %v3026_v3  ;;  %v1549_v44 = vpop.permute.xlu1 %1548 }
 0x4f0   : > { %2838 = vmatmul.mubr.msk.f32.vlgmr.msra.gmra.mrb[2].mxu1 %vm1065_vm5, %v1062_v30 }
 0x4f1   : > { %2848 = vmatpush3.xpose.msk.msra.mxu1 %vm711_vm2, %v1473_v26  ;;  %2849 = vmatprep.mubr.msk.f32.mxu1 %vm3070_vm1, %v3069_v14 }
 0x4f2   : > { %2857 = vmatprep.subr.mxu1 %v3069_v14  ;;  %v1707_v49 = vpop.permute.xlu1 %1706 }
 0x4f4   : > { %2850 = vmatmul.mubr.msk.f32.vlgmr.msra.gmra.mrb[4].mxu1 %vm711_vm2, %v1471_v28 }
 0x4f5   : > { %2858 = vmatpush3.xpose.msk.msra.mxu1 %vm711_vm2, %v1629_v31  ;;  %2859 = vmatprep.mubr.msk.f32.mxu1 %vm3070_vm1, %v3069_v14 }
 0x4f6   : > { %2867 = vmatprep.subr.mxu1 %v3069_v14  ;;  %v1705_v57 = vpop.permute.xlu1 %1704 }
 0x4f8   : > { %2860 = vmatmul.mubr.msk.f32.vlgmr.msra.gmra.mrb[6].mxu1 %vm711_vm2, %v1627_v32 }
 0x4f9   : > { %2869 = vmatprep.mubr.msk.f32.mxu1 %vm3070_vm1, %v3069_v14 }
 0x586   : > { %v1138_v36 = vpop.f32.mrb[10].mxu0 }
 0x587   : > { %v2824_v37 = vpop.f32.mrb[11].mxu0 }
 0x58a   : > { %v1215_v38 = vpop.f32.mrb[0].mxu1 }
 0x58b   : > { %v1377_v39 = vcombine.low %v1138_v36, %v1215_v38  ;;  %v2829_v40 = vpop.f32.mrb[1].mxu1 }
 0x58d   : > { %2844 = vmatprep.mubr.msk.f32.mxu0 %vm711_vm2, %v1377_v39 }
 0x58e   : > { %v1292_v41 = vpop.f32.mrb[12].mxu0 }
 0x58f   : > { %v2834_v42 = vpop.f32.mrb[13].mxu0 }
 0x5c3   : > { %v1369_v45 = vpop.f32.mrb[2].mxu1 }
 0x5c4   : > { %v1378_v46 = vcombine.low %v1292_v41, %v1369_v45  ;;  %v2839_v47 = vpop.f32.mrb[3].mxu1 }
 0x5c6   : > { %2845 = vmatmul.mubr.msk.f32.vlgmr.msra.gmra.mrb[14].mxu0 %vm711_vm2, %v1378_v46 }
 0x5c7   : > { %2853 = vmatpush3.xpose.msk.msra.mxu0 %vm711_vm2, %v1551_v43  ;;  %v1544_v50 = vpop.f32.mrb[4].mxu1  ;;  %2854 = vmatprep.mubr.msk.f32.mxu0 %vm3070_vm1, %v3069_v14 }
 0x5c8   : > { %v1545_v51 = vadd.f32 %v2692_v48, %v1544_v50  ;;  %v2851_v52 = vpop.f32.mrb[5].mxu1  ;;  %2862 = vmatprep.subr.mxu0 %v3069_v14 }
 0x5c9   : > { %v683_v52 = vld [vmem:[%s3519_s4 + $0x10] sm:$0xff] }
 0x5ca   : > { %2855 = vmatmul.mubr.msk.f32.vlgmr.msra.gmra.mrb[16].mxu0 %vm711_vm2, %v1549_v44  ;;  %v1782_v53 = vsel %vm1018_vm3, %v1545_v51, -inf }
 0x5cb   : > { %2863 = vmatpush3.xpose.msk.msra.mxu0 %vm711_vm2, %v1707_v49  ;;  %1783 = vmax.xlane.f32.xlu0 %v1782_v53  ;;  %v1700_v54 = vpop.f32.mrb[6].mxu1  ;;  %v684_v53 = vld [vmem:[%s3519_s4 + $0x18] sm:$0xff] }
 0x5cc   : > { %v1701_v55 = vadd.f32 %v2692_v48, %v1700_v54  ;;  %v2861_v56 = vpop.f32.mrb[7].mxu1  ;;  %2864 = vmatprep.mubr.msk.f32.mxu0 %vm3070_vm1, %v3069_v14  ;;  %2872 = vmatprep.subr.mxu0 %v3069_v14  ;;  %v2952_v54 = vpack.c.bf16 %v684_v53, %v683_v52 }
 0x5ce   : > { %2865 = vmatmul.mubr.msk.f32.vlgmr.msra.gmra.mrb[18].mxu0 %vm711_vm2, %v1705_v57  ;;  %v1788_v58 = vsel %vm1018_vm3, %v1701_v55, -inf }
 0x5cf   : > { %1789 = vmax.xlane.f32.xlu0 %v1788_v58  ;;  %2874 = vmatprep.mubr.msk.f32.mxu0 %vm3070_vm1, %v3069_v14 }
 0x658   : > { %v1784_v59 = vpop.xlane.xlu0 %1783 }
 0x659   : > { %v1794_v60 = vsub.f32 %v1545_v51, %v1784_v59 }
 0x65b   : > { %v1798_v62 = vmul.f32 1.442695, %v1794_v60  ;;  %v2673_v60 = vld [vmem:[%s3520_s5] ss:$0 sm:$0xff] }
 0x65c   : > { %v1790_v61 = vpop.xlane.xlu0 %1789 }
 0x65d   : > { %v1796_v63 = vsub.f32 %v1701_v55, %v1790_v61  ;;  %3035 = vpow2.f32 %v1798_v62  ;;  %v692_v61 = vcombine.high %v2673_v60, %v2673_v60  ;;  %v696_v62 = vadd.f32 %v2673_v60, %v3166_v2 }
 0x65f   : > { %v1802_v6 = vmul.f32 1.442695, %v1796_v63  ;;  %v694_v63 = vadd.f32 %v2673_v60, %v3162_v0 }
 0x661   : > { %3037 = vpow2.f32 %v1802_v6  ;;  %v697_v6 = vadd.f32 %v692_v61, %v3170_v4 }
 0x667   : > { %v3036_v22 = vpop.eup %3035 }
 0x668   : > { %v1806_v23 = vsel %vm1018_vm3, %v3036_v22, 0.0 }
 0x66b   : > { %v3038_v24 = vpop.eup %3037 }
 0x66c   : > { %v1812_v25 = vsel %vm1018_vm3, %v3038_v24, 0.0 }
 0x699   : > { %v3348_v3 = vpop.f32.mrb[14].mxu0 }
 0x69a   : > { %v3350_v5 = vpop.f32.mrb[15].mxu0 }
 0x69d   : > { %v1622_v7 = vpop.f32.mrb[16].mxu0 }
 0x69e   : > { %v1623_v8 = vadd.f32 %v2692_v48, %v1622_v7  ;;  %v2856_v9 = vpop.f32.mrb[17].mxu0  ;;  %v1461_v7 = vcombine.high %v3348_v3, %v3348_v3 }
 0x69f   : > { %v1460_v9 = vcombine.high %v3350_v5, %v3350_v5 }
 0x6a0   : > { %v1785_v10 = vsel %vm1018_vm3, %v1623_v8, -inf }
 0x6a1   : > { %1786 = vmax.xlane.f32.xlu1 %v1785_v10  ;;  %v1778_v11 = vpop.f32.mrb[18].mxu0  ;;  %v1466_v10 = vadd.f32 %v3348_v3, %v696_v62 }
 0x6a2   : > { %v1779_v12 = vadd.f32 %v2692_v48, %v1778_v11  ;;  %v2866_v13 = vpop.f32.mrb[19].mxu0  ;;  %v1464_v11 = vadd.f32 %v3350_v5, %v694_v63 }
 0x6a3   : > { %v1467_v13 = vadd.f32 %v1461_v7, %v697_v6 }
 0x6a4   : > { %v1791_v21 = vsel %vm1018_vm3, %v1779_v12, -inf }
 0x6a5   : > { %1792 = vmax.xlane.f32.xlu0 %v1791_v21 }
 0x6a9   : > { %1807 = vadd.xlane.f32.xlu0 %v1806_v23 }
 0x6ad   : > { %1813 = vadd.xlane.f32.xlu0 %v1812_v25 }
 0x6b2   : > { %1903 = vrot.lane.b32.xlu1 %v3226_v19, %s3075_s26 }
 0x6b6   : > { %1980 = vrot.lane.b32.xlu1 %v3220_v15, %s3075_s26 }
 0x6c3   : > { %1826 = vrot.lane.b32.xlu0 %v3222_v18, %s3075_s26 }
 0x72e   : > { %v1787_v26 = vpop.xlane.xlu1 %1786 }
 0x72f   : > { %v1795_v27 = vsub.f32 %v1623_v8, %v1787_v26  ;;  %v695_v8 = vadd.f32 %v692_v61, %v3164_v1 }
 0x731   : > { %v1800_v28 = vmul.f32 1.442695, %v1795_v27 }
 0x732   : > { %v1904_v29 = vpop.permute.xlu1 %1903  ;;  %v1793_v30 = vpop.xlane.xlu0 %1792 }
 0x733   : > { %3039 = vpow2.f32 %v1800_v28  ;;  %v1797_v31 = vsub.f32 %v1779_v12, %v1793_v30  ;;  %2873 = vmatpush3.msk.msra.mxu0 %vm1069_vm4, %v1904_v29 }
 0x734   : > { %2882 = vmatprep.subr.mxu0 %v3069_v14 }
 0x735   : > { %v1804_v32 = vmul.f32 1.442695, %v1797_v31 }
 0x736   : > { %v1808_v33 = vpop.xlane.xlu0 %1807  ;;  %v1981_v40 = vpop.permute.xlu1 %1980 }
 0x737   : > { %3041 = vpow2.f32 %v1804_v32 }
 0x738   : > { %3043 = vrcp.f32 %v1808_v33 }
 0x73a   : > { %v1814_v19 = vpop.xlane.xlu0 %1813 }
 0x73b   : > { %3045 = vrcp.f32 %v1814_v19 }
 0x73d   : > { %v3040_v15 = vpop.eup %3039 }
 0x73e   : > { %v1827_v34 = vpop.permute.xlu0 %1826  ;;  %v1809_v18 = vsel %vm1018_vm3, %v3040_v15, 0.0 }
 0x73f   : > { %1810 = vadd.xlane.f32.xlu1 %v1809_v18  ;;  %2868 = vmatpush3.msk.msra.mxu1 %vm1069_vm4, %v1827_v34 }
 0x740   : > { %2877 = vmatprep.subr.mxu1 %v3069_v14 }
 0x741   : > { %v3042_v35 = vpop.eup %3041 }
 0x742   : > { %v3044_v36 = vpop.eup %3043  ;;  %v1815_v37 = vsel %vm1018_vm3, %v3042_v35, 0.0 }
 0x743   : > { %v1822_v38 = vmul.f32 %v3044_v36, %v3036_v22  ;;  %1816 = vadd.xlane.f32.xlu1 %v1815_v37  ;;  %v1465_v22 = vadd.f32 %v1460_v9, %v695_v8 }
 0x745   : > { %v3046_v39 = vpop.eup %3045  ;;  %2870 = vmatmul.mubr.msk.f32.vlgmr.msra.gmra.mrb[8].mxu1 %vm1065_vm5, %v1822_v38 }
 0x746   : > { %v1824_v41 = vmul.f32 %v3046_v39, %v3038_v24  ;;  %2878 = vmatpush3.msk.msra.mxu1 %vm1069_vm4, %v1981_v40  ;;  %2879 = vmatprep.mubr.msk.f32.mxu1 %vm3070_vm1, %v3069_v14 }
 0x747   : > { %2953 = vmatprep.subr.bf16.mxu1 %v2952_v54 }
 0x749   : > { %2880 = vmatmul.mubr.msk.f32.vlgmr.msra.gmra.mrb[10].mxu1 %vm1065_vm5, %v1824_v41 }
 0x74a   : > { %2955 = vmatpush3.bf16.msra.mxu1 %v2952_v54 }
 0x754   : > { %2057 = vrot.lane.b32.xlu1 %v3233_v20, %s3075_s26 }
 0x7cc   : > { %v1811_v42 = vpop.xlane.xlu1 %1810 }
 0x7cd   : > { %3047 = vrcp.f32 %v1811_v42 }
 0x7d0   : > { %v1817_v43 = vpop.xlane.xlu1 %1816 }
 0x7d1   : > { %3049 = vrcp.f32 %v1817_v43 }
 0x7d4   : > { %v2058_v46 = vpop.permute.xlu1 %2057 }
 0x7d7   : > { %v3048_v44 = vpop.eup %3047 }
 0x7d8   : > { %v1823_v45 = vmul.f32 %v3048_v44, %v3040_v15  ;;  %v2371_v44 = vld [vmem:[%s3524_s9] sm:$0xff] }
 0x7da   : > { %2875 = vmatmul.mubr.msk.f32.vlgmr.msra.gmra.mrb[20].mxu0 %vm1065_vm5, %v1823_v45  ;;  %v2372_v45 = vld [vmem:[%s3524_s9 + $0x8] sm:$0xff] }
 0x7db   : > { %v3050_v47 = vpop.eup %3049  ;;  %2883 = vmatpush3.msk.msra.mxu0 %vm1069_vm4, %v2058_v46  ;;  %2884 = vmatprep.mubr.msk.f32.mxu0 %vm3070_vm1, %v3069_v14  ;;  %v2956_v46 = vpack.c.bf16 %v2372_v45, %v2371_v44  ;;  %v2713_v44 = vld [vmem:[%s3525_s10] ss:$0 sm:$0xff] }
 0x7dc   : > { %v1825_v48 = vmul.f32 %v3050_v47, %v3042_v35  ;;  %v2373_v47 = vld [vmem:[%s3524_s9 + $0x10] sm:$0xff] }
 0x7dd   : > { %2957 = vmatprep.subr.bf16.mxu0 %v2956_v46 }
 0x7de   : > { %2885 = vmatmul.mubr.msk.f32.vlgmr.msra.gmra.mrb[22].mxu0 %vm1065_vm5, %v1825_v48  ;;  %v2374_v48 = vld [vmem:[%s3524_s9 + $0x18] sm:$0xff] }
 0x7df   : > { %2959 = vmatpush3.bf16.msra.mxu0 %v2956_v46 }
 0x818   : > { %v1899_v49 = vpop.f32.mrb[8].mxu1 }
 0x819   : > { %v2871_v20 = vpop.f32.mrb[9].mxu1 }
 0x81a   : > { %v2485_v20 = vld [vmem:[%s3526_s11] sm:$0xff] }
 0x81c   : > { %v2053_v50 = vpop.f32.mrb[10].mxu1 }
 0x81d   : > { %v2881_v51 = vpop.f32.mrb[11].mxu1 }
 0x8ad   : > { %v1976_v55 = vpop.f32.mrb[20].mxu0 }
 0x8ae   : > { %v2138_v14 = vcombine.low %v1899_v49, %v1976_v55  ;;  %v2876_v56 = vpop.f32.mrb[21].mxu0  ;;  %v2960_v49 = vpack.c.bf16 %v2374_v48, %v2373_v47 }
 0x8b0   : > { %2891 = vmatprep.mubr.msk.f32.mxu1 %vm711_vm2, %v2138_v14  ;;  %2961 = vmatprep.subr.bf16.mxu0 %v2960_v49 }
 0x8b1   : > { %v2130_v57 = vpop.f32.mrb[22].mxu0  ;;  %2963 = vmatpush3.bf16.msra.mxu0 %v2960_v49 }
 0x8b2   : > { %v2139_v58 = vcombine.low %v2053_v50, %v2130_v57  ;;  %v2886_v59 = vpop.f32.mrb[23].mxu0  ;;  %v2486_v50 = vld [vmem:[%s3526_s11 + $0x8] sm:$0xff]  ;;  %v2711_v57 = vld [vmem:[%s3522_s7] ss:$0 sm:$0xff] }
 0x8b3   : > { %v2964_v51 = vpack.c.bf16 %v2486_v50, %v2485_v20  ;;  %v2712_v59 = vld [vmem:[%s3523_s8] ss:$0 sm:$0xff]  ;;  %v2353_v62 = vcombine.high %v2711_v57, %v2711_v57 }
 0x8b4   : > { %2892 = vmatmul.mubr.msk.f32.vlgmr.msra.gmra.mrb[12].mxu1 %vm711_vm2, %v2139_v58  ;;  %v2365_v7 = vcombine.high %v2712_v59, %v2712_v59 }
 0x8b5   : > { %2965 = vmatprep.subr.bf16.mxu1 %v2964_v51 }
 0x8b6   : > { %2967 = vmatpush3.bf16.msra.mxu1 %v2964_v51 }
 0x987   : > { %v2893_v12 = vpop.f32.mrb[12].mxu1 }
 0x988   : > { %v2222_v21 = vcombine.high %v2893_v12, %v2893_v12  ;;  %v3401_v2 = vadd.f32 %v2893_v12, %v1466_v10  ;;  %v2210_v0 = vpop.f32.mrb[13].mxu1 }
 0x989   : > { %v2221_v4 = vcombine.high %v2210_v0, %v2210_v0  ;;  %v3403_v23 = vadd.f32 %v2210_v0, %v1464_v11 }
 0x98a   : > { %v3405_v24 = vadd.f32 %v2222_v21, %v1467_v13 }
 0x98b   : > { %v3407_v1 = vadd.f32 %v2221_v4, %v1465_v22 }
 0x98c   : > { %v2236_v25 = vcombine.low %v3401_v2, %v3405_v24 }
 0x98d   : > { %v2235_v3 = vcombine.low %v3403_v23, %v3407_v1 }
 0x98e   : > { %v2242_v5 = vsel %vm458_vm0, %v2236_v25, 0.0 }
 0x98f   : > { %2243 = vadd.xlane.f32.xlu1 %v2242_v5  ;;  %v2239_v26 = vsel %vm458_vm0, %v2235_v3, 0.0 }
 0x990   : > { %2240 = vadd.xlane.f32.xlu0 %v2239_v26 }
 0xa1c   : > { %v2244_v27 = vpop.xlane.xlu1 %2243 }
 0xa1d   : > { %v2246_v28 = vmul.f32 0.03125, %v2244_v27  ;;  %v2241_v29 = vpop.xlane.xlu0 %2240 }
 0xa1e   : > { %v2245_v30 = vmul.f32 0.03125, %v2241_v29  ;;  %v2489_v29 = vld [vmem:[%s3526_s11 + $0x20] sm:$0xff] }
 0xa1f   : > { %v2269_v31 = vrot.slane %v2246_v28, %v3176_v16  ;;  %v2276_v32 = vrot.slane %v2246_v28, %v3178_v17 }
 0xa20   : > { %v2255_v33 = vrot.slane %v2245_v30, %v3176_v16  ;;  %v2262_v19 = vrot.slane %v2245_v30, %v3178_v17  ;;  %v2490_v30 = vld [vmem:[%s3526_s11 + $0x28] sm:$0xff] }
 0xa21   : > { %v2283_v15 = vsub.f32 %v3401_v2, %v2269_v31  ;;  %v2284_v34 = vsub.f32 %v3405_v24, %v2276_v32  ;;  %v2972_v31 = vpack.c.bf16 %v2490_v30, %v2489_v29  ;;  %v2491_v32 = vld [vmem:[%s3526_s11 + $0x30] sm:$0xff] }
 0xa22   : > { %v2281_v18 = vsub.f32 %v3403_v23, %v2255_v33  ;;  %v2282_v35 = vsub.f32 %v3407_v1, %v2262_v19  ;;  %v2492_v33 = vld [vmem:[%s3526_s11 + $0x38] sm:$0xff]  ;;  %v2493_v19 = vld [vmem:[%s3526_s11 + $0x40] sm:$0xff] }
 0xa23   : > { %v2287_v38 = vmul.f32 %v2283_v15, %v2283_v15  ;;  %v2288_v39 = vmul.f32 %v2284_v34, %v2284_v34 }
 0xa24   : > { %v2285_v36 = vmul.f32 %v2281_v18, %v2281_v18  ;;  %v2286_v37 = vmul.f32 %v2282_v35, %v2282_v35 }
 0xa25   : > { %v2294_v42 = vcombine.low %v2287_v38, %v2288_v39  ;;  %v2497_v38 = vld [vmem:[%s3526_s11 + $0x60] sm:$0xff]  ;;  %v2498_v39 = vld [vmem:[%s3526_s11 + $0x68] sm:$0xff] }
 0xa26   : > { %v2293_v40 = vcombine.low %v2285_v36, %v2286_v37  ;;  %v2496_v36 = vld [vmem:[%s3526_s11 + $0x58] sm:$0xff] }
 0xa27   : > { %v2300_v43 = vsel %vm458_vm0, %v2294_v42, 0.0  ;;  %v2500_v42 = vld [vmem:[%s3526_s11 + $0x78] sm:$0xff] }
 0xa28   : > { %v2297_v41 = vsel %vm458_vm0, %v2293_v40, 0.0  ;;  %v2988_v40 = vpack.c.bf16 %v2498_v39, %v2497_v38 }
 0xa29   : > { %2298 = vadd.xlane.f32.xlu0 %v2297_v41  ;;  %v2499_v41 = vld [vmem:[%s3526_s11 + $0x70] sm:$0xff] }
 0xa2d   : > { %2301 = vadd.xlane.f32.xlu0 %v2300_v43  ;;  %v2992_v43 = vpack.c.bf16 %v2500_v42, %v2499_v41 }
 0xab6   : > { %v2299_v52 = vpop.xlane.xlu0 %2298 }
 0xab7   : > { %v2303_v53 = vmul.f32 0.03125, %v2299_v52 }
 0xab9   : > { %v2305_v54 = vadd.f32 1e-05, %v2303_v53 }
 0xaba   : > { %v2302_v55 = vpop.xlane.xlu0 %2301 }
 0xabb   : > { %3051 = vrsqrt.f32 %v2305_v54  ;;  %v2304_v14 = vmul.f32 0.03125, %v2302_v55 }
 0xabd   : > { %v2306_v56 = vadd.f32 1e-05, %v2304_v14 }
 0xabf   : > { %3053 = vrsqrt.f32 %v2306_v56 }
 0xac5   : > { %v3052_v58 = vpop.eup %3051 }
 0xac6   : > { %v2317_v60 = vrot.slane %v3052_v58, %v3176_v16  ;;  %v2324_v61 = vrot.slane %v3052_v58, %v3178_v17 }
 0xac8   : > { %v2343_v63 = vmul.f32 %v2317_v60, %v2281_v18  ;;  %v2344_v6 = vmul.f32 %v2324_v61, %v2282_v35  ;;  %v2495_v35 = vld [vmem:[%s3526_s11 + $0x50] sm:$0xff] }
 0xac9   : > { %v3054_v8 = vpop.eup %3053  ;;  %v2984_v37 = vpack.c.bf16 %v2496_v36, %v2495_v35 }
 0xaca   : > { %v2331_v9 = vrot.slane %v3054_v8, %v3176_v16  ;;  %v2338_v10 = vrot.slane %v3054_v8, %v3178_v17  ;;  %v2355_v11 = vmul.f32 %v2711_v57, %v2343_v63  ;;  %v2356_v12 = vmul.f32 %v2353_v62, %v2344_v6  ;;  %v2487_v16 = vld [vmem:[%s3526_s11 + $0x10] sm:$0xff]  ;;  %v2488_v17 = vld [vmem:[%s3526_s11 + $0x18] sm:$0xff] }
 0xacb   : > { %v2968_v28 = vpack.c.bf16 %v2488_v17, %v2487_v16 }
 0xacc   : > { %v2345_v13 = vmul.f32 %v2331_v9, %v2283_v15  ;;  %v2346_v21 = vmul.f32 %v2338_v10, %v2284_v34  ;;  %v2367_v0 = vadd.f32 %v2712_v59, %v2355_v11  ;;  %v2368_v22 = vadd.f32 %v2365_v7, %v2356_v12  ;;  %v2494_v34 = vld [vmem:[%s3526_s11 + $0x48] sm:$0xff] }
 0xacd   : > { %2969 = vmatprep.subr.bf16.mxu1 %v2968_v28  ;;  %v2976_v15 = vpack.c.bf16 %v2492_v33, %v2491_v32  ;;  %v2980_v18 = vpack.c.bf16 %v2494_v34, %v2493_v19 }
 0xace   : > { %v2358_v4 = vmul.f32 %v2353_v62, %v2346_v21  ;;  %v2386_v25 = vcombine.low %v2367_v0, %v2368_v22  ;;  %v2357_v3 = vmul.f32 %v2711_v57, %v2345_v13  ;;  %2971 = vmatpush3.bf16.msra.mxu1 %v2968_v28 }
 0xacf   : > { %2973 = vmatprep.subr.bf16.mxu1 %v2972_v31 }
 0xad0   : > { %v2370_v5 = vadd.f32 %v2365_v7, %v2358_v4  ;;  %2902 = vmatprep.mubr.msk.f32.mxu0 %vm458_vm0, %v2386_v25  ;;  %v2369_v26 = vadd.f32 %v2712_v59, %v2357_v3  ;;  %v2716_v7 = vld [vmem:[%s3527_s12] ss:$0 sm:$0xff] }
 0xad1   : > { %v2593_v11 = vcombine.high %v2716_v7, %v2716_v7 }
 0xad2   : > { %v2387_v27 = vcombine.low %v2369_v26, %v2370_v5  ;;  %2975 = vmatpush3.bf16.msra.mxu1 %v2972_v31 }
 0xad3   : > { %2977 = vmatprep.subr.bf16.mxu1 %v2976_v15 }
 0xad4   : > { %2903 = vmatmul.mubr.msk.f32.vlgmr.msra.gmra.mrb[24].mxu0 %vm458_vm0, %v2387_v27 }
 0xad6   : > { %2979 = vmatpush3.bf16.msra.mxu1 %v2976_v15 }
 0xad7   : > { %2981 = vmatprep.subr.bf16.mxu1 %v2980_v18 }
 0xada   : > { %2983 = vmatpush3.bf16.msra.mxu1 %v2980_v18 }
 0xadb   : > { %2985 = vmatprep.subr.bf16.mxu1 %v2984_v37 }
 0xade   : > { %2987 = vmatpush3.bf16.msra.mxu1 %v2984_v37 }
 0xadf   : > { %2989 = vmatprep.subr.bf16.mxu1 %v2988_v40 }
 0xae2   : > { %2991 = vmatpush3.bf16.msra.mxu1 %v2988_v40 }
 0xae3   : > { %2993 = vmatprep.subr.bf16.mxu1 %v2992_v43 }
 0xae6   : > { %2995 = vmatpush3.bf16.msra.mxu1 %v2992_v43 }
 0xba7   : > { %v2904_v45 = vpop.f32.mrb[24].mxu0 }
 0xba8   : > { %v2464_v46 = vadd.f32 %v2904_v45, %v2713_v44  ;;  %v2458_v47 = vpop.f32.mrb[25].mxu0 }
 0xba9   : > { %v2459_v48 = vadd.f32 %v2713_v44, %v2458_v47 }
 0xbaa   : > { %v2470_v49 = vmul.f32 0.044715, %v2464_v46  ;;  %v2468_v62 = vmul.f32 0.5, %v2464_v46 }
 0xbab   : > { %v2469_v20 = vmul.f32 0.044715, %v2459_v48  ;;  %v2467_v60 = vmul.f32 0.5, %v2459_v48 }
 0xbac   : > { %v2472_v50 = vmul.f32 %v2470_v49, %v2464_v46 }
 0xbad   : > { %v2471_v51 = vmul.f32 %v2469_v20, %v2459_v48 }
 0xbae   : > { %v2474_v52 = vmul.f32 %v2472_v50, %v2464_v46 }
 0xbaf   : > { %v2473_v53 = vmul.f32 %v2471_v51, %v2459_v48 }
 0xbb0   : > { %v2476_v54 = vadd.f32 %v2474_v52, %v2464_v46 }
 0xbb1   : > { %v2475_v55 = vadd.f32 %v2473_v53, %v2459_v48 }
 0xbb2   : > { %v2478_v14 = vmul.f32 0.7978846, %v2476_v54 }
 0xbb3   : > { %v2477_v56 = vmul.f32 0.7978846, %v2475_v55 }
 0xbb4   : > { %3055 = vtanh.f32 %v2478_v14 }
 0xbb5   : > { %3057 = vtanh.f32 %v2477_v56 }
 0xbbe   : > { %v3056_v57 = vpop.eup %3055 }
 0xbbf   : > { %v3058_v58 = vpop.eup %3057  ;;  %v2482_v59 = vadd.f32 1.0, %v3056_v57 }
 0xbc0   : > { %v2481_v61 = vadd.f32 1.0, %v3058_v58 }
 0xbc1   : > { %v2484_v6 = vmul.f32 %v2482_v59, %v2468_v62 }
 0xbc2   : > { %v2483_v63 = vmul.f32 %v2481_v61, %v2467_v60 }
 0xbc4   : > { %2937 = vmatprep.mubr.f32.mxu1 %v2483_v63 }
 0xbc5   : > { %2938 = vmatmul.mubr.f32.vlgmr.msra.gmra.mrb[14].mxu1 %v2484_v6 }
 0xc98   : > { %v2939_v8 = vpop.f32.mrb[14].mxu1 }
 0xc99   : > { %v2579_v9 = vcombine.high %v2939_v8, %v2939_v8  ;;  %v2567_v10 = vpop.f32.mrb[15].mxu1  ;;  %v2584_v21 = vadd.f32 %v2939_v8, %v3401_v2 }
 0xc9a   : > { %v2578_v12 = vcombine.high %v2567_v10, %v2567_v10  ;;  %v2582_v13 = vadd.f32 %v2567_v10, %v3403_v23 }
 0xc9b   : > { %v2585_v0 = vadd.f32 %v2579_v9, %v3405_v24  ;;  %v2597_v3 = vadd.f32 %v2716_v7, %v2584_v21 }
 0xc9c   : > { %v2583_v22 = vadd.f32 %v2578_v12, %v3407_v1  ;;  %v2595_v4 = vadd.f32 %v2716_v7, %v2582_v13 }
 0xc9d   : > { %v2598_v5 = vadd.f32 %v2593_v11, %v2585_v0  ;;  %2602 = vst.msk [vmem:[%s442_s29 + $0x8] sm:$0xf] %vm2599_vm6, %v2597_v3 }
 0xc9e   : > { %v2596_v25 = vadd.f32 %v2593_v11, %v2583_v22  ;;  %2600 = vst.msk [vmem:[%s442_s29] sm:$0xf] %vm2599_vm6, %v2595_v4 }
 0xc9f   : > { %2603 = vst.msk [vmem:[%s442_s29 + $0xc] sm:$0xf] %vm2599_vm6, %v2598_v5 }
 0xca0   : > { %2601 = vst.msk [vmem:[%s442_s29 + $0x4] sm:$0xf] %vm2599_vm6, %v2596_v25 }
 0xca1 PF: > { %s23_s25 = sadd.s32 1, %s3065_s25  }
 0xca2   : > { %p20_p4 = scmp.ge.s32.totalorder %s23_s25, 4  }
 0xca4   :  { %22 = sbr.rel (!%p20_p4) target bundleno = 1 (0x1), region = 103 }

// kernel: selfvit_forward.17
= control target key start
LH: loop header
LB: loop body
LE: loop exit
PB: predicated region body
PF: predicated region fallthrough
CT: control target
= control target key end

     0   :  { %s850_s24 = smov 0   ;;  %s952_s0 = inlined_call_operand.vmem [shape: f32[64,16], index: 0, kind: input, shape index: {}]   ;;  %s953_s1 = inlined_call_operand.vmem [shape: f32[1,16], index: 1, kind: input, shape index: {}]   ;;  %s954_s2 = inlined_call_operand.vmem [shape: f32[1,16], index: 2, kind: input, shape index: {}]   ;;  %s955_s3 = inlined_call_operand.vmem [shape: f32[16,64], index: 3, kind: input, shape index: {}]   ;;  %s956_s4 = inlined_call_operand.vmem [shape: f32[1,64], index: 4, kind: input, shape index: {}]   ;;  %s957_s5 = inlined_call_operand.vmem [shape: f32[64,16], index: 5, kind: input, shape index: {}]   ;;  %s958_s6 = inlined_call_operand.vmem [shape: f32[1,16], index: 6, kind: input, shape index: {}]   ;;  %s959_s7 = inlined_call_operand.vmem [shape: f32[64,16], index: 7, kind: output, shape index: {}]  }
   0x1 LB: > { %s685_s25 = sadd.s32 4294967295, %s808_s24   ;;  %p689_p0 = scmp.ge.s32.totalorder %s808_s24, 1  ;;  %s808_s24 = sphi %s850_s24, %s17_s24  }
   0x2   : > { %p238_p1 = scmp.lt.s32.totalorder %s808_s24, 3 }
   0x4   : > { %p239_p2 = pnand %p689_p0, %p238_p1 }
   0x5   : > { %s690_s26 = sshll.u32 (!%p239_p2), %s685_s25, 2  ;;  %vm288_vm0 = vcmask (!%p239_p2), 130048   ;;  %v362_v28 = vld [vmem:[%s955_s3] sm:$0xff] (!%p239_p2)  ;;  %v363_v29 = vld [vmem:[%s955_s3 + $0x8] sm:$0xff] (!%p239_p2)  ;;  %vm512_vm1 = vcmask (!%p239_p2), 523264  }
   0x6   : > { %242 = sbr.rel (%p239_p2) target bundleno = 797 (0x31d), region = 48  ;;  %p271_p3 = scmp.lt.s32.totalorder (!%p239_p2), %s690_s26, 7  ;;  %v758_v30 = vpack.c.bf16 (!%p239_p2), %v363_v29, %v362_v28  ;;  %v694_v44 = vld [vmem:[%s953_s1] ss:$0 sm:$0xff] (!%p239_p2)  ;;  %v505_v62 = vld [vmem:[%s957_s5 + $0x8] sm:$0xff] (!%p239_p2) }
   0x7   : > { %v695_v46 = vld [vmem:[%s954_s2] ss:$0 sm:$0xff] (!%p239_p2) }
   0x8   : > { %759 = vmatprep.subr.bf16.mxu0 (!%p239_p2), %v758_v30  ;;  %v504_v61 = vld [vmem:[%s957_s5] sm:$0xff] (!%p239_p2) }
   0x9   : > { %761 = vmatpush3.bf16.msra.mxu0 (!%p239_p2), %v758_v30  ;;  %v762_v63 = vpack.c.bf16 (!%p239_p2), %v505_v62, %v504_v61 }
   0xb   : > { %763 = vmatprep.subr.bf16.mxu1 (!%p239_p2), %v762_v63 }
   0xc   : > { %765 = vmatpush3.bf16.msra.mxu1 (!%p239_p2), %v762_v63 }
   0xd   : > { %s961_s26 = smov (!%p271_p3, %s690_s26), 7 }
   0xe   : > { %s691_s27 = sshll.u32 %s961_s26, 3 }
   0xf   : > { %s274_s30 = scalar_lea.vmem %s952_s0, %s691_s27  ;;  %s280_s18 = scalar_lea.vmem %s959_s7, %s691_s27 }
  0x10   : > { %v866_v0 = vld [vmem:[%s274_s30] sm:$0xff]  ;;  %v868_v1 = vld [vmem:[%s274_s30 + $0x10] sm:$0xff]  ;;  %v870_v2 = vld [vmem:[%s274_s30 + $0x8] sm:$0xff] }
  0x11   : > { %v289_v3 = vsel %vm288_vm0, %v866_v0, 0.0  ;;  %v295_v4 = vsel %vm288_vm0, %v868_v1, 0.0  ;;  %v876_v5 = vld [vmem:[%s274_s30 + $0x18] sm:$0xff]  ;;  %v292_v6 = vsel %vm288_vm0, %v870_v2, 0.0 }
  0x12   : > { %290 = vadd.xlane.f32.xlu0 %v289_v3  ;;  %296 = vadd.xlane.f32.xlu1 %v295_v4  ;;  %v298_v7 = vsel %vm288_vm0, %v876_v5, 0.0  ;;  %v506_v3 = vld [vmem:[%s957_s5 + $0x10] sm:$0xff]  ;;  %v507_v4 = vld [vmem:[%s957_s5 + $0x18] sm:$0xff] }
  0x16   : > { %293 = vadd.xlane.f32.xlu0 %v292_v6  ;;  %299 = vadd.xlane.f32.xlu1 %v298_v7  ;;  %v508_v6 = vld [vmem:[%s957_s5 + $0x20] sm:$0xff]  ;;  %v766_v7 = vpack.c.bf16 %v507_v4, %v506_v3 }
  0x18   : > { %767 = vmatprep.subr.bf16.mxu1 %v766_v7 }
  0x19   : > { %769 = vmatpush3.bf16.msra.mxu1 %v766_v7 }
  0x9f   : > { %v291_v8 = vpop.xlane.xlu0 %290  ;;  %v297_v9 = vpop.xlane.xlu1 %296 }
  0xa0   : > { %v302_v10 = vmul.f32 0.0625, %v291_v8  ;;  %v304_v11 = vmul.f32 0.0625, %v297_v9  ;;  %v509_v8 = vld [vmem:[%s957_s5 + $0x28] sm:$0xff] }
  0xa1   : > { %v770_v9 = vpack.c.bf16 %v509_v8, %v508_v6 }
  0xa2   : > { %v306_v12 = vsub.f32 %v866_v0, %v302_v10  ;;  %v308_v13 = vsub.f32 %v868_v1, %v304_v11  ;;  %v510_v10 = vld [vmem:[%s957_s5 + $0x30] sm:$0xff]  ;;  %v511_v11 = vld [vmem:[%s957_s5 + $0x38] sm:$0xff] }
  0xa3   : > { %v294_v14 = vpop.xlane.xlu0 %293  ;;  %v300_v15 = vpop.xlane.xlu1 %299  ;;  %771 = vmatprep.subr.bf16.mxu1 %v770_v9 }
  0xa4   : > { %v303_v16 = vmul.f32 0.0625, %v294_v14  ;;  %v305_v17 = vmul.f32 0.0625, %v300_v15  ;;  %v310_v18 = vmul.f32 %v306_v12, %v306_v12  ;;  %v312_v19 = vmul.f32 %v308_v13, %v308_v13  ;;  %773 = vmatpush3.bf16.msra.mxu1 %v770_v9 }
  0xa6   : > { %v307_v20 = vsub.f32 %v870_v2, %v303_v16  ;;  %v309_v21 = vsub.f32 %v876_v5, %v305_v17  ;;  %v314_v22 = vsel %vm288_vm0, %v310_v18, 0.0  ;;  %v320_v23 = vsel %vm288_vm0, %v312_v19, 0.0 }
  0xa7   : > { %315 = vadd.xlane.f32.xlu0 %v314_v22 }
  0xa8   : > { %v311_v24 = vmul.f32 %v307_v20, %v307_v20  ;;  %v313_v25 = vmul.f32 %v309_v21, %v309_v21 }
  0xaa   : > { %v317_v26 = vsel %vm288_vm0, %v311_v24, 0.0  ;;  %v323_v27 = vsel %vm288_vm0, %v313_v25, 0.0 }
  0xab   : > { %321 = vadd.xlane.f32.xlu0 %v320_v23  ;;  %318 = vadd.xlane.f32.xlu1 %v317_v26 }
  0xaf   : > { %324 = vadd.xlane.f32.xlu1 %v323_v27 }
 0x134   : > { %v316_v31 = vpop.xlane.xlu0 %315 }
 0x135   : > { %v326_v32 = vmul.f32 0.0625, %v316_v31 }
 0x137   : > { %v330_v33 = vadd.f32 1e-05, %v326_v32 }
 0x138   : > { %v319_v34 = vpop.xlane.xlu1 %318  ;;  %v322_v35 = vpop.xlane.xlu0 %321 }
 0x139   : > { %786 = vrsqrt.f32 %v330_v33  ;;  %v327_v36 = vmul.f32 0.0625, %v319_v34  ;;  %v328_v37 = vmul.f32 0.0625, %v322_v35 }
 0x13b   : > { %v331_v38 = vadd.f32 1e-05, %v327_v36  ;;  %v332_v39 = vadd.f32 1e-05, %v328_v37 }
 0x13c   : > { %v325_v40 = vpop.xlane.xlu1 %324 }
 0x13d   : > { %788 = vrsqrt.f32 %v331_v38  ;;  %v329_v41 = vmul.f32 0.0625, %v325_v40 }
 0x13e   : > { %790 = vrsqrt.f32 %v332_v39 }
 0x13f   : > { %v333_v42 = vadd.f32 1e-05, %v329_v41 }
 0x141   : > { %792 = vrsqrt.f32 %v333_v42 }
 0x143   : > { %v787_v43 = vpop.eup %786 }
 0x144   : > { %v338_v45 = vmul.f32 %v787_v43, %v306_v12  ;;  %v774_v12 = vpack.c.bf16 %v511_v11, %v510_v10 }
 0x146   : > { %v348_v47 = vmul.f32 %v694_v44, %v338_v45  ;;  %775 = vmatprep.subr.bf16.mxu1 %v774_v12 }
 0x147   : > { %v789_v48 = vpop.eup %788  ;;  %777 = vmatpush3.bf16.msra.mxu1 %v774_v12 }
 0x148   : > { %v791_v49 = vpop.eup %790  ;;  %v358_v50 = vadd.f32 %v695_v46, %v348_v47  ;;  %v339_v51 = vmul.f32 %v789_v48, %v307_v20 }
 0x149   : > { %v340_v52 = vmul.f32 %v791_v49, %v308_v13  ;;  %v696_v13 = vld [vmem:[%s956_s4] ss:$0 sm:$0xff] }
 0x14a   : > { %730 = vmatprep.mubr.msk.f32.mxu0 %vm288_vm0, %v358_v50  ;;  %v349_v53 = vmul.f32 %v694_v44, %v339_v51 }
 0x14b   : > { %v793_v54 = vpop.eup %792  ;;  %v350_v55 = vmul.f32 %v694_v44, %v340_v52 }
 0x14c   : > { %v359_v56 = vadd.f32 %v695_v46, %v349_v53  ;;  %v341_v57 = vmul.f32 %v793_v54, %v309_v21 }
 0x14d   : > { %v360_v58 = vadd.f32 %v695_v46, %v350_v55 }
 0x14e   : > { %731 = vmatmul.mubr.msk.f32.vlgmr.msra.gmra.mrb[0].mxu0 %vm288_vm0, %v359_v56  ;;  %v351_v59 = vmul.f32 %v694_v44, %v341_v57 }
 0x14f   : > { %733 = vmatprep.mubr.msk.f32.mxu0 %vm288_vm0, %v360_v58 }
 0x150   : > { %v361_v60 = vadd.f32 %v695_v46, %v351_v59 }
 0x152   : > { %734 = vmatmul.mubr.msk.f32.gmra.mrb[2].mxu0 %vm288_vm0, %v361_v60  ;;  %v705_v60 = vld [vmem:[%s958_s6] ss:$0 sm:$0xff] }
 0x221   : > { %v732_v14 = vpop.f32.mrb[0].mxu0 }
 0x222   : > { %v455_v15 = vadd.f32 %v732_v14, %v696_v13  ;;  %v449_v16 = vpop.f32.mrb[1].mxu0 }
 0x223   : > { %v450_v17 = vadd.f32 %v696_v13, %v449_v16 }
 0x224   : > { %v473_v18 = vmul.f32 0.044715, %v455_v15  ;;  %v469_v47 = vmul.f32 0.5, %v455_v15 }
 0x225   : > { %v472_v19 = vmul.f32 0.044715, %v450_v17  ;;  %v735_v20 = vpop.f32.mrb[2].mxu0  ;;  %v468_v45 = vmul.f32 0.5, %v450_v17 }
 0x226   : > { %v477_v21 = vmul.f32 %v473_v18, %v455_v15  ;;  %v465_v22 = vadd.f32 %v735_v20, %v696_v13  ;;  %v459_v23 = vpop.f32.mrb[3].mxu0 }
 0x227   : > { %v460_v24 = vadd.f32 %v696_v13, %v459_v23  ;;  %v476_v25 = vmul.f32 %v472_v19, %v450_v17 }
 0x228   : > { %v481_v26 = vmul.f32 %v477_v21, %v455_v15  ;;  %v475_v27 = vmul.f32 0.044715, %v465_v22  ;;  %v471_v55 = vmul.f32 0.5, %v465_v22 }
 0x229   : > { %v474_v28 = vmul.f32 0.044715, %v460_v24  ;;  %v480_v29 = vmul.f32 %v476_v25, %v450_v17  ;;  %v470_v53 = vmul.f32 0.5, %v460_v24 }
 0x22a   : > { %v485_v30 = vadd.f32 %v481_v26, %v455_v15  ;;  %v479_v31 = vmul.f32 %v475_v27, %v465_v22 }
 0x22b   : > { %v478_v32 = vmul.f32 %v474_v28, %v460_v24  ;;  %v484_v33 = vadd.f32 %v480_v29, %v450_v17 }
 0x22c   : > { %v483_v34 = vmul.f32 %v479_v31, %v465_v22  ;;  %v489_v35 = vmul.f32 0.7978846, %v485_v30 }
 0x22d   : > { %v482_v36 = vmul.f32 %v478_v32, %v460_v24  ;;  %v488_v37 = vmul.f32 0.7978846, %v484_v33 }
 0x22e   : > { %v487_v38 = vadd.f32 %v483_v34, %v465_v22  ;;  %794 = vtanh.f32 %v489_v35 }
 0x22f   : > { %v486_v39 = vadd.f32 %v482_v36, %v460_v24  ;;  %796 = vtanh.f32 %v488_v37 }
 0x230   : > { %v491_v40 = vmul.f32 0.7978846, %v487_v38 }
 0x231   : > { %v490_v41 = vmul.f32 0.7978846, %v486_v39 }
 0x232   : > { %798 = vtanh.f32 %v491_v40 }
 0x233   : > { %800 = vtanh.f32 %v490_v41 }
 0x238   : > { %v795_v42 = vpop.eup %794 }
 0x239   : > { %v797_v43 = vpop.eup %796  ;;  %v497_v44 = vadd.f32 1.0, %v795_v42 }
 0x23a   : > { %v496_v46 = vadd.f32 1.0, %v797_v43 }
 0x23b   : > { %v501_v51 = vmul.f32 %v497_v44, %v469_v47 }
 0x23c   : > { %v799_v48 = vpop.eup %798  ;;  %v500_v49 = vmul.f32 %v496_v46, %v468_v45 }
 0x23d   : > { %v801_v50 = vpop.eup %800  ;;  %v499_v52 = vadd.f32 1.0, %v799_v48 }
 0x23e   : > { %752 = vmatprep.mubr.msk.f32.mxu1 %vm512_vm1, %v500_v49  ;;  %v498_v54 = vadd.f32 1.0, %v801_v50 }
 0x23f   : > { %753 = vmatmul.mubr.msk.f32.vlgmr.msra.gmra.mrb[0].mxu1 %vm512_vm1, %v501_v51  ;;  %v503_v57 = vmul.f32 %v499_v52, %v471_v55 }
 0x240   : > { %v502_v56 = vmul.f32 %v498_v54, %v470_v53 }
 0x242   : > { %755 = vmatprep.mubr.msk.f32.mxu1 %vm512_vm1, %v502_v56 }
 0x243   : > { %756 = vmatmul.mubr.msk.f32.gmra.mrb[2].mxu1 %vm512_vm1, %v503_v57 }
 0x312   : > { %v754_v58 = vpop.f32.mrb[0].mxu1 }
 0x313   : > { %v611_v59 = vadd.f32 %v754_v58, %v870_v2  ;;  %v591_v61 = vpop.f32.mrb[1].mxu1 }
 0x314   : > { %v610_v62 = vadd.f32 %v591_v61, %v866_v0 }
 0x315   : > { %v622_v4 = vadd.f32 %v705_v60, %v611_v59 }
 0x316   : > { %v621_v63 = vadd.f32 %v705_v60, %v610_v62  ;;  %v757_v3 = vpop.f32.mrb[2].mxu1 }
 0x317   : > { %v613_v6 = vadd.f32 %v757_v3, %v876_v5  ;;  %v601_v7 = vpop.f32.mrb[3].mxu1  ;;  %626 = vst.msk [vmem:[%s280_s18 + $0x8] sm:$0xff] %vm288_vm0, %v622_v4 }
 0x318   : > { %625 = vst.msk [vmem:[%s280_s18] sm:$0xff] %vm288_vm0, %v621_v63  ;;  %v612_v2 = vadd.f32 %v601_v7, %v868_v1 }
 0x319   : > { %v624_v9 = vadd.f32 %v705_v60, %v613_v6 }
 0x31a   : > { %v623_v8 = vadd.f32 %v705_v60, %v612_v2 }
 0x31b   : > { %628 = vst.msk [vmem:[%s280_s18 + $0x18] sm:$0xff] %vm288_vm0, %v624_v9 }
 0x31c   : > { %627 = vst.msk [vmem:[%s280_s18 + $0x10] sm:$0xff] %vm288_vm0, %v623_v8 }
 0x31d PF: > { %s17_s24 = sadd.s32 1, %s808_s24  }
 0x31e   : > { %p14_p4 = scmp.ge.s32.totalorder %s17_s24, 4  }
 0x320   :  { %16 = sbr.rel (!%p14_p4) target bundleno = 1 (0x1), region = 78 }

// kernel: selfvit_forward.16
= control target key start
LH: loop header
LB: loop body
LE: loop exit
PB: predicated region body
PF: predicated region fallthrough
CT: control target
= control target key end

     0   :  { %s4678_s21 = smov 0   ;;  %s5675_s0 = inlined_call_operand.vmem [shape: f32[8,32,4], index: 0, kind: input, shape index: {}]   ;;  %s5676_s1 = inlined_call_operand.vmem [shape: f32[1,4], index: 1, kind: input, shape index: {}]   ;;  %s5677_s2 = inlined_call_operand.vmem [shape: f32[1,4], index: 2, kind: input, shape index: {}]   ;;  %s5678_s3 = inlined_call_operand.vmem [shape: f32[4,96], index: 3, kind: input, shape index: {}]   ;;  %s5679_s4 = inlined_call_operand.vmem [shape: f32[32,4], index: 4, kind: input, shape index: {}]   ;;  %s5680_s5 = inlined_call_operand.vmem [shape: f32[1,4], index: 5, kind: input, shape index: {}]   ;;  %s5681_s6 = inlined_call_operand.vmem [shape: f32[8,32,4], index: 6, kind: output, shape index: {}]  }
   0x1 LB: > { %s3427_s22 = sadd.s32 4294967295, %s4636_s21   ;;  %p3431_p0 = scmp.ge.s32.totalorder %s4636_s21, 1  ;;  %s4636_s21 = sphi %s4678_s21, %s16_s21  }
   0x2   : > { %p214_p1 = scmp.lt.s32.totalorder %s4636_s21, 3 }
   0x4   : > { %p215_p2 = pnand %p3431_p0, %p214_p1 }
   0x5   : > { %s3432_s23 = sshll.u32 (!%p215_p2), %s3427_s22, 2  ;;  %vm278_vm0 = vcmask (!%p215_p2), 31744   ;;  %vm581_vm1 = vcmask (!%p215_p2), 1043456   ;;  %vm785_vm2 = vcmask (!%p215_p2), 130048   ;;  %s4638_s10 = smov (!%p215_p2), 96   ;;  %vm1242_vm4 = vcmask (!%p215_p2), 261120  }
   0x6   : > { %218 = sbr.rel (%p215_p2) target bundleno = 2486 (0x9b6), region = 44  ;;  %p247_p3 = scmp.lt.s32.totalorder (!%p215_p2), %s3432_s23, 7  ;;  %vm5009_vm3 = vmpackc.low (!%p215_p2), %vm785_vm2, %vm785_vm2 }
   0x7   : > { %s4639_s11 = smov (!%p215_p2), 64   ;;  %s4640_s12 = smov (!%p215_p2), 80  }
   0x8   : > { %s4641_s13 = smov (!%p215_p2), 112   ;;  %s4642_s18 = smov (!%p215_p2), 48  }
   0xd   : > { %s5685_s23 = smov (!%p247_p3, %s3432_s23), 7 }
   0xe   : > { %s3588_s24 = sshll.u32 %s5685_s23, 5 }
   0xf   : > { %s4694_s27 = scalar_lea.vmem %s5675_s0, %s3588_s24  ;;  %s5610_s7 = scalar_lea.vmem %s5681_s6, %s3588_s24 }
  0x10   : > { %v260_v0 = vld [vmem:[%s4694_s27] sm:$0xff]  ;;  %v262_v1 = vld [vmem:[%s4694_s27 + $0x10] sm:$0xff]  ;;  %v261_v2 = vld [vmem:[%s4694_s27 + $0x8] sm:$0xff] }
  0x11   : > { %v279_v3 = vsel %vm278_vm0, %v260_v0, 0.0  ;;  %v285_v4 = vsel %vm278_vm0, %v262_v1, 0.0  ;;  %v263_v5 = vld [vmem:[%s4694_s27 + $0x18] sm:$0xff]  ;;  %v282_v6 = vsel %vm278_vm0, %v261_v2, 0.0  ;;  %v264_v8 = vld [vmem:[%s4694_s27 + $0x20] sm:$0xff]  ;;  %v265_v9 = vld [vmem:[%s4694_s27 + $0x28] sm:$0xff] }
  0x12   : > { %280 = vadd.xlane.f32.xlu0 %v279_v3  ;;  %286 = vadd.xlane.f32.xlu1 %v285_v4  ;;  %v288_v7 = vsel %vm278_vm0, %v263_v5, 0.0  ;;  %v291_v10 = vsel %vm278_vm0, %v264_v8, 0.0  ;;  %v294_v11 = vsel %vm278_vm0, %v265_v9, 0.0  ;;  %v4709_v12 = vld [vmem:[%s4694_s27 + $0x30] sm:$0xff]  ;;  %v4712_v13 = vld [vmem:[%s4694_s27 + $0x38] sm:$0xff]  ;;  %v4719_v16 = vld [vmem:[%s4694_s27 + $0x40] sm:$0xff] }
  0x13   : > { %v297_v14 = vsel %vm278_vm0, %v4709_v12, 0.0  ;;  %v300_v15 = vsel %vm278_vm0, %v4712_v13, 0.0  ;;  %v4722_v17 = vld [vmem:[%s4694_s27 + $0x48] sm:$0xff]  ;;  %v303_v18 = vsel %vm278_vm0, %v4719_v16, 0.0  ;;  %v4729_v20 = vld [vmem:[%s4694_s27 + $0x50] sm:$0xff]  ;;  %v4732_v21 = vld [vmem:[%s4694_s27 + $0x58] sm:$0xff] }
  0x14   : > { %v306_v19 = vsel %vm278_vm0, %v4722_v17, 0.0  ;;  %v309_v22 = vsel %vm278_vm0, %v4729_v20, 0.0  ;;  %v312_v23 = vsel %vm278_vm0, %v4732_v21, 0.0  ;;  %v4739_v24 = vld [vmem:[%s4694_s27 + $0x60] sm:$0xff]  ;;  %v4742_v25 = vld [vmem:[%s4694_s27 + $0x68] sm:$0xff]  ;;  %v4749_v28 = vld [vmem:[%s4694_s27 + $0x70] sm:$0xff] }
  0x15   : > { %v315_v26 = vsel %vm278_vm0, %v4739_v24, 0.0  ;;  %v318_v27 = vsel %vm278_vm0, %v4742_v25, 0.0  ;;  %v4752_v29 = vld [vmem:[%s4694_s27 + $0x78] sm:$0xff]  ;;  %v321_v30 = vsel %vm278_vm0, %v4749_v28, 0.0 }
  0x16   : > { %283 = vadd.xlane.f32.xlu0 %v282_v6  ;;  %289 = vadd.xlane.f32.xlu1 %v288_v7  ;;  %v324_v31 = vsel %vm278_vm0, %v4752_v29, 0.0 }
  0x1a   : > { %292 = vadd.xlane.f32.xlu0 %v291_v10  ;;  %295 = vadd.xlane.f32.xlu1 %v294_v11 }
  0x1e   : > { %298 = vadd.xlane.f32.xlu0 %v297_v14  ;;  %301 = vadd.xlane.f32.xlu1 %v300_v15 }
  0x22   : > { %304 = vadd.xlane.f32.xlu0 %v303_v18  ;;  %307 = vadd.xlane.f32.xlu1 %v306_v19 }
  0x26   : > { %310 = vadd.xlane.f32.xlu0 %v309_v22  ;;  %313 = vadd.xlane.f32.xlu1 %v312_v23 }
  0x2a   : > { %316 = vadd.xlane.f32.xlu0 %v315_v26  ;;  %319 = vadd.xlane.f32.xlu1 %v318_v27 }
  0x2e   : > { %322 = vadd.xlane.f32.xlu0 %v321_v30  ;;  %325 = vadd.xlane.f32.xlu1 %v324_v31 }
  0x9f   : > { %v281_v32 = vpop.xlane.xlu0 %280  ;;  %v287_v33 = vpop.xlane.xlu1 %286 }
  0xa0   : > { %v328_v34 = vmul.f32 0.25, %v281_v32  ;;  %v330_v35 = vmul.f32 0.25, %v287_v33 }
  0xa2   : > { %v4758_v36 = vsub.f32 %v260_v0, %v328_v34  ;;  %v4760_v37 = vsub.f32 %v262_v1, %v330_v35 }
  0xa3   : > { %v284_v38 = vpop.xlane.xlu0 %283  ;;  %v290_v39 = vpop.xlane.xlu1 %289 }
  0xa4   : > { %v329_v40 = vmul.f32 0.25, %v284_v38  ;;  %v331_v41 = vmul.f32 0.25, %v290_v39  ;;  %v360_v42 = vmul.f32 %v4758_v36, %v4758_v36  ;;  %v362_v43 = vmul.f32 %v4760_v37, %v4760_v37 }
  0xa6   : > { %v4766_v44 = vsub.f32 %v261_v2, %v329_v40  ;;  %v4768_v45 = vsub.f32 %v263_v5, %v331_v41  ;;  %v376_v46 = vsel %vm278_vm0, %v360_v42, 0.0  ;;  %v382_v49 = vsel %vm278_vm0, %v362_v43, 0.0 }
  0xa7   : > { %377 = vadd.xlane.f32.xlu0 %v376_v46  ;;  %v293_v47 = vpop.xlane.xlu0 %292  ;;  %v296_v48 = vpop.xlane.xlu1 %295 }
  0xa8   : > { %v332_v50 = vmul.f32 0.25, %v293_v47  ;;  %v333_v51 = vmul.f32 0.25, %v296_v48  ;;  %v361_v52 = vmul.f32 %v4766_v44, %v4766_v44  ;;  %v363_v53 = vmul.f32 %v4768_v45, %v4768_v45 }
  0xaa   : > { %v4776_v54 = vsub.f32 %v264_v8, %v332_v50  ;;  %v4778_v55 = vsub.f32 %v265_v9, %v333_v51  ;;  %v379_v56 = vsel %vm278_vm0, %v361_v52, 0.0  ;;  %v385_v59 = vsel %vm278_vm0, %v363_v53, 0.0 }
  0xab   : > { %383 = vadd.xlane.f32.xlu0 %v382_v49  ;;  %380 = vadd.xlane.f32.xlu1 %v379_v56  ;;  %v299_v57 = vpop.xlane.xlu0 %298  ;;  %v302_v58 = vpop.xlane.xlu1 %301 }
  0xac   : > { %v334_v60 = vmul.f32 0.25, %v299_v57  ;;  %v335_v61 = vmul.f32 0.25, %v302_v58  ;;  %v364_v62 = vmul.f32 %v4776_v54, %v4776_v54  ;;  %v365_v63 = vmul.f32 %v4778_v55, %v4778_v55 }
  0xae   : > { %v4787_v0 = vsub.f32 %v4709_v12, %v334_v60  ;;  %v4790_v1 = vsub.f32 %v4712_v13, %v335_v61  ;;  %v388_v2 = vsel %vm278_vm0, %v364_v62, 0.0  ;;  %v391_v5 = vsel %vm278_vm0, %v365_v63, 0.0 }
  0xaf   : > { %386 = vadd.xlane.f32.xlu1 %v385_v59  ;;  %389 = vadd.xlane.f32.xlu0 %v388_v2  ;;  %v305_v3 = vpop.xlane.xlu0 %304  ;;  %v308_v4 = vpop.xlane.xlu1 %307 }
  0xb0   : > { %v336_v6 = vmul.f32 0.25, %v305_v3  ;;  %v337_v7 = vmul.f32 0.25, %v308_v4  ;;  %v366_v8 = vmul.f32 %v4787_v0, %v4787_v0  ;;  %v367_v9 = vmul.f32 %v4790_v1, %v4790_v1 }
  0xb2   : > { %v4799_v10 = vsub.f32 %v4719_v16, %v336_v6  ;;  %v4802_v11 = vsub.f32 %v4722_v17, %v337_v7  ;;  %v394_v12 = vsel %vm278_vm0, %v366_v8, 0.0  ;;  %v397_v15 = vsel %vm278_vm0, %v367_v9, 0.0 }
  0xb3   : > { %392 = vadd.xlane.f32.xlu1 %v391_v5  ;;  %395 = vadd.xlane.f32.xlu0 %v394_v12  ;;  %v311_v13 = vpop.xlane.xlu0 %310  ;;  %v314_v14 = vpop.xlane.xlu1 %313 }
  0xb4   : > { %v338_v18 = vmul.f32 0.25, %v311_v13  ;;  %v339_v19 = vmul.f32 0.25, %v314_v14  ;;  %v368_v22 = vmul.f32 %v4799_v10, %v4799_v10  ;;  %v369_v16 = vmul.f32 %v4802_v11, %v4802_v11 }
  0xb6   : > { %v4811_v23 = vsub.f32 %v4729_v20, %v338_v18  ;;  %v4814_v17 = vsub.f32 %v4732_v21, %v339_v19  ;;  %v400_v26 = vsel %vm278_vm0, %v368_v22, 0.0  ;;  %v403_v31 = vsel %vm278_vm0, %v369_v16, 0.0  ;;  %v4854_v19 = vld [vmem:[%s5676_s1] ss:$0 sm:$0xff] }
  0xb7   : > { %398 = vadd.xlane.f32.xlu1 %v397_v15  ;;  %401 = vadd.xlane.f32.xlu0 %v400_v26  ;;  %v317_v27 = vpop.xlane.xlu0 %316  ;;  %v320_v30 = vpop.xlane.xlu1 %319 }
  0xb8   : > { %v340_v32 = vmul.f32 0.25, %v317_v27  ;;  %v341_v33 = vmul.f32 0.25, %v320_v30  ;;  %v370_v34 = vmul.f32 %v4811_v23, %v4811_v23  ;;  %v371_v20 = vmul.f32 %v4814_v17, %v4814_v17 }
  0xba   : > { %v4823_v35 = vsub.f32 %v4739_v24, %v340_v32  ;;  %v4826_v21 = vsub.f32 %v4742_v25, %v341_v33  ;;  %v406_v38 = vsel %vm278_vm0, %v370_v34, 0.0  ;;  %v409_v41 = vsel %vm278_vm0, %v371_v20, 0.0 }
  0xbb   : > { %404 = vadd.xlane.f32.xlu1 %v403_v31  ;;  %407 = vadd.xlane.f32.xlu0 %v406_v38  ;;  %v323_v39 = vpop.xlane.xlu0 %322  ;;  %v326_v40 = vpop.xlane.xlu1 %325  ;;  %v4860_v31 = vld [vmem:[%s5677_s2] ss:$0 sm:$0xff] }
  0xbc   : > { %v342_v42 = vmul.f32 0.25, %v323_v39  ;;  %v343_v43 = vmul.f32 0.25, %v326_v40  ;;  %v372_v46 = vmul.f32 %v4823_v35, %v4823_v35  ;;  %v373_v24 = vmul.f32 %v4826_v21, %v4826_v21 }
  0xbe   : > { %v4835_v47 = vsub.f32 %v4749_v28, %v342_v42  ;;  %v4838_v25 = vsub.f32 %v4752_v29, %v343_v43  ;;  %v412_v48 = vsel %vm278_vm0, %v372_v46, 0.0  ;;  %v415_v49 = vsel %vm278_vm0, %v373_v24, 0.0  ;;  %v532_v29 = vld [vmem:[%s5678_s3] sm:$0xf] }
  0xbf   : > { %410 = vadd.xlane.f32.xlu1 %v409_v41  ;;  %413 = vadd.xlane.f32.xlu0 %v412_v48 }
  0xc0   : > { %v374_v50 = vmul.f32 %v4835_v47, %v4835_v47  ;;  %v375_v51 = vmul.f32 %v4838_v25, %v4838_v25  ;;  %3771 = vmatprep.subr.msk.mxu0 %vm581_vm1, %v532_v29 }
  0xc1   : > { %3772 = vmatpush3.msk.msra.mxu0 %vm581_vm1, %v532_v29 }
  0xc2   : > { %v418_v52 = vsel %vm278_vm0, %v374_v50, 0.0  ;;  %v421_v28 = vsel %vm278_vm0, %v375_v51, 0.0 }
  0xc3   : > { %416 = vadd.xlane.f32.xlu1 %v415_v49  ;;  %419 = vadd.xlane.f32.xlu0 %v418_v52 }
  0xc7   : > { %422 = vadd.xlane.f32.xlu1 %v421_v28 }
 0x134   : > { %v378_v53 = vpop.xlane.xlu0 %377 }
 0x135   : > { %v424_v56 = vmul.f32 0.25, %v378_v53 }
 0x137   : > { %v440_v57 = vadd.f32 1e-05, %v424_v56 }
 0x138   : > { %v381_v58 = vpop.xlane.xlu1 %380  ;;  %v384_v59 = vpop.xlane.xlu0 %383 }
 0x139   : > { %4454 = vrsqrt.f32 %v440_v57  ;;  %v425_v60 = vmul.f32 0.25, %v381_v58  ;;  %v426_v61 = vmul.f32 0.25, %v384_v59 }
 0x13b   : > { %v441_v62 = vadd.f32 1e-05, %v425_v60  ;;  %v442_v63 = vadd.f32 1e-05, %v426_v61 }
 0x13c   : > { %v387_v2 = vpop.xlane.xlu1 %386  ;;  %v390_v3 = vpop.xlane.xlu0 %389 }
 0x13d   : > { %4456 = vrsqrt.f32 %v441_v62  ;;  %v427_v4 = vmul.f32 0.25, %v387_v2  ;;  %v428_v5 = vmul.f32 0.25, %v390_v3 }
 0x13e   : > { %4458 = vrsqrt.f32 %v442_v63 }
 0x13f   : > { %v443_v6 = vadd.f32 1e-05, %v427_v4  ;;  %v444_v7 = vadd.f32 1e-05, %v428_v5 }
 0x140   : > { %v393_v8 = vpop.xlane.xlu1 %392  ;;  %v396_v9 = vpop.xlane.xlu0 %395 }
 0x141   : > { %4460 = vrsqrt.f32 %v443_v6  ;;  %v429_v12 = vmul.f32 0.25, %v393_v8  ;;  %v430_v13 = vmul.f32 0.25, %v396_v9 }
 0x142   : > { %4462 = vrsqrt.f32 %v444_v7 }
 0x143   : > { %v4455_v14 = vpop.eup %4454  ;;  %v445_v15 = vadd.f32 1e-05, %v429_v12  ;;  %v446_v18 = vadd.f32 1e-05, %v430_v13 }
 0x144   : > { %v399_v22 = vpop.xlane.xlu1 %398  ;;  %v402_v16 = vpop.xlane.xlu0 %401  ;;  %v472_v26 = vmul.f32 %v4455_v14, %v4758_v36 }
 0x145   : > { %4464 = vrsqrt.f32 %v445_v15  ;;  %v431_v27 = vmul.f32 0.25, %v399_v22  ;;  %v432_v30 = vmul.f32 0.25, %v402_v16 }
 0x146   : > { %4466 = vrsqrt.f32 %v446_v18  ;;  %v494_v32 = vmul.f32 %v4854_v19, %v472_v26 }
 0x147   : > { %v4457_v33 = vpop.eup %4456  ;;  %v447_v34 = vadd.f32 1e-05, %v431_v27  ;;  %v448_v20 = vadd.f32 1e-05, %v432_v30 }
 0x148   : > { %v4459_v38 = vpop.eup %4458  ;;  %v405_v39 = vpop.xlane.xlu1 %404  ;;  %v516_v41 = vadd.f32 %v4860_v31, %v494_v32  ;;  %v473_v36 = vmul.f32 %v4457_v33, %v4766_v44 }
 0x149   : > { %v408_v40 = vpop.xlane.xlu0 %407  ;;  %4468 = vrsqrt.f32 %v447_v34  ;;  %v433_v42 = vmul.f32 0.25, %v405_v39  ;;  %v474_v46 = vmul.f32 %v4459_v38, %v4760_v37 }
 0x14a   : > { %v434_v43 = vmul.f32 0.25, %v408_v40  ;;  %4470 = vrsqrt.f32 %v448_v20  ;;  %3773 = vmatprep.mubr.msk.f32.mxu0 %vm278_vm0, %v516_v41  ;;  %v495_v24 = vmul.f32 %v4854_v19, %v473_v36 }
 0x14b   : > { %v4461_v48 = vpop.eup %4460  ;;  %v449_v49 = vadd.f32 1e-05, %v433_v42  ;;  %v496_v51 = vmul.f32 %v4854_v19, %v474_v46 }
 0x14c   : > { %v450_v50 = vadd.f32 1e-05, %v434_v43  ;;  %v4463_v52 = vpop.eup %4462  ;;  %v411_v28 = vpop.xlane.xlu1 %410  ;;  %v517_v44 = vadd.f32 %v4860_v31, %v495_v24  ;;  %v475_v53 = vmul.f32 %v4461_v48, %v4768_v45 }
 0x14d   : > { %v414_v29 = vpop.xlane.xlu0 %413  ;;  %4472 = vrsqrt.f32 %v449_v49  ;;  %v435_v56 = vmul.f32 0.25, %v411_v28  ;;  %v518_v57 = vadd.f32 %v4860_v31, %v496_v51  ;;  %v476_v59 = vmul.f32 %v4463_v52, %v4776_v54 }
 0x14e   : > { %v436_v37 = vmul.f32 0.25, %v414_v29  ;;  %4474 = vrsqrt.f32 %v450_v50  ;;  %3774 = vmatmul.mubr.msk.f32.vlgmr.msra.gmra.mrb[0].mxu0 %vm278_vm0, %v517_v44  ;;  %v497_v58 = vmul.f32 %v4854_v19, %v475_v53 }
 0x14f   : > { %v4465_v60 = vpop.eup %4464  ;;  %v451_v61 = vadd.f32 1e-05, %v435_v56  ;;  %3776 = vmatprep.mubr.msk.f32.mxu0 %vm278_vm0, %v518_v57  ;;  %v498_v4 = vmul.f32 %v4854_v19, %v476_v59 }
 0x150   : > { %v452_v62 = vadd.f32 1e-05, %v436_v37  ;;  %v4467_v63 = vpop.eup %4466  ;;  %v417_v2 = vpop.xlane.xlu1 %416  ;;  %v519_v3 = vadd.f32 %v4860_v31, %v497_v58  ;;  %v477_v5 = vmul.f32 %v4465_v60, %v4778_v55 }
 0x151   : > { %v420_v45 = vpop.xlane.xlu0 %419  ;;  %4476 = vrsqrt.f32 %v451_v61  ;;  %v437_v6 = vmul.f32 0.25, %v417_v2  ;;  %v478_v8 = vmul.f32 %v4467_v63, %v4787_v0  ;;  %v520_v54 = vadd.f32 %v4860_v31, %v498_v4 }
 0x152   : > { %v438_v7 = vmul.f32 0.25, %v420_v45  ;;  %4478 = vrsqrt.f32 %v452_v62  ;;  %3777 = vmatmul.mubr.msk.f32.gmra.mrb[2].mxu0 %vm278_vm0, %v519_v3  ;;  %v499_v9 = vmul.f32 %v4854_v19, %v477_v5 }
 0x153   : > { %v4469_v12 = vpop.eup %4468  ;;  %v453_v13 = vadd.f32 1e-05, %v437_v6  ;;  %v500_v15 = vmul.f32 %v4854_v19, %v478_v8  ;;  %3779 = vmatprep.mubr.msk.f32.mxu0 %vm278_vm0, %v520_v54 }
 0x154   : > { %v454_v14 = vadd.f32 1e-05, %v438_v7  ;;  %v4471_v18 = vpop.eup %4470  ;;  %v423_v55 = vpop.xlane.xlu1 %422  ;;  %v521_v22 = vadd.f32 %v4860_v31, %v499_v9  ;;  %v479_v0 = vmul.f32 %v4469_v12, %v4790_v1 }
 0x155   : > { %4480 = vrsqrt.f32 %v453_v13  ;;  %v439_v16 = vmul.f32 0.25, %v423_v55  ;;  %v522_v26 = vadd.f32 %v4860_v31, %v500_v15  ;;  %v480_v27 = vmul.f32 %v4471_v18, %v4799_v10 }
 0x156   : > { %4482 = vrsqrt.f32 %v454_v14  ;;  %3780 = vmatmul.mubr.msk.f32.gmra.mrb[4].mxu0 %vm278_vm0, %v521_v22  ;;  %v501_v30 = vmul.f32 %v4854_v19, %v479_v0 }
 0x157   : > { %v4473_v32 = vpop.eup %4472  ;;  %v455_v33 = vadd.f32 1e-05, %v439_v16  ;;  %3782 = vmatprep.mubr.msk.f32.mxu0 %vm278_vm0, %v522_v26  ;;  %v502_v34 = vmul.f32 %v4854_v19, %v480_v27 }
 0x158   : > { %v4475_v20 = vpop.eup %4474  ;;  %v523_v1 = vadd.f32 %v4860_v31, %v501_v30  ;;  %v481_v38 = vmul.f32 %v4473_v32, %v4802_v11 }
 0x159   : > { %4484 = vrsqrt.f32 %v455_v33  ;;  %v524_v39 = vadd.f32 %v4860_v31, %v502_v34  ;;  %v482_v10 = vmul.f32 %v4475_v20, %v4811_v23 }
 0x15a   : > { %3783 = vmatmul.mubr.msk.f32.gmra.mrb[6].mxu0 %vm278_vm0, %v523_v1  ;;  %v503_v40 = vmul.f32 %v4854_v19, %v481_v38 }
 0x15b   : > { %v4477_v41 = vpop.eup %4476  ;;  %3785 = vmatprep.mubr.msk.f32.mxu0 %vm278_vm0, %v524_v39  ;;  %v504_v36 = vmul.f32 %v4854_v19, %v482_v10 }
 0x15c   : > { %v4479_v42 = vpop.eup %4478  ;;  %v525_v43 = vadd.f32 %v4860_v31, %v503_v40  ;;  %v483_v46 = vmul.f32 %v4477_v41, %v4814_v17 }
 0x15d   : > { %v526_v11 = vadd.f32 %v4860_v31, %v504_v36  ;;  %v484_v24 = vmul.f32 %v4479_v42, %v4823_v35 }
 0x15e   : > { %3786 = vmatmul.mubr.msk.f32.gmra.mrb[8].mxu0 %vm278_vm0, %v525_v43  ;;  %v505_v23 = vmul.f32 %v4854_v19, %v483_v46 }
 0x15f   : > { %v4481_v48 = vpop.eup %4480  ;;  %3788 = vmatprep.mubr.msk.f32.mxu0 %vm278_vm0, %v526_v11  ;;  %v506_v49 = vmul.f32 %v4854_v19, %v484_v24 }
 0x160   : > { %v4483_v50 = vpop.eup %4482  ;;  %v527_v51 = vadd.f32 %v4860_v31, %v505_v23  ;;  %v485_v52 = vmul.f32 %v4481_v48, %v4826_v21 }
 0x161   : > { %v528_v17 = vadd.f32 %v4860_v31, %v506_v49  ;;  %v486_v28 = vmul.f32 %v4483_v50, %v4835_v47 }
 0x162   : > { %3789 = vmatmul.mubr.msk.f32.gmra.mrb[10].mxu0 %vm278_vm0, %v527_v51  ;;  %v507_v35 = vmul.f32 %v4854_v19, %v485_v52 }
 0x163   : > { %v4485_v29 = vpop.eup %4484  ;;  %3791 = vmatprep.mubr.msk.f32.mxu0 %vm278_vm0, %v528_v17  ;;  %v508_v44 = vmul.f32 %v4854_v19, %v486_v28 }
 0x164   : > { %v529_v53 = vadd.f32 %v4860_v31, %v507_v35  ;;  %v487_v56 = vmul.f32 %v4485_v29, %v4838_v25 }
 0x165   : > { %v530_v37 = vadd.f32 %v4860_v31, %v508_v44 }
 0x166   : > { %3792 = vmatmul.mubr.msk.f32.gmra.mrb[12].mxu0 %vm278_vm0, %v529_v53  ;;  %v509_v21 = vmul.f32 %v4854_v19, %v487_v56 }
 0x167   : > { %3794 = vmatprep.mubr.msk.f32.mxu0 %vm278_vm0, %v530_v37 }
 0x168   : > { %v531_v47 = vadd.f32 %v4860_v31, %v509_v21 }
 0x16a   : > { %3795 = vmatmul.mubr.msk.f32.gmra.mrb[14].mxu0 %vm278_vm0, %v531_v47 }
 0x221   : > { %v4925_v57 = vpop.f32.mrb[0].mxu0 }
 0x222   : > { %v651_v58 = vpop.f32.mrb[1].mxu0  ;;  %v5028_v11 = vmul.f32 0.25, %v4925_v57 }
 0x223   : > { %v4928_v59 = vpack.i.bf16 %v4925_v57, %v651_v58  ;;  %v4930_v25 = vmul.f32 0.25, %v651_v58 }
 0x225   : > { %4295 = vrot.lane.b32.xlu0 %v4928_v59, %s4638_s10  ;;  %v4934_v19 = vpop.f32.mrb[2].mxu0  ;;  %3805 = vmatprep.mubr.msk.f32.mxu0 %vm785_vm2, %v4930_v25 }
 0x226   : > { %v661_v31 = vpop.f32.mrb[3].mxu0  ;;  %v5043_v52 = vmul.f32 0.25, %v4934_v19 }
 0x227   : > { %v4939_v60 = vpack.i.bf16 %v4934_v19, %v661_v31  ;;  %v5030_v48 = vmul.f32 0.25, %v661_v31 }
 0x229   : > { %4300 = vrot.lane.b32.xlu1 %v4939_v60, %s4638_s10  ;;  %v4943_v61 = vpop.f32.mrb[4].mxu0 }
 0x22a   : > { %v671_v62 = vpop.f32.mrb[5].mxu0  ;;  %v5054_v53 = vmul.f32 0.25, %v4943_v61 }
 0x22b   : > { %v4946_v63 = vpack.i.bf16 %v4943_v61, %v671_v62  ;;  %v4948_v2 = vmul.f32 0.25, %v671_v62 }
 0x22d   : > { %4305 = vrot.lane.b32.xlu1 %v4946_v63, %s4638_s10  ;;  %v4952_v45 = vpop.f32.mrb[6].mxu0  ;;  %3819 = vmatprep.mubr.msk.f32.mxu1 %vm785_vm2, %v4948_v2 }
 0x22e   : > { %v4956_v3 = vpop.f32.mrb[7].mxu0  ;;  %v5070_v61 = vmul.f32 0.25, %v4952_v45 }
 0x22f   : > { %v4960_v4 = vpack.i.bf16 %v4952_v45, %v4956_v3  ;;  %v5057_v21 = vmul.f32 0.25, %v4956_v3 }
 0x231   : > { %4310 = vrot.lane.b32.xlu1 %v4960_v4, %s4638_s10  ;;  %v4964_v5 = vpop.f32.mrb[8].mxu0 }
 0x232   : > { %v691_v6 = vpop.f32.mrb[9].mxu0  ;;  %v5082_v45 = vmul.f32 0.25, %v4964_v5 }
 0x233   : > { %v4967_v7 = vpack.i.bf16 %v4964_v5, %v691_v6  ;;  %v5045_v28 = vmul.f32 0.25, %v691_v6 }
 0x235   : > { %4315 = vrot.lane.b32.xlu0 %v4967_v7, %s4638_s10  ;;  %v4971_v8 = vpop.f32.mrb[10].mxu0 }
 0x236   : > { %v4973_v54 = vpop.f32.mrb[11].mxu0  ;;  %v5094_v5 = vmul.f32 0.25, %v4971_v8 }
 0x237   : > { %v4977_v9 = vpack.i.bf16 %v4971_v8, %v4973_v54 }
 0x239   : > { %4320 = vrot.lane.b32.xlu1 %v4977_v9, %s4638_s10  ;;  %v4981_v12 = vpop.f32.mrb[12].mxu0 }
 0x23a   : > { %v4983_v13 = vpop.f32.mrb[13].mxu0 }
 0x23b   : > { %v4987_v14 = vpack.i.bf16 %v4981_v12, %v4983_v13  ;;  %v5073_v6 = vmul.f32 0.25, %v4983_v13 }
 0x23d   : > { %4325 = vrot.lane.b32.xlu0 %v4987_v14, %s4638_s10  ;;  %v4991_v15 = vpop.f32.mrb[14].mxu0 }
 0x23e   : > { %v4993_v18 = vpop.f32.mrb[15].mxu0  ;;  %v5112_v8 = vmul.f32 0.25, %v4991_v15 }
 0x23f   : > { %v4997_v55 = vpack.i.bf16 %v4991_v15, %v4993_v18 }
 0x241   : > { %4335 = vrot.lane.b32.xlu0 %v4928_v59, %s4639_s11  ;;  %4330 = vrot.lane.b32.xlu1 %v4997_v55, %s4638_s10 }
 0x245   : > { %4345 = vrot.lane.b32.xlu0 %v4946_v63, %s4639_s11  ;;  %4340 = vrot.lane.b32.xlu1 %v4939_v60, %s4639_s11 }
 0x297   : > { %v4296_v22 = vpop.permute.xlu0 %4295 }
 0x298   : > { %v4298_v0 = vunpack.i.h.bf16 %v4296_v22  ;;  %v4297_v16 = vunpack.i.l.bf16 %v4296_v22 }
 0x29a   : > { %v4077_v27 = vpack.c.bf16 %v4298_v0, %v4297_v16 }
 0x29b   : > { %v4301_v30 = vpop.permute.xlu1 %4300 }
 0x29c   : > { %v4303_v32 = vunpack.i.h.bf16 %v4301_v30  ;;  %v4302_v33 = vunpack.i.l.bf16 %v4301_v30  ;;  %4079 = vmatprep.subr.msk.bf16.mxu0 %vm5009_vm3, %v4077_v27 }
 0x29d   : > { %4082 = vmatpush3.bf16.xpose.msk.msra.mxu0 %vm5009_vm3, %v4077_v27  ;;  %v5085_v27 = vmul.f32 0.25, %v4973_v54 }
 0x29e   : > { %v4083_v34 = vpack.c.bf16 %v4303_v32, %v4302_v33  ;;  %v5101_v33 = vmul.f32 0.25, %v4981_v12 }
 0x29f   : > { %v4306_v20 = vpop.permute.xlu1 %4305 }
 0x2a0   : > { %4085 = vmatprep.subr.msk.bf16.mxu0 %vm5009_vm3, %v4083_v34  ;;  %v4308_v1 = vunpack.i.h.bf16 %v4306_v20  ;;  %v4307_v38 = vunpack.i.l.bf16 %v4306_v20 }
 0x2a2   : > { %v4089_v39 = vpack.c.bf16 %v4308_v1, %v4307_v38 }
 0x2a3   : > { %v4311_v10 = vpop.permute.xlu1 %4310 }
 0x2a4   : > { %v4313_v40 = vunpack.i.h.bf16 %v4311_v10  ;;  %v4312_v41 = vunpack.i.l.bf16 %v4311_v10  ;;  %4091 = vmatprep.subr.msk.bf16.mxu1 %vm5009_vm3, %v4089_v39 }
 0x2a5   : > { %4088 = vmatpush3.bf16.xpose.msk.msra.mxu0 %vm5009_vm3, %v4083_v34  ;;  %4094 = vmatpush3.bf16.xpose.msk.msra.mxu1 %vm5009_vm3, %v4089_v39  ;;  %v5105_v34 = vmul.f32 0.25, %v4993_v18 }
 0x2a6   : > { %v4095_v36 = vpack.c.bf16 %v4313_v40, %v4312_v41 }
 0x2a7   : > { %v4316_v42 = vpop.permute.xlu0 %4315 }
 0x2a8   : > { %v4318_v43 = vunpack.i.h.bf16 %v4316_v42  ;;  %v4317_v46 = vunpack.i.l.bf16 %v4316_v42  ;;  %4097 = vmatprep.subr.msk.bf16.mxu1 %vm5009_vm3, %v4095_v36 }
 0x2aa   : > { %v4101_v24 = vpack.c.bf16 %v4318_v43, %v4317_v46 }
 0x2ab   : > { %v4321_v23 = vpop.permute.xlu1 %4320 }
 0x2ac   : > { %v4323_v49 = vunpack.i.h.bf16 %v4321_v23  ;;  %v4322_v50 = vunpack.i.l.bf16 %v4321_v23  ;;  %3806 = vmatmul.mubr.msk.f32.vlgmr.msra.gmra.mrb[16].mxu0 %vm785_vm2, %v5028_v11  ;;  %4103 = vmatprep.subr.msk.bf16.mxu0 %vm5009_vm3, %v4101_v24 }
 0x2ad   : > { %3808 = vmatprep.mubr.msk.f32.mxu0 %vm785_vm2, %v5030_v48  ;;  %4100 = vmatpush3.bf16.xpose.msk.msra.mxu1 %vm5009_vm3, %v4095_v36 }
 0x2ae   : > { %v4107_v51 = vpack.c.bf16 %v4323_v49, %v4322_v50  ;;  %4106 = vmatpush3.bf16.xpose.msk.msra.mxu0 %vm5009_vm3, %v4101_v24 }
 0x2af   : > { %v4326_v17 = vpop.permute.xlu0 %4325 }
 0x2b0   : > { %v4328_v35 = vunpack.i.h.bf16 %v4326_v17  ;;  %v4327_v29 = vunpack.i.l.bf16 %v4326_v17  ;;  %3809 = vmatmul.mubr.msk.f32.gmra.mrb[18].mxu0 %vm785_vm2, %v5043_v52  ;;  %4109 = vmatprep.subr.msk.bf16.mxu0 %vm5009_vm3, %v4107_v51 }
 0x2b1   : > { %3833 = vmatprep.mubr.msk.f32.mxu0 %vm785_vm2, %v5045_v28 }
 0x2b2   : > { %v4113_v44 = vpack.c.bf16 %v4328_v35, %v4327_v29 }
 0x2b3   : > { %v4331_v56 = vpop.permute.xlu1 %4330  ;;  %v4336_v37 = vpop.permute.xlu0 %4335 }
 0x2b4   : > { %v4333_v47 = vunpack.i.h.bf16 %v4331_v56  ;;  %v4332_v57 = vunpack.i.l.bf16 %v4331_v56  ;;  %v4338_v58 = vunpack.i.h.bf16 %v4336_v37  ;;  %v4337_v19 = vunpack.i.l.bf16 %v4336_v37  ;;  %3820 = vmatmul.mubr.msk.f32.vlgmr.msra.gmra.mrb[0].mxu1 %vm785_vm2, %v5054_v53  ;;  %4115 = vmatprep.subr.msk.bf16.mxu1 %vm5009_vm3, %v4113_v44 }
 0x2b5   : > { %3822 = vmatprep.mubr.msk.f32.mxu1 %vm785_vm2, %v5057_v21  ;;  %4118 = vmatpush3.bf16.xpose.msk.msra.mxu1 %vm5009_vm3, %v4113_v44 }
 0x2b6   : > { %v4119_v31 = vpack.c.bf16 %v4333_v47, %v4332_v57  ;;  %4112 = vmatpush3.bf16.xpose.msk.msra.mxu0 %vm5009_vm3, %v4107_v51  ;;  %v4125_v62 = vpack.c.bf16 %v4338_v58, %v4337_v19 }
 0x2b7   : > { %v4341_v3 = vpop.permute.xlu1 %4340  ;;  %v4346_v16 = vpop.permute.xlu0 %4345 }
 0x2b8   : > { %3823 = vmatmul.mubr.msk.f32.gmra.mrb[2].mxu1 %vm785_vm2, %v5070_v61  ;;  %4121 = vmatprep.subr.msk.bf16.mxu1 %vm5009_vm3, %v4119_v31  ;;  %v4343_v22 = vunpack.i.h.bf16 %v4341_v3  ;;  %v4342_v0 = vunpack.i.l.bf16 %v4341_v3  ;;  %v4348_v13 = vunpack.i.h.bf16 %v4346_v16  ;;  %v4347_v30 = vunpack.i.l.bf16 %v4346_v16 }
 0x2b9   : > { %4126 = vmatprep.subr.bf16.mxu0 %v4125_v62  ;;  %3847 = vmatprep.mubr.msk.f32.mxu1 %vm785_vm2, %v5073_v6 }
 0x2ba   : > { %v4129_v32 = vpack.c.bf16 %v4343_v22, %v4342_v0  ;;  %v5098_v54 = vpack.c.bf16 %v4348_v13, %v4347_v30 }
 0x2bd   : > { %3834 = vmatmul.mubr.msk.f32.vlgmr.msra.gmra.mrb[20].mxu0 %vm785_vm2, %v5082_v45  ;;  %4124 = vmatpush3.bf16.xpose.msk.msra.mxu1 %vm5009_vm3, %v4119_v31 }
 0x2be   : > { %3836 = vmatprep.mubr.msk.f32.mxu0 %vm785_vm2, %v5085_v27  ;;  %4128 = vmatpush3.bf16.msra.mxu0 %v4125_v62 }
 0x2bf   : > { %4130 = vmatprep.subr.bf16.mxu0 %v4129_v32 }
 0x2c1   : > { %3837 = vmatmul.mubr.msk.f32.gmra.mrb[22].mxu0 %vm785_vm2, %v5094_v5 }
 0x2c2   : > { %4132 = vmatpush3.bf16.msra.mxu0 %v4129_v32 }
 0x2c3   : > { %4134 = vmatprep.subr.bf16.mxu0 %v5098_v54 }
 0x2c4   : > { %3848 = vmatmul.mubr.msk.f32.vlgmr.msra.gmra.mrb[4].mxu1 %vm785_vm2, %v5101_v33 }
 0x2c5   : > { %3850 = vmatprep.mubr.msk.f32.mxu1 %vm785_vm2, %v5105_v34 }
 0x2c8   : > { %3851 = vmatmul.mubr.msk.f32.gmra.mrb[6].mxu1 %vm785_vm2, %v5112_v8 }
 0x37f   : > { %v3807_v12 = vpop.f32.mrb[16].mxu0 }
 0x380   : > { %v872_v20 = vpop.f32.mrb[17].mxu0  ;;  %v1246_v1 = vsel %vm1242_vm4, %v3807_v12, -inf }
 0x381   : > { %1247 = vmax.xlane.f32.xlu1 %v1246_v1  ;;  %v1243_v18 = vsel %vm1242_vm4, %v872_v20, -inf }
 0x382   : > { %1244 = vmax.xlane.f32.xlu0 %v1243_v18 }
 0x383   : > { %v3810_v38 = vpop.f32.mrb[18].mxu0 }
 0x384   : > { %v882_v39 = vpop.f32.mrb[19].mxu0  ;;  %v1252_v10 = vsel %vm1242_vm4, %v3810_v38, -inf }
 0x385   : > { %v1249_v36 = vsel %vm1242_vm4, %v882_v39, -inf }
 0x386   : > { %1253 = vmax.xlane.f32.xlu0 %v1252_v10 }
 0x387   : > { %v3821_v40 = vpop.f32.mrb[0].mxu1 }
 0x388   : > { %v5119_v15 = vpop.f32.mrb[1].mxu1  ;;  %v1258_v41 = vsel %vm1242_vm4, %v3821_v40, -inf }
 0x389   : > { %1259 = vmax.xlane.f32.xlu1 %v1258_v41  ;;  %v1255_v24 = vsel %vm1242_vm4, %v5119_v15, -inf }
 0x38a   : > { %1250 = vmax.xlane.f32.xlu0 %v1249_v36 }
 0x38b   : > { %v3824_v42 = vpop.f32.mrb[2].mxu1 }
 0x38c   : > { %v5123_v43 = vpop.f32.mrb[3].mxu1  ;;  %v1264_v46 = vsel %vm1242_vm4, %v3824_v42, -inf }
 0x38d   : > { %1265 = vmax.xlane.f32.xlu1 %v1264_v46  ;;  %v1261_v51 = vsel %vm1242_vm4, %v5123_v43, -inf }
 0x38e   : > { %1256 = vmax.xlane.f32.xlu0 %v1255_v24 }
 0x390   : > { %v5128_v23 = vpop.f32.mrb[20].mxu0 }
 0x391   : > { %v5130_v49 = vpop.f32.mrb[21].mxu0  ;;  %v1270_v50 = vsel %vm1242_vm4, %v5128_v23, -inf }
 0x392   : > { %1271 = vmax.xlane.f32.xlu1 %v1270_v50  ;;  %1262 = vmax.xlane.f32.xlu0 %v1261_v51  ;;  %v1267_v44 = vsel %vm1242_vm4, %v5130_v49, -inf }
 0x394   : > { %v5136_v17 = vpop.f32.mrb[22].mxu0 }
 0x395   : > { %v5138_v35 = vpop.f32.mrb[23].mxu0  ;;  %v1276_v29 = vsel %vm1242_vm4, %v5136_v17, -inf }
 0x396   : > { %1277 = vmax.xlane.f32.xlu1 %v1276_v29  ;;  %1268 = vmax.xlane.f32.xlu0 %v1267_v44  ;;  %v1273_v57 = vsel %vm1242_vm4, %v5138_v35, -inf }
 0x397   : > { %v5144_v56 = vpop.f32.mrb[4].mxu1 }
 0x398   : > { %v5146_v37 = vpop.f32.mrb[5].mxu1  ;;  %v1282_v47 = vsel %vm1242_vm4, %v5144_v56, -inf }
 0x399   : > { %v1279_v62 = vsel %vm1242_vm4, %v5146_v37, -inf }
 0x39a   : > { %1283 = vmax.xlane.f32.xlu1 %v1282_v47  ;;  %1274 = vmax.xlane.f32.xlu0 %v1273_v57 }
 0x39b   : > { %v5152_v58 = vpop.f32.mrb[6].mxu1 }
 0x39c   : > { %v5154_v19 = vpop.f32.mrb[7].mxu1  ;;  %v1288_v31 = vsel %vm1242_vm4, %v5152_v58, -inf }
 0x39d   : > { %v1285_v3 = vsel %vm1242_vm4, %v5154_v19, -inf }
 0x39e   : > { %1289 = vmax.xlane.f32.xlu1 %v1288_v31  ;;  %1280 = vmax.xlane.f32.xlu0 %v1279_v62 }
 0x3af   : > { %4350 = vrot.lane.b32.xlu1 %v4960_v4, %s4639_s11 }
 0x3b4   : > { %4355 = vrot.lane.b32.xlu0 %v4967_v7, %s4639_s11 }
 0x3d3   : > { %1286 = vmax.xlane.f32.xlu0 %v1285_v3 }
 0x3e9   : > { %4360 = vrot.lane.b32.xlu0 %v4977_v9, %s4639_s11 }
 0x40e   : > { %v1248_v22 = vpop.xlane.xlu1 %1247 }
 0x40f   : > { %v1292_v0 = vsub.f32 %v3807_v12, %v1248_v22  ;;  %v1245_v16 = vpop.xlane.xlu0 %1244 }
 0x410   : > { %v1291_v13 = vsub.f32 %v872_v20, %v1245_v16 }
 0x411   : > { %v1309_v30 = vmul.f32 1.442695, %v1292_v0 }
 0x412   : > { %v1307_v32 = vmul.f32 1.442695, %v1291_v13 }
 0x413   : > { %4486 = vpow2.f32 %v1309_v30  ;;  %v1254_v1 = vpop.xlane.xlu0 %1253 }
 0x414   : > { %4488 = vpow2.f32 %v1307_v32  ;;  %v1294_v18 = vsub.f32 %v3810_v38, %v1254_v1 }
 0x416   : > { %v1313_v10 = vmul.f32 1.442695, %v1294_v18  ;;  %v1260_v41 = vpop.xlane.xlu1 %1259 }
 0x417   : > { %v1296_v36 = vsub.f32 %v3821_v40, %v1260_v41  ;;  %v1251_v46 = vpop.xlane.xlu0 %1250 }
 0x418   : > { %4490 = vpow2.f32 %v1313_v10  ;;  %v1293_v24 = vsub.f32 %v882_v39, %v1251_v46 }
 0x419   : > { %v1317_v50 = vmul.f32 1.442695, %v1296_v36 }
 0x41a   : > { %v1311_v51 = vmul.f32 1.442695, %v1293_v24  ;;  %v1266_v29 = vpop.xlane.xlu1 %1265 }
 0x41b   : > { %4492 = vpow2.f32 %v1317_v50  ;;  %v1298_v44 = vsub.f32 %v3824_v42, %v1266_v29  ;;  %v1257_v12 = vpop.xlane.xlu0 %1256 }
 0x41c   : > { %4494 = vpow2.f32 %v1311_v51  ;;  %v1295_v20 = vsub.f32 %v5119_v15, %v1257_v12 }
 0x41d   : > { %v5169_v47 = vpop.eup %4486  ;;  %v1321_v57 = vmul.f32 1.442695, %v1298_v44 }
 0x41e   : > { %v5171_v31 = vpop.eup %4488  ;;  %v1315_v38 = vmul.f32 1.442695, %v1295_v20  ;;  %v1342_v40 = vsel %vm1242_vm4, %v5169_v47, 0.0 }
 0x41f   : > { %4496 = vpow2.f32 %v1321_v57  ;;  %v1272_v39 = vpop.xlane.xlu1 %1271  ;;  %v1263_v62 = vpop.xlane.xlu0 %1262  ;;  %1343 = vadd.xlane.f32.xlu1 %v1342_v40  ;;  %v1339_v42 = vsel %vm1242_vm4, %v5171_v31, 0.0 }
 0x420   : > { %4498 = vpow2.f32 %v1315_v38  ;;  %v1300_v3 = vsub.f32 %v5128_v23, %v1272_v39  ;;  %v1297_v15 = vsub.f32 %v5123_v43, %v1263_v62  ;;  %1340 = vadd.xlane.f32.xlu0 %v1339_v42 }
 0x422   : > { %v5179_v22 = vpop.eup %4490  ;;  %v1325_v0 = vmul.f32 1.442695, %v1300_v3  ;;  %v1319_v16 = vmul.f32 1.442695, %v1297_v15 }
 0x423   : > { %v1278_v13 = vpop.xlane.xlu1 %1277  ;;  %v1269_v30 = vpop.xlane.xlu0 %1268  ;;  %v1348_v32 = vsel %vm1242_vm4, %v5179_v22, 0.0 }
 0x424   : > { %4500 = vpow2.f32 %v1325_v0  ;;  %v1302_v1 = vsub.f32 %v5136_v17, %v1278_v13  ;;  %v1299_v18 = vsub.f32 %v5130_v49, %v1269_v30  ;;  %1349 = vadd.xlane.f32.xlu1 %v1348_v32 }
 0x425   : > { %v5185_v10 = vpop.eup %4492  ;;  %4502 = vpow2.f32 %v1319_v16 }
 0x426   : > { %v5187_v43 = vpop.eup %4494  ;;  %v1329_v23 = vmul.f32 1.442695, %v1302_v1  ;;  %v1323_v41 = vmul.f32 1.442695, %v1299_v18  ;;  %v1354_v36 = vsel %vm1242_vm4, %v5185_v10, 0.0 }
 0x427   : > { %v1284_v46 = vpop.xlane.xlu1 %1283  ;;  %v1275_v24 = vpop.xlane.xlu0 %1274  ;;  %v1345_v50 = vsel %vm1242_vm4, %v5187_v43, 0.0 }
 0x428   : > { %4504 = vpow2.f32 %v1329_v23  ;;  %v1304_v17 = vsub.f32 %v5144_v56, %v1284_v46  ;;  %v1301_v49 = vsub.f32 %v5138_v35, %v1275_v24  ;;  %1355 = vadd.xlane.f32.xlu1 %v1354_v36  ;;  %1346 = vadd.xlane.f32.xlu0 %v1345_v50 }
 0x429   : > { %v5195_v51 = vpop.eup %4496  ;;  %4506 = vpow2.f32 %v1323_v41 }
 0x42a   : > { %v5197_v29 = vpop.eup %4498  ;;  %v1327_v44 = vmul.f32 1.442695, %v1301_v49  ;;  %v1360_v12 = vsel %vm1242_vm4, %v5195_v51, 0.0  ;;  %v1333_v20 = vmul.f32 1.442695, %v1304_v17 }
 0x42b   : > { %v1290_v57 = vpop.xlane.xlu1 %1289  ;;  %v1281_v38 = vpop.xlane.xlu0 %1280  ;;  %v1351_v40 = vsel %vm1242_vm4, %v5197_v29, 0.0 }
 0x42c   : > { %v1306_v56 = vsub.f32 %v5152_v58, %v1290_v57  ;;  %v1303_v35 = vsub.f32 %v5146_v37, %v1281_v38  ;;  %1361 = vadd.xlane.f32.xlu1 %v1360_v12  ;;  %1352 = vadd.xlane.f32.xlu0 %v1351_v40  ;;  %4508 = vpow2.f32 %v1327_v44  ;;  %v730_v38 = vld [vmem:[%s5679_s4] sm:$0xff]  ;;  %v731_v40 = vld [vmem:[%s5679_s4 + $0x8] sm:$0xff] }
 0x42d   : > { %4510 = vpow2.f32 %v1333_v20 }
 0x42e   : > { %v5205_v39 = vpop.eup %4500  ;;  %v1331_v62 = vmul.f32 1.442695, %v1303_v35  ;;  %v1337_v3 = vmul.f32 1.442695, %v1306_v56 }
 0x42f   : > { %v5207_v42 = vpop.eup %4502  ;;  %v4356_v15 = vpop.permute.xlu0 %4355  ;;  %v1366_v0 = vsel %vm1242_vm4, %v5205_v39, 0.0 }
 0x430   : > { %v4358_v16 = vunpack.i.h.bf16 %v4356_v15  ;;  %1367 = vadd.xlane.f32.xlu1 %v1366_v0  ;;  %4512 = vpow2.f32 %v1331_v62  ;;  %v4357_v58 = vunpack.i.l.bf16 %v4356_v15  ;;  %v1357_v37 = vsel %vm1242_vm4, %v5207_v42, 0.0 }
 0x431   : > { %1358 = vadd.xlane.f32.xlu0 %v1357_v37  ;;  %4514 = vpow2.f32 %v1337_v3 }
 0x432   : > { %v5213_v13 = vpop.eup %4504  ;;  %v4141_v32 = vpack.c.bf16 %v4358_v16, %v4357_v58 }
 0x433   : > { %v5215_v30 = vpop.eup %4506  ;;  %v1372_v1 = vsel %vm1242_vm4, %v5213_v13, 0.0 }
 0x434   : > { %1373 = vadd.xlane.f32.xlu1 %v1372_v1  ;;  %v1363_v18 = vsel %vm1242_vm4, %v5215_v30, 0.0  ;;  %4142 = vmatprep.subr.bf16.mxu1 %v4141_v32 }
 0x435   : > { %1364 = vadd.xlane.f32.xlu0 %v1363_v18  ;;  %4144 = vmatpush3.bf16.msra.mxu1 %v4141_v32 }
 0x436   : > { %v5221_v23 = vpop.eup %4508 }
 0x437   : > { %v1369_v41 = vsel %vm1242_vm4, %v5221_v23, 0.0  ;;  %v5225_v36 = vpop.eup %4510 }
 0x438   : > { %1370 = vadd.xlane.f32.xlu1 %v1369_v41  ;;  %v1378_v24 = vsel %vm1242_vm4, %v5225_v36, 0.0 }
 0x43a   : > { %v5227_v46 = vpop.eup %4512 }
 0x43b   : > { %v1375_v50 = vsel %vm1242_vm4, %v5227_v46, 0.0  ;;  %v5233_v17 = vpop.eup %4514 }
 0x43c   : > { %1379 = vadd.xlane.f32.xlu1 %v1378_v24  ;;  %1376 = vadd.xlane.f32.xlu0 %v1375_v50  ;;  %v1384_v49 = vsel %vm1242_vm4, %v5233_v17, 0.0 }
 0x440   : > { %1385 = vadd.xlane.f32.xlu1 %v1384_v49 }
 0x452   : > { %4365 = vrot.lane.b32.xlu0 %v4987_v14, %s4639_s11 }
 0x456   : > { %4375 = vrot.lane.b32.xlu0 %v4928_v59, %s4640_s12 }
 0x45a   : > { %4385 = vrot.lane.b32.xlu0 %v4946_v63, %s4640_s12 }
 0x45e   : > { %2066 = vrot.lane.b32.xlu0 %v5028_v11, %s4641_s13 }
 0x460   : > { %v1287_v44 = vpop.xlane.xlu0 %1286 }
 0x461   : > { %v1305_v12 = vsub.f32 %v5154_v19, %v1287_v44  ;;  %v5256_v19 = vpack.c.bf16 %v731_v40, %v730_v38 }
 0x462   : > { %4395 = vrot.lane.b32.xlu0 %v4967_v7, %s4640_s12 }
 0x463   : > { %v1335_v20 = vmul.f32 1.442695, %v1305_v12 }
 0x464   : > { %v4361_v57 = vpop.permute.xlu0 %4360 }
 0x465   : > { %4516 = vpow2.f32 %v1335_v20  ;;  %v4363_v56 = vunpack.i.h.bf16 %v4361_v57  ;;  %v4362_v35 = vunpack.i.l.bf16 %v4361_v57 }
 0x466   : > { %2070 = vrot.lane.b32.xlu0 %v5043_v52, %s4641_s13 }
 0x467   : > { %v4145_v11 = vpack.c.bf16 %v4363_v56, %v4362_v35 }
 0x469   : > { %4146 = vmatprep.subr.bf16.mxu1 %v4145_v11 }
 0x46a   : > { %4148 = vmatpush3.bf16.msra.mxu1 %v4145_v11  ;;  %4405 = vrot.lane.b32.xlu0 %v4987_v14, %s4640_s12 }
 0x46b   : > { %4158 = vmatprep.subr.bf16.mxu1 %v5256_v19 }
 0x46e   : > { %2183 = vrot.lane.b32.xlu0 %v5054_v53, %s4641_s13 }
 0x46f   : > { %v5261_v62 = vpop.eup %4516 }
 0x470   : > { %v1381_v3 = vsel %vm1242_vm4, %v5261_v62, 0.0 }
 0x471   : > { %1382 = vadd.xlane.f32.xlu1 %v1381_v3 }
 0x472   : > { %2187 = vrot.lane.b32.xlu0 %v5070_v61, %s4641_s13 }
 0x476   : > { %2298 = vrot.lane.b32.xlu0 %v5045_v28, %s4641_s13 }
 0x47a   : > { %2302 = vrot.lane.b32.xlu0 %v5085_v27, %s4641_s13 }
 0x47e   : > { %2415 = vrot.lane.b32.xlu0 %v5073_v6, %s4641_s13 }
 0x482   : > { %4370 = vrot.lane.b32.xlu1 %v4997_v55, %s4639_s11  ;;  %2419 = vrot.lane.b32.xlu0 %v5105_v34, %s4641_s13 }
 0x486   : > { %4380 = vrot.lane.b32.xlu1 %v4939_v60, %s4640_s12 }
 0x48a   : > { %2064 = vrot.lane.b32.xlu1 %v4930_v25, %s4641_s13  ;;  %v4351_v25 = vpop.permute.xlu1 %4350 }
 0x48b   : > { %v4353_v6 = vunpack.i.h.bf16 %v4351_v25 }
 0x48e   : > { %4390 = vrot.lane.b32.xlu1 %v4960_v4, %s4640_s12 }
 0x492   : > { %2068 = vrot.lane.b32.xlu1 %v5030_v48, %s4641_s13 }
 0x496   : > { %4400 = vrot.lane.b32.xlu1 %v4977_v9, %s4640_s12 }
 0x49a   : > { %2181 = vrot.lane.b32.xlu1 %v4948_v2, %s4641_s13 }
 0x49e   : > { %2185 = vrot.lane.b32.xlu1 %v5057_v21, %s4641_s13 }
 0x4a2   : > { %4410 = vrot.lane.b32.xlu1 %v4997_v55, %s4640_s12 }
 0x4a6   : > { %2300 = vrot.lane.b32.xlu1 %v5082_v45, %s4641_s13  ;;  %v4352_v45 = vunpack.i.l.bf16 %v4351_v25 }
 0x4aa   : > { %2304 = vrot.lane.b32.xlu1 %v5094_v5, %s4641_s13 }
 0x4ac   : > { %v1344_v48 = vpop.xlane.xlu1 %1343 }
 0x4ad   : > { %4518 = vrcp.f32 %v1344_v48  ;;  %v1341_v52 = vpop.xlane.xlu0 %1340 }
 0x4ae   : > { %4520 = vrcp.f32 %v1341_v52  ;;  %2417 = vrot.lane.b32.xlu1 %v5101_v33, %s4641_s13  ;;  %v4137_v33 = vpack.c.bf16 %v4353_v6, %v4352_v45 }
 0x4b1   : > { %v1350_v2 = vpop.xlane.xlu1 %1349 }
 0x4b2   : > { %2421 = vrot.lane.b32.xlu1 %v5112_v8, %s4641_s13  ;;  %4522 = vrcp.f32 %v1350_v2 }
 0x4b5   : > { %v1356_v28 = vpop.xlane.xlu1 %1355  ;;  %v1347_v53 = vpop.xlane.xlu0 %1346 }
 0x4b6   : > { %4524 = vrcp.f32 %v1347_v53 }
 0x4b7   : > { %v4519_v21 = vpop.eup %4518  ;;  %4526 = vrcp.f32 %v1356_v28 }
 0x4b8   : > { %v4521_v61 = vpop.eup %4520  ;;  %v1404_v15 = vmul.f32 %v4519_v21, %v5169_v47 }
 0x4b9   : > { %v1362_v27 = vpop.xlane.xlu1 %1361  ;;  %v1353_v5 = vpop.xlane.xlu0 %1352  ;;  %v1403_v34 = vmul.f32 %v4521_v61, %v5171_v31 }
 0x4ba   : > { %4528 = vrcp.f32 %v1353_v5 }
 0x4bb   : > { %3861 = vmatprep.mubr.msk.f32.mxu0 %vm1242_vm4, %v1403_v34  ;;  %4530 = vrcp.f32 %v1362_v27 }
 0x4bc   : > { %3862 = vmatmul.mubr.msk.f32.vlgmr.msra.gmra.mrb[24].mxu0 %vm1242_vm4, %v1404_v15  ;;  %v4523_v16 = vpop.eup %4522 }
 0x4bd   : > { %4136 = vmatpush3.bf16.msra.mxu0 %v5098_v54  ;;  %v1368_v8 = vpop.xlane.xlu1 %1367  ;;  %v1406_v32 = vmul.f32 %v4523_v16, %v5179_v22 }
 0x4be   : > { %4138 = vmatprep.subr.bf16.mxu0 %v4137_v33  ;;  %v1359_v0 = vpop.xlane.xlu0 %1358 }
 0x4bf   : > { %4532 = vrcp.f32 %v1359_v0 }
 0x4c0   : > { %v4525_v58 = vpop.eup %4524  ;;  %4534 = vrcp.f32 %v1368_v8 }
 0x4c1   : > { %4140 = vmatpush3.bf16.msra.mxu0 %v4137_v33  ;;  %v1374_v31 = vpop.xlane.xlu1 %1373  ;;  %v1405_v47 = vmul.f32 %v4525_v58, %v5187_v43  ;;  %v4527_v1 = vpop.eup %4526 }
 0x4c2   : > { %v1365_v37 = vpop.xlane.xlu0 %1364  ;;  %v1408_v24 = vmul.f32 %v4527_v1, %v5185_v10 }
 0x4c3   : > { %4536 = vrcp.f32 %v1365_v37  ;;  %3864 = vmatprep.mubr.msk.f32.mxu0 %vm1242_vm4, %v1405_v47 }
 0x4c4   : > { %v4529_v54 = vpop.eup %4528  ;;  %3865 = vmatmul.mubr.msk.f32.gmra.mrb[26].mxu0 %vm1242_vm4, %v1406_v32  ;;  %4538 = vrcp.f32 %v1374_v31 }
 0x4c5   : > { %v1371_v18 = vpop.xlane.xlu1 %1370  ;;  %v1407_v41 = vmul.f32 %v4529_v54, %v5197_v29  ;;  %v4531_v43 = vpop.eup %4530 }
 0x4c6   : > { %4540 = vrcp.f32 %v1371_v18  ;;  %v1410_v44 = vmul.f32 %v4531_v43, %v5195_v51 }
 0x4c7   : > { %3875 = vmatprep.mubr.msk.f32.mxu0 %vm1242_vm4, %v1407_v41 }
 0x4c8   : > { %3876 = vmatmul.mubr.msk.f32.vlgmr.msra.gmra.mrb[28].mxu0 %vm1242_vm4, %v1408_v24 }
 0x4c9   : > { %v4533_v22 = vpop.eup %4532  ;;  %v1377_v50 = vpop.xlane.xlu0 %1376 }
 0x4ca   : > { %v1409_v49 = vmul.f32 %v4533_v22, %v5207_v42  ;;  %4542 = vrcp.f32 %v1377_v50  ;;  %v4535_v12 = vpop.eup %4534 }
 0x4cb   : > { %v1412_v56 = vmul.f32 %v4535_v12, %v5205_v39 }
 0x4cc   : > { %3878 = vmatprep.mubr.msk.f32.mxu0 %vm1242_vm4, %v1409_v49 }
 0x4cd   : > { %v4537_v20 = vpop.eup %4536  ;;  %3879 = vmatmul.mubr.msk.f32.gmra.mrb[30].mxu0 %vm1242_vm4, %v1410_v44  ;;  %v4366_v10 = vpop.permute.xlu0 %4365 }
 0x4ce   : > { %v4368_v29 = vunpack.i.h.bf16 %v4366_v10  ;;  %v4367_v57 = vunpack.i.l.bf16 %v4366_v10  ;;  %v1411_v38 = vmul.f32 %v4537_v20, %v5215_v30  ;;  %v4539_v40 = vpop.eup %4538 }
 0x4cf   : > { %v1414_v30 = vmul.f32 %v4539_v40, %v5213_v13 }
 0x4d0   : > { %v4541_v35 = vpop.eup %4540  ;;  %v4149_v11 = vpack.c.bf16 %v4368_v29, %v4367_v57  ;;  %3889 = vmatprep.mubr.msk.f32.mxu1 %vm1242_vm4, %v1411_v38 }
 0x4d1   : > { %3890 = vmatmul.mubr.msk.f32.vlgmr.msra.gmra.mrb[8].mxu1 %vm1242_vm4, %v1412_v56  ;;  %v4376_v51 = vpop.permute.xlu0 %4375  ;;  %v1413_v42 = vmul.f32 %v4541_v35, %v5221_v23 }
 0x4d2   : > { %4150 = vmatprep.subr.bf16.mxu0 %v4149_v11  ;;  %4160 = vmatpush3.bf16.msra.mxu1 %v5256_v19  ;;  %v1380_v19 = vpop.xlane.xlu1 %1379  ;;  %v4377_v61 = vunpack.i.l.bf16 %v4376_v51 }
 0x4d3   : > { %3892 = vmatprep.mubr.msk.f32.mxu1 %vm1242_vm4, %v1413_v42  ;;  %4152 = vmatpush3.bf16.msra.mxu0 %v4149_v11  ;;  %4544 = vrcp.f32 %v1380_v19 }
 0x4d4   : > { %v4543_v3 = vpop.eup %4542 }
 0x4d5   : > { %3893 = vmatmul.mubr.msk.f32.gmra.mrb[10].mxu1 %vm1242_vm4, %v1414_v30  ;;  %v4386_v39 = vpop.permute.xlu0 %4385  ;;  %v1415_v25 = vmul.f32 %v4543_v3, %v5227_v46  ;;  %v4378_v46 = vunpack.i.h.bf16 %v4376_v51 }
 0x4d6   : > { %v1386_v13 = vpop.xlane.xlu1 %1385  ;;  %v4387_v18 = vunpack.i.l.bf16 %v4386_v39 }
 0x4d7   : > { %3903 = vmatprep.mubr.msk.f32.mxu0 %vm1242_vm4, %v1415_v25  ;;  %v4161_v15 = vpack.c.bf16 %v4378_v46, %v4377_v61 }
 0x4d9   : > { %v2067_v48 = vpop.permute.xlu0 %2066 }
 0x4dd   : > { %v4396_v52 = vpop.permute.xlu0 %4395  ;;  %v4545_v5 = vpop.eup %4544 }
 0x4de   : > { %v4398_v2 = vunpack.i.h.bf16 %v4396_v52  ;;  %v4397_v23 = vunpack.i.l.bf16 %v4396_v52  ;;  %v1416_v8 = vmul.f32 %v4545_v5, %v5225_v36 }
 0x4e0   : > { %v5331_v28 = vpack.c.bf16 %v4398_v2, %v4397_v23 }
 0x4e1   : > { %v2071_v1 = vpop.permute.xlu0 %2070 }
 0x4e2   : > { %4187 = vmatprep.subr.msk.bf16.mxu1 %vm5009_vm3, %v5331_v28 }
 0x4e5   : > { %v4406_v41 = vpop.permute.xlu0 %4405 }
 0x4e6   : > { %v4408_v10 = vunpack.i.h.bf16 %v4406_v41  ;;  %v4407_v29 = vunpack.i.l.bf16 %v4406_v41 }
 0x4e8   : > { %v4197_v57 = vpack.c.bf16 %v4408_v10, %v4407_v29 }
 0x4fe   : > { %v1383_v53 = vpop.xlane.xlu1 %1382 }
 0x4ff   : > { %4546 = vrcp.f32 %v1383_v53 }
 0x500   : > { %4548 = vrcp.f32 %v1386_v13 }
 0x502   : > { %v4371_v21 = vpop.permute.xlu1 %4370 }
 0x503   : > { %v4373_v6 = vunpack.i.h.bf16 %v4371_v21  ;;  %v4372_v45 = vunpack.i.l.bf16 %v4371_v21 }
 0x505   : > { %v4153_v27 = vpack.c.bf16 %v4373_v6, %v4372_v45 }
 0x506   : > { %v4381_v34 = vpop.permute.xlu1 %4380 }
 0x507   : > { %4154 = vmatprep.subr.bf16.mxu0 %v4153_v27  ;;  %v4383_v31 = vunpack.i.h.bf16 %v4381_v34  ;;  %v4382_v47 = vunpack.i.l.bf16 %v4381_v34 }
 0x508   : > { %4156 = vmatpush3.bf16.msra.mxu0 %v4153_v27 }
 0x509   : > { %v4547_v33 = vpop.eup %4546  ;;  %4163 = vmatprep.subr.msk.bf16.mxu0 %vm5009_vm3, %v4161_v15  ;;  %v4167_v36 = vpack.c.bf16 %v4383_v31, %v4382_v47 }
 0x50a   : > { %v4549_v0 = vpop.eup %4548  ;;  %v2065_v16 = vpop.permute.xlu1 %2064  ;;  %v1417_v58 = vmul.f32 %v4547_v33, %v5261_v62  ;;  %v4388_v62 = vunpack.i.h.bf16 %v4386_v39 }
 0x50b   : > { %3904 = vmatmul.mubr.msk.f32.vlgmr.msra.gmra.mrb[32].mxu0 %vm1242_vm4, %v1416_v8  ;;  %v1418_v37 = vmul.f32 %v4549_v0, %v5233_v17  ;;  %v2184_v17 = vpop.permute.xlu0 %2183 }
 0x50c   : > { %3906 = vmatprep.mubr.msk.f32.mxu0 %vm1242_vm4, %v1417_v58  ;;  %v4173_v43 = vpack.c.bf16 %v4388_v62, %v4387_v18 }
 0x50e   : > { %v4391_v32 = vpop.permute.xlu1 %4390 }
 0x50f   : > { %3907 = vmatmul.mubr.msk.f32.gmra.mrb[34].mxu0 %vm1242_vm4, %v1418_v37  ;;  %v4393_v22 = vunpack.i.h.bf16 %v4391_v32  ;;  %v4392_v50 = vunpack.i.l.bf16 %v4391_v32  ;;  %v2188_v12 = vpop.permute.xlu0 %2187 }
 0x510   : > { %3945 = vmatprep.mubr.msk.f32.mxu0 %vm785_vm2, %v2065_v16 }
 0x511   : > { %4166 = vmatpush3.bf16.xpose.msk.msra.mxu0 %vm5009_vm3, %v4161_v15  ;;  %v4179_v44 = vpack.c.bf16 %v4393_v22, %v4392_v50 }
 0x512   : > { %v2069_v54 = vpop.permute.xlu1 %2068  ;;  %4169 = vmatprep.subr.msk.bf16.mxu0 %vm5009_vm3, %v4167_v36 }
 0x513   : > { %v2299_v38 = vpop.permute.xlu0 %2298 }
 0x516   : > { %v4401_v24 = vpop.permute.xlu1 %4400 }
 0x517   : > { %v2303_v11 = vpop.permute.xlu0 %2302  ;;  %v4403_v52 = vunpack.i.h.bf16 %v4401_v24  ;;  %v4402_v2 = vunpack.i.l.bf16 %v4401_v24 }
 0x519   : > { %4172 = vmatpush3.bf16.xpose.msk.msra.mxu0 %vm5009_vm3, %v4167_v36  ;;  %v4191_v13 = vpack.c.bf16 %v4403_v52, %v4402_v2 }
 0x51a   : > { %4175 = vmatprep.subr.msk.bf16.mxu0 %vm5009_vm3, %v4173_v43  ;;  %v2182_v49 = vpop.permute.xlu1 %2181 }
 0x51b   : > { %v2416_v30 = vpop.permute.xlu0 %2415 }
 0x51e   : > { %v2186_v20 = vpop.permute.xlu1 %2185 }
 0x51f   : > { %v2420_v25 = vpop.permute.xlu0 %2419 }
 0x520   : > { %3946 = vmatmul.mubr.msk.f32.vlgmr.msra.gmra.mrb[36].mxu0 %vm785_vm2, %v2067_v48 }
 0x521   : > { %3948 = vmatprep.mubr.msk.f32.mxu0 %vm785_vm2, %v2069_v54  ;;  %4178 = vmatpush3.bf16.xpose.msk.msra.mxu0 %vm5009_vm3, %v4173_v43 }
 0x522   : > { %4181 = vmatprep.subr.msk.bf16.mxu0 %vm5009_vm3, %v4179_v44  ;;  %v4411_v40 = vpop.permute.xlu1 %4410 }
 0x523   : > { %v4413_v56 = vunpack.i.h.bf16 %v4411_v40  ;;  %v4412_v35 = vunpack.i.l.bf16 %v4411_v40 }
 0x524   : > { %3949 = vmatmul.mubr.msk.f32.gmra.mrb[38].mxu0 %vm785_vm2, %v2071_v1 }
 0x525   : > { %3959 = vmatprep.mubr.msk.f32.mxu0 %vm785_vm2, %v2182_v49  ;;  %v4203_v51 = vpack.c.bf16 %v4413_v56, %v4412_v35 }
 0x526   : > { %v2301_v42 = vpop.permute.xlu1 %2300 }
 0x529   : > { %4184 = vmatpush3.bf16.xpose.msk.msra.mxu0 %vm5009_vm3, %v4179_v44 }
 0x52a   : > { %4199 = vmatprep.subr.msk.bf16.mxu0 %vm5009_vm3, %v4197_v57  ;;  %v2305_v3 = vpop.permute.xlu1 %2304 }
 0x52e   : > { %v2418_v39 = vpop.permute.xlu1 %2417 }
 0x530   : > { %3960 = vmatmul.mubr.msk.f32.vlgmr.msra.gmra.mrb[40].mxu0 %vm785_vm2, %v2184_v17 }
 0x531   : > { %3962 = vmatprep.mubr.msk.f32.mxu0 %vm785_vm2, %v2186_v20  ;;  %4202 = vmatpush3.bf16.xpose.msk.msra.mxu0 %vm5009_vm3, %v4197_v57 }
 0x532   : > { %4205 = vmatprep.subr.msk.bf16.mxu0 %vm5009_vm3, %v4203_v51  ;;  %v2422_v48 = vpop.permute.xlu1 %2421 }
 0x534   : > { %3963 = vmatmul.mubr.msk.f32.gmra.mrb[42].mxu0 %vm785_vm2, %v2188_v12 }
 0x535   : > { %3987 = vmatprep.mubr.msk.f32.mxu0 %vm785_vm2, %v2416_v30 }
 0x539   : > { %4208 = vmatpush3.bf16.xpose.msk.msra.mxu0 %vm5009_vm3, %v4203_v51 }
 0x540   : > { %3988 = vmatmul.mubr.msk.f32.vlgmr.msra.gmra.mrb[44].mxu0 %vm785_vm2, %v2418_v39 }
 0x541   : > { %3990 = vmatprep.mubr.msk.f32.mxu0 %vm785_vm2, %v2420_v25 }
 0x544   : > { %3991 = vmatmul.mubr.msk.f32.gmra.mrb[46].mxu0 %vm785_vm2, %v2422_v48 }
 0x58f   : > { %v3863_v23 = vpop.f32.mrb[24].mxu0 }
 0x590   : > { %v1509_v19 = vpop.f32.mrb[25].mxu0 }
 0x591   : > { %3913 = vmatprep.mubr.msk.f32.mxu1 %vm785_vm2, %v1509_v19 }
 0x592   : > { %3914 = vmatmul.mubr.msk.f32.vlgmr.msra.gmra.mrb[12].mxu1 %vm785_vm2, %v3863_v23 }
 0x593   : > { %4190 = vmatpush3.bf16.xpose.msk.msra.mxu1 %vm5009_vm3, %v5331_v28 }
 0x594   : > { %4193 = vmatprep.subr.msk.bf16.mxu1 %vm5009_vm3, %v4191_v13 }
 0x597   : > { %v3866_v53 = vpop.f32.mrb[26].mxu0 }
 0x598   : > { %v1519_v21 = vpop.f32.mrb[27].mxu0 }
 0x599   : > { %3916 = vmatprep.mubr.msk.f32.mxu1 %vm785_vm2, %v1519_v21 }
 0x59a   : > { %3917 = vmatmul.mubr.msk.f32.gmra.mrb[14].mxu1 %vm785_vm2, %v3866_v53 }
 0x59b   : > { %4196 = vmatpush3.bf16.xpose.msk.msra.mxu1 %vm5009_vm3, %v4191_v13  ;;  %v3877_v46 = vpop.f32.mrb[28].mxu0 }
 0x59c   : > { %v1618_v61 = vpop.f32.mrb[29].mxu0 }
 0x59d   : > { %3919 = vmatprep.mubr.msk.f32.mxu1 %vm785_vm2, %v1618_v61 }
 0x59e   : > { %3920 = vmatmul.mubr.msk.f32.gmra.mrb[16].mxu1 %vm785_vm2, %v3877_v46 }
 0x5a0   : > { %v3880_v6 = vpop.f32.mrb[30].mxu0 }
 0x5a1   : > { %v1628_v28 = vpop.f32.mrb[31].mxu0 }
 0x5a2   : > { %3922 = vmatprep.mubr.msk.f32.mxu1 %vm785_vm2, %v1628_v28 }
 0x5a3   : > { %3923 = vmatmul.mubr.msk.f32.gmra.mrb[18].mxu1 %vm785_vm2, %v3880_v6 }
 0x5a4   : > { %v3891_v45 = vpop.f32.mrb[8].mxu1 }
 0x5a5   : > { %v1727_v27 = vpop.f32.mrb[9].mxu1 }
 0x5a6   : > { %3925 = vmatprep.mubr.msk.f32.mxu1 %vm785_vm2, %v1727_v27 }
 0x5a7   : > { %3926 = vmatmul.mubr.msk.f32.gmra.mrb[20].mxu1 %vm785_vm2, %v3891_v45 }
 0x5a8   : > { %v3894_v26 = vpop.f32.mrb[10].mxu1 }
 0x5a9   : > { %v1737_v5 = vpop.f32.mrb[11].mxu1 }
 0x5aa   : > { %3928 = vmatprep.mubr.msk.f32.mxu1 %vm785_vm2, %v1737_v5 }
 0x5ab   : > { %3929 = vmatmul.mubr.msk.f32.gmra.mrb[22].mxu1 %vm785_vm2, %v3894_v26 }
 0x5de   : > { %v3905_v34 = vpop.f32.mrb[32].mxu0 }
 0x5df   : > { %v1836_v15 = vpop.f32.mrb[33].mxu0 }
 0x5e0   : > { %3931 = vmatprep.mubr.msk.f32.mxu1 %vm785_vm2, %v1836_v15 }
 0x5e1   : > { %3932 = vmatmul.mubr.msk.f32.gmra.mrb[24].mxu1 %vm785_vm2, %v3905_v34 }
 0x5e2   : > { %v3908_v33 = vpop.f32.mrb[34].mxu0 }
 0x5e3   : > { %v1846_v8 = vpop.f32.mrb[35].mxu0 }
 0x5e4   : > { %3934 = vmatprep.mubr.msk.f32.mxu1 %vm785_vm2, %v1846_v8 }
 0x5e5   : > { %3935 = vmatmul.mubr.msk.f32.gmra.mrb[26].mxu1 %vm785_vm2, %v3908_v33 }
 0x5e6   : > { %3973 = vmatprep.mubr.msk.f32.mxu1 %vm785_vm2, %v2299_v38 }
 0x5e9   : > { %3974 = vmatmul.mubr.msk.f32.vlgmr.msra.gmra.mrb[28].mxu1 %vm785_vm2, %v2301_v42 }
 0x5ea   : > { %3976 = vmatprep.mubr.msk.f32.mxu1 %vm785_vm2, %v2303_v11 }
 0x5ed   : > { %3977 = vmatmul.mubr.msk.f32.gmra.mrb[30].mxu1 %vm785_vm2, %v2305_v3 }
 0x5f3   : > { %v3947_v0 = vpop.f32.mrb[36].mxu0 }
 0x5f4   : > { %v2162_v16 = vpop.f32.mrb[37].mxu0  ;;  %v2535_v58 = vsel %vm1242_vm4, %v3947_v0, -inf }
 0x5f5   : > { %2536 = vmax.xlane.f32.xlu1 %v2535_v58  ;;  %v2532_v31 = vsel %vm1242_vm4, %v2162_v16, -inf }
 0x5f6   : > { %2533 = vmax.xlane.f32.xlu0 %v2532_v31 }
 0x5f7   : > { %v3950_v47 = vpop.f32.mrb[38].mxu0 }
 0x5f8   : > { %v2172_v37 = vpop.f32.mrb[39].mxu0  ;;  %v2541_v32 = vsel %vm1242_vm4, %v3950_v47, -inf }
 0x5f9   : > { %v2538_v1 = vsel %vm1242_vm4, %v2172_v37, -inf }
 0x5fa   : > { %2542 = vmax.xlane.f32.xlu0 %v2541_v32 }
 0x5fe   : > { %2539 = vmax.xlane.f32.xlu0 %v2538_v1 }
 0x603   : > { %v3961_v36 = vpop.f32.mrb[40].mxu0 }
 0x604   : > { %v2279_v54 = vpop.f32.mrb[41].mxu0  ;;  %v2547_v62 = vsel %vm1242_vm4, %v3961_v36, -inf }
 0x605   : > { %2548 = vmax.xlane.f32.xlu1 %v2547_v62  ;;  %v2544_v18 = vsel %vm1242_vm4, %v2279_v54, -inf }
 0x606   : > { %2545 = vmax.xlane.f32.xlu0 %v2544_v18 }
 0x607   : > { %v3964_v41 = vpop.f32.mrb[42].mxu0 }
 0x608   : > { %v2289_v24 = vpop.f32.mrb[43].mxu0  ;;  %v2553_v43 = vsel %vm1242_vm4, %v3964_v41, -inf }
 0x609   : > { %2554 = vmax.xlane.f32.xlu1 %v2553_v43  ;;  %v2550_v17 = vsel %vm1242_vm4, %v2289_v24, -inf }
 0x60a   : > { %2551 = vmax.xlane.f32.xlu0 %v2550_v17 }
 0x613   : > { %v5413_v22 = vpop.f32.mrb[44].mxu0 }
 0x614   : > { %v5415_v50 = vpop.f32.mrb[45].mxu0  ;;  %v2571_v49 = vsel %vm1242_vm4, %v5413_v22, -inf }
 0x615   : > { %2572 = vmax.xlane.f32.xlu1 %v2571_v49  ;;  %v2568_v44 = vsel %vm1242_vm4, %v5415_v50, -inf }
 0x616   : > { %2569 = vmax.xlane.f32.xlu0 %v2568_v44 }
 0x617   : > { %v5421_v12 = vpop.f32.mrb[46].mxu0 }
 0x618   : > { %v5423_v20 = vpop.f32.mrb[47].mxu0  ;;  %v2577_v10 = vsel %vm1242_vm4, %v5421_v12, -inf }
 0x619   : > { %2578 = vmax.xlane.f32.xlu1 %v2577_v10  ;;  %v2574_v29 = vsel %vm1242_vm4, %v5423_v20, -inf }
 0x61a   : > { %2575 = vmax.xlane.f32.xlu0 %v2574_v29 }
 0x682   : > { %v2537_v57 = vpop.xlane.xlu1 %2536 }
 0x683   : > { %v2581_v38 = vsub.f32 %v3947_v0, %v2537_v57  ;;  %v2534_v40 = vpop.xlane.xlu0 %2533 }
 0x684   : > { %v2580_v56 = vsub.f32 %v2162_v16, %v2534_v40 }
 0x685   : > { %v2598_v35 = vmul.f32 1.442695, %v2581_v38 }
 0x686   : > { %v2596_v11 = vmul.f32 1.442695, %v2580_v56 }
 0x687   : > { %4550 = vpow2.f32 %v2598_v35  ;;  %v2543_v51 = vpop.xlane.xlu0 %2542 }
 0x688   : > { %4552 = vpow2.f32 %v2596_v11  ;;  %v2583_v42 = vsub.f32 %v3950_v47, %v2543_v51 }
 0x68a   : > { %v2602_v30 = vmul.f32 1.442695, %v2583_v42 }
 0x68b   : > { %v2540_v3 = vpop.xlane.xlu0 %2539 }
 0x68c   : > { %4554 = vpow2.f32 %v2602_v30  ;;  %v2582_v39 = vsub.f32 %v2172_v37, %v2540_v3 }
 0x68e   : > { %v2600_v25 = vmul.f32 1.442695, %v2582_v39 }
 0x690   : > { %4556 = vpow2.f32 %v2600_v25 }
 0x691   : > { %v5429_v48 = vpop.eup %4550 }
 0x692   : > { %v5431_v52 = vpop.eup %4552  ;;  %v2549_v2 = vpop.xlane.xlu1 %2548  ;;  %v2631_v23 = vsel %vm1242_vm4, %v5429_v48, 0.0 }
 0x693   : > { %v2585_v19 = vsub.f32 %v3961_v36, %v2549_v2  ;;  %v2546_v13 = vpop.xlane.xlu0 %2545  ;;  %2632 = vadd.xlane.f32.xlu1 %v2631_v23  ;;  %v2628_v53 = vsel %vm1242_vm4, %v5431_v52, 0.0 }
 0x694   : > { %v2584_v21 = vsub.f32 %v2279_v54, %v2546_v13  ;;  %2629 = vadd.xlane.f32.xlu0 %v2628_v53 }
 0x695   : > { %v2606_v46 = vmul.f32 1.442695, %v2585_v19 }
 0x696   : > { %v5437_v61 = vpop.eup %4554  ;;  %v2604_v6 = vmul.f32 1.442695, %v2584_v21  ;;  %v2555_v28 = vpop.xlane.xlu1 %2554 }
 0x697   : > { %4558 = vpow2.f32 %v2606_v46  ;;  %v2587_v45 = vsub.f32 %v3964_v41, %v2555_v28  ;;  %v2552_v27 = vpop.xlane.xlu0 %2551  ;;  %v2637_v26 = vsel %vm1242_vm4, %v5437_v61, 0.0 }
 0x698   : > { %4560 = vpow2.f32 %v2604_v6  ;;  %v2586_v5 = vsub.f32 %v2289_v24, %v2552_v27  ;;  %2638 = vadd.xlane.f32.xlu1 %v2637_v26 }
 0x699   : > { %v2610_v34 = vmul.f32 1.442695, %v2587_v45 }
 0x69a   : > { %v5441_v15 = vpop.eup %4556  ;;  %v2608_v33 = vmul.f32 1.442695, %v2586_v5 }
 0x69b   : > { %4562 = vpow2.f32 %v2610_v34  ;;  %v2634_v8 = vsel %vm1242_vm4, %v5441_v15, 0.0 }
 0x69c   : > { %4564 = vpow2.f32 %v2608_v33  ;;  %2635 = vadd.xlane.f32.xlu0 %v2634_v8 }
 0x6a1   : > { %v5445_v0 = vpop.eup %4558 }
 0x6a2   : > { %v5447_v16 = vpop.eup %4560  ;;  %v2643_v58 = vsel %vm1242_vm4, %v5445_v0, 0.0  ;;  %v2573_v44 = vpop.xlane.xlu1 %2572 }
 0x6a3   : > { %2644 = vadd.xlane.f32.xlu1 %v2643_v58  ;;  %v2640_v31 = vsel %vm1242_vm4, %v5447_v16, 0.0  ;;  %v2570_v49 = vpop.xlane.xlu0 %2569  ;;  %v2593_v10 = vsub.f32 %v5413_v22, %v2573_v44 }
 0x6a4   : > { %2641 = vadd.xlane.f32.xlu0 %v2640_v31  ;;  %v2592_v29 = vsub.f32 %v5415_v50, %v2570_v49 }
 0x6a5   : > { %v5453_v47 = vpop.eup %4562  ;;  %v2622_v38 = vmul.f32 1.442695, %v2593_v10 }
 0x6a6   : > { %v5455_v37 = vpop.eup %4564  ;;  %v2649_v32 = vsel %vm1242_vm4, %v5453_v47, 0.0  ;;  %v2620_v56 = vmul.f32 1.442695, %v2592_v29  ;;  %v2579_v35 = vpop.xlane.xlu1 %2578 }
 0x6a7   : > { %2650 = vadd.xlane.f32.xlu1 %v2649_v32  ;;  %v2646_v1 = vsel %vm1242_vm4, %v5455_v37, 0.0  ;;  %v2576_v57 = vpop.xlane.xlu0 %2575  ;;  %4566 = vpow2.f32 %v2622_v38  ;;  %v2595_v11 = vsub.f32 %v5421_v12, %v2579_v35 }
 0x6a8   : > { %2647 = vadd.xlane.f32.xlu0 %v2646_v1  ;;  %v2594_v40 = vsub.f32 %v5423_v20, %v2576_v57  ;;  %4568 = vpow2.f32 %v2620_v56 }
 0x6aa   : > { %v2624_v51 = vmul.f32 1.442695, %v2594_v40 }
 0x6ac   : > { %4570 = vpow2.f32 %v2624_v51 }
 0x6bc   : > { %v5461_v36 = vpop.f32.mrb[28].mxu1 }
 0x6bd   : > { %v5463_v54 = vpop.f32.mrb[29].mxu1  ;;  %v2559_v62 = vsel %vm1242_vm4, %v5461_v36, -inf }
 0x6be   : > { %2560 = vmax.xlane.f32.xlu1 %v2559_v62  ;;  %v2556_v18 = vsel %vm1242_vm4, %v5463_v54, -inf }
 0x6bf   : > { %2557 = vmax.xlane.f32.xlu0 %v2556_v18 }
 0x6c0   : > { %v5469_v41 = vpop.f32.mrb[30].mxu1 }
 0x6c1   : > { %v5471_v24 = vpop.f32.mrb[31].mxu1  ;;  %v2565_v43 = vsel %vm1242_vm4, %v5469_v41, -inf }
 0x6c2   : > { %2566 = vmax.xlane.f32.xlu1 %v2565_v43  ;;  %v2562_v17 = vsel %vm1242_vm4, %v5471_v24, -inf }
 0x6c3   : > { %2563 = vmax.xlane.f32.xlu0 %v2562_v17 }
 0x6d3   : > { %4420 = vrot.lane.b32.xlu1 %v4939_v60, %s4642_s18  ;;  %v2626_v60 = vmul.f32 1.442695, %v2595_v11 }
 0x6d5   : > { %4572 = vpow2.f32 %v2626_v60 }
 0x6d9   : > { %4415 = vrot.lane.b32.xlu0 %v4928_v59, %s4642_s18  ;;  %v5485_v59 = vpop.eup %4566 }
 0x6da   : > { %v5487_v42 = vpop.eup %4568  ;;  %v2667_v22 = vsel %vm1242_vm4, %v5485_v59, 0.0 }
 0x6db   : > { %v5491_v50 = vpop.eup %4570  ;;  %v2664_v20 = vsel %vm1242_vm4, %v5487_v42, 0.0 }
 0x6dc   : > { %v2670_v12 = vsel %vm1242_vm4, %v5491_v50, 0.0 }
 0x6df   : > { %v5497_v30 = vpop.eup %4572 }
 0x6e0   : > { %v2673_v3 = vsel %vm1242_vm4, %v5497_v30, 0.0 }
 0x6f7   : > { %2668 = vadd.xlane.f32.xlu1 %v2667_v22 }
 0x6f8   : > { %2665 = vadd.xlane.f32.xlu0 %v2664_v20 }
 0x6fb   : > { %2671 = vadd.xlane.f32.xlu1 %v2670_v12 }
 0x6ff   : > { %2674 = vadd.xlane.f32.xlu1 %v2673_v3 }
 0x70e   : > { %4425 = vrot.lane.b32.xlu0 %v4946_v63, %s4642_s18 }
 0x710   : > { %4430 = vrot.lane.b32.xlu1 %v4960_v4, %s4642_s18 }
 0x712   : > { %4435 = vrot.lane.b32.xlu0 %v4967_v7, %s4642_s18 }
 0x716   : > { %4440 = vrot.lane.b32.xlu0 %v4977_v9, %s4642_s18 }
 0x720   : > { %v2633_v23 = vpop.xlane.xlu1 %2632 }
 0x721   : > { %v2630_v39 = vpop.xlane.xlu0 %2629 }
 0x722   : > { %4574 = vrcp.f32 %v2630_v39 }
 0x723   : > { %4576 = vrcp.f32 %v2633_v23 }
 0x725   : > { %v2639_v19 = vpop.xlane.xlu1 %2638 }
 0x729   : > { %v2636_v13 = vpop.xlane.xlu0 %2635 }
 0x72c   : > { %v4575_v25 = vpop.eup %4574 }
 0x72d   : > { %v2692_v2 = vmul.f32 %v4575_v25, %v5431_v52  ;;  %v4577_v62 = vpop.eup %4576 }
 0x72e   : > { %v2693_v29 = vmul.f32 %v4577_v62, %v5429_v48 }
 0x72f   : > { %4001 = vmatprep.mubr.msk.f32.mxu1 %vm1242_vm4, %v2692_v2 }
 0x730   : > { %v5511_v63 = vpop.xlane.xlu1 %2644 }
 0x731   : > { %v2642_v53 = vpop.xlane.xlu0 %2641 }
 0x734   : > { %v5513_v4 = vpop.xlane.xlu1 %2650 }
 0x735   : > { %v5515_v21 = vpop.xlane.xlu0 %2647 }
 0x74b   : > { %v2561_v7 = vpop.xlane.xlu1 %2560 }
 0x74c   : > { %v2589_v9 = vsub.f32 %v5461_v36, %v2561_v7  ;;  %v2558_v46 = vpop.xlane.xlu0 %2557 }
 0x74d   : > { %v2588_v6 = vsub.f32 %v5463_v54, %v2558_v46 }
 0x74e   : > { %v2614_v28 = vmul.f32 1.442695, %v2589_v9 }
 0x74f   : > { %v2612_v52 = vmul.f32 1.442695, %v2588_v6  ;;  %v2567_v45 = vpop.xlane.xlu1 %2566 }
 0x750   : > { %4578 = vpow2.f32 %v2614_v28  ;;  %v2591_v27 = vsub.f32 %v5469_v41, %v2567_v45  ;;  %v2564_v26 = vpop.xlane.xlu0 %2563 }
 0x751   : > { %4580 = vpow2.f32 %v2612_v52  ;;  %v2590_v5 = vsub.f32 %v5471_v24, %v2564_v26 }
 0x752   : > { %4582 = vrcp.f32 %v2639_v19  ;;  %v2618_v34 = vmul.f32 1.442695, %v2591_v27 }
 0x753   : > { %4584 = vrcp.f32 %v2636_v13  ;;  %v2616_v33 = vmul.f32 1.442695, %v2590_v5  ;;  %v4421_v8 = vpop.permute.xlu1 %4420 }
 0x754   : > { %4586 = vpow2.f32 %v2618_v34  ;;  %v4416_v58 = vpop.permute.xlu0 %4415  ;;  %v4423_v31 = vunpack.i.h.bf16 %v4421_v8  ;;  %v4422_v32 = vunpack.i.l.bf16 %v4421_v8 }
 0x755   : > { %v4418_v1 = vunpack.i.h.bf16 %v4416_v58  ;;  %v4417_v36 = vunpack.i.l.bf16 %v4416_v58  ;;  %4588 = vpow2.f32 %v2616_v33 }
 0x756   : > { %4590 = vrcp.f32 %v2642_v53  ;;  %v4213_v18 = vpack.c.bf16 %v4423_v31, %v4422_v32  ;;  %v732_v31 = vld [vmem:[%s5679_s4 + $0x10] sm:$0xff]  ;;  %v733_v32 = vld [vmem:[%s5679_s4 + $0x18] sm:$0xff] }
 0x757   : > { %v4209_v54 = vpack.c.bf16 %v4418_v1, %v4417_v36  ;;  %4592 = vrcp.f32 %v5511_v63 }
 0x758   : > { %4594 = vrcp.f32 %v5515_v21 }
 0x759   : > { %4210 = vmatprep.subr.bf16.mxu1 %v4209_v54  ;;  %4596 = vrcp.f32 %v5513_v4 }
 0x75a   : > { %v5521_v41 = vpop.eup %4578  ;;  %4212 = vmatpush3.bf16.msra.mxu1 %v4209_v54 }
 0x75b   : > { %v5523_v24 = vpop.eup %4580  ;;  %4214 = vmatprep.subr.bf16.mxu1 %v4213_v18  ;;  %v2655_v43 = vsel %vm1242_vm4, %v5521_v41, 0.0 }
 0x75c   : > { %v4583_v17 = vpop.eup %4582  ;;  %2656 = vadd.xlane.f32.xlu1 %v2655_v43  ;;  %v2652_v49 = vsel %vm1242_vm4, %v5523_v24, 0.0  ;;  %v4241_v43 = vpack.c.bf16 %v733_v32, %v732_v31 }
 0x75d   : > { %v4585_v44 = vpop.eup %4584  ;;  %2653 = vadd.xlane.f32.xlu0 %v2652_v49  ;;  %v2695_v11 = vmul.f32 %v4583_v17, %v5437_v61 }
 0x75e   : > { %v5529_v10 = vpop.eup %4586  ;;  %4216 = vmatpush3.bf16.msra.mxu1 %v4213_v18  ;;  %v2694_v40 = vmul.f32 %v4585_v44, %v5441_v15 }
 0x75f   : > { %v2661_v57 = vsel %vm1242_vm4, %v5529_v10, 0.0  ;;  %v5534_v38 = vpop.eup %4588 }
 0x760   : > { %2662 = vadd.xlane.f32.xlu1 %v2661_v57  ;;  %v4591_v56 = vpop.eup %4590  ;;  %v2658_v35 = vsel %vm1242_vm4, %v5534_v38, 0.0 }
 0x761   : > { %4002 = vmatmul.mubr.msk.f32.vlgmr.msra.gmra.mrb[32].mxu1 %vm1242_vm4, %v2693_v29  ;;  %v2696_v48 = vmul.f32 %v4591_v56, %v5447_v16  ;;  %v4593_v21 = vpop.eup %4592 }
 0x762   : > { %4004 = vmatprep.mubr.msk.f32.mxu1 %vm1242_vm4, %v2694_v40  ;;  %v4595_v9 = vpop.eup %4594  ;;  %v2697_v4 = vmul.f32 %v4593_v21, %v5445_v0 }
 0x763   : > { %v4597_v46 = vpop.eup %4596  ;;  %v2698_v6 = vmul.f32 %v4595_v9, %v5455_v37 }
 0x764   : > { %2659 = vadd.xlane.f32.xlu1 %v2658_v35  ;;  %v2699_v52 = vmul.f32 %v4597_v46, %v5453_v47 }
 0x765   : > { %4005 = vmatmul.mubr.msk.f32.gmra.mrb[34].mxu1 %vm1242_vm4, %v2695_v11 }
 0x766   : > { %4015 = vmatprep.mubr.msk.f32.mxu1 %vm1242_vm4, %v2696_v48 }
 0x773   : > { %4445 = vrot.lane.b32.xlu0 %v4987_v14, %s4642_s18 }
 0x775   : > { %4450 = vrot.lane.b32.xlu1 %v4997_v55, %s4642_s18 }
 0x784   : > { %v2669_v15 = vpop.xlane.xlu1 %2668 }
 0x785   : > { %v2666_v51 = vpop.xlane.xlu0 %2665 }
 0x788   : > { %v2672_v60 = vpop.xlane.xlu1 %2671 }
 0x789   : > { %v4426_v22 = vpop.permute.xlu0 %4425  ;;  %4598 = vrcp.f32 %v2672_v60 }
 0x78a   : > { %v4428_v61 = vunpack.i.h.bf16 %v4426_v22  ;;  %v4427_v20 = vunpack.i.l.bf16 %v4426_v22 }
 0x78c   : > { %v4217_v16 = vpack.c.bf16 %v4428_v61, %v4427_v20  ;;  %v2675_v12 = vpop.xlane.xlu1 %2674 }
 0x78d   : > { %v4436_v3 = vpop.permute.xlu0 %4435 }
 0x78e   : > { %v4438_v39 = vunpack.i.h.bf16 %v4436_v3  ;;  %v4437_v14 = vunpack.i.l.bf16 %v4436_v3  ;;  %4218 = vmatprep.subr.bf16.mxu1 %v4217_v16 }
 0x78f   : > { %4220 = vmatpush3.bf16.msra.mxu1 %v4217_v16 }
 0x790   : > { %v4225_v55 = vpack.c.bf16 %v4438_v39, %v4437_v14  ;;  %v4431_v25 = vpop.permute.xlu1 %4430  ;;  %v5599_v39 = vld [vmem:[%s5680_s5] ss:$0 sm:$0xff]  ;;  %v4614_v14 = vld [vmem:[%s4694_s27 + $0x8] sm:$0xff] }
 0x791   : > { %v4433_v2 = vunpack.i.h.bf16 %v4431_v25  ;;  %v4432_v23 = vunpack.i.l.bf16 %v4431_v25  ;;  %v4441_v19 = vpop.permute.xlu0 %4440  ;;  %v4615_v25 = vld [vmem:[%s4694_s27] sm:$0xff] }
 0x792   : > { %v4443_v13 = vunpack.i.h.bf16 %v4441_v19  ;;  %v4442_v63 = vunpack.i.l.bf16 %v4441_v19  ;;  %4226 = vmatprep.subr.bf16.mxu0 %v4225_v55 }
 0x793   : > { %v4221_v53 = vpack.c.bf16 %v4433_v2, %v4432_v23  ;;  %4228 = vmatpush3.bf16.msra.mxu0 %v4225_v55  ;;  %v4599_v28 = vpop.eup %4598  ;;  %v742_v55 = vadd.f32 %v4614_v14, %v5599_v39  ;;  %v741_v2 = vadd.f32 %v4615_v25, %v5599_v39 }
 0x794   : > { %v4229_v7 = vpack.c.bf16 %v4443_v13, %v4442_v63  ;;  %v2706_v45 = vmul.f32 %v4599_v28, %v5491_v50  ;;  %v4616_v63 = vld [vmem:[%s4694_s27 + $0x18] sm:$0xff] }
 0x795   : > { %4222 = vmatprep.subr.bf16.mxu1 %v4221_v53 }
 0x796   : > { %4224 = vmatpush3.bf16.msra.mxu1 %v4221_v53  ;;  %4230 = vmatprep.subr.bf16.mxu0 %v4229_v7  ;;  %v744_v53 = vadd.f32 %v4616_v63, %v5599_v39 }
 0x797   : > { %4232 = vmatpush3.bf16.msra.mxu0 %v4229_v7  ;;  %v4617_v7 = vld [vmem:[%s4694_s27 + $0x10] sm:$0xff] }
 0x798   : > { %v743_v9 = vadd.f32 %v4617_v7, %v5599_v39 }
 0x799   : > { %4016 = vmatmul.mubr.msk.f32.vlgmr.msra.gmra.mrb[36].mxu1 %vm1242_vm4, %v2697_v4 }
 0x79a   : > { %4018 = vmatprep.mubr.msk.f32.mxu1 %vm1242_vm4, %v2698_v6 }
 0x79d   : > { %4019 = vmatmul.mubr.msk.f32.gmra.mrb[38].mxu1 %vm1242_vm4, %v2699_v52  ;;  %v4618_v52 = vld [vmem:[%s4694_s27 + $0x28] sm:$0xff] }
 0x79e   : > { %4046 = vmatprep.mubr.msk.f32.mxu1 %vm1242_vm4, %v2706_v45  ;;  %v746_v45 = vadd.f32 %v4618_v52, %v5599_v39 }
 0x7e9   : > { %v2657_v27 = vpop.xlane.xlu1 %2656 }
 0x7ea   : > { %4600 = vrcp.f32 %v2657_v27  ;;  %v2654_v0 = vpop.xlane.xlu0 %2653  ;;  %v4619_v27 = vld [vmem:[%s4694_s27 + $0x20] sm:$0xff] }
 0x7eb   : > { %4602 = vrcp.f32 %v2654_v0  ;;  %v745_v0 = vadd.f32 %v4619_v27, %v5599_v39 }
 0x7ec   : > { %4604 = vrcp.f32 %v2675_v12 }
 0x7ed   : > { %v2663_v26 = vpop.xlane.xlu1 %2662  ;;  %4606 = vrcp.f32 %v2666_v51 }
 0x7ee   : > { %v4446_v5 = vpop.permute.xlu0 %4445  ;;  %4608 = vrcp.f32 %v2663_v26 }
 0x7ef   : > { %v4448_v37 = vunpack.i.h.bf16 %v4446_v5  ;;  %v4447_v34 = vunpack.i.l.bf16 %v4446_v5 }
 0x7f1   : > { %v4233_v33 = vpack.c.bf16 %v4448_v37, %v4447_v34  ;;  %v2660_v8 = vpop.xlane.xlu1 %2659  ;;  %v4620_v34 = vld [vmem:[%s4694_s27 + $0x38] sm:$0xff] }
 0x7f2   : > { %4610 = vrcp.f32 %v2660_v8 }
 0x7f3   : > { %4234 = vmatprep.subr.bf16.mxu0 %v4233_v33  ;;  %4245 = vmatprep.subr.bf16.mxu1 %v4233_v33  ;;  %4612 = vrcp.f32 %v2669_v15 }
 0x7f4   : > { %v4601_v47 = vpop.eup %4600  ;;  %4247 = vmatpush3.bf16.msra.mxu1 %v4233_v33 }
 0x7f5   : > { %v4603_v50 = vpop.eup %4602  ;;  %v4451_v58 = vpop.permute.xlu1 %4450  ;;  %v2701_v62 = vmul.f32 %v4601_v47, %v5521_v41  ;;  %v4621_v47 = vld [vmem:[%s4694_s27 + $0x30] sm:$0xff] }
 0x7f6   : > { %v4453_v1 = vunpack.i.h.bf16 %v4451_v58  ;;  %v4452_v36 = vunpack.i.l.bf16 %v4451_v58  ;;  %v2700_v54 = vmul.f32 %v4603_v50, %v5523_v24  ;;  %v4605_v17 = vpop.eup %4604  ;;  %v747_v50 = vadd.f32 %v4621_v47, %v5599_v39 }
 0x7f7   : > { %v4607_v49 = vpop.eup %4606  ;;  %v2707_v57 = vmul.f32 %v4605_v17, %v5497_v30 }
 0x7f8   : > { %v4237_v18 = vpack.c.bf16 %v4453_v1, %v4452_v36  ;;  %4029 = vmatprep.mubr.msk.f32.mxu0 %vm1242_vm4, %v2700_v54  ;;  %v4609_v44 = vpop.eup %4608  ;;  %v2704_v56 = vmul.f32 %v4607_v49, %v5487_v42  ;;  %v4622_v36 = vld [vmem:[%s4694_s27 + $0x48] sm:$0xff] }
 0x7f9   : > { %4030 = vmatmul.mubr.msk.f32.vlgmr.msra.gmra.mrb[48].mxu0 %vm1242_vm4, %v2701_v62  ;;  %v2703_v41 = vmul.f32 %v4609_v44, %v5529_v10  ;;  %v750_v54 = vadd.f32 %v4622_v36, %v5599_v39  ;;  %v4623_v62 = vld [vmem:[%s4694_s27 + $0x40] sm:$0xff] }
 0x7fa   : > { %4236 = vmatpush3.bf16.msra.mxu0 %v4233_v33  ;;  %4246 = vmatprep.subr.bf16.mxu1 %v4237_v18  ;;  %v748_v33 = vadd.f32 %v4620_v34, %v5599_v39 }
 0x7fb   : > { %4238 = vmatprep.subr.bf16.mxu0 %v4237_v18  ;;  %4248 = vmatpush3.bf16.msra.mxu1 %v4237_v18 }
 0x7fc   : > { %v4611_v29 = vpop.eup %4610  ;;  %4242 = vmatprep.subr.bf16.mxu1 %v4241_v43 }
 0x7fd   : > { %v2702_v24 = vmul.f32 %v4611_v29, %v5534_v38  ;;  %v4613_v40 = vpop.eup %4612  ;;  %v4624_v29 = vld [vmem:[%s4694_s27 + $0x58] sm:$0xff] }
 0x7fe   : > { %4240 = vmatpush3.bf16.msra.mxu0 %v4237_v18  ;;  %4047 = vmatmul.mubr.msk.f32.vlgmr.msra.gmra.mrb[40].mxu1 %vm1242_vm4, %v2707_v57  ;;  %v2705_v30 = vmul.f32 %v4613_v40, %v5485_v59  ;;  %v749_v18 = vadd.f32 %v4623_v62, %v5599_v39  ;;  %v752_v57 = vadd.f32 %v4624_v29, %v5599_v39 }
 0x7ff   : > { %4032 = vmatprep.mubr.msk.f32.mxu0 %vm1242_vm4, %v2702_v24  ;;  %4244 = vmatpush3.bf16.msra.mxu1 %v4241_v43  ;;  %v4625_v24 = vld [vmem:[%s4694_s27 + $0x50] sm:$0xff] }
 0x800   : > { %4033 = vmatmul.mubr.msk.f32.gmra.mrb[50].mxu0 %vm1242_vm4, %v2703_v41  ;;  %v751_v41 = vadd.f32 %v4625_v24, %v5599_v39 }
 0x801   : > { %4043 = vmatprep.mubr.msk.f32.mxu0 %vm1242_vm4, %v2704_v56 }
 0x804   : > { %4044 = vmatmul.mubr.msk.f32.vlgmr.msra.gmra.mrb[52].mxu0 %vm1242_vm4, %v2705_v30 }
 0x834   : > { %v4003_v38 = vpop.f32.mrb[32].mxu1 }
 0x835   : > { %v2798_v35 = vpop.f32.mrb[33].mxu1 }
 0x836   : > { %4053 = vmatprep.mubr.msk.f32.mxu1 %vm785_vm2, %v2798_v35 }
 0x837   : > { %4054 = vmatmul.mubr.msk.f32.vlgmr.msra.gmra.mrb[12].mxu1 %vm785_vm2, %v4003_v38  ;;  %v4626_v38 = vld [vmem:[%s4694_s27 + $0x68] sm:$0xff] }
 0x838   : > { %v4006_v10 = vpop.f32.mrb[34].mxu1  ;;  %v754_v35 = vadd.f32 %v4626_v38, %v5599_v39 }
 0x839   : > { %v2808_v11 = vpop.f32.mrb[35].mxu1 }
 0x83a   : > { %4056 = vmatprep.mubr.msk.f32.mxu1 %vm785_vm2, %v2808_v11  ;;  %v4627_v11 = vld [vmem:[%s4694_s27 + $0x60] sm:$0xff] }
 0x83b   : > { %4057 = vmatmul.mubr.msk.f32.gmra.mrb[14].mxu1 %vm785_vm2, %v4006_v10 }
 0x86c   : > { %v4017_v42 = vpop.f32.mrb[36].mxu1 }
 0x86d   : > { %v2907_v48 = vpop.f32.mrb[37].mxu1 }
 0x86e   : > { %4059 = vmatprep.mubr.msk.f32.mxu1 %vm785_vm2, %v2907_v48 }
 0x86f   : > { %4060 = vmatmul.mubr.msk.f32.gmra.mrb[16].mxu1 %vm785_vm2, %v4017_v42  ;;  %v753_v42 = vadd.f32 %v4627_v11, %v5599_v39 }
 0x870   : > { %v4020_v59 = vpop.f32.mrb[38].mxu1 }
 0x871   : > { %v2917_v15 = vpop.f32.mrb[39].mxu1 }
 0x872   : > { %4062 = vmatprep.mubr.msk.f32.mxu1 %vm785_vm2, %v2917_v15 }
 0x873   : > { %4063 = vmatmul.mubr.msk.f32.gmra.mrb[18].mxu1 %vm785_vm2, %v4020_v59 }
 0x8cc   : > { %v4031_v51 = vpop.f32.mrb[48].mxu0 }
 0x8cd   : > { %v3016_v60 = vpop.f32.mrb[49].mxu0 }
 0x8ce   : > { %4065 = vmatprep.mubr.msk.f32.mxu1 %vm785_vm2, %v3016_v60 }
 0x8cf   : > { %4066 = vmatmul.mubr.msk.f32.gmra.mrb[20].mxu1 %vm785_vm2, %v4031_v51  ;;  %v4628_v51 = vld [vmem:[%s4694_s27 + $0x78] sm:$0xff] }
 0x8d0   : > { %v756_v60 = vadd.f32 %v4628_v51, %v5599_v39 }
 0x8d1   : > { %v4048_v22 = vpop.f32.mrb[40].mxu1 }
 0x8d2   : > { %v3135_v61 = vpop.f32.mrb[41].mxu1 }
 0x8d3   : > { %v4034_v20 = vpop.f32.mrb[50].mxu0 }
 0x8d4   : > { %v3026_v16 = vpop.f32.mrb[51].mxu0 }
 0x8d5   : > { %4068 = vmatprep.mubr.msk.f32.mxu1 %vm785_vm2, %v3026_v16 }
 0x8d6   : > { %4069 = vmatmul.mubr.msk.f32.gmra.mrb[22].mxu1 %vm785_vm2, %v4034_v20 }
 0x8d7   : > { %v4045_v12 = vpop.f32.mrb[52].mxu0 }
 0x8d8   : > { %v3125_v3 = vpop.f32.mrb[53].mxu0 }
 0x8d9   : > { %4071 = vmatprep.mubr.msk.f32.mxu1 %vm785_vm2, %v3125_v3 }
 0x8da   : > { %4072 = vmatmul.mubr.msk.f32.gmra.mrb[24].mxu1 %vm785_vm2, %v4045_v12 }
 0x8db   : > { %4074 = vmatprep.mubr.msk.f32.mxu1 %vm785_vm2, %v3135_v61  ;;  %v4629_v61 = vld [vmem:[%s4694_s27 + $0x70] sm:$0xff] }
 0x8dc   : > { %v755_v20 = vadd.f32 %v4629_v61, %v5599_v39 }
 0x8de   : > { %4075 = vmatmul.mubr.msk.f32.gmra.mrb[26].mxu1 %vm785_vm2, %v4048_v22 }
 0x90a   : > { %v4055_v23 = vpop.f32.mrb[12].mxu1 }
 0x90b   : > { %v4249_v19 = vadd.f32 %v4055_v23, %v742_v55  ;;  %v3258_v13 = vpop.f32.mrb[13].mxu1 }
 0x90c   : > { %v4250_v21 = vadd.f32 %v3258_v13, %v741_v2 }
 0x90d   : > { %3354 = vst.msk [vmem:[%s5610_s7 + $0x8] sm:$0xff] %vm278_vm0, %v4249_v19 }
 0x90e   : > { %3353 = vst.msk [vmem:[%s5610_s7] sm:$0xff] %vm278_vm0, %v4250_v21  ;;  %v4058_v4 = vpop.f32.mrb[14].mxu1 }
 0x90f   : > { %v4251_v46 = vadd.f32 %v4058_v4, %v744_v53  ;;  %v3268_v6 = vpop.f32.mrb[15].mxu1 }
 0x910   : > { %v4252_v28 = vadd.f32 %v3268_v6, %v743_v9 }
 0x911   : > { %3356 = vst.msk [vmem:[%s5610_s7 + $0x18] sm:$0xff] %vm278_vm0, %v4251_v46 }
 0x912   : > { %3355 = vst.msk [vmem:[%s5610_s7 + $0x10] sm:$0xff] %vm278_vm0, %v4252_v28 }
 0x942   : > { %v4061_v26 = vpop.f32.mrb[16].mxu1 }
 0x943   : > { %v4253_v5 = vadd.f32 %v4061_v26, %v746_v45  ;;  %v3278_v37 = vpop.f32.mrb[17].mxu1 }
 0x944   : > { %v4254_v8 = vadd.f32 %v3278_v37, %v745_v0 }
 0x945   : > { %3358 = vst.msk [vmem:[%s5610_s7 + $0x28] sm:$0xff] %vm278_vm0, %v4253_v5 }
 0x946   : > { %3357 = vst.msk [vmem:[%s5610_s7 + $0x20] sm:$0xff] %vm278_vm0, %v4254_v8  ;;  %v4064_v58 = vpop.f32.mrb[18].mxu1 }
 0x947   : > { %v4255_v31 = vadd.f32 %v4064_v58, %v748_v33  ;;  %v3288_v32 = vpop.f32.mrb[19].mxu1 }
 0x948   : > { %v4256_v1 = vadd.f32 %v3288_v32, %v747_v50 }
 0x949   : > { %3360 = vst.msk [vmem:[%s5610_s7 + $0x38] sm:$0xff] %vm278_vm0, %v4255_v31 }
 0x94a   : > { %3359 = vst.msk [vmem:[%s5610_s7 + $0x30] sm:$0xff] %vm278_vm0, %v4256_v1 }
 0x9a2   : > { %v4067_v43 = vpop.f32.mrb[20].mxu1 }
 0x9a3   : > { %v4257_v17 = vadd.f32 %v4067_v43, %v750_v54  ;;  %v3298_v49 = vpop.f32.mrb[21].mxu1 }
 0x9a4   : > { %v4258_v44 = vadd.f32 %v3298_v49, %v749_v18 }
 0x9a5   : > { %3362 = vst.msk [vmem:[%s5610_s7 + $0x48] sm:$0xff] %vm278_vm0, %v4257_v17 }
 0x9a6   : > { %3361 = vst.msk [vmem:[%s5610_s7 + $0x40] sm:$0xff] %vm278_vm0, %v4258_v44 }
 0x9a9   : > { %v4070_v40 = vpop.f32.mrb[22].mxu1 }
 0x9aa   : > { %v4259_v56 = vadd.f32 %v4070_v40, %v752_v57  ;;  %v3308_v30 = vpop.f32.mrb[23].mxu1 }
 0x9ab   : > { %v4260_v10 = vadd.f32 %v3308_v30, %v751_v41 }
 0x9ac   : > { %3364 = vst.msk [vmem:[%s5610_s7 + $0x58] sm:$0xff] %vm278_vm0, %v4259_v56 }
 0x9ad   : > { %3363 = vst.msk [vmem:[%s5610_s7 + $0x50] sm:$0xff] %vm278_vm0, %v4260_v10  ;;  %v4073_v48 = vpop.f32.mrb[24].mxu1 }
 0x9ae   : > { %v4261_v59 = vadd.f32 %v4073_v48, %v754_v35  ;;  %v3318_v15 = vpop.f32.mrb[25].mxu1 }
 0x9af   : > { %v4262_v22 = vadd.f32 %v3318_v15, %v753_v42 }
 0x9b0   : > { %3366 = vst.msk [vmem:[%s5610_s7 + $0x68] sm:$0xff] %vm278_vm0, %v4261_v59 }
 0x9b1   : > { %3365 = vst.msk [vmem:[%s5610_s7 + $0x60] sm:$0xff] %vm278_vm0, %v4262_v22  ;;  %v4076_v16 = vpop.f32.mrb[26].mxu1 }
 0x9b2   : > { %v4263_v12 = vadd.f32 %v4076_v16, %v756_v60  ;;  %v3328_v3 = vpop.f32.mrb[27].mxu1 }
 0x9b3   : > { %v4264_v14 = vadd.f32 %v3328_v3, %v755_v20 }
 0x9b4   : > { %3368 = vst.msk [vmem:[%s5610_s7 + $0x78] sm:$0xff] %vm278_vm0, %v4263_v12 }
 0x9b5   : > { %3367 = vst.msk [vmem:[%s5610_s7 + $0x70] sm:$0xff] %vm278_vm0, %v4264_v14 }
 0x9b6 PF: > { %s16_s21 = sadd.s32 1, %s4636_s21  }
 0x9b7   : > { %p13_p4 = scmp.ge.s32.totalorder %s16_s21, 4  }
 0x9b9   :  { %15 = sbr.rel (!%p13_p4) target bundleno = 1 (0x1), region = 74 }

// kernel: selfvit_forward.20
= control target key start
LH: loop header
LB: loop body
LE: loop exit
PB: predicated region body
PF: predicated region fallthrough
CT: control target
= control target key end

     0   :  { %v194_v0 = vmov 0.0|0.0   ;;  %vm195_vm0 = vmmov 0   ;;  %v196_v4 = vmov 0.0   ;;  %vm108_vm1 = vcmask 523264   ;;  %s274_s1 = inlined_call_operand.vmem [shape: f32[128,64], index: 1, kind: input, shape index: {}]   ;;  %s275_s0 = inlined_call_operand.vmem [shape: f32[8,128], index: 0, kind: input, shape index: {}]   ;;  %s276_s2 = inlined_call_operand.vmem [shape: f32[1,64], index: 2, kind: input, shape index: {}]   ;;  %s277_s3 = inlined_call_operand.vmem [shape: f32[8,64], index: 3, kind: output, shape index: {}]  }
   0x1   :  { %167 = vmatprep.subr.bf16.mxu0 %v194_v0  ;;  %v15_v1 = vld [vmem:[%s274_s1] sm:$0xff]  ;;  %v16_v2 = vld [vmem:[%s274_s1 + $0x8] sm:$0xff]  ;;  %v17_v3 = vld [vmem:[%s274_s1 + $0x10] sm:$0xff]  ;;  %164 = vmatprep.mubr.msk.f32.mxu0 %vm195_vm0, %v196_v4 }
   0x2   :  { %v168_v5 = vpack.c.bf16 %v16_v2, %v15_v1  ;;  %v18_v6 = vld [vmem:[%s274_s1 + $0x18] sm:$0xff]  ;;  %v19_v8 = vld [vmem:[%s274_s1 + $0x20] sm:$0xff]  ;;  %v20_v9 = vld [vmem:[%s274_s1 + $0x28] sm:$0xff] }
   0x3   :  { %v171_v7 = vpack.c.bf16 %v18_v6, %v17_v3  ;;  %v174_v10 = vpack.c.bf16 %v20_v9, %v19_v8  ;;  %v21_v11 = vld [vmem:[%s274_s1 + $0x30] sm:$0xff]  ;;  %v22_v12 = vld [vmem:[%s274_s1 + $0x38] sm:$0xff]  ;;  %v23_v14 = vld [vmem:[%s274_s1 + $0x40] sm:$0xff] }
   0x4   :  { %169 = vmatpush3.bf16.msra.mxu0 %v168_v5  ;;  %v177_v13 = vpack.c.bf16 %v22_v12, %v21_v11  ;;  %v24_v15 = vld [vmem:[%s274_s1 + $0x48] sm:$0xff]  ;;  %v25_v17 = vld [vmem:[%s274_s1 + $0x50] sm:$0xff]  ;;  %v26_v18 = vld [vmem:[%s274_s1 + $0x58] sm:$0xff] }
   0x5   :  { %170 = vmatprep.subr.bf16.mxu0 %v194_v0  ;;  %v180_v16 = vpack.c.bf16 %v24_v15, %v23_v14  ;;  %v183_v19 = vpack.c.bf16 %v26_v18, %v25_v17  ;;  %v27_v20 = vld [vmem:[%s274_s1 + $0x60] sm:$0xff]  ;;  %v28_v21 = vld [vmem:[%s274_s1 + $0x68] sm:$0xff]  ;;  %v29_v23 = vld [vmem:[%s274_s1 + $0x70] sm:$0xff] }
   0x6   :  { %v186_v22 = vpack.c.bf16 %v28_v21, %v27_v20  ;;  %v30_v24 = vld [vmem:[%s274_s1 + $0x78] sm:$0xff]  ;;  %v14_v26 = vld [vmem:[%s275_s0] sm:$0xff] }
   0x7   :  { %v189_v25 = vpack.c.bf16 %v30_v24, %v29_v23  ;;  %v114_v27 = vld [vmem:[%s276_s2] ss:$0 sm:$0xff] }
   0x8   :  { %172 = vmatpush3.bf16.msra.mxu0 %v171_v7 }
   0x9   :  { %173 = vmatprep.subr.bf16.mxu0 %v194_v0 }
   0xc   :  { %175 = vmatpush3.bf16.msra.mxu0 %v174_v10 }
   0xd   :  { %176 = vmatprep.subr.bf16.mxu0 %v194_v0 }
  0x10   :  { %178 = vmatpush3.bf16.msra.mxu0 %v177_v13 }
  0x11   :  { %179 = vmatprep.subr.bf16.mxu0 %v194_v0 }
  0x14   :  { %181 = vmatpush3.bf16.msra.mxu0 %v180_v16 }
  0x15   :  { %182 = vmatprep.subr.bf16.mxu0 %v194_v0 }
  0x18   :  { %184 = vmatpush3.bf16.msra.mxu0 %v183_v19 }
  0x19   :  { %185 = vmatprep.subr.bf16.mxu0 %v194_v0 }
  0x1c   :  { %187 = vmatpush3.bf16.msra.mxu0 %v186_v22 }
  0x1d   :  { %188 = vmatprep.subr.bf16.mxu0 %v194_v0 }
  0x20   :  { %190 = vmatpush3.bf16.msra.mxu0 %v189_v25 }
  0x23   :  { %165 = vmatmul.mubr.f32.vlgmr.msra.gmra.mrb[0].mxu0 %v14_v26 }
  0xf6   :  { %v104_v28 = vpop.f32.mrb[0].mxu0 }
  0xf7   :  { %v105_v29 = vadd.f32 %v114_v27, %v104_v28  ;;  %v166_v30 = vpop.f32.mrb[1].mxu0 }
  0xf9   :  { %109 = vst.msk [vmem:[%s277_s3] sm:$0xff] %vm108_vm1, %v105_v29 }

// kernel: selfvit_forward.23
= control target key start
LH: loop header
LB: loop body
LE: loop exit
PB: predicated region body
PF: predicated region fallthrough
CT: control target
= control target key end

     0   :  { %vm31_vm0 = vcmask 519168   ;;  %s1023_s0 = inlined_call_operand.vmem [shape: f32[2,4,64], index: 0, kind: input, shape index: {}]   ;;  %s1024_s1 = inlined_call_operand.vmem [shape: f32[1,64], index: 1, kind: input, shape index: {}]   ;;  %s1025_s2 = inlined_call_operand.vmem [shape: f32[1,64], index: 2, kind: input, shape index: {}]   ;;  %s1026_s3 = inlined_call_operand.vmem [shape: f32[4,4,64], index: 3, kind: input, shape index: {}]   ;;  %s1027_s4 = inlined_call_operand.vmem [shape: f32[4,64], index: 4, kind: input, shape index: {}]   ;;  %s1028_s5 = inlined_call_operand.vmem [shape: f32[4,64,10], index: 5, kind: input, shape index: {}]   ;;  %s1029_s6 = inlined_call_operand.vmem [shape: f32[1,10], index: 6, kind: input, shape index: {}]   ;;  %s1030_s7 = inlined_call_operand.hbm [shape: f32[2,10], index: 7, kind: output, shape index: {}]  }
   0x1   :  { %v28_v0 = vld [vmem:[%s1023_s0 + $0x4] sm:$0xf]  ;;  %v27_v1 = vld [vmem:[%s1023_s0] sm:$0xf] }
   0x2   :  { %v35_v2 = vsel %vm31_vm0, %v28_v0, 0.0 }
   0x3   :  { %12 = vsyncpa [#allocation3], 0  ;;  %36 = vadd.xlane.f32.xlu0 %v35_v2  ;;  %v32_v3 = vsel %vm31_vm0, %v27_v1, 0.0  ;;  %v100_v14 = vld [vmem:[%s1028_s5] sm:$0xff]  ;;  %v101_v15 = vld [vmem:[%s1028_s5 + $0x8] sm:$0xff]  ;;  %v778_v17 = vmov 0.0|0.0  }
   0x4   :  { %v560_v16 = vld [vmem:[%s1028_s5 + $0x80] sm:$0xff]  ;;  %692 = vmatprep.subr.bf16.mxu1 %v778_v17  ;;  %716 = vmatprep.subr.bf16.mxu0 %v778_v17  ;;  %v693_v18 = vpack.c.bf16 %v101_v15, %v100_v14  ;;  %v561_v19 = vld [vmem:[%s1028_s5 + $0x88] sm:$0xff]  ;;  %v102_v20 = vld [vmem:[%s1028_s5 + $0x10] sm:$0xff]  ;;  %vm779_vm1 = vmmov 0   ;;  %v780_v25 = vmov 0.0   ;;  %vm111_vm2 = vcmask 1041409  }
   0x5   :  { %v103_v21 = vld [vmem:[%s1028_s5 + $0x18] sm:$0xff]  ;;  %v717_v22 = vpack.c.bf16 %v561_v19, %v560_v16  ;;  %v562_v23 = vld [vmem:[%s1028_s5 + $0x90] sm:$0xff]  ;;  %632 = vmatprep.mubr.msk.f32.mxu1 %vm779_vm1, %v780_v25  ;;  %670 = vmatprep.mubr.msk.f32.mxu0 %vm779_vm1, %v780_v25  ;;  %v104_v28 = vld [vmem:[%s1028_s5 + $0x20] sm:$0xff]  ;;  %vm113_vm3 = vcmask 523264   ;;  %s781_s10 = smov [#allocation2]   ;;  %vm526_vm4 = vcmask 74752  }
   0x6   :  { %v563_v24 = vld [vmem:[%s1028_s5 + $0x98] sm:$0xff]  ;;  %694 = vmatpush3.bf16.msra.mxu1 %v693_v18  ;;  %v696_v26 = vpack.c.bf16 %v103_v21, %v102_v20  ;;  %v105_v29 = vld [vmem:[%s1028_s5 + $0x28] sm:$0xff]  ;;  %v564_v30 = vld [vmem:[%s1028_s5 + $0xa0] sm:$0xff]  ;;  %s534_s11 = sshll.u32 %s781_s10, 4  ;;  %s535_s11 = int_to_ptr.vmem [resolvable:$true] %s534_s11 }
   0x7   :  { %33 = vadd.xlane.f32.xlu0 %v32_v3  ;;  %718 = vmatpush3.bf16.msra.mxu0 %v717_v22  ;;  %v720_v27 = vpack.c.bf16 %v563_v24, %v562_v23  ;;  %v565_v31 = vld [vmem:[%s1028_s5 + $0xa8] sm:$0xff]  ;;  %v699_v32 = vpack.c.bf16 %v105_v29, %v104_v28  ;;  %v106_v34 = vld [vmem:[%s1028_s5 + $0x30] sm:$0xff]  ;;  %v107_v35 = vld [vmem:[%s1028_s5 + $0x38] sm:$0xff]  ;;  %s754_s12 = scalar_lea.vmem %s535_s11, 32  ;;  %p759_p1 = scmp.lt.s32.totalorder %s535_s11, %s535_s11 }
   0x8   :  { %695 = vmatprep.subr.bf16.mxu1 %v778_v17  ;;  %719 = vmatprep.subr.bf16.mxu0 %v778_v17  ;;  %v723_v33 = vpack.c.bf16 %v565_v31, %v564_v30  ;;  %v566_v36 = vld [vmem:[%s1028_s5 + $0xb0] sm:$0xff]  ;;  %v567_v37 = vld [vmem:[%s1028_s5 + $0xb8] sm:$0xff]  ;;  %v702_v38 = vpack.c.bf16 %v107_v35, %v106_v34  ;;  %v542_v47 = vld [vmem:[%s1024_s1] ss:$0 sm:$0xff]  ;;  %p755_p0 = scmp.ne.s32.totalorder %s535_s11, %s754_s12  ;;  %p760_p2 = scmp.lt.s32.totalorder %s754_s12, %s754_s12 }
   0x9   :  { %v726_v39 = vpack.c.bf16 %v567_v37, %v566_v36  ;;  %v543_v49 = vld [vmem:[%s1025_s2] ss:$0 sm:$0xff]  ;;  %v558_v53 = vld [vmem:[%s1026_s3 + $0x8] sm:$0xf]  ;;  %v547_v54 = vld [vmem:[%s1026_s3 + $0x4] sm:$0xf] }
   0xa   :  { %697 = vmatpush3.bf16.msra.mxu1 %v696_v26  ;;  %v76_v52 = vld [vmem:[%s1026_s3] sm:$0xf]  ;;  %v569_v57 = vld [vmem:[%s1026_s3 + $0xc] sm:$0xf]  ;;  %p761_p3 = por %p760_p2, %p759_p1 }
   0xb   :  { %721 = vmatpush3.bf16.msra.mxu0 %v720_v27  ;;  %698 = vmatprep.subr.bf16.mxu1 %v778_v17  ;;  %v544_v36 = vld [vmem:[%s1027_s4] ss:$0 sm:$0xff]  ;;  %v559_v37 = vld [vmem:[%s1027_s4 + $0x2] ss:$0 sm:$0xff] }
   0xc   :  { %722 = vmatprep.subr.bf16.mxu0 %v778_v17  ;;  %p762_p4 = pnand %p761_p3, %p755_p0 }
   0xe   :  { %700 = vmatpush3.bf16.msra.mxu1 %v699_v32 }
   0xf   :  { %724 = vmatpush3.bf16.msra.mxu0 %v723_v33  ;;  %701 = vmatprep.subr.bf16.mxu1 %v778_v17 }
  0x10   :  { %725 = vmatprep.subr.bf16.mxu0 %v778_v17 }
  0x12   :  { %703 = vmatpush3.bf16.msra.mxu1 %v702_v38 }
  0x13   :  { %727 = vmatpush3.bf16.msra.mxu0 %v726_v39  ;;  %704 = vmatprep.subr.bf16.mxu1 %v778_v17 }
  0x14   :  { %728 = vmatprep.subr.bf16.mxu0 %v778_v17 }
  0x90   :  { %v37_v4 = vpop.xlane.xlu0 %36 }
  0x91   :  { %v40_v5 = vmul.f32 0.015625, %v37_v4 }
  0x93   :  { %v830_v6 = vsub.f32 %v28_v0, %v40_v5 }
  0x94   :  { %v34_v7 = vpop.xlane.xlu0 %33 }
  0x95   :  { %v39_v8 = vmul.f32 0.015625, %v34_v7  ;;  %v44_v9 = vmul.f32 %v830_v6, %v830_v6 }
  0x97   :  { %v834_v10 = vsub.f32 %v27_v1, %v39_v8  ;;  %v48_v11 = vsel %vm31_vm0, %v44_v9, 0.0 }
  0x98   :  { %49 = vadd.xlane.f32.xlu1 %v48_v11 }
  0x99   :  { %v43_v12 = vmul.f32 %v834_v10, %v834_v10 }
  0x9b   :  { %v45_v13 = vsel %vm31_vm0, %v43_v12, 0.0 }
  0x9c   :  { %46 = vadd.xlane.f32.xlu1 %v45_v13 }
 0x125   :  { %v50_v40 = vpop.xlane.xlu1 %49 }
 0x126   :  { %v52_v41 = vmul.f32 0.015625, %v50_v40 }
 0x128   :  { %v54_v42 = vadd.f32 1e-05, %v52_v41 }
 0x129   :  { %v47_v43 = vpop.xlane.xlu1 %46 }
 0x12a   :  { %750 = vrsqrt.f32 %v54_v42  ;;  %v51_v44 = vmul.f32 0.015625, %v47_v43  ;;  %v549_v42 = vld [vmem:[%s1028_s5 + $0x40] sm:$0xff]  ;;  %v550_v43 = vld [vmem:[%s1028_s5 + $0x48] sm:$0xff] }
 0x12c   :  { %v53_v45 = vadd.f32 1e-05, %v51_v44 }
 0x12e   :  { %752 = vrsqrt.f32 %v53_v45 }
 0x134   :  { %v751_v46 = vpop.eup %750 }
 0x135   :  { %v58_v48 = vmul.f32 %v751_v46, %v830_v6 }
 0x137   :  { %v66_v50 = vmul.f32 %v542_v47, %v58_v48 }
 0x138   :  { %v753_v51 = vpop.eup %752 }
 0x139   :  { %v74_v55 = vadd.f32 %v543_v49, %v66_v50  ;;  %v57_v56 = vmul.f32 %v753_v51, %v834_v10 }
 0x13b   :  { %v65_v58 = vmul.f32 %v542_v47, %v57_v56  ;;  %v78_v59 = vmul.f32 %v76_v52, %v74_v55  ;;  %v307_v60 = vmul.f32 %v558_v53, %v74_v55  ;;  %v196_v61 = vmul.f32 %v547_v54, %v74_v55 }
 0x13c   :  { %v418_v62 = vmul.f32 %v569_v57, %v74_v55 }
 0x13d   :  { %v73_v63 = vadd.f32 %v543_v49, %v65_v58  ;;  %v86_v0 = vsel %vm31_vm0, %v78_v59, 0.0  ;;  %v315_v1 = vsel %vm31_vm0, %v307_v60, 0.0  ;;  %v204_v2 = vsel %vm31_vm0, %v196_v61, 0.0 }
 0x13e   :  { %v87_v3 = vrot.slane %v86_v0, 4  ;;  %v316_v4 = vrot.slane %v315_v1, 4  ;;  %v426_v5 = vsel %vm31_vm0, %v418_v62, 0.0  ;;  %v205_v12 = vrot.slane %v204_v2, 4 }
 0x13f   :  { %v77_v6 = vmul.f32 %v76_v52, %v73_v63  ;;  %v306_v7 = vmul.f32 %v558_v53, %v73_v63  ;;  %v195_v8 = vmul.f32 %v547_v54, %v73_v63  ;;  %v417_v9 = vmul.f32 %v569_v57, %v73_v63  ;;  %v571_v52 = vld [vmem:[%s1028_s5 + $0xc0] sm:$0xff]  ;;  %v572_v53 = vld [vmem:[%s1028_s5 + $0xc8] sm:$0xff] }
 0x140   :  { %v88_v10 = vadd.f32 %v87_v3, %v86_v0  ;;  %v317_v11 = vadd.f32 %v316_v4, %v315_v1  ;;  %v427_v13 = vrot.slane %v426_v5, 4  ;;  %v206_v30 = vadd.f32 %v205_v12, %v204_v2  ;;  %v551_v2 = vld [vmem:[%s1028_s5 + $0x50] sm:$0xff]  ;;  %v552_v3 = vld [vmem:[%s1028_s5 + $0x58] sm:$0xff]  ;;  %v553_v12 = vld [vmem:[%s1028_s5 + $0x60] sm:$0xff] }
 0x141   :  { %v79_v14 = vsel %vm31_vm0, %v77_v6, 0.0  ;;  %v308_v15 = vsel %vm31_vm0, %v306_v7, 0.0  ;;  %v197_v16 = vsel %vm31_vm0, %v195_v8, 0.0  ;;  %v419_v18 = vsel %vm31_vm0, %v417_v9, 0.0  ;;  %v573_v4 = vld [vmem:[%s1028_s5 + $0xd0] sm:$0xff] }
 0x142   :  { %v80_v19 = vrot.slane %v79_v14, 4  ;;  %v89_v20 = vrot.slane %v88_v10, 2  ;;  %v309_v21 = vrot.slane %v308_v15, 4  ;;  %v318_v22 = vrot.slane %v317_v11, 2 }
 0x143   :  { %v198_v23 = vrot.slane %v197_v16, 4  ;;  %v420_v24 = vrot.slane %v419_v18, 4  ;;  %v428_v31 = vadd.f32 %v427_v13, %v426_v5  ;;  %v207_v46 = vrot.slane %v206_v30, 2  ;;  %v574_v5 = vld [vmem:[%s1028_s5 + $0xd8] sm:$0xff]  ;;  %v554_v13 = vld [vmem:[%s1028_s5 + $0x68] sm:$0xff] }
 0x144   :  { %v81_v26 = vadd.f32 %v80_v19, %v79_v14  ;;  %v90_v27 = vadd.f32 %v89_v20, %v88_v10  ;;  %v310_v28 = vadd.f32 %v309_v21, %v308_v15  ;;  %v319_v29 = vadd.f32 %v318_v22, %v317_v11 }
 0x145   :  { %v199_v38 = vadd.f32 %v198_v23, %v197_v16  ;;  %v421_v39 = vadd.f32 %v420_v24, %v419_v18  ;;  %v429_v47 = vrot.slane %v428_v31, 2  ;;  %v705_v54 = vpack.c.bf16 %v550_v43, %v549_v42  ;;  %v575_v16 = vld [vmem:[%s1028_s5 + $0xe0] sm:$0xff]  ;;  %v576_v18 = vld [vmem:[%s1028_s5 + $0xe8] sm:$0xff]  ;;  %v555_v23 = vld [vmem:[%s1028_s5 + $0x70] sm:$0xff] }
 0x146   :  { %v82_v32 = vrot.slane %v81_v26, 2  ;;  %v91_v33 = vrot.slane %v90_v27, 1  ;;  %v311_v34 = vrot.slane %v310_v28, 2  ;;  %v320_v35 = vrot.slane %v319_v29, 1  ;;  %v556_v24 = vld [vmem:[%s1028_s5 + $0x78] sm:$0xff] }
 0x147   :  { %v200_v57 = vrot.slane %v199_v38, 2  ;;  %v422_v58 = vrot.slane %v421_v39, 2  ;;  %v729_v59 = vpack.c.bf16 %v572_v53, %v571_v52  ;;  %v208_v60 = vadd.f32 %v207_v46, %v206_v30  ;;  %v570_v30 = vld [vmem:[%s1027_s4 + $0x3] ss:$0 sm:$0xff]  ;;  %v546_v43 = vld [vmem:[%s1029_s6] ss:$0 sm:$0xff] }
 0x148   :  { %v83_v40 = vadd.f32 %v82_v32, %v81_v26  ;;  %v92_v41 = vadd.f32 %v91_v33, %v90_v27  ;;  %v312_v44 = vadd.f32 %v311_v34, %v310_v28  ;;  %v321_v45 = vadd.f32 %v320_v35, %v319_v29  ;;  %v548_v27 = vld [vmem:[%s1027_s4 + $0x1] ss:$0 sm:$0xff]  ;;  %v577_v28 = vld [vmem:[%s1028_s5 + $0xf0] sm:$0xff]  ;;  %v578_v29 = vld [vmem:[%s1028_s5 + $0xf8] sm:$0xff] }
 0x149   :  { %v430_v61 = vadd.f32 %v429_v47, %v428_v31  ;;  %v201_v8 = vadd.f32 %v200_v57, %v199_v38  ;;  %v423_v9 = vadd.f32 %v422_v58, %v421_v39  ;;  %v708_v10 = vpack.c.bf16 %v552_v3, %v551_v2 }
 0x14a   :  { %v84_v48 = vrot.slane %v83_v40, 1  ;;  %v99_v49 = vadd.f32 %v544_v36, %v92_v41  ;;  %v313_v50 = vrot.slane %v312_v44, 1  ;;  %v328_v51 = vadd.f32 %v559_v37, %v321_v45 }
 0x14b   :  { %v732_v11 = vpack.c.bf16 %v574_v5, %v573_v4  ;;  %v209_v14 = vrot.slane %v208_v60, 1  ;;  %v431_v15 = vrot.slane %v430_v61, 1  ;;  %v202_v19 = vrot.slane %v201_v8, 1 }
 0x14c   :  { %v85_v55 = vadd.f32 %v84_v48, %v83_v40  ;;  %v314_v56 = vadd.f32 %v313_v50, %v312_v44  ;;  %v110_v63 = vrot.slane %v99_v49, 7  ;;  %v340_v1 = vrot.slane %v328_v51, 7 }
 0x14d   :  { %v424_v20 = vrot.slane %v423_v9, 1  ;;  %v711_v21 = vpack.c.bf16 %v554_v13, %v553_v12  ;;  %v735_v22 = vpack.c.bf16 %v576_v18, %v575_v16  ;;  %v210_v26 = vadd.f32 %v209_v14, %v208_v60 }
 0x14e   :  { %v98_v62 = vadd.f32 %v544_v36, %v85_v55  ;;  %v327_v0 = vadd.f32 %v559_v37, %v314_v56  ;;  %v203_v31 = vadd.f32 %v202_v19, %v201_v8  ;;  %v714_v33 = vpack.c.bf16 %v556_v24, %v555_v23 }
 0x14f   :  { %v425_v32 = vadd.f32 %v424_v20, %v423_v9  ;;  %v738_v34 = vpack.c.bf16 %v578_v29, %v577_v28  ;;  %v217_v35 = vadd.f32 %v548_v27, %v210_v26 }
 0x150   :  { %v112_v6 = vsel %vm111_vm2, %v110_v63, %v98_v62  ;;  %v341_v7 = vsel %vm111_vm2, %v340_v1, %v327_v0  ;;  %v216_v37 = vadd.f32 %v548_v27, %v203_v31 }
 0x151   :  { %633 = vmatmul.mubr.msk.f32.vlgmr.msra.gmra.mrb[0].mxu1 %vm113_vm3, %v112_v6  ;;  %671 = vmatmul.mubr.msk.f32.vlgmr.msra.gmra.mrb[0].mxu0 %vm113_vm3, %v341_v7  ;;  %v438_v38 = vadd.f32 %v570_v30, %v425_v32  ;;  %v229_v39 = vrot.slane %v217_v35, 7 }
 0x152   :  { %706 = vmatpush3.bf16.msra.mxu1 %v705_v54  ;;  %730 = vmatpush3.bf16.msra.mxu0 %v729_v59 }
 0x153   :  { %707 = vmatprep.subr.bf16.mxu1 %v778_v17  ;;  %731 = vmatprep.subr.bf16.mxu0 %v778_v17  ;;  %v230_v41 = vsel %vm111_vm2, %v229_v39, %v216_v37 }
 0x154   :  { %651 = vmatprep.mubr.msk.f32.mxu1 %vm779_vm1, %v780_v25  ;;  %689 = vmatprep.mubr.msk.f32.mxu0 %vm779_vm1, %v780_v25  ;;  %v432_v25 = vadd.f32 %v431_v15, %v430_v61 }
 0x156   :  { %709 = vmatpush3.bf16.msra.mxu1 %v708_v10  ;;  %733 = vmatpush3.bf16.msra.mxu0 %v732_v11  ;;  %v439_v36 = vadd.f32 %v570_v30, %v432_v25 }
 0x157   :  { %710 = vmatprep.subr.bf16.mxu1 %v778_v17  ;;  %734 = vmatprep.subr.bf16.mxu0 %v778_v17 }
 0x158   :  { %v451_v40 = vrot.slane %v439_v36, 7 }
 0x15a   :  { %712 = vmatpush3.bf16.msra.mxu1 %v711_v21  ;;  %736 = vmatpush3.bf16.msra.mxu0 %v735_v22  ;;  %v452_v42 = vsel %vm111_vm2, %v451_v40, %v438_v38 }
 0x15b   :  { %713 = vmatprep.subr.bf16.mxu1 %v778_v17  ;;  %737 = vmatprep.subr.bf16.mxu0 %v778_v17 }
 0x15e   :  { %715 = vmatpush3.bf16.msra.mxu1 %v714_v33  ;;  %739 = vmatpush3.bf16.msra.mxu0 %v738_v34 }
 0x161   :  { %652 = vmatmul.mubr.msk.f32.vlgmr.msra.gmra.mrb[0].mxu1 %vm113_vm3, %v230_v41  ;;  %690 = vmatmul.mubr.msk.f32.vlgmr.msra.gmra.mrb[0].mxu0 %vm113_vm3, %v452_v42 }
 0x234   :  { %v299_v44 = vpop.f32.mrb[0].mxu1  ;;  %v521_v17 = vpop.f32.mrb[0].mxu0 }
 0x235   :  { %v740_v45 = vadd.f32 %v546_v43, %v299_v44  ;;  %v653_v46 = vpop.f32.mrb[1].mxu1  ;;  %v691_v47 = vpop.f32.mrb[1].mxu0 }
 0x237   :  { %v741_v48 = vadd.f32 %v740_v45, %v521_v17 }
 0x239   :  { %527 = vst.msk [vmem:[#allocation2] sm:$0x3] %vm526_vm4, %v741_v48 }
 0x23a   :  { %765 = shalt.err (!%p762_p4)
}
 0x23b   :  { %s766_s14 = scalar_lea.hbm %s1030_s7, 32 }
 0x23c   :  { %p767_p5 = scmp.ne.s32.totalorder %s1030_s7, %s766_s14  ;;  %p770_p6 = scmp.lt.u32.totalorder %s766_s14, %s1030_s7 }
 0x23e   :  { %p772_p7 = pnand %p770_p6, %p767_p5 }
 0x240   :  { %775 = shalt.err (!%p772_p7)
}
 0x241   :  { %537 = dma.vmem_to_hbm [thread:$0]  %s535_s11, 32, %s1030_s7, [#allocation3]  }
 0x242   :  { %776 = dma.done.wait [#allocation3], 32  }
 0x243   :  { %777 = vsyncadd [#allocation3], 4294967264 }
 0x244   :  { %541 = vsyncpa [#allocation3], 1 }

// kernel: selfvit_forward.21
= control target key start
LH: loop header
LB: loop body
LE: loop exit
PB: predicated region body
PF: predicated region fallthrough
CT: control target
= control target key end

     0   :  { %s2244_s25 = smov 0   ;;  %s2623_s0 = inlined_call_operand.vmem [shape: f32[2,4,64], index: 0, kind: input, shape index: {}]   ;;  %s2624_s1 = inlined_call_operand.vmem [shape: f32[1,64], index: 1, kind: input, shape index: {}]   ;;  %s2625_s2 = inlined_call_operand.vmem [shape: f32[1,64], index: 2, kind: input, shape index: {}]   ;;  %s2626_s3 = inlined_call_operand.vmem [shape: f32[64,192], index: 3, kind: input, shape index: {}]   ;;  %s2627_s4 = inlined_call_operand.vmem [shape: f32[64,64], index: 4, kind: input, shape index: {}]   ;;  %s2628_s5 = inlined_call_operand.vmem [shape: f32[1,64], index: 5, kind: input, shape index: {}]   ;;  %s2629_s6 = inlined_call_operand.vmem [shape: f32[4,4,4], index: 6, kind: input, shape index: {}]   ;;  %s2630_s7 = inlined_call_operand.vmem [shape: f32[1,64], index: 7, kind: input, shape index: {}]   ;;  %s2631_s8 = inlined_call_operand.vmem [shape: f32[1,64], index: 8, kind: input, shape index: {}]   ;;  %s2632_s9 = inlined_call_operand.vmem [shape: f32[64,256], index: 9, kind: input, shape index: {}]   ;;  %s2633_s10 = inlined_call_operand.vmem [shape: f32[1,256], index: 10, kind: input, shape index: {}]   ;;  %s2634_s11 = inlined_call_operand.vmem [shape: f32[256,64], index: 11, kind: input, shape index: {}]   ;;  %s2635_s12 = inlined_call_operand.vmem [shape: f32[1,64], index: 12, kind: input, shape index: {}]   ;;  %s2636_s13 = inlined_call_operand.vmem [shape: f32[2,4,64], index: 13, kind: output, shape index: {}]  }
   0x1 LB: > { %s1860_s26 = sadd.s32 4294967295, %s2162_s25   ;;  %p1864_p0 = scmp.ge.s32.totalorder %s2162_s25, 1  ;;  %s2162_s25 = sphi %s2244_s25, %s23_s25  }
   0x2   : > { %p386_p1 = scmp.lt.s32.totalorder %s2162_s25, 3 }
   0x4   : > { %p387_p2 = pnand %p1864_p0, %p386_p1 }
   0x5   : > { %p428_p3 = scmp.lt.s32.totalorder (!%p387_p2), %s1860_s26, 1  ;;  %vm439_vm0 = vcmask (!%p387_p2), 519168   ;;  %v469_v7 = vld [vmem:[%s2626_s3 + $0x8] sm:$0xff] (!%p387_p2)  ;;  %v471_v8 = vld [vmem:[%s2626_s3 + $0x18] sm:$0xff] (!%p387_p2)  ;;  %v468_v10 = vld [vmem:[%s2626_s3] sm:$0xff] (!%p387_p2)  ;;  %v2164_v20 = vmov (!%p387_p2), 0.0  }
   0x6   : > { %390 = sbr.rel (%p387_p2) target bundleno = 3672 (0xe58), region = 72  ;;  %v2031_v9 = vpack.c.bf16 (!%p387_p2), %v471_v8, %v469_v7  ;;  %v470_v11 = vld [vmem:[%s2626_s3 + $0x10] sm:$0xff] (!%p387_p2)  ;;  %v473_v13 = vld [vmem:[%s2626_s3 + $0x28] sm:$0xff] (!%p387_p2)  ;;  %v475_v14 = vld [vmem:[%s2626_s3 + $0x38] sm:$0xff] (!%p387_p2)  ;;  %552 = vmatprep.mubr.f32.mxu0 (!%p387_p2), %v2164_v20  ;;  %vm484_vm1 = vcmask (!%p387_p2), 523264   ;;  %vm2165_vm2 = vmmov (!%p387_p2), 0  }
   0x7   : > { %v2033_v12 = vpack.c.bf16 (!%p387_p2), %v470_v11, %v468_v10  ;;  %v472_v15 = vld [vmem:[%s2626_s3 + $0x20] sm:$0xff] (!%p387_p2)  ;;  %v2035_v16 = vpack.c.bf16 (!%p387_p2), %v475_v14, %v473_v13  ;;  %v474_v17 = vld [vmem:[%s2626_s3 + $0x30] sm:$0xff] (!%p387_p2)  ;;  %v477_v18 = vld [vmem:[%s2626_s3 + $0x48] sm:$0xff] (!%p387_p2)  ;;  %1977 = vmatprep.mubr.msk.f32.mxu1 (!%p387_p2), %vm2165_vm2, %v2164_v20  ;;  %s2166_s22 = smov (!%p387_p2), 64   ;;  %vm580_vm3 = vcmask (!%p387_p2), 130048   ;;  %vm672_vm4 = vcmask (!%p387_p2), 1043456  }
   0x8   : > { %2032 = vmatprep.subr.bf16.mxu0 (!%p387_p2), %v2031_v9  ;;  %v479_v19 = vld [vmem:[%s2626_s3 + $0x58] sm:$0xff] (!%p387_p2)  ;;  %v2037_v21 = vpack.c.bf16 (!%p387_p2), %v474_v17, %v472_v15  ;;  %v476_v23 = vld [vmem:[%s2626_s3 + $0x40] sm:$0xff] (!%p387_p2)  ;;  %v478_v24 = vld [vmem:[%s2626_s3 + $0x50] sm:$0xff] (!%p387_p2)  ;;  %vm656_vm5 = vcmask (!%p387_p2), 27648   ;;  %s2167_s28 = smov (!%p387_p2), 112   ;;  %s2168_s29 = smov (!%p387_p2), 32  }
   0x9   : > { %2034 = vmatpush1.bf16.msra.mxu0 (!%p387_p2), %v2033_v12  ;;  %v2039_v22 = vpack.c.bf16 (!%p387_p2), %v479_v19, %v477_v18  ;;  %v481_v25 = vld [vmem:[%s2626_s3 + $0x68] sm:$0xff] (!%p387_p2)  ;;  %v483_v26 = vld [vmem:[%s2626_s3 + $0x78] sm:$0xff] (!%p387_p2)  ;;  %v2041_v27 = vpack.c.bf16 (!%p387_p2), %v478_v24, %v476_v23  ;;  %v480_v29 = vld [vmem:[%s2626_s3 + $0x60] sm:$0xff] (!%p387_p2)  ;;  %v2170_v57 = vmov (!%p387_p2), 0.0|0.0   ;;  %vm668_vm6 = vcmask (!%p387_p2), 31744   ;;  %s2171_s20 = smov (!%p387_p2), 16  }
   0xa   : > { %2036 = vmatprep.subr.bf16.mxu0 (!%p387_p2), %v2035_v16  ;;  %v2043_v28 = vpack.c.bf16 (!%p387_p2), %v483_v26, %v481_v25  ;;  %v482_v30 = vld [vmem:[%s2626_s3 + $0x70] sm:$0xff] (!%p387_p2)  ;;  %v1867_v36 = vld [vmem:[%s2624_s1] ss:$0 sm:$0xff] (!%p387_p2)  ;;  %v560_v56 = vld [vmem:[%s2627_s4 + $0x8] sm:$0xff] (!%p387_p2)  ;;  %2047 = vmatprep.subr.bf16.mxu1 (!%p387_p2), %v2170_v57  ;;  %s2172_s21 = smov (!%p387_p2), 96  }
   0xb   : > { %v2045_v31 = vpack.c.bf16 (!%p387_p2), %v482_v30, %v480_v29  ;;  %v1868_v38 = vld [vmem:[%s2625_s2] ss:$0 sm:$0xff] (!%p387_p2)  ;;  %v561_v14 = vld [vmem:[%s2627_s4 + $0x10] sm:$0xff] (!%p387_p2)  ;;  %v562_v15 = vld [vmem:[%s2627_s4 + $0x18] sm:$0xff] (!%p387_p2) }
   0xc   : > { %v576_v45 = vld [vmem:[%s2629_s6] sm:$0xf] (!%p387_p2)  ;;  %v2051_v16 = vpack.c.bf16 (!%p387_p2), %v562_v15, %v561_v14  ;;  %v1577_v15 = vld [vmem:[%s2632_s9 + $0x10] sm:$0xff] (!%p387_p2) }
   0xd   : > { %s2638_s26 = smov (!%p428_p3, %s1860_s26), 1  ;;  %2038 = vmatpush1.bf16.msra.mxu0 %v2037_v21  ;;  %v559_v55 = vld [vmem:[%s2627_s4] sm:$0xff] }
   0xe   : > { %s1865_s27 = sshll.u32 %s2638_s26, 2  ;;  %2040 = vmatprep.subr.bf16.mxu0 %v2039_v22  ;;  %v2048_v58 = vpack.c.bf16 %v560_v56, %v559_v55  ;;  %v1575_v14 = vld [vmem:[%s2632_s9] sm:$0xff] }
   0xf   : > { %s431_s30 = scalar_lea.vmem %s2623_s0, %s1865_s27 }
  0x10   : > { %v2260_v0 = vld [vmem:[%s431_s30] sm:$0xf]  ;;  %s2169_s30 = smov 48   ;;  %2049 = vmatpush3.bf16.msra.mxu1 %v2048_v58 }
  0x11   : > { %v440_v1 = vsel %vm439_vm0, %v2260_v0, 0.0  ;;  %2042 = vmatpush1.bf16.msra.mxu0 %v2041_v27  ;;  %1980 = vmatprep.subr.mxu1 %v2164_v20  ;;  %v1882_v27 = vld [vmem:[%s2629_s6 + $0x8] sm:$0xf] }
  0x12   : > { %441 = vadd.xlane.f32.xlu0 %v440_v1  ;;  %2044 = vmatprep.subr.bf16.mxu0 %v2043_v28 }
  0x15   : > { %2046 = vmatpush1.bf16.msra.mxu0 %v2045_v31  ;;  %v1888_v31 = vld [vmem:[%s2629_s6 + $0xc] sm:$0xf] }
  0x16   : > { %1963 = vmatprep.subr.mxu0 %v2164_v20 }
  0x9f   : > { %v442_v2 = vpop.xlane.xlu0 %441 }
  0xa0   : > { %v444_v3 = vmul.f32 0.015625, %v442_v2 }
  0xa2   : > { %v445_v4 = vsub.f32 %v2260_v0, %v444_v3 }
  0xa4   : > { %v446_v5 = vmul.f32 %v445_v4, %v445_v4 }
  0xa6   : > { %v447_v6 = vsel %vm439_vm0, %v446_v5, 0.0 }
  0xa7   : > { %448 = vadd.xlane.f32.xlu0 %v447_v6 }
 0x134   : > { %v449_v32 = vpop.xlane.xlu0 %448 }
 0x135   : > { %v450_v33 = vmul.f32 0.015625, %v449_v32 }
 0x137   : > { %v451_v34 = vadd.f32 1e-05, %v450_v33 }
 0x139   : > { %2132 = vrsqrt.f32 %v451_v34 }
 0x143   : > { %v2133_v35 = vpop.eup %2132 }
 0x144   : > { %v453_v37 = vmul.f32 %v2133_v35, %v445_v4  ;;  %v1876_v4 = vld [vmem:[%s2629_s6 + $0x4] sm:$0xf] }
 0x146   : > { %v460_v39 = vmul.f32 %v1867_v36, %v453_v37 }
 0x148   : > { %v467_v40 = vadd.f32 %v1868_v38, %v460_v39 }
 0x14a   : > { %1869 = vmatmul.mubr.msk.f32.vlgmr.msra.gmra.mrb[0].mxu0 %vm484_vm1, %v467_v40 }
 0x14b   : > { %1965 = vmatprep.mubr.msk.f32.mxu0 %vm2165_vm2, %v2164_v20 }
 0x21d   : > { %v2327_v41 = vpop.f32.mrb[0].mxu0 }
 0x21e   : > { %578 = vrot.lane.b32.xlu1 %v2327_v41, %s2166_s22  ;;  %v2330_v42 = vpop.f32.mrb[1].mxu0  ;;  %v2334_v44 = vmul.f32 0.25, %v2327_v41  ;;  %s2173_s22 = smov 80  }
 0x290   : > { %v579_v43 = vpop.permute.xlu1 %578 }
 0x291   : > { %1964 = vmatpush3.xpose.msk.msra.mxu0 %vm580_vm3, %v579_v43 }
 0x292   : > { %1968 = vmatprep.subr.mxu0 %v2164_v20 }
 0x294   : > { %1966 = vmatmul.mubr.msk.f32.vlgmr.msra.gmra.mrb[2].mxu0 %vm580_vm3, %v2334_v44 }
 0x295   : > { %1969 = vmatpush3.msk.msra.mxu0 %vm672_vm4, %v2330_v42  ;;  %1970 = vmatprep.mubr.msk.f32.mxu0 %vm2165_vm2, %v2164_v20 }
 0x296   : > { %1985 = vmatprep.subr.mxu0 %v2164_v20 }
 0x367   : > { %v652_v46 = vpop.f32.mrb[2].mxu0 }
 0x368   : > { %v653_v47 = vadd.f32 %v652_v46, %v576_v45  ;;  %v1967_v48 = vpop.f32.mrb[3].mxu0 }
 0x36a   : > { %v657_v49 = vsel %vm656_vm5, %v653_v47, -inf }
 0x36b   : > { %658 = vmax.xlane.f32.xlu1 %v657_v49 }
 0x37c   : > { %911 = vrot.lane.b32.xlu1 %v2330_v42, %s2167_s28 }
 0x380   : > { %1066 = vrot.lane.b32.xlu1 %v2327_v41, %s2168_s29 }
 0x3f8   : > { %v659_v50 = vpop.xlane.xlu1 %658 }
 0x3f9   : > { %v660_v51 = vsub.f32 %v653_v47, %v659_v50 }
 0x3fb   : > { %v661_v52 = vmul.f32 1.442695, %v660_v51 }
 0x3fc   : > { %v912_v62 = vpop.permute.xlu1 %911 }
 0x3fd   : > { %2134 = vpow2.f32 %v661_v52  ;;  %v563_v52 = vld [vmem:[%s2627_s4 + $0x20] sm:$0xff] }
 0x400   : > { %v1067_v17 = vpop.permute.xlu1 %1066 }
 0x407   : > { %v2135_v53 = vpop.eup %2134 }
 0x408   : > { %v663_v54 = vsel %vm656_vm5, %v2135_v53, 0.0 }
 0x409   : > { %664 = vadd.xlane.f32.xlu0 %v663_v54 }
 0x41f   : > { %824 = vrot.lane.b32.xlu0 %v2327_v41, %s2169_s30 }
 0x423   : > { %822 = vrot.lane.b32.xlu0 %v2334_v44, %s2167_s28 }
 0x496   : > { %v665_v59 = vpop.xlane.xlu0 %664 }
 0x497   : > { %2136 = vrcp.f32 %v665_v59  ;;  %v565_v59 = vld [vmem:[%s2627_s4 + $0x30] sm:$0xff] }
 0x49a   : > { %v825_v63 = vpop.permute.xlu0 %824 }
 0x49e   : > { %v823_v3 = vpop.permute.xlu0 %822 }
 0x4a1   : > { %v2137_v60 = vpop.eup %2136 }
 0x4a2   : > { %v667_v61 = vmul.f32 %v2137_v60, %v2135_v53  ;;  %v564_v53 = vld [vmem:[%s2627_s4 + $0x28] sm:$0xff]  ;;  %v566_v60 = vld [vmem:[%s2627_s4 + $0x38] sm:$0xff] }
 0x4a3   : > { %v2054_v55 = vpack.c.bf16 %v564_v53, %v563_v52  ;;  %v1713_v52 = vld [vmem:[%s2634_s11 + $0x90] sm:$0xff]  ;;  %v1714_v53 = vld [vmem:[%s2634_s11 + $0x98] sm:$0xff] }
 0x4a4   : > { %1971 = vmatmul.mubr.msk.f32.vlgmr.msra.gmra.mrb[4].mxu0 %vm668_vm6, %v667_v61  ;;  %v2057_v61 = vpack.c.bf16 %v566_v60, %v565_v59  ;;  %v1716_v59 = vld [vmem:[%s2634_s11 + $0xa8] sm:$0xff] }
 0x4a5   : > { %1986 = vmatpush3.msk.msra.mxu0 %vm672_vm4, %v912_v62  ;;  %1987 = vmatprep.mubr.msk.f32.mxu0 %vm2165_vm2, %v2164_v20 }
 0x4a6   : > { %1997 = vmatprep.subr.mxu0 %v2164_v20 }
 0x577   : > { %v742_v1 = vpop.f32.mrb[4].mxu0 }
 0x578   : > { %v1972_v2 = vpop.f32.mrb[5].mxu0  ;;  %1978 = vmatmul.mubr.msk.f32.vlgmr.msra.gmra.mrb[0].mxu1 %vm580_vm3, %v742_v1 }
 0x579   : > { %1981 = vmatpush3.xpose.msk.msra.mxu1 %vm580_vm3, %v825_v63  ;;  %1982 = vmatprep.mubr.msk.f32.mxu1 %vm2165_vm2, %v2164_v20  ;;  %v1870_v2 = vld [vmem:[%s2628_s5] ss:$0 sm:$0xff] }
 0x57a   : > { %2050 = vmatprep.subr.bf16.mxu1 %v2170_v57 }
 0x57c   : > { %1983 = vmatmul.mubr.msk.f32.vlgmr.msra.gmra.mrb[2].mxu1 %vm580_vm3, %v823_v3  ;;  %v574_v3 = vadd.f32 %v1870_v2, %v2260_v0  ;;  %v1576_v0 = vld [vmem:[%s2632_s9 + $0x8] sm:$0xff] }
 0x57d   : > { %1994 = vmatprep.mubr.msk.f32.mxu1 %vm2165_vm2, %v2164_v20  ;;  %2052 = vmatpush3.bf16.msra.mxu1 %v2051_v16  ;;  %v2061_v16 = vpack.c.bf16 %v1577_v15, %v1575_v14  ;;  %v1705_v14 = vld [vmem:[%s2634_s11 + $0x50] sm:$0xff]  ;;  %v1706_v15 = vld [vmem:[%s2634_s11 + $0x58] sm:$0xff] }
 0x57e   : > { %2002 = vmatprep.subr.mxu1 %v2164_v20 }
 0x64f   : > { %v896_v5 = vpop.f32.mrb[2].mxu1 }
 0x650   : > { %v897_v6 = vadd.f32 %v1876_v4, %v896_v5  ;;  %v1984_v7 = vpop.f32.mrb[3].mxu1 }
 0x652   : > { %v900_v8 = vsel %vm656_vm5, %v897_v6, -inf }
 0x653   : > { %901 = vmax.xlane.f32.xlu0 %v900_v8 }
 0x669   : > { %1308 = vrot.lane.b32.xlu0 %v2327_v41, %s2171_s20 }
 0x6e0   : > { %v902_v9 = vpop.xlane.xlu0 %901 }
 0x6e1   : > { %v903_v10 = vsub.f32 %v897_v6, %v902_v9 }
 0x6e3   : > { %v904_v11 = vmul.f32 1.442695, %v903_v10 }
 0x6e4   : > { %v1309_v23 = vpop.permute.xlu0 %1308 }
 0x6e5   : > { %2138 = vpow2.f32 %v904_v11 }
 0x6ef   : > { %v2139_v12 = vpop.eup %2138 }
 0x6f0   : > { %v906_v13 = vsel %vm656_vm5, %v2139_v12, 0.0 }
 0x6f1   : > { %907 = vadd.xlane.f32.xlu1 %v906_v13 }
 0x702   : > { %1064 = vrot.lane.b32.xlu1 %v2334_v44, %s2172_s21 }
 0x706   : > { %1306 = vrot.lane.b32.xlu1 %v2334_v44, %s2173_s22 }
 0x77e   : > { %v908_v18 = vpop.xlane.xlu1 %907 }
 0x77f   : > { %2140 = vrcp.f32 %v908_v18  ;;  %v1582_v18 = vld [vmem:[%s2632_s9 + $0x38] sm:$0xff] }
 0x782   : > { %v1065_v22 = vpop.permute.xlu1 %1064 }
 0x786   : > { %v1307_v24 = vpop.permute.xlu1 %1306 }
 0x789   : > { %v2141_v19 = vpop.eup %2140 }
 0x78a   : > { %v910_v21 = vmul.f32 %v2141_v19, %v2139_v12  ;;  %v1578_v12 = vld [vmem:[%s2632_s9 + $0x18] sm:$0xff] }
 0x78b   : > { %v2059_v13 = vpack.c.bf16 %v1578_v12, %v1576_v0  ;;  %v1722_v0 = vld [vmem:[%s2634_s11 + $0xd8] sm:$0xff] }
 0x78c   : > { %1988 = vmatmul.mubr.msk.f32.vlgmr.msra.gmra.mrb[6].mxu0 %vm668_vm6, %v910_v21  ;;  %v1579_v21 = vld [vmem:[%s2632_s9 + $0x20] sm:$0xff] }
 0x78d   : > { %1998 = vmatpush3.xpose.msk.msra.mxu0 %vm580_vm3, %v1067_v17  ;;  %1999 = vmatprep.mubr.msk.f32.mxu0 %vm2165_vm2, %v2164_v20  ;;  %v1580_v17 = vld [vmem:[%s2632_s9 + $0x28] sm:$0xff] }
 0x78e   : > { %2014 = vmatprep.subr.mxu0 %v2164_v20  ;;  %v2063_v19 = vpack.c.bf16 %v1582_v18, %v1580_v17  ;;  %v1724_v17 = vld [vmem:[%s2634_s11 + $0xe8] sm:$0xff]  ;;  %v2097_v18 = vpack.c.bf16 %v1706_v15, %v1705_v14 }
 0x790   : > { %2000 = vmatmul.mubr.msk.f32.vlgmr.msra.gmra.mrb[8].mxu0 %vm580_vm3, %v1065_v22  ;;  %v1581_v22 = vld [vmem:[%s2632_s9 + $0x30] sm:$0xff] }
 0x791   : > { %2015 = vmatpush3.xpose.msk.msra.mxu0 %vm580_vm3, %v1309_v23  ;;  %2016 = vmatprep.mubr.msk.f32.mxu0 %vm2165_vm2, %v2164_v20  ;;  %v2065_v23 = vpack.c.bf16 %v1581_v22, %v1579_v21  ;;  %v1707_v21 = vld [vmem:[%s2634_s11 + $0x60] sm:$0xff]  ;;  %v1708_v22 = vld [vmem:[%s2634_s11 + $0x68] sm:$0xff] }
 0x792   : > { %2019 = vmatprep.subr.mxu0 %v2164_v20 }
 0x794   : > { %2017 = vmatmul.mubr.msk.f32.vlgmr.msra.gmra.mrb[10].mxu0 %vm580_vm3, %v1307_v24  ;;  %v1584_v24 = vld [vmem:[%s2632_s9 + $0x48] sm:$0xff] }
 0x795   : > { %2021 = vmatprep.mubr.msk.f32.mxu0 %vm2165_vm2, %v2164_v20 }
 0x85f   : > { %v984_v25 = vpop.f32.mrb[6].mxu0 }
 0x860   : > { %v1989_v26 = vpop.f32.mrb[7].mxu0  ;;  %1995 = vmatmul.mubr.msk.f32.vlgmr.msra.gmra.mrb[0].mxu1 %vm580_vm3, %v984_v25  ;;  %v1586_v25 = vld [vmem:[%s2632_s9 + $0x58] sm:$0xff] }
 0x861   : > { %2004 = vmatprep.mubr.msk.f32.mxu1 %vm2165_vm2, %v2164_v20  ;;  %v2067_v26 = vpack.c.bf16 %v1586_v25, %v1584_v24  ;;  %v1726_v24 = vld [vmem:[%s2634_s11 + $0xf8] sm:$0xff]  ;;  %v2101_v25 = vpack.c.bf16 %v1708_v22, %v1707_v21 }
 0x863   : > { %v1138_v28 = vpop.f32.mrb[8].mxu0 }
 0x864   : > { %v1139_v29 = vadd.f32 %v1882_v27, %v1138_v28  ;;  %v2001_v30 = vpop.f32.mrb[9].mxu0  ;;  %v1583_v27 = vld [vmem:[%s2632_s9 + $0x40] sm:$0xff]  ;;  %v1585_v28 = vld [vmem:[%s2632_s9 + $0x50] sm:$0xff] }
 0x865   : > { %v1588_v30 = vld [vmem:[%s2632_s9 + $0x68] sm:$0xff] }
 0x866   : > { %v1142_v32 = vsel %vm656_vm5, %v1139_v29, -inf }
 0x867   : > { %1143 = vmax.xlane.f32.xlu1 %v1142_v32  ;;  %v1380_v33 = vpop.f32.mrb[10].mxu0 }
 0x868   : > { %v1381_v34 = vadd.f32 %v1888_v31, %v1380_v33  ;;  %v2018_v35 = vpop.f32.mrb[11].mxu0  ;;  %v1590_v31 = vld [vmem:[%s2632_s9 + $0x78] sm:$0xff]  ;;  %v1587_v33 = vld [vmem:[%s2632_s9 + $0x60] sm:$0xff] }
 0x869   : > { %v2071_v32 = vpack.c.bf16 %v1590_v31, %v1588_v30  ;;  %v1593_v30 = vlaneseq }
 0x86a   : > { %v1384_v36 = vsel %vm656_vm5, %v1381_v34, -inf }
 0x86b   : > { %1385 = vmax.xlane.f32.xlu0 %v1384_v36  ;;  %v1711_v36 = vld [vmem:[%s2634_s11 + $0x80] sm:$0xff]  ;;  %v1594_v31 = vshrl.u32 %v1593_v30, 7 }
 0x881   : > { %1395 = vrot.lane.b32.xlu0 %v2330_v42, %s2173_s22 }
 0x8f4   : > { %v1144_v37 = vpop.xlane.xlu1 %1143 }
 0x8f5   : > { %v1145_v38 = vsub.f32 %v1139_v29, %v1144_v37  ;;  %v2069_v29 = vpack.c.bf16 %v1585_v28, %v1583_v27  ;;  %v1712_v37 = vld [vmem:[%s2634_s11 + $0x88] sm:$0xff]  ;;  %v1709_v27 = vld [vmem:[%s2634_s11 + $0x70] sm:$0xff]  ;;  %v1710_v28 = vld [vmem:[%s2634_s11 + $0x78] sm:$0xff] }
 0x8f7   : > { %v1146_v39 = vmul.f32 1.442695, %v1145_v38  ;;  %v1695_v38 = vld [vmem:[%s2634_s11] sm:$0xff] }
 0x8f8   : > { %v1386_v40 = vpop.xlane.xlu0 %1385 }
 0x8f9   : > { %2142 = vpow2.f32 %v1146_v39  ;;  %v1387_v41 = vsub.f32 %v1381_v34, %v1386_v40  ;;  %v1589_v34 = vld [vmem:[%s2632_s9 + $0x70] sm:$0xff]  ;;  %v2075_v39 = vpack.c.bf16 %v1712_v37, %v1711_v36  ;;  %v1696_v40 = vld [vmem:[%s2634_s11 + $0x8] sm:$0xff] }
 0x8fa   : > { %v2073_v35 = vpack.c.bf16 %v1589_v34, %v1587_v33  ;;  %v1591_v33 = vld [vmem:[%s2633_s10] sm:$0x3]  ;;  %v1599_v34 = vsub.s32 1, %v1594_v31 }
 0x8fb   : > { %v1388_v43 = vmul.f32 1.442695, %v1387_v41  ;;  %v2077_v41 = vpack.c.bf16 %v1696_v40, %v1695_v38 }
 0x8fc   : > { %v1396_v44 = vpop.permute.xlu0 %1395  ;;  %v1600_v36 = vrot.slane %v1591_v33, %v1599_v34 }
 0x8fd   : > { %2144 = vpow2.f32 %v1388_v43  ;;  %2020 = vmatpush3.msk.msra.mxu0 %vm672_vm4, %v1396_v44 }
 0x8fe   : > { %2060 = vmatprep.subr.bf16.mxu0 %v2059_v13 }
 0x903   : > { %v2143_v45 = vpop.eup %2142 }
 0x904   : > { %v1148_v46 = vsel %vm656_vm5, %v2143_v45, 0.0 }
 0x905   : > { %1149 = vadd.xlane.f32.xlu1 %v1148_v46 }
 0x907   : > { %v2145_v47 = vpop.eup %2144 }
 0x908   : > { %v1390_v48 = vsel %vm656_vm5, %v2145_v47, 0.0 }
 0x909   : > { %1391 = vadd.xlane.f32.xlu1 %v1390_v48 }
 0x91a   : > { %1153 = vrot.lane.b32.xlu1 %v2330_v42, %s2172_s21  ;;  %s435_s21 = scalar_lea.vmem %s2636_s13, %s1865_s27 }
 0x992   : > { %v1150_v49 = vpop.xlane.xlu1 %1149 }
 0x993   : > { %2146 = vrcp.f32 %v1150_v49  ;;  %v1895_v49 = vld [vmem:[%s2631_s8] ss:$0 sm:$0xff] }
 0x996   : > { %v1392_v50 = vpop.xlane.xlu1 %1391 }
 0x997   : > { %2148 = vrcp.f32 %v1392_v50 }
 0x99a   : > { %v1154_v51 = vpop.permute.xlu1 %1153 }
 0x99b   : > { %2003 = vmatpush3.msk.msra.mxu1 %vm672_vm4, %v1154_v51 }
 0x99c   : > { %2053 = vmatprep.subr.bf16.mxu1 %v2170_v57 }
 0x99d   : > { %v2147_v54 = vpop.eup %2146 }
 0x99e   : > { %v1152_v42 = vmul.f32 %v2147_v54, %v2143_v45  ;;  %v2079_v54 = vpack.c.bf16 %v1714_v53, %v1713_v52 }
 0x9a0   : > { %2005 = vmatmul.mubr.msk.f32.vlgmr.msra.gmra.mrb[4].mxu1 %vm668_vm6, %v1152_v42  ;;  %v1698_v42 = vld [vmem:[%s2634_s11 + $0x18] sm:$0xff] }
 0x9a1   : > { %v2149_v56 = vpop.eup %2148  ;;  %2055 = vmatpush3.bf16.msra.mxu1 %v2054_v55  ;;  %2011 = vmatprep.mubr.msk.f32.mxu1 %vm2165_vm2, %v2164_v20  ;;  %v1697_v55 = vld [vmem:[%s2634_s11 + $0x10] sm:$0xff] }
 0x9a2   : > { %v1394_v58 = vmul.f32 %v2149_v56, %v2145_v47  ;;  %2056 = vmatprep.subr.bf16.mxu1 %v2170_v57  ;;  %v1894_v47 = vld [vmem:[%s2630_s7] ss:$0 sm:$0xff]  ;;  %v2081_v56 = vpack.c.bf16 %v1698_v42, %v1697_v55 }
 0x9a4   : > { %2022 = vmatmul.mubr.msk.f32.vlgmr.msra.gmra.mrb[12].mxu0 %vm668_vm6, %v1394_v58  ;;  %v1715_v58 = vld [vmem:[%s2634_s11 + $0xa0] sm:$0xff] }
 0x9a5   : > { %1670 = vmatprep.mubr.f32.mxu0 %v2164_v20  ;;  %2062 = vmatpush1.bf16.msra.mxu0 %v2061_v16  ;;  %v2083_v60 = vpack.c.bf16 %v1716_v59, %v1715_v58  ;;  %v1723_v16 = vld [vmem:[%s2634_s11 + $0xe0] sm:$0xff] }
 0x9a6   : > { %2064 = vmatprep.subr.bf16.mxu0 %v2063_v19  ;;  %v2099_v19 = vpack.c.bf16 %v1724_v17, %v1723_v16 }
 0x9a9   : > { %2066 = vmatpush1.bf16.msra.mxu0 %v2065_v23  ;;  %v1725_v23 = vld [vmem:[%s2634_s11 + $0xf0] sm:$0xff] }
 0x9aa   : > { %2068 = vmatprep.subr.bf16.mxu0 %v2067_v26  ;;  %v2103_v26 = vpack.c.bf16 %v1726_v24, %v1725_v23 }
 0x9ad   : > { %2070 = vmatpush1.bf16.msra.mxu0 %v2069_v29  ;;  %v2105_v29 = vpack.c.bf16 %v1710_v28, %v1709_v27 }
 0x9ae   : > { %2072 = vmatprep.subr.bf16.mxu0 %v2071_v32  ;;  %v1595_v32 = vsub.s32 0, %v1594_v31 }
 0x9b1   : > { %2074 = vmatpush1.bf16.msra.mxu0 %v2073_v35  ;;  %v1596_v35 = vrot.slane %v1591_v33, %v1595_v32 }
 0xa73   : > { %v1226_v62 = vpop.f32.mrb[4].mxu1 }
 0xa74   : > { %v2006_v63 = vpop.f32.mrb[5].mxu1  ;;  %2012 = vmatmul.mubr.msk.f32.vlgmr.msra.gmra.mrb[0].mxu1 %vm580_vm3, %v1226_v62  ;;  %v1700_v62 = vld [vmem:[%s2634_s11 + $0x28] sm:$0xff] }
 0xa75   : > { %2058 = vmatpush3.bf16.msra.mxu1 %v2057_v61  ;;  %2028 = vmatprep.mubr.msk.f32.mxu1 %vm2165_vm2, %v2164_v20  ;;  %v1699_v61 = vld [vmem:[%s2634_s11 + $0x20] sm:$0xff] }
 0xa76   : > { %2076 = vmatprep.subr.bf16.mxu1 %v2075_v39  ;;  %v2085_v63 = vpack.c.bf16 %v1700_v62, %v1699_v61 }
 0xa77   : > { %v1468_v57 = vpop.f32.mrb[12].mxu0 }
 0xa78   : > { %v2023_v1 = vpop.f32.mrb[13].mxu0 }
 0xa79   : > { %v1718_v1 = vld [vmem:[%s2634_s11 + $0xb8] sm:$0xff] }
 0xa7c   : > { %2029 = vmatmul.mubr.msk.f32.vlgmr.msra.gmra.mrb[0].mxu1 %vm580_vm3, %v1468_v57  ;;  %v1717_v57 = vld [vmem:[%s2634_s11 + $0xb0] sm:$0xff] }
 0xa7d   : > { %2078 = vmatpush3.bf16.msra.mxu1 %v2077_v41  ;;  %v2087_v2 = vpack.c.bf16 %v1718_v1, %v1717_v57 }
 0xa7e   : > { %2080 = vmatprep.subr.bf16.mxu1 %v2079_v54 }
 0xa81   : > { %2082 = vmatpush3.bf16.msra.mxu1 %v2081_v56 }
 0xa82   : > { %2084 = vmatprep.subr.bf16.mxu1 %v2083_v60 }
 0xa85   : > { %2086 = vmatpush3.bf16.msra.mxu1 %v2085_v63  ;;  %v1897_v63 = vld [vmem:[%s2635_s12] ss:$0 sm:$0xff] }
 0xa86   : > { %2088 = vmatprep.subr.bf16.mxu1 %v2087_v2 }
 0xb4f   : > { %v1541_v4 = vpop.f32.mrb[0].mxu1 }
 0xb50   : > { %v2450_v5 = vadd.f32 %v1541_v4, %v574_v3  ;;  %v2030_v6 = vpop.f32.mrb[1].mxu1  ;;  %v1701_v3 = vld [vmem:[%s2634_s11 + $0x30] sm:$0xff]  ;;  %v1702_v4 = vld [vmem:[%s2634_s11 + $0x38] sm:$0xff] }
 0xb51   : > { %v1719_v6 = vld [vmem:[%s2634_s11 + $0xc0] sm:$0xff] }
 0xb52   : > { %v1548_v7 = vsel %vm439_vm0, %v2450_v5, 0.0 }
 0xb53   : > { %1549 = vadd.xlane.f32.xlu1 %v1548_v7  ;;  %v2089_v7 = vpack.c.bf16 %v1702_v4, %v1701_v3 }
 0xb55   : > { %2090 = vmatpush3.bf16.msra.mxu1 %v2089_v7 }
 0xbe0   : > { %v1550_v8 = vpop.xlane.xlu1 %1549 }
 0xbe1   : > { %v1551_v20 = vmul.f32 0.015625, %v1550_v8  ;;  %v1720_v8 = vld [vmem:[%s2634_s11 + $0xc8] sm:$0xff] }
 0xbe3   : > { %v1552_v9 = vsub.f32 %v2450_v5, %v1551_v20  ;;  %v1703_v20 = vld [vmem:[%s2634_s11 + $0x40] sm:$0xff] }
 0xbe5   : > { %v1553_v10 = vmul.f32 %v1552_v9, %v1552_v9 }
 0xbe7   : > { %v1554_v11 = vsel %vm439_vm0, %v1553_v10, 0.0  ;;  %v2091_v10 = vpack.c.bf16 %v1720_v8, %v1719_v6 }
 0xbe8   : > { %1555 = vadd.xlane.f32.xlu0 %v1554_v11  ;;  %v1721_v11 = vld [vmem:[%s2634_s11 + $0xd0] sm:$0xff] }
 0xbe9   : > { %2092 = vmatprep.subr.bf16.mxu1 %v2091_v10  ;;  %v2095_v13 = vpack.c.bf16 %v1722_v0, %v1721_v11 }
 0xc75   : > { %v1556_v43 = vpop.xlane.xlu0 %1555 }
 0xc76   : > { %v1557_v44 = vmul.f32 0.015625, %v1556_v43 }
 0xc78   : > { %v1558_v45 = vadd.f32 1e-05, %v1557_v44 }
 0xc7a   : > { %2150 = vrsqrt.f32 %v1558_v45 }
 0xc84   : > { %v2151_v46 = vpop.eup %2150 }
 0xc85   : > { %v1560_v48 = vmul.f32 %v2151_v46, %v1552_v9  ;;  %v1704_v9 = vld [vmem:[%s2634_s11 + $0x48] sm:$0xff] }
 0xc86   : > { %v2093_v12 = vpack.c.bf16 %v1704_v9, %v1703_v20 }
 0xc87   : > { %v1567_v50 = vmul.f32 %v1894_v47, %v1560_v48 }
 0xc88   : > { %2094 = vmatpush3.bf16.msra.mxu1 %v2093_v12 }
 0xc89   : > { %v1574_v51 = vadd.f32 %v1895_v49, %v1567_v50  ;;  %2096 = vmatprep.subr.bf16.mxu1 %v2095_v13 }
 0xc8b   : > { %1896 = vmatmul.mubr.msk.f32.vlgmr.msra.gmra.mrb[14].mxu0 %vm484_vm1, %v1574_v51 }
 0xc8c   : > { %2098 = vmatpush3.bf16.msra.mxu1 %v2097_v18 }
 0xc8d   : > { %2100 = vmatprep.subr.bf16.mxu1 %v2099_v19 }
 0xc90   : > { %2102 = vmatpush3.bf16.msra.mxu1 %v2101_v25 }
 0xc91   : > { %2104 = vmatprep.subr.bf16.mxu1 %v2103_v26 }
 0xc94   : > { %2106 = vmatpush3.bf16.msra.mxu1 %v2105_v29 }
 0xd5e   : > { %v1672_v37 = vpop.f32.mrb[14].mxu0 }
 0xd5f   : > { %v1673_v38 = vadd.f32 %v1672_v37, %v1596_v35  ;;  %v1674_v39 = vpop.f32.mrb[15].mxu0 }
 0xd60   : > { %v1675_v40 = vadd.f32 %v1674_v39, %v1600_v36 }
 0xd61   : > { %v1679_v41 = vmul.f32 0.044715, %v1673_v38  ;;  %v1677_v56 = vmul.f32 0.5, %v1673_v38 }
 0xd62   : > { %v1680_v43 = vmul.f32 0.044715, %v1675_v40  ;;  %v1678_v55 = vmul.f32 0.5, %v1675_v40 }
 0xd63   : > { %v1681_v44 = vmul.f32 %v1679_v41, %v1673_v38 }
 0xd64   : > { %v1682_v45 = vmul.f32 %v1680_v43, %v1675_v40 }
 0xd65   : > { %v1683_v46 = vmul.f32 %v1681_v44, %v1673_v38 }
 0xd66   : > { %v1684_v47 = vmul.f32 %v1682_v45, %v1675_v40 }
 0xd67   : > { %v1685_v48 = vadd.f32 %v1683_v46, %v1673_v38 }
 0xd68   : > { %v1686_v49 = vadd.f32 %v1684_v47, %v1675_v40 }
 0xd69   : > { %v1687_v50 = vmul.f32 0.7978846, %v1685_v48 }
 0xd6a   : > { %v1688_v51 = vmul.f32 0.7978846, %v1686_v49 }
 0xd6b   : > { %2152 = vtanh.f32 %v1687_v50 }
 0xd6c   : > { %2154 = vtanh.f32 %v1688_v51 }
 0xd75   : > { %v2153_v52 = vpop.eup %2152 }
 0xd76   : > { %v2155_v53 = vpop.eup %2154  ;;  %v1691_v54 = vadd.f32 1.0, %v2153_v52 }
 0xd77   : > { %v1692_v42 = vadd.f32 1.0, %v2155_v53 }
 0xd78   : > { %v1693_v59 = vmul.f32 %v1691_v54, %v1677_v56 }
 0xd79   : > { %v1694_v58 = vmul.f32 %v1692_v42, %v1678_v55 }
 0xd7b   : > { %1791 = vmatprep.mubr.f32.mxu1 %v1694_v58 }
 0xd7c   : > { %1792 = vmatmul.mubr.f32.vlgmr.msra.gmra.mrb[6].mxu1 %v1693_v59 }
 0xe4f   : > { %v1960_v60 = vpop.f32.mrb[6].mxu1 }
 0xe50   : > { %v1961_v61 = vpop.f32.mrb[7].mxu1 }
 0xe51   : > { %v1962_v62 = vadd.f32 %v1961_v61, %v1960_v60 }
 0xe53   : > { %v1797_v57 = vadd.f32 %v2450_v5, %v1962_v62 }
 0xe55   : > { %v1805_v1 = vadd.f32 %v1897_v63, %v1797_v57 }
 0xe57   : > { %1806 = vst.msk [vmem:[%s435_s21] sm:$0xf] %vm439_vm0, %v1805_v1 }
 0xe58 PF: > { %s23_s25 = sadd.s32 1, %s2162_s25  }
 0xe59   : > { %p20_p4 = scmp.ge.s32.totalorder %s23_s25, 4  }
 0xe5b   :  { %22 = sbr.rel (!%p20_p4) target bundleno = 1 (0x1), region = 105 }

</bundles_post_ra>
